<compile_context>
chip_gen: v7x
topology: tpu7x:2x2x1
jax: 0.10.0
libtpu: 0.0.40
codegen_flags: <defaults>
</compile_context>

<pallas_src>
from collections import defaultdict

import numpy as np
import jax
import jax.numpy as jnp
from jax.experimental import pallas as pl
from jax.experimental.pallas import tpu as pltpu

# ----------------------------- model constants ------------------------------
NUM_NODES = 100
NUM_EDGES = 500
IN_FEATURES = 64
HIDDEN_FEATURES = 128      # SMANLayer out_features
OUT_FEATURES = 10
HIDDEN_SIZE = 128
NUM_LAYERS = 3

# TPU-friendly padded sizes (padded rows/cols are zero in all selection /
# incidence matrices, so they never contaminate real outputs)
N_PAD = 128      # nodes
E_PAD = 512      # edges
F_PAD = 128      # input feature dim (layer-0 weights zero-padded to match)
OUT_PAD = 128    # output features padded for lane-dense stores


def _full_block(shape):
    ndim = len(shape)
    return pl.BlockSpec(shape, lambda i, _n=ndim: (0,) * _n)


# ------------------------------ fused kernel ---------------------------------
def _fused_gnn_kernel(feat_ref, emask_ref, s_ref, a_ref, invdeg_ref, m_ref,
                      wne_ref, we_ref, bne_ref,
                      wee_ref, bee_ref, wen_ref, ben_ref,
                      wout_ref, bout_ref, out_ref, pcat_ref):
    f32, bf16 = jnp.float32, jnp.bfloat16
    H = HIDDEN_SIZE

    def mxu(a, b):
        # bf16 MXU inputs, f32 accumulation
        return jnp.dot(a, b, preferred_element_type=f32)

    X = feat_ref[...]                  # [N_PAD, F_PAD]      bf16
    edge_attr = emask_ref[...]         # [E_PAD, 1]          f32 (1.0 on real edges)
    S = s_ref[...]                     # [E_PAD, 2*N_PAD]    bf16 [S_src | S_dst]
    A = a_ref[...]                     # [E_PAD, E_PAD]      bf16 edge-to-edge counts
    inv_deg = invdeg_ref[...]          # [E_PAD, 1]          f32 exact 1/rowsum
    M = m_ref[...]                     # [N_PAD, E_PAD]      bf16 node<-edge incidence

    for l in range(NUM_LAYERS):        # unrolled at trace time (3 layers)
        # ---- NodeToEdgeAggregation: project-then-gather ---------------------
        # TODO(synk): NodeToEdgeAggregation is undefined in the reference
        # source; stand-in is a linear layer on [x_src, x_dst, edge_attr].
        P = mxu(X, wne_ref[l])                               # [N_PAD, 2H] f32
        pcat_ref[:N_PAD, :] = P[:, :H].astype(bf16)          # src-projected half
        pcat_ref[N_PAD:, :] = P[:, H:].astype(bf16)          # dst-projected half
        e1 = (mxu(S, pcat_ref[...])                          # one K=256 gather matmul
              + edge_attr * we_ref[l]                        # edge_attr scalar column
              + bne_ref[l])
        E1 = jnp.maximum(e1, 0.0).astype(bf16)               # [E, H] bf16

        # ---- EdgeToEdgeAggregation (stand-in: normalized adjacency mean) ----
        # TODO(synk): EdgeToEdgeAggregation (multi-head attention) is undefined
        # in the reference; implemented as row-normalized edge-adjacency mean.
        agg = (mxu(A, E1) * inv_deg).astype(bf16)            # [E, H] bf16
        e2 = jnp.maximum(mxu(agg, wee_ref[l]) + bee_ref[l], 0.0)   # f32
        E2 = e2.astype(bf16)
        # fused row-mean  (= .view(E, -1).mean(dim=1, keepdim=True)), exact f32
        edge_attr = jnp.mean(e2, axis=1, keepdims=True)      # [E, 1] f32

        # ---- EdgeToNodeAggregation + scatter_add over node_to_node_index ----
        # TODO(synk): EdgeToNodeAggregation is undefined in the reference; the
        # scatter_add(dst=cat([src, dst])) is expressed as an incidence matmul.
        Msg = jnp.maximum(mxu(E2, wen_ref[l]) + ben_ref[l], 0.0).astype(bf16)
        X = mxu(M, Msg).astype(bf16)                         # [N, H] bf16

    # SMANLayer ReLU fused with the output Linear; lane-dense 128-wide store.
    # TODO(synk): the reference's global_mean_pool -> fc(128->1) -> ReLU ->
    # F.linear(fc.weight) tail is shape-inconsistent (cannot execute in
    # PyTorch); we keep per-node features instead.
    Xr = jnp.maximum(X, 0.0)
    out_ref[...] = mxu(Xr, wout_ref[...]) + bout_ref[...]    # [N_PAD, OUT_PAD] f32


def fused_forward(feat_pad, edge_mask, S, A, inv_deg, M_inc, params):
    args = (feat_pad, edge_mask, S, A, inv_deg, M_inc,
            params["W_ne"], params["w_e"], params["b_ne"],
            params["W_ee"], params["b_ee"], params["W_en"], params["b_en"],
            params["W_out"], params["b_out"])
    in_specs = [_full_block(a.shape) for a in args]
    return pl.pallas_call(
        _fused_gnn_kernel,
        out_shape=jax.ShapeDtypeStruct((N_PAD, OUT_PAD), jnp.float32),
        grid=(1,),
        in_specs=in_specs,
        out_specs=pl.BlockSpec((N_PAD, OUT_PAD), lambda i: (0, 0)),
        scratch_shapes=[pltpu.VMEM((2 * N_PAD, HIDDEN_SIZE), jnp.bfloat16)],
        compiler_params=pltpu.CompilerParams(
            dimension_semantics=("arbitrary",)),
    )(*args)


# ------------------------------ setup / params --------------------------------
def build_graph_structures(src, dst):
    """Host-side replication of SMANLayer's python graph preprocessing."""
    # S_cat = [S_src | S_dst]  ([E_PAD, 2*N_PAD]) for the project-then-gather form
    S = np.zeros((E_PAD, 2 * N_PAD), np.float32)
    M_inc = np.zeros((N_PAD, E_PAD), np.float32)
    for e in range(NUM_EDGES):
        S[e, src[e]] = 1.0
        S[e, N_PAD + dst[e]] = 1.0
        M_inc[src[e], e] += 1.0           # scatter_add target = dst of
        M_inc[dst[e], e] += 1.0           # node_to_node_index = cat([src, dst])

    node_to_edges = defaultdict(list)
    for e in range(NUM_EDGES):
        node_to_edges[int(src[e])].append(e)
        node_to_edges[int(dst[e])].append(e)
    A = np.zeros((E_PAD, E_PAD), np.float32)         # integer counts (bf16-exact)
    for e in range(NUM_EDGES):
        connected = node_to_edges[int(src[e])] + node_to_edges[int(dst[e])]
        for ce in connected:
            if ce != e:
                A[e, ce] += 1.0
    inv_deg = 1.0 / np.maximum(A.sum(axis=1, keepdims=True), 1.0)  # exact f32 normalization
    return (jnp.asarray(S, jnp.bfloat16), jnp.asarray(A, jnp.bfloat16),
            jnp.asarray(M_inc, jnp.bfloat16), jnp.asarray(inv_deg, jnp.float32))


def init_params(key):
    L, H = NUM_LAYERS, HIDDEN_SIZE
    # stacked NodeToEdge weight: [:, :, :H] = W_src, [:, :, H:] = W_dst
    W_ne = np.zeros((L, F_PAD, 2 * H), np.float32)
    w_e = np.zeros((L, 1, H), np.float32)
    W_ee = np.zeros((L, H, H), np.float32)
    W_en = np.zeros((L, H, H), np.float32)
    f = IN_FEATURES
    for l in range(L):
        key, k1, k2, k3, k4, k5 = jax.random.split(key, 6)
        W_ne[l, :f, :H] = np.asarray(jax.random.normal(k1, (f, H))) * 0.1
        W_ne[l, :f, H:] = np.asarray(jax.random.normal(k2, (f, H))) * 0.1
        w_e[l] = np.asarray(jax.random.normal(k3, (1, H))) * 0.1
        W_ee[l] = np.asarray(jax.random.normal(k4, (H, H))) * 0.1
        W_en[l] = np.asarray(jax.random.normal(k5, (H, H))) * 0.1
        f = H
    key, ko = jax.random.split(key)
    W_out = np.zeros((H, OUT_PAD), np.float32)
    W_out[:, :OUT_FEATURES] = np.asarray(
        jax.random.normal(ko, (H, OUT_FEATURES))) * 0.1
    return {
        "W_ne": jnp.asarray(W_ne, jnp.bfloat16),
        "w_e": jnp.asarray(w_e, jnp.float32),
        "b_ne": jnp.zeros((L, 1, H), jnp.float32),
        "W_ee": jnp.asarray(W_ee, jnp.bfloat16),
        "b_ee": jnp.zeros((L, 1, H), jnp.float32),
        "W_en": jnp.asarray(W_en, jnp.bfloat16),
        "b_en": jnp.zeros((L, 1, H), jnp.float32),
        "W_out": jnp.asarray(W_out, jnp.bfloat16),
        "b_out": jnp.zeros((1, OUT_PAD), jnp.float32),
    }


# ---------------------------------- main --------------------------------------
if __name__ == "__main__":
    key = jax.random.PRNGKey(0)
    k_feat, k_edge, k_param = jax.random.split(key, 3)

    # inputs implied by the module's top-level code
    features = jax.random.normal(k_feat, (NUM_NODES, IN_FEATURES), jnp.float32)
    edge_indices = jax.random.randint(k_edge, (2, NUM_EDGES), 0, NUM_NODES)

    src = np.asarray(edge_indices[0])
    dst = np.asarray(edge_indices[1])
    S, A, M_inc, inv_deg = build_graph_structures(src, dst)

    # zero-padded node features in bf16 (they only feed the bf16 MXU path);
    # edge_attr = ones on real edges (as in the reference)
    features_pad = jnp.zeros((N_PAD, F_PAD), jnp.float32)
    features_pad = features_pad.at[:NUM_NODES, :IN_FEATURES].set(features)
    features_pad = features_pad.astype(jnp.bfloat16)
    edge_mask = jnp.zeros((E_PAD, 1), jnp.float32).at[:NUM_EDGES].set(1.0)

    params = init_params(k_param)

    fwd = jax.jit(fused_forward)
    out_pad = fwd(features_pad, edge_mask, S, A, inv_deg, M_inc, params)
    out = out_pad[:NUM_NODES, :OUT_FEATURES]           # [100, 10]
    jax.block_until_ready(out)

    assert out.shape == (NUM_NODES, OUT_FEATURES)
    assert bool(jnp.all(jnp.isfinite(out)))
    print("KERNEL_OK")
</pallas_src>

<mosaic_0001>
module attributes {stable_mosaic.version = 11 : i64} {
  func.func @_fused_gnn_kernel(%arg0: i32, %arg1: memref<128x128xbf16, #tpu.memory_space<vmem>>, %arg2: memref<512x1xf32, #tpu.memory_space<vmem>>, %arg3: memref<512x256xbf16, #tpu.memory_space<vmem>>, %arg4: memref<512x512xbf16, #tpu.memory_space<vmem>>, %arg5: memref<512x1xf32, #tpu.memory_space<vmem>>, %arg6: memref<128x512xbf16, #tpu.memory_space<vmem>>, %arg7: memref<3x128x256xbf16, #tpu.memory_space<vmem>>, %arg8: memref<3x1x128xf32, #tpu.memory_space<vmem>>, %arg9: memref<3x1x128xf32, #tpu.memory_space<vmem>>, %arg10: memref<3x128x128xbf16, #tpu.memory_space<vmem>>, %arg11: memref<3x1x128xf32, #tpu.memory_space<vmem>>, %arg12: memref<3x128x128xbf16, #tpu.memory_space<vmem>>, %arg13: memref<3x1x128xf32, #tpu.memory_space<vmem>>, %arg14: memref<128x128xbf16, #tpu.memory_space<vmem>>, %arg15: memref<1x128xf32, #tpu.memory_space<vmem>>, %arg16: memref<128x128xf32, #tpu.memory_space<vmem>>, %arg17: memref<256x128xbf16, #tpu.memory_space<vmem>>) attributes {dimension_semantics = [#tpu.dimension_semantics<arbitrary>], iteration_bounds = array<i64: 1>, scalar_prefetch = 0 : i64, scratch_operands = 1 : i64, tpu.core_type = #tpu.core_type<tc>, window_params = [{pipeline_mode = #tpu.pipeline_mode<synchronous>, transform_indices = @transform_0, window_bounds = array<i64: 128, 128>}, {pipeline_mode = #tpu.pipeline_mode<synchronous>, transform_indices = @transform_1, window_bounds = array<i64: 512, 1>}, {pipeline_mode = #tpu.pipeline_mode<synchronous>, transform_indices = @transform_2, window_bounds = array<i64: 512, 256>}, {pipeline_mode = #tpu.pipeline_mode<synchronous>, transform_indices = @transform_3, window_bounds = array<i64: 512, 512>}, {pipeline_mode = #tpu.pipeline_mode<synchronous>, transform_indices = @transform_4, window_bounds = array<i64: 512, 1>}, {pipeline_mode = #tpu.pipeline_mode<synchronous>, transform_indices = @transform_5, window_bounds = array<i64: 128, 512>}, {pipeline_mode = #tpu.pipeline_mode<synchronous>, transform_indices = @transform_6, window_bounds = array<i64: 3, 128, 256>}, {pipeline_mode = #tpu.pipeline_mode<synchronous>, transform_indices = @transform_7, window_bounds = array<i64: 3, 1, 128>}, {pipeline_mode = #tpu.pipeline_mode<synchronous>, transform_indices = @transform_8, window_bounds = array<i64: 3, 1, 128>}, {pipeline_mode = #tpu.pipeline_mode<synchronous>, transform_indices = @transform_9, window_bounds = array<i64: 3, 128, 128>}, {pipeline_mode = #tpu.pipeline_mode<synchronous>, transform_indices = @transform_10, window_bounds = array<i64: 3, 1, 128>}, {pipeline_mode = #tpu.pipeline_mode<synchronous>, transform_indices = @transform_11, window_bounds = array<i64: 3, 128, 128>}, {pipeline_mode = #tpu.pipeline_mode<synchronous>, transform_indices = @transform_12, window_bounds = array<i64: 3, 1, 128>}, {pipeline_mode = #tpu.pipeline_mode<synchronous>, transform_indices = @transform_13, window_bounds = array<i64: 128, 128>}, {pipeline_mode = #tpu.pipeline_mode<synchronous>, transform_indices = @transform_14, window_bounds = array<i64: 1, 128>}, {pipeline_mode = #tpu.pipeline_mode<synchronous>, transform_indices = @transform_15, window_bounds = array<i64: 128, 128>}]} {
    %c0 = arith.constant 0 : index
    %c0_0 = arith.constant 0 : index
    %0 = vector.load %arg1[%c0, %c0_0] : memref<128x128xbf16, #tpu.memory_space<vmem>>, vector<128x128xbf16>
    %c0_1 = arith.constant 0 : index
    %c0_2 = arith.constant 0 : index
    %1 = vector.load %arg2[%c0_1, %c0_2] : memref<512x1xf32, #tpu.memory_space<vmem>>, vector<512x1xf32>
    %c0_3 = arith.constant 0 : index
    %c0_4 = arith.constant 0 : index
    %2 = vector.load %arg3[%c0_3, %c0_4] : memref<512x256xbf16, #tpu.memory_space<vmem>>, vector<512x256xbf16>
    %c0_5 = arith.constant 0 : index
    %c0_6 = arith.constant 0 : index
    %3 = vector.load %arg4[%c0_5, %c0_6] : memref<512x512xbf16, #tpu.memory_space<vmem>>, vector<512x512xbf16>
    %c0_7 = arith.constant 0 : index
    %c0_8 = arith.constant 0 : index
    %4 = vector.load %arg5[%c0_7, %c0_8] : memref<512x1xf32, #tpu.memory_space<vmem>>, vector<512x1xf32>
    %c0_9 = arith.constant 0 : index
    %c0_10 = arith.constant 0 : index
    %5 = vector.load %arg6[%c0_9, %c0_10] : memref<128x512xbf16, #tpu.memory_space<vmem>>, vector<128x512xbf16>
    %c0_11 = arith.constant 0 : index
    %c0_12 = arith.constant 0 : index
    %c0_13 = arith.constant 0 : index
    %6 = vector.load %arg7[%c0_11, %c0_12, %c0_13] : memref<3x128x256xbf16, #tpu.memory_space<vmem>>, vector<1x128x256xbf16>
    %7 = vector.shape_cast %6 : vector<1x128x256xbf16> to vector<128x256xbf16>
    %cst = arith.constant dense<0.000000e+00> : vector<128x256xf32>
    %8 = tpu.matmul %0, %7, %cst {dimension_numbers = #tpu.dot_dimension_numbers<[1], [0], [0], [1], [0, 0, 1, 1], [], []>} : vector<128x128xbf16>, vector<128x256xbf16>, vector<128x256xf32> -> vector<128x256xf32>
    %9 = vector.extract_strided_slice %8 {offsets = [0, 0], sizes = [128, 128], strides = [1, 1]} : vector<128x256xf32> to vector<128x128xf32>
    %10 = arith.truncf %9 : vector<128x128xf32> to vector<128x128xbf16>
    %c0_14 = arith.constant 0 : index
    %c0_15 = arith.constant 0 : index
    %11 = vector.load %arg17[%c0_14, %c0_15] : memref<256x128xbf16, #tpu.memory_space<vmem>>, vector<128x128xbf16>
    tpu.vector_store %arg17[%c0_14, %c0_15], %10 {strides = array<i32>} : memref<256x128xbf16, #tpu.memory_space<vmem>>, vector<128x128xbf16>,
    %12 = vector.extract_strided_slice %8 {offsets = [0, 128], sizes = [128, 128], strides = [1, 1]} : vector<128x256xf32> to vector<128x128xf32>
    %13 = arith.truncf %12 : vector<128x128xf32> to vector<128x128xbf16>
    %c128 = arith.constant 128 : index
    %c0_16 = arith.constant 0 : index
    %14 = vector.load %arg17[%c128, %c0_16] : memref<256x128xbf16, #tpu.memory_space<vmem>>, vector<128x128xbf16>
    tpu.vector_store %arg17[%c128, %c0_16], %13 {strides = array<i32>} : memref<256x128xbf16, #tpu.memory_space<vmem>>, vector<128x128xbf16>,
    %c0_17 = arith.constant 0 : index
    %c0_18 = arith.constant 0 : index
    %15 = vector.load %arg17[%c0_17, %c0_18] : memref<256x128xbf16, #tpu.memory_space<vmem>>, vector<256x128xbf16>
    %cst_19 = arith.constant dense<0.000000e+00> : vector<512x128xf32>
    %16 = tpu.matmul %2, %15, %cst_19 {dimension_numbers = #tpu.dot_dimension_numbers<[1], [0], [0], [1], [0, 0, 1, 1], [], []>} : vector<512x256xbf16>, vector<256x128xbf16>, vector<512x128xf32> -> vector<512x128xf32>
    %c0_20 = arith.constant 0 : index
    %c0_21 = arith.constant 0 : index
    %c0_22 = arith.constant 0 : index
    %17 = vector.load %arg8[%c0_20, %c0_21, %c0_22] : memref<3x1x128xf32, #tpu.memory_space<vmem>>, vector<1x1x128xf32>
    %18 = vector.shape_cast %17 : vector<1x1x128xf32> to vector<1x128xf32>
    %19 = vector.broadcast %1 : vector<512x1xf32> to vector<512x128xf32>
    %20 = vector.broadcast %18 : vector<1x128xf32> to vector<512x128xf32>
    %21 = arith.mulf %19, %20 : vector<512x128xf32>
    %22 = arith.addf %16, %21 : vector<512x128xf32>
    %c0_23 = arith.constant 0 : index
    %c0_24 = arith.constant 0 : index
    %c0_25 = arith.constant 0 : index
    %23 = vector.load %arg9[%c0_23, %c0_24, %c0_25] : memref<3x1x128xf32, #tpu.memory_space<vmem>>, vector<1x1x128xf32>
    %24 = vector.shape_cast %23 : vector<1x1x128xf32> to vector<1x128xf32>
    %25 = vector.broadcast %24 : vector<1x128xf32> to vector<512x128xf32>
    %26 = arith.addf %22, %25 : vector<512x128xf32>
    %cst_26 = arith.constant 0.000000e+00 : f32
    %27 = vector.broadcast %cst_26 : f32 to vector<512x128xf32>
    %28 = arith.maximumf %26, %27 : vector<512x128xf32>
    %29 = arith.truncf %28 : vector<512x128xf32> to vector<512x128xbf16>
    %cst_27 = arith.constant dense<0.000000e+00> : vector<512x128xf32>
    %30 = tpu.matmul %3, %29, %cst_27 {dimension_numbers = #tpu.dot_dimension_numbers<[1], [0], [0], [1], [0, 0, 1, 1], [], []>} : vector<512x512xbf16>, vector<512x128xbf16>, vector<512x128xf32> -> vector<512x128xf32>
    %31 = vector.broadcast %4 : vector<512x1xf32> to vector<512x128xf32>
    %32 = arith.mulf %30, %31 : vector<512x128xf32>
    %33 = arith.truncf %32 : vector<512x128xf32> to vector<512x128xbf16>
    %c0_28 = arith.constant 0 : index
    %c0_29 = arith.constant 0 : index
    %c0_30 = arith.constant 0 : index
    %34 = vector.load %arg10[%c0_28, %c0_29, %c0_30] : memref<3x128x128xbf16, #tpu.memory_space<vmem>>, vector<1x128x128xbf16>
    %35 = vector.shape_cast %34 : vector<1x128x128xbf16> to vector<128x128xbf16>
    %cst_31 = arith.constant dense<0.000000e+00> : vector<512x128xf32>
    %36 = tpu.matmul %33, %35, %cst_31 {dimension_numbers = #tpu.dot_dimension_numbers<[1], [0], [0], [1], [0, 0, 1, 1], [], []>} : vector<512x128xbf16>, vector<128x128xbf16>, vector<512x128xf32> -> vector<512x128xf32>
    %c0_32 = arith.constant 0 : index
    %c0_33 = arith.constant 0 : index
    %c0_34 = arith.constant 0 : index
    %37 = vector.load %arg11[%c0_32, %c0_33, %c0_34] : memref<3x1x128xf32, #tpu.memory_space<vmem>>, vector<1x1x128xf32>
    %38 = vector.shape_cast %37 : vector<1x1x128xf32> to vector<1x128xf32>
    %39 = vector.broadcast %38 : vector<1x128xf32> to vector<512x128xf32>
    %40 = arith.addf %36, %39 : vector<512x128xf32>
    %cst_35 = arith.constant 0.000000e+00 : f32
    %41 = vector.broadcast %cst_35 : f32 to vector<512x128xf32>
    %42 = arith.maximumf %40, %41 : vector<512x128xf32>
    %43 = arith.truncf %42 : vector<512x128xf32> to vector<512x128xbf16>
    %cst_36 = arith.constant dense<0.000000e+00> : vector<512xf32>
    %44 = vector.multi_reduction <add>, %42, %cst_36 [1] : vector<512x128xf32> to vector<512xf32>
    %45 = vector.shape_cast %44 : vector<512xf32> to vector<512x1xf32>
    %cst_37 = arith.constant 1.280000e+02 : f32
    %46 = vector.broadcast %cst_37 : f32 to vector<512x1xf32>
    %47 = arith.divf %45, %46 : vector<512x1xf32>
    %c0_38 = arith.constant 0 : index
    %c0_39 = arith.constant 0 : index
    %c0_40 = arith.constant 0 : index
    %48 = vector.load %arg12[%c0_38, %c0_39, %c0_40] : memref<3x128x128xbf16, #tpu.memory_space<vmem>>, vector<1x128x128xbf16>
    %49 = vector.shape_cast %48 : vector<1x128x128xbf16> to vector<128x128xbf16>
    %cst_41 = arith.constant dense<0.000000e+00> : vector<512x128xf32>
    %50 = tpu.matmul %43, %49, %cst_41 {dimension_numbers = #tpu.dot_dimension_numbers<[1], [0], [0], [1], [0, 0, 1, 1], [], []>} : vector<512x128xbf16>, vector<128x128xbf16>, vector<512x128xf32> -> vector<512x128xf32>
    %c0_42 = arith.constant 0 : index
    %c0_43 = arith.constant 0 : index
    %c0_44 = arith.constant 0 : index
    %51 = vector.load %arg13[%c0_42, %c0_43, %c0_44] : memref<3x1x128xf32, #tpu.memory_space<vmem>>, vector<1x1x128xf32>
    %52 = vector.shape_cast %51 : vector<1x1x128xf32> to vector<1x128xf32>
    %53 = vector.broadcast %52 : vector<1x128xf32> to vector<512x128xf32>
    %54 = arith.addf %50, %53 : vector<512x128xf32>
    %cst_45 = arith.constant 0.000000e+00 : f32
    %55 = vector.broadcast %cst_45 : f32 to vector<512x128xf32>
    %56 = arith.maximumf %54, %55 : vector<512x128xf32>
    %57 = arith.truncf %56 : vector<512x128xf32> to vector<512x128xbf16>
    %cst_46 = arith.constant dense<0.000000e+00> : vector<128x128xf32>
    %58 = tpu.matmul %5, %57, %cst_46 {dimension_numbers = #tpu.dot_dimension_numbers<[1], [0], [0], [1], [0, 0, 1, 1], [], []>} : vector<128x512xbf16>, vector<512x128xbf16>, vector<128x128xf32> -> vector<128x128xf32>
    %59 = arith.truncf %58 : vector<128x128xf32> to vector<128x128xbf16>
    %c1 = arith.constant 1 : index
    %c0_47 = arith.constant 0 : index
    %c0_48 = arith.constant 0 : index
    %60 = vector.load %arg7[%c1, %c0_47, %c0_48] : memref<3x128x256xbf16, #tpu.memory_space<vmem>>, vector<1x128x256xbf16>
    %61 = vector.shape_cast %60 : vector<1x128x256xbf16> to vector<128x256xbf16>
    %cst_49 = arith.constant dense<0.000000e+00> : vector<128x256xf32>
    %62 = tpu.matmul %59, %61, %cst_49 {dimension_numbers = #tpu.dot_dimension_numbers<[1], [0], [0], [1], [0, 0, 1, 1], [], []>} : vector<128x128xbf16>, vector<128x256xbf16>, vector<128x256xf32> -> vector<128x256xf32>
    %63 = vector.extract_strided_slice %62 {offsets = [0, 0], sizes = [128, 128], strides = [1, 1]} : vector<128x256xf32> to vector<128x128xf32>
    %64 = arith.truncf %63 : vector<128x128xf32> to vector<128x128xbf16>
    %c0_50 = arith.constant 0 : index
    %c0_51 = arith.constant 0 : index
    %65 = vector.load %arg17[%c0_50, %c0_51] : memref<256x128xbf16, #tpu.memory_space<vmem>>, vector<128x128xbf16>
    tpu.vector_store %arg17[%c0_50, %c0_51], %64 {strides = array<i32>} : memref<256x128xbf16, #tpu.memory_space<vmem>>, vector<128x128xbf16>,
    %66 = vector.extract_strided_slice %62 {offsets = [0, 128], sizes = [128, 128], strides = [1, 1]} : vector<128x256xf32> to vector<128x128xf32>
    %67 = arith.truncf %66 : vector<128x128xf32> to vector<128x128xbf16>
    %c128_52 = arith.constant 128 : index
    %c0_53 = arith.constant 0 : index
    %68 = vector.load %arg17[%c128_52, %c0_53] : memref<256x128xbf16, #tpu.memory_space<vmem>>, vector<128x128xbf16>
    tpu.vector_store %arg17[%c128_52, %c0_53], %67 {strides = array<i32>} : memref<256x128xbf16, #tpu.memory_space<vmem>>, vector<128x128xbf16>,
    %c0_54 = arith.constant 0 : index
    %c0_55 = arith.constant 0 : index
    %69 = vector.load %arg17[%c0_54, %c0_55] : memref<256x128xbf16, #tpu.memory_space<vmem>>, vector<256x128xbf16>
    %cst_56 = arith.constant dense<0.000000e+00> : vector<512x128xf32>
    %70 = tpu.matmul %2, %69, %cst_56 {dimension_numbers = #tpu.dot_dimension_numbers<[1], [0], [0], [1], [0, 0, 1, 1], [], []>} : vector<512x256xbf16>, vector<256x128xbf16>, vector<512x128xf32> -> vector<512x128xf32>
    %c1_57 = arith.constant 1 : index
    %c0_58 = arith.constant 0 : index
    %c0_59 = arith.constant 0 : index
    %71 = vector.load %arg8[%c1_57, %c0_58, %c0_59] : memref<3x1x128xf32, #tpu.memory_space<vmem>>, vector<1x1x128xf32>
    %72 = vector.shape_cast %71 : vector<1x1x128xf32> to vector<1x128xf32>
    %73 = vector.broadcast %47 : vector<512x1xf32> to vector<512x128xf32>
    %74 = vector.broadcast %72 : vector<1x128xf32> to vector<512x128xf32>
    %75 = arith.mulf %73, %74 : vector<512x128xf32>
    %76 = arith.addf %70, %75 : vector<512x128xf32>
    %c1_60 = arith.constant 1 : index
    %c0_61 = arith.constant 0 : index
    %c0_62 = arith.constant 0 : index
    %77 = vector.load %arg9[%c1_60, %c0_61, %c0_62] : memref<3x1x128xf32, #tpu.memory_space<vmem>>, vector<1x1x128xf32>
    %78 = vector.shape_cast %77 : vector<1x1x128xf32> to vector<1x128xf32>
    %79 = vector.broadcast %78 : vector<1x128xf32> to vector<512x128xf32>
    %80 = arith.addf %76, %79 : vector<512x128xf32>
    %cst_63 = arith.constant 0.000000e+00 : f32
    %81 = vector.broadcast %cst_63 : f32 to vector<512x128xf32>
    %82 = arith.maximumf %80, %81 : vector<512x128xf32>
    %83 = arith.truncf %82 : vector<512x128xf32> to vector<512x128xbf16>
    %cst_64 = arith.constant dense<0.000000e+00> : vector<512x128xf32>
    %84 = tpu.matmul %3, %83, %cst_64 {dimension_numbers = #tpu.dot_dimension_numbers<[1], [0], [0], [1], [0, 0, 1, 1], [], []>} : vector<512x512xbf16>, vector<512x128xbf16>, vector<512x128xf32> -> vector<512x128xf32>
    %85 = vector.broadcast %4 : vector<512x1xf32> to vector<512x128xf32>
    %86 = arith.mulf %84, %85 : vector<512x128xf32>
    %87 = arith.truncf %86 : vector<512x128xf32> to vector<512x128xbf16>
    %c1_65 = arith.constant 1 : index
    %c0_66 = arith.constant 0 : index
    %c0_67 = arith.constant 0 : index
    %88 = vector.load %arg10[%c1_65, %c0_66, %c0_67] : memref<3x128x128xbf16, #tpu.memory_space<vmem>>, vector<1x128x128xbf16>
    %89 = vector.shape_cast %88 : vector<1x128x128xbf16> to vector<128x128xbf16>
    %cst_68 = arith.constant dense<0.000000e+00> : vector<512x128xf32>
    %90 = tpu.matmul %87, %89, %cst_68 {dimension_numbers = #tpu.dot_dimension_numbers<[1], [0], [0], [1], [0, 0, 1, 1], [], []>} : vector<512x128xbf16>, vector<128x128xbf16>, vector<512x128xf32> -> vector<512x128xf32>
    %c1_69 = arith.constant 1 : index
    %c0_70 = arith.constant 0 : index
    %c0_71 = arith.constant 0 : index
    %91 = vector.load %arg11[%c1_69, %c0_70, %c0_71] : memref<3x1x128xf32, #tpu.memory_space<vmem>>, vector<1x1x128xf32>
    %92 = vector.shape_cast %91 : vector<1x1x128xf32> to vector<1x128xf32>
    %93 = vector.broadcast %92 : vector<1x128xf32> to vector<512x128xf32>
    %94 = arith.addf %90, %93 : vector<512x128xf32>
    %cst_72 = arith.constant 0.000000e+00 : f32
    %95 = vector.broadcast %cst_72 : f32 to vector<512x128xf32>
    %96 = arith.maximumf %94, %95 : vector<512x128xf32>
    %97 = arith.truncf %96 : vector<512x128xf32> to vector<512x128xbf16>
    %cst_73 = arith.constant dense<0.000000e+00> : vector<512xf32>
    %98 = vector.multi_reduction <add>, %96, %cst_73 [1] : vector<512x128xf32> to vector<512xf32>
    %99 = vector.shape_cast %98 : vector<512xf32> to vector<512x1xf32>
    %cst_74 = arith.constant 1.280000e+02 : f32
    %100 = vector.broadcast %cst_74 : f32 to vector<512x1xf32>
    %101 = arith.divf %99, %100 : vector<512x1xf32>
    %c1_75 = arith.constant 1 : index
    %c0_76 = arith.constant 0 : index
    %c0_77 = arith.constant 0 : index
    %102 = vector.load %arg12[%c1_75, %c0_76, %c0_77] : memref<3x128x128xbf16, #tpu.memory_space<vmem>>, vector<1x128x128xbf16>
    %103 = vector.shape_cast %102 : vector<1x128x128xbf16> to vector<128x128xbf16>
    %cst_78 = arith.constant dense<0.000000e+00> : vector<512x128xf32>
    %104 = tpu.matmul %97, %103, %cst_78 {dimension_numbers = #tpu.dot_dimension_numbers<[1], [0], [0], [1], [0, 0, 1, 1], [], []>} : vector<512x128xbf16>, vector<128x128xbf16>, vector<512x128xf32> -> vector<512x128xf32>
    %c1_79 = arith.constant 1 : index
    %c0_80 = arith.constant 0 : index
    %c0_81 = arith.constant 0 : index
    %105 = vector.load %arg13[%c1_79, %c0_80, %c0_81] : memref<3x1x128xf32, #tpu.memory_space<vmem>>, vector<1x1x128xf32>
    %106 = vector.shape_cast %105 : vector<1x1x128xf32> to vector<1x128xf32>
    %107 = vector.broadcast %106 : vector<1x128xf32> to vector<512x128xf32>
    %108 = arith.addf %104, %107 : vector<512x128xf32>
    %cst_82 = arith.constant 0.000000e+00 : f32
    %109 = vector.broadcast %cst_82 : f32 to vector<512x128xf32>
    %110 = arith.maximumf %108, %109 : vector<512x128xf32>
    %111 = arith.truncf %110 : vector<512x128xf32> to vector<512x128xbf16>
    %cst_83 = arith.constant dense<0.000000e+00> : vector<128x128xf32>
    %112 = tpu.matmul %5, %111, %cst_83 {dimension_numbers = #tpu.dot_dimension_numbers<[1], [0], [0], [1], [0, 0, 1, 1], [], []>} : vector<128x512xbf16>, vector<512x128xbf16>, vector<128x128xf32> -> vector<128x128xf32>
    %113 = arith.truncf %112 : vector<128x128xf32> to vector<128x128xbf16>
    %c2 = arith.constant 2 : index
    %c0_84 = arith.constant 0 : index
    %c0_85 = arith.constant 0 : index
    %114 = vector.load %arg7[%c2, %c0_84, %c0_85] : memref<3x128x256xbf16, #tpu.memory_space<vmem>>, vector<1x128x256xbf16>
    %115 = vector.shape_cast %114 : vector<1x128x256xbf16> to vector<128x256xbf16>
    %cst_86 = arith.constant dense<0.000000e+00> : vector<128x256xf32>
    %116 = tpu.matmul %113, %115, %cst_86 {dimension_numbers = #tpu.dot_dimension_numbers<[1], [0], [0], [1], [0, 0, 1, 1], [], []>} : vector<128x128xbf16>, vector<128x256xbf16>, vector<128x256xf32> -> vector<128x256xf32>
    %117 = vector.extract_strided_slice %116 {offsets = [0, 0], sizes = [128, 128], strides = [1, 1]} : vector<128x256xf32> to vector<128x128xf32>
    %118 = arith.truncf %117 : vector<128x128xf32> to vector<128x128xbf16>
    %c0_87 = arith.constant 0 : index
    %c0_88 = arith.constant 0 : index
    %119 = vector.load %arg17[%c0_87, %c0_88] : memref<256x128xbf16, #tpu.memory_space<vmem>>, vector<128x128xbf16>
    tpu.vector_store %arg17[%c0_87, %c0_88], %118 {strides = array<i32>} : memref<256x128xbf16, #tpu.memory_space<vmem>>, vector<128x128xbf16>,
    %120 = vector.extract_strided_slice %116 {offsets = [0, 128], sizes = [128, 128], strides = [1, 1]} : vector<128x256xf32> to vector<128x128xf32>
    %121 = arith.truncf %120 : vector<128x128xf32> to vector<128x128xbf16>
    %c128_89 = arith.constant 128 : index
    %c0_90 = arith.constant 0 : index
    %122 = vector.load %arg17[%c128_89, %c0_90] : memref<256x128xbf16, #tpu.memory_space<vmem>>, vector<128x128xbf16>
    tpu.vector_store %arg17[%c128_89, %c0_90], %121 {strides = array<i32>} : memref<256x128xbf16, #tpu.memory_space<vmem>>, vector<128x128xbf16>,
    %c0_91 = arith.constant 0 : index
    %c0_92 = arith.constant 0 : index
    %123 = vector.load %arg17[%c0_91, %c0_92] : memref<256x128xbf16, #tpu.memory_space<vmem>>, vector<256x128xbf16>
    %cst_93 = arith.constant dense<0.000000e+00> : vector<512x128xf32>
    %124 = tpu.matmul %2, %123, %cst_93 {dimension_numbers = #tpu.dot_dimension_numbers<[1], [0], [0], [1], [0, 0, 1, 1], [], []>} : vector<512x256xbf16>, vector<256x128xbf16>, vector<512x128xf32> -> vector<512x128xf32>
    %c2_94 = arith.constant 2 : index
    %c0_95 = arith.constant 0 : index
    %c0_96 = arith.constant 0 : index
    %125 = vector.load %arg8[%c2_94, %c0_95, %c0_96] : memref<3x1x128xf32, #tpu.memory_space<vmem>>, vector<1x1x128xf32>
    %126 = vector.shape_cast %125 : vector<1x1x128xf32> to vector<1x128xf32>
    %127 = vector.broadcast %101 : vector<512x1xf32> to vector<512x128xf32>
    %128 = vector.broadcast %126 : vector<1x128xf32> to vector<512x128xf32>
    %129 = arith.mulf %127, %128 : vector<512x128xf32>
    %130 = arith.addf %124, %129 : vector<512x128xf32>
    %c2_97 = arith.constant 2 : index
    %c0_98 = arith.constant 0 : index
    %c0_99 = arith.constant 0 : index
    %131 = vector.load %arg9[%c2_97, %c0_98, %c0_99] : memref<3x1x128xf32, #tpu.memory_space<vmem>>, vector<1x1x128xf32>
    %132 = vector.shape_cast %131 : vector<1x1x128xf32> to vector<1x128xf32>
    %133 = vector.broadcast %132 : vector<1x128xf32> to vector<512x128xf32>
    %134 = arith.addf %130, %133 : vector<512x128xf32>
    %cst_100 = arith.constant 0.000000e+00 : f32
    %135 = vector.broadcast %cst_100 : f32 to vector<512x128xf32>
    %136 = arith.maximumf %134, %135 : vector<512x128xf32>
    %137 = arith.truncf %136 : vector<512x128xf32> to vector<512x128xbf16>
    %cst_101 = arith.constant dense<0.000000e+00> : vector<512x128xf32>
    %138 = tpu.matmul %3, %137, %cst_101 {dimension_numbers = #tpu.dot_dimension_numbers<[1], [0], [0], [1], [0, 0, 1, 1], [], []>} : vector<512x512xbf16>, vector<512x128xbf16>, vector<512x128xf32> -> vector<512x128xf32>
    %139 = vector.broadcast %4 : vector<512x1xf32> to vector<512x128xf32>
    %140 = arith.mulf %138, %139 : vector<512x128xf32>
    %141 = arith.truncf %140 : vector<512x128xf32> to vector<512x128xbf16>
    %c2_102 = arith.constant 2 : index
    %c0_103 = arith.constant 0 : index
    %c0_104 = arith.constant 0 : index
    %142 = vector.load %arg10[%c2_102, %c0_103, %c0_104] : memref<3x128x128xbf16, #tpu.memory_space<vmem>>, vector<1x128x128xbf16>
    %143 = vector.shape_cast %142 : vector<1x128x128xbf16> to vector<128x128xbf16>
    %cst_105 = arith.constant dense<0.000000e+00> : vector<512x128xf32>
    %144 = tpu.matmul %141, %143, %cst_105 {dimension_numbers = #tpu.dot_dimension_numbers<[1], [0], [0], [1], [0, 0, 1, 1], [], []>} : vector<512x128xbf16>, vector<128x128xbf16>, vector<512x128xf32> -> vector<512x128xf32>
    %c2_106 = arith.constant 2 : index
    %c0_107 = arith.constant 0 : index
    %c0_108 = arith.constant 0 : index
    %145 = vector.load %arg11[%c2_106, %c0_107, %c0_108] : memref<3x1x128xf32, #tpu.memory_space<vmem>>, vector<1x1x128xf32>
    %146 = vector.shape_cast %145 : vector<1x1x128xf32> to vector<1x128xf32>
    %147 = vector.broadcast %146 : vector<1x128xf32> to vector<512x128xf32>
    %148 = arith.addf %144, %147 : vector<512x128xf32>
    %cst_109 = arith.constant 0.000000e+00 : f32
    %149 = vector.broadcast %cst_109 : f32 to vector<512x128xf32>
    %150 = arith.maximumf %148, %149 : vector<512x128xf32>
    %151 = arith.truncf %150 : vector<512x128xf32> to vector<512x128xbf16>
    %c2_110 = arith.constant 2 : index
    %c0_111 = arith.constant 0 : index
    %c0_112 = arith.constant 0 : index
    %152 = vector.load %arg12[%c2_110, %c0_111, %c0_112] : memref<3x128x128xbf16, #tpu.memory_space<vmem>>, vector<1x128x128xbf16>
    %153 = vector.shape_cast %152 : vector<1x128x128xbf16> to vector<128x128xbf16>
    %cst_113 = arith.constant dense<0.000000e+00> : vector<512x128xf32>
    %154 = tpu.matmul %151, %153, %cst_113 {dimension_numbers = #tpu.dot_dimension_numbers<[1], [0], [0], [1], [0, 0, 1, 1], [], []>} : vector<512x128xbf16>, vector<128x128xbf16>, vector<512x128xf32> -> vector<512x128xf32>
    %c2_114 = arith.constant 2 : index
    %c0_115 = arith.constant 0 : index
    %c0_116 = arith.constant 0 : index
    %155 = vector.load %arg13[%c2_114, %c0_115, %c0_116] : memref<3x1x128xf32, #tpu.memory_space<vmem>>, vector<1x1x128xf32>
    %156 = vector.shape_cast %155 : vector<1x1x128xf32> to vector<1x128xf32>
    %157 = vector.broadcast %156 : vector<1x128xf32> to vector<512x128xf32>
    %158 = arith.addf %154, %157 : vector<512x128xf32>
    %cst_117 = arith.constant 0.000000e+00 : f32
    %159 = vector.broadcast %cst_117 : f32 to vector<512x128xf32>
    %160 = arith.maximumf %158, %159 : vector<512x128xf32>
    %161 = arith.truncf %160 : vector<512x128xf32> to vector<512x128xbf16>
    %cst_118 = arith.constant dense<0.000000e+00> : vector<128x128xf32>
    %162 = tpu.matmul %5, %161, %cst_118 {dimension_numbers = #tpu.dot_dimension_numbers<[1], [0], [0], [1], [0, 0, 1, 1], [], []>} : vector<128x512xbf16>, vector<512x128xbf16>, vector<128x128xf32> -> vector<128x128xf32>
    %163 = arith.truncf %162 : vector<128x128xf32> to vector<128x128xbf16>
    %cst_119 = arith.constant 0.000000e+00 : bf16
    %164 = vector.broadcast %cst_119 : bf16 to vector<128x128xbf16>
    %165 = arith.maximumf %163, %164 : vector<128x128xbf16>
    %c0_120 = arith.constant 0 : index
    %c0_121 = arith.constant 0 : index
    %166 = vector.load %arg14[%c0_120, %c0_121] : memref<128x128xbf16, #tpu.memory_space<vmem>>, vector<128x128xbf16>
    %cst_122 = arith.constant dense<0.000000e+00> : vector<128x128xf32>
    %167 = tpu.matmul %165, %166, %cst_122 {dimension_numbers = #tpu.dot_dimension_numbers<[1], [0], [0], [1], [0, 0, 1, 1], [], []>} : vector<128x128xbf16>, vector<128x128xbf16>, vector<128x128xf32> -> vector<128x128xf32>
    %c0_123 = arith.constant 0 : index
    %c0_124 = arith.constant 0 : index
    %168 = vector.load %arg15[%c0_123, %c0_124] : memref<1x128xf32, #tpu.memory_space<vmem>>, vector<1x128xf32>
    %169 = vector.broadcast %168 : vector<1x128xf32> to vector<128x128xf32>
    %170 = arith.addf %167, %169 : vector<128x128xf32>
    %c0_125 = arith.constant 0 : index
    %c0_126 = arith.constant 0 : index
    %171 = vector.load %arg16[%c0_125, %c0_126] : memref<128x128xf32, #tpu.memory_space<vmem>>, vector<128x128xf32>
    tpu.vector_store %arg16[%c0_125, %c0_126], %170 {strides = array<i32>} : memref<128x128xf32, #tpu.memory_space<vmem>>, vector<128x128xf32>,
    return
  }
  func.func @transform_0(%arg0: i32) -> (i32, i32) {
    %c0_i32 = arith.constant 0 : i32
    %c0_i32_0 = arith.constant 0 : i32
    %c0_i32_1 = arith.constant 0 : i32
    return %c0_i32, %c0_i32_0 : i32, i32
  }
  func.func @transform_1(%arg0: i32) -> (i32, i32) {
    %c0_i32 = arith.constant 0 : i32
    %c0_i32_0 = arith.constant 0 : i32
    %c0_i32_1 = arith.constant 0 : i32
    return %c0_i32, %c0_i32_0 : i32, i32
  }
  func.func @transform_2(%arg0: i32) -> (i32, i32) {
    %c0_i32 = arith.constant 0 : i32
    %c0_i32_0 = arith.constant 0 : i32
    %c0_i32_1 = arith.constant 0 : i32
    return %c0_i32, %c0_i32_0 : i32, i32
  }
  func.func @transform_3(%arg0: i32) -> (i32, i32) {
    %c0_i32 = arith.constant 0 : i32
    %c0_i32_0 = arith.constant 0 : i32
    %c0_i32_1 = arith.constant 0 : i32
    return %c0_i32, %c0_i32_0 : i32, i32
  }
  func.func @transform_4(%arg0: i32) -> (i32, i32) {
    %c0_i32 = arith.constant 0 : i32
    %c0_i32_0 = arith.constant 0 : i32
    %c0_i32_1 = arith.constant 0 : i32
    return %c0_i32, %c0_i32_0 : i32, i32
  }
  func.func @transform_5(%arg0: i32) -> (i32, i32) {
    %c0_i32 = arith.constant 0 : i32
    %c0_i32_0 = arith.constant 0 : i32
    %c0_i32_1 = arith.constant 0 : i32
    return %c0_i32, %c0_i32_0 : i32, i32
  }
  func.func @transform_6(%arg0: i32) -> (i32, i32, i32) {
    %c0_i32 = arith.constant 0 : i32
    %c0_i32_0 = arith.constant 0 : i32
    %c0_i32_1 = arith.constant 0 : i32
    %c0_i32_2 = arith.constant 0 : i32
    return %c0_i32, %c0_i32_0, %c0_i32_1 : i32, i32, i32
  }
  func.func @transform_7(%arg0: i32) -> (i32, i32, i32) {
    %c0_i32 = arith.constant 0 : i32
    %c0_i32_0 = arith.constant 0 : i32
    %c0_i32_1 = arith.constant 0 : i32
    %c0_i32_2 = arith.constant 0 : i32
    return %c0_i32, %c0_i32_0, %c0_i32_1 : i32, i32, i32
  }
  func.func @transform_8(%arg0: i32) -> (i32, i32, i32) {
    %c0_i32 = arith.constant 0 : i32
    %c0_i32_0 = arith.constant 0 : i32
    %c0_i32_1 = arith.constant 0 : i32
    %c0_i32_2 = arith.constant 0 : i32
    return %c0_i32, %c0_i32_0, %c0_i32_1 : i32, i32, i32
  }
  func.func @transform_9(%arg0: i32) -> (i32, i32, i32) {
    %c0_i32 = arith.constant 0 : i32
    %c0_i32_0 = arith.constant 0 : i32
    %c0_i32_1 = arith.constant 0 : i32
    %c0_i32_2 = arith.constant 0 : i32
    return %c0_i32, %c0_i32_0, %c0_i32_1 : i32, i32, i32
  }
  func.func @transform_10(%arg0: i32) -> (i32, i32, i32) {
    %c0_i32 = arith.constant 0 : i32
    %c0_i32_0 = arith.constant 0 : i32
    %c0_i32_1 = arith.constant 0 : i32
    %c0_i32_2 = arith.constant 0 : i32
    return %c0_i32, %c0_i32_0, %c0_i32_1 : i32, i32, i32
  }
  func.func @transform_11(%arg0: i32) -> (i32, i32, i32) {
    %c0_i32 = arith.constant 0 : i32
    %c0_i32_0 = arith.constant 0 : i32
    %c0_i32_1 = arith.constant 0 : i32
    %c0_i32_2 = arith.constant 0 : i32
    return %c0_i32, %c0_i32_0, %c0_i32_1 : i32, i32, i32
  }
  func.func @transform_12(%arg0: i32) -> (i32, i32, i32) {
    %c0_i32 = arith.constant 0 : i32
    %c0_i32_0 = arith.constant 0 : i32
    %c0_i32_1 = arith.constant 0 : i32
    %c0_i32_2 = arith.constant 0 : i32
    return %c0_i32, %c0_i32_0, %c0_i32_1 : i32, i32, i32
  }
  func.func @transform_13(%arg0: i32) -> (i32, i32) {
    %c0_i32 = arith.constant 0 : i32
    %c0_i32_0 = arith.constant 0 : i32
    %c0_i32_1 = arith.constant 0 : i32
    return %c0_i32, %c0_i32_0 : i32, i32
  }
  func.func @transform_14(%arg0: i32) -> (i32, i32) {
    %c0_i32 = arith.constant 0 : i32
    %c0_i32_0 = arith.constant 0 : i32
    %c0_i32_1 = arith.constant 0 : i32
    return %c0_i32, %c0_i32_0 : i32, i32
  }
  func.func @transform_15(%arg0: i32) -> (i32, i32) {
    %c0_i32 = arith.constant 0 : i32
    %c0_i32_0 = arith.constant 0 : i32
    %c0_i32_1 = arith.constant 0 : i32
    return %c0_i32, %c0_i32_0 : i32, i32
  }
}

</mosaic_0001>

<bundles_post_ra>
// kernel: fused_forward.1
= control target key start
LH: loop header
LB: loop body
LE: loop exit
PB: predicated region body
PF: predicated region fallthrough
CT: control target
= control target key end

     0   :  { %20 = vsyncpa [#allocation4], 0  ;;  %s17161_s0 = inlined_call_operand.hbm [shape: bf16[128,128], index: 0, kind: input, shape index: {}]   ;;  %s17162_s1 = inlined_call_operand.vmem [shape: f32[512,1], index: 1, kind: input, shape index: {}]   ;;  %s17163_s2 = inlined_call_operand.hbm [shape: bf16[512,256], index: 2, kind: input, shape index: {}]   ;;  %s17164_s3 = inlined_call_operand.vmem [shape: bf16[512,512], index: 3, kind: input, shape index: {}]   ;;  %s17165_s4 = inlined_call_operand.vmem [shape: f32[512,1], index: 4, kind: input, shape index: {}]   ;;  %s17166_s5 = inlined_call_operand.hbm [shape: bf16[128,512], index: 5, kind: input, shape index: {}]   ;;  %s17167_s6 = inlined_call_operand.hbm [shape: bf16[3,128,256], index: 6, kind: input, shape index: {}]   ;;  %s17168_s7 = inlined_call_operand.vmem [shape: f32[3,1,128], index: 7, kind: input, shape index: {}]   ;;  %s17169_s8 = inlined_call_operand.vmem [shape: f32[3,1,128], index: 8, kind: input, shape index: {}]   ;;  %s17170_s9 = inlined_call_operand.hbm [shape: bf16[3,128,128], index: 9, kind: input, shape index: {}]   ;;  %s17171_s10 = inlined_call_operand.vmem [shape: f32[3,1,128], index: 10, kind: input, shape index: {}]   ;;  %s17172_s11 = inlined_call_operand.hbm [shape: bf16[3,128,128], index: 11, kind: input, shape index: {}]   ;;  %s17173_s12 = inlined_call_operand.vmem [shape: f32[3,1,128], index: 12, kind: input, shape index: {}]   ;;  %s17174_s13 = inlined_call_operand.hbm [shape: bf16[128,128], index: 13, kind: input, shape index: {}]   ;;  %s17175_s14 = inlined_call_operand.vmem [shape: f32[1,128], index: 14, kind: input, shape index: {}]   ;;  %s17176_s15 = inlined_call_operand.hbm [shape: f32[128,128], index: 15, kind: output, shape index: {}]  }
   0x1   :  { %21 = vsyncpa [#allocation7], 0 }
   0x2   :  { %22 = vsyncpa [#allocation10], 0 }
   0x3   :  { %23 = vsyncpa [#allocation13], 0 }
   0x4   :  { %24 = vsyncpa [#allocation5], 0  ;;  %s13672_s18 = smov [#allocation6]   ;;  %s13486_s22 = scalar_lea.hbm %s17163_s2, 8192 }
   0x5   :  { %s44_s19 = sshll.u32 %s13672_s18, 4  ;;  %p13487_p0 = scmp.ne.s32.totalorder %s17163_s2, %s13486_s22  ;;  %s45_s19 = int_to_ptr.vmem [resolvable:$true] %s44_s19 }
   0x6   :  { %p13490_p1 = scmp.lt.u32.totalorder %s13486_s22, %s17163_s2 }
   0x8   :  { %p13492_p2 = pnand %p13490_p1, %p13487_p0 }
   0xa   :  { %13495 = shalt.err (!%p13492_p2)
}
   0xb   :  { %s13496_s27 = scalar_lea.vmem %s45_s19, 8192  ;;  %p13501_p4 = scmp.lt.s32.totalorder %s45_s19, %s45_s19 }
   0xc   :  { %p13497_p3 = scmp.ne.s32.totalorder %s45_s19, %s13496_s27  ;;  %p13502_p5 = scmp.lt.s32.totalorder %s13496_s27, %s13496_s27 }
   0xe   :  { %p13503_p6 = por %p13502_p5, %p13501_p4 }
  0x10   :  { %p13504_p7 = pnand %p13503_p6, %p13497_p3 }
  0x12   :  { %13507 = shalt.err (!%p13504_p7)
}
  0x13   :  { %s17177_s28 = smov 128   ;;  %s13674_s29 = smov 8  }
  0x14   :  { %50 = dma.hbm_to_vmem [thread:$0]  %s17163_s2, 8192, %s45_s19, [#allocation7], %s17177_s28, %s17177_s28, %s13674_s29  }
  0x15   :  { %s13675_s17 = smov [#allocation9]   ;;  %s13508_s22 = scalar_lea.hbm %s17167_s6, 6144 }
  0x16   :  { %s72_s18 = sshll.u32 %s13675_s17, 4  ;;  %p13509_p8 = scmp.ne.s32.totalorder %s17167_s6, %s13508_s22  ;;  %s73_s18 = int_to_ptr.vmem [resolvable:$true] %s72_s18 }
  0x17   :  { %p13512_p9 = scmp.lt.u32.totalorder %s13508_s22, %s17167_s6 }
  0x19   :  { %p13514_p10 = pnand %p13512_p9, %p13509_p8 }
  0x1b   :  { %13517 = shalt.err (!%p13514_p10)
}
  0x1c   :  { %s13518_s27 = scalar_lea.vmem %s73_s18, 6144  ;;  %p13523_p12 = scmp.lt.s32.totalorder %s73_s18, %s73_s18 }
  0x1d   :  { %p13519_p11 = scmp.ne.s32.totalorder %s73_s18, %s13518_s27  ;;  %p13524_p13 = scmp.lt.s32.totalorder %s13518_s27, %s13518_s27 }
  0x1f   :  { %p13525_p0 = por %p13524_p13, %p13523_p12 }
  0x21   :  { %p13526_p1 = pnand %p13525_p0, %p13519_p11 }
  0x23   :  { %13529 = shalt.err (!%p13526_p1)
}
  0x24   :  { %78 = dma.hbm_to_vmem [thread:$0]  %s17167_s6, 6144, %s73_s18, [#allocation10], %s17177_s28, %s17177_s28, %s13674_s29  }
  0x25   :  { %s13676_s30 = smov [#allocation12]   ;;  %s13677_s17 = smov [#allocation3]  }
  0x26   :  { %s102_s16 = sshll.u32 %s13676_s30, 4  ;;  %s30_s20 = sshll.u32 %s13677_s17, 4  ;;  %s103_s16 = int_to_ptr.vmem [resolvable:$true] %s102_s16  ;;  %s13797_s20 = int_to_ptr.vmem [resolvable:$true] %s30_s20 }
  0x27   :  { %s13530_s23 = scalar_lea.hbm %s17172_s11, 3072 }
  0x28   :  { %p13531_p2 = scmp.ne.s32.totalorder %s17172_s11, %s13530_s23  ;;  %p13534_p3 = scmp.lt.u32.totalorder %s13530_s23, %s17172_s11 }
  0x2a   :  { %p13536_p4 = pnand %p13534_p3, %p13531_p2 }
  0x2c   :  { %13539 = shalt.err (!%p13536_p4)
}
  0x2d   :  { %s13540_s6 = scalar_lea.vmem %s103_s16, 3072  ;;  %p13545_p6 = scmp.lt.s32.totalorder %s103_s16, %s103_s16 }
  0x2e   :  { %p13541_p5 = scmp.ne.s32.totalorder %s103_s16, %s13540_s6  ;;  %p13546_p7 = scmp.lt.s32.totalorder %s13540_s6, %s13540_s6 }
  0x30   :  { %p13547_p8 = por %p13546_p7, %p13545_p6 }
  0x32   :  { %p13548_p9 = pnand %p13547_p8, %p13541_p5 }
  0x34   :  { %13551 = shalt.err (!%p13548_p9)
}
  0x35   :  { %s13678_s18 = smov 64   ;;  %s13679_s2 = smov 4  }
  0x36   :  { %108 = dma.hbm_to_vmem [thread:$0]  %s17172_s11, 3072, %s103_s16, [#allocation13], %s13678_s18, %s13678_s18, %s13679_s2  }
  0x37   :  { %s13552_s22 = scalar_lea.hbm %s17161_s0, 1024 }
  0x38   :  { %p13553_p10 = scmp.ne.s32.totalorder %s17161_s0, %s13552_s22  ;;  %p13556_p11 = scmp.lt.u32.totalorder %s13552_s22, %s17161_s0 }
  0x3a   :  { %p13558_p12 = pnand %p13556_p11, %p13553_p10 }
  0x3c   :  { %13561 = shalt.err (!%p13558_p12)
}
  0x3d   :  { %s13562_s27 = scalar_lea.vmem %s13797_s20, 1024  ;;  %p13567_p0 = scmp.lt.s32.totalorder %s13797_s20, %s13797_s20 }
  0x3e   :  { %p13563_p13 = scmp.ne.s32.totalorder %s13797_s20, %s13562_s27  ;;  %p13568_p1 = scmp.lt.s32.totalorder %s13562_s27, %s13562_s27 }
  0x40   :  { %p13569_p2 = por %p13568_p1, %p13567_p0 }
  0x42   :  { %p13570_p3 = pnand %p13569_p2, %p13563_p13 }
  0x44   :  { %13573 = shalt.err (!%p13570_p3)
}
  0x45   :  { %36 = dma.hbm_to_vmem [thread:$0]  %s17161_s0, 1024, %s13797_s20, [#allocation4], %s13678_s18, %s13678_s18, %s13679_s2  }
  0x46   :  { %s13680_s6 = smov [#allocation8]   ;;  %s13574_s21 = scalar_lea.hbm %s17166_s5, 4096 }
  0x47   :  { %s60_s19 = sshll.u32 %s13680_s6, 4  ;;  %p13575_p4 = scmp.ne.s32.totalorder %s17166_s5, %s13574_s21  ;;  %s61_s19 = int_to_ptr.vmem [resolvable:$true] %s60_s19 }
  0x48   :  { %p13578_p5 = scmp.lt.u32.totalorder %s13574_s21, %s17166_s5 }
  0x4a   :  { %p13580_p6 = pnand %p13578_p5, %p13575_p4 }
  0x4c   :  { %13583 = shalt.err (!%p13580_p6)
}
  0x4d   :  { %s13584_s26 = scalar_lea.vmem %s61_s19, 4096  ;;  %p13589_p8 = scmp.lt.s32.totalorder %s61_s19, %s61_s19 }
  0x4e   :  { %p13585_p7 = scmp.ne.s32.totalorder %s61_s19, %s13584_s26  ;;  %p13590_p9 = scmp.lt.s32.totalorder %s13584_s26, %s13584_s26 }
  0x50   :  { %p13591_p10 = por %p13590_p9, %p13589_p8 }
  0x52   :  { %p13592_p11 = pnand %p13591_p10, %p13585_p7 }
  0x54   :  { %13595 = shalt.err (!%p13592_p11)
}
  0x55   :  { %s13681_s0 = smov 256   ;;  %s13682_s20 = smov 16  }
  0x56   :  { %66 = dma.hbm_to_vmem [thread:$0]  %s17166_s5, 4096, %s61_s19, [#allocation7], %s13681_s0, %s13681_s0, %s13682_s20  }
  0x57   :  { %s13683_s16 = smov [#allocation11]   ;;  %s13684_s30 = smov [#allocation14]  }
  0x58   :  { %s88_s6 = sshll.u32 %s13683_s16, 4  ;;  %s116_s17 = sshll.u32 %s13684_s30, 4  ;;  %s89_s6 = int_to_ptr.vmem [resolvable:$true] %s88_s6  ;;  %s117_s17 = int_to_ptr.vmem [resolvable:$true] %s116_s17 }
  0x59   :  { %s13596_s23 = scalar_lea.hbm %s17170_s9, 3072 }
  0x5a   :  { %p13597_p12 = scmp.ne.s32.totalorder %s17170_s9, %s13596_s23  ;;  %p13600_p13 = scmp.lt.u32.totalorder %s13596_s23, %s17170_s9 }
  0x5c   :  { %p13602_p0 = pnand %p13600_p13, %p13597_p12 }
  0x5e   :  { %13605 = shalt.err (!%p13602_p0)
}
  0x5f   :  { %s13606_s5 = scalar_lea.vmem %s89_s6, 3072  ;;  %p13611_p2 = scmp.lt.s32.totalorder %s89_s6, %s89_s6 }
  0x60   :  { %p13607_p1 = scmp.ne.s32.totalorder %s89_s6, %s13606_s5  ;;  %p13612_p3 = scmp.lt.s32.totalorder %s13606_s5, %s13606_s5 }
  0x62   :  { %p13613_p4 = por %p13612_p3, %p13611_p2 }
  0x64   :  { %p13614_p5 = pnand %p13613_p4, %p13607_p1 }
  0x66   :  { %13617 = shalt.err (!%p13614_p5)
}
  0x67   :  { %94 = dma.hbm_to_vmem [thread:$0]  %s17170_s9, 3072, %s89_s6, [#allocation10], %s13678_s18, %s13678_s18, %s13679_s2  }
  0x68   :  { %s13618_s27 = scalar_lea.hbm %s17174_s13, 1024 }
  0x69   :  { %p13619_p6 = scmp.ne.s32.totalorder %s17174_s13, %s13618_s27  ;;  %p13622_p7 = scmp.lt.u32.totalorder %s13618_s27, %s17174_s13 }
  0x6b   :  { %p13624_p8 = pnand %p13622_p7, %p13619_p6 }
  0x6d   :  { %13627 = shalt.err (!%p13624_p8)
}
  0x6e   :  { %s13628_s22 = scalar_lea.vmem %s117_s17, 1024  ;;  %p13633_p10 = scmp.lt.s32.totalorder %s117_s17, %s117_s17 }
  0x6f   :  { %p13629_p9 = scmp.ne.s32.totalorder %s117_s17, %s13628_s22  ;;  %p13634_p11 = scmp.lt.s32.totalorder %s13628_s22, %s13628_s22 }
  0x71   :  { %p13635_p12 = por %p13634_p11, %p13633_p10 }
  0x73   :  { %p13636_p13 = pnand %p13635_p12, %p13629_p9 }
  0x75   :  { %13639 = shalt.err (!%p13636_p13)
}
  0x76   :  { %122 = dma.hbm_to_vmem [thread:$0]  %s17174_s13, 1024, %s117_s17, [#allocation13], %s13678_s18, %s13678_s18, %s13679_s2  }
  0x77   :  { %13662 = dma.done.wait [#allocation4], 1024  }
  0x78   :  { %13663 = vsyncadd [#allocation4], 4294966272 }
  0x79   :  { %13664 = dma.done.wait [#allocation7], 12288  }
  0x7a   :  { %13665 = vsyncadd [#allocation7], 4294955008 }
  0x7b   :  { %13666 = dma.done.wait [#allocation10], 9216  }
  0x7c   :  { %13667 = vsyncadd [#allocation10], 4294958080 }
  0x7d   :  { %13668 = dma.done.wait [#allocation13], 4096  }
  0x7e   :  { %13669 = vsyncadd [#allocation13], 4294963200  ;;  %v17178_v0 = vmov 0   ;;  %v12560_v1 = vld [vmem:[#allocation9 + $0x4] ss:$8 sps:$4 sm:$0xff]   ;;  %v165_v14 = vld [vmem:[%s17162_s1 + $0x10] sm:$0xff] }
  0x7f   :  { %691 = vmatprep.mubr.bf16.mxu0 %v17178_v0  ;;  %12558 = vset.pattern.permute.xlu0 %v17178_v0  ;;  %v12562_v2 = vld [vmem:[#allocation9] ss:$8 sps:$4 sm:$0xff]   ;;  %v12563_v3 = vld [vmem:[#allocation9 + $0x14] ss:$8 sps:$4 sm:$0xff]   ;;  %v12565_v4 = vld [vmem:[#allocation9 + $0x10] ss:$8 sps:$4 sm:$0xff]  }
  0x80   :  { %12559 = vset.pattern.permute.xlu1 %v17178_v0  ;;  %1531 = vmatprep.subr.bf16.mxu1 %v17178_v0  ;;  %v12566_v5 = vld [vmem:[#allocation9 + $0x24] ss:$8 sps:$4 sm:$0xff]   ;;  %v12568_v6 = vld [vmem:[#allocation9 + $0x20] ss:$8 sps:$4 sm:$0xff]   ;;  %v12569_v7 = vld [vmem:[#allocation9 + $0x34] ss:$8 sps:$4 sm:$0xff]  }
  0x81   :  { %659 = vmatprep.subr.bf16.mxu0 %v12560_v1  ;;  %v12571_v8 = vld [vmem:[#allocation9 + $0x30] ss:$8 sps:$4 sm:$0xff]   ;;  %v12572_v9 = vld [vmem:[#allocation9 + $0x44] ss:$8 sps:$4 sm:$0xff]   ;;  %v12574_v10 = vld [vmem:[#allocation9 + $0x40] ss:$8 sps:$4 sm:$0xff]   ;;  %833 = vperm.xlu1 %12559, %v165_v14  }
  0x82   :  { %660 = vmatpush1.bf16.msra.mxu0 %v12562_v2  ;;  %v12575_v11 = vld [vmem:[#allocation9 + $0x54] ss:$8 sps:$4 sm:$0xff]   ;;  %v163_v12 = vld [vmem:[%s17162_s1] sm:$0xff]  ;;  %v12577_v13 = vld [vmem:[#allocation9 + $0x50] ss:$8 sps:$4 sm:$0xff]  }
  0x83   :  { %661 = vmatprep.subr.bf16.mxu0 %v12563_v3  ;;  %823 = vperm.xlu0 %12558, %v163_v12   ;;  %v12578_v15 = vld [vmem:[#allocation9 + $0x64] ss:$8 sps:$4 sm:$0xff]   ;;  %v12580_v17 = vld [vmem:[#allocation9 + $0x60] ss:$8 sps:$4 sm:$0xff]   ;;  %v166_v18 = vld [vmem:[%s17162_s1 + $0x18] sm:$0xff] }
  0x84   :  { %v164_v16 = vld [vmem:[%s17162_s1 + $0x8] sm:$0xff]  ;;  %v12581_v19 = vld [vmem:[#allocation9 + $0x74] ss:$8 sps:$4 sm:$0xff]   ;;  %v167_v20 = vld [vmem:[%s17162_s1 + $0x20] sm:$0xff] }
  0x85   :  { %v168_v21 = vld [vmem:[%s17162_s1 + $0x28] sm:$0xff]  ;;  %838 = vperm.xlu1 %12559, %v166_v18   ;;  %v12583_v22 = vld [vmem:[#allocation9 + $0x70] ss:$8 sps:$4 sm:$0xff]   ;;  %v12584_v25 = vld [vmem:[#allocation3] sm:$0xff]  }
  0x86   :  { %662 = vmatpush1.bf16.msra.mxu0 %v12565_v4  ;;  %v169_v23 = vld [vmem:[%s17162_s1 + $0x30] sm:$0xff]  ;;  %v170_v24 = vld [vmem:[%s17162_s1 + $0x38] sm:$0xff]  ;;  %v171_v26 = vld [vmem:[%s17162_s1 + $0x40] sm:$0xff] }
  0x87   :  { %663 = vmatprep.subr.bf16.mxu0 %v12566_v5  ;;  %828 = vperm.xlu0 %12558, %v164_v16   ;;  %v12585_v27 = vld [vmem:[#allocation3 + $0x8] sm:$0xff]   ;;  %v12586_v28 = vld [vmem:[#allocation3 + $0x10] sm:$0xff]   ;;  %v12587_v29 = vld [vmem:[#allocation3 + $0x18] sm:$0xff]  }
  0x88   :  { %v12588_v30 = vld [vmem:[#allocation3 + $0x20] sm:$0xff]   ;;  %v12589_v31 = vld [vmem:[#allocation3 + $0x28] sm:$0xff]   ;;  %v12590_v32 = vld [vmem:[#allocation3 + $0x30] sm:$0xff]  }
  0x89   :  { %848 = vperm.xlu1 %12559, %v168_v21   ;;  %v12591_v33 = vld [vmem:[#allocation3 + $0x38] sm:$0xff]   ;;  %v172_v34 = vld [vmem:[%s17162_s1 + $0x48] sm:$0xff]  ;;  %v173_v35 = vld [vmem:[%s17162_s1 + $0x50] sm:$0xff] }
  0x8a   :  { %664 = vmatpush1.bf16.msra.mxu0 %v12568_v6  ;;  %v174_v36 = vld [vmem:[%s17162_s1 + $0x58] sm:$0xff]  ;;  %v175_v37 = vld [vmem:[%s17162_s1 + $0x60] sm:$0xff]  ;;  %v176_v38 = vld [vmem:[%s17162_s1 + $0x68] sm:$0xff] }
  0x8b   :  { %665 = vmatprep.subr.bf16.mxu0 %v12569_v7  ;;  %843 = vperm.xlu0 %12558, %v167_v20   ;;  %v177_v39 = vld [vmem:[%s17162_s1 + $0x70] sm:$0xff]  ;;  %v178_v40 = vld [vmem:[%s17162_s1 + $0x78] sm:$0xff]  ;;  %v179_v41 = vld [vmem:[%s17162_s1 + $0x80] sm:$0xff] }
  0x8c   :  { %v180_v42 = vld [vmem:[%s17162_s1 + $0x88] sm:$0xff]  ;;  %v181_v43 = vld [vmem:[%s17162_s1 + $0x90] sm:$0xff]  ;;  %v182_v44 = vld [vmem:[%s17162_s1 + $0x98] sm:$0xff] }
  0x8d   :  { %858 = vperm.xlu1 %12559, %v170_v24   ;;  %v183_v45 = vld [vmem:[%s17162_s1 + $0xa0] sm:$0xff]  ;;  %v184_v46 = vld [vmem:[%s17162_s1 + $0xa8] sm:$0xff]  ;;  %v185_v47 = vld [vmem:[%s17162_s1 + $0xb0] sm:$0xff] }
  0x8e   :  { %666 = vmatpush1.bf16.msra.mxu0 %v12571_v8  ;;  %v186_v48 = vld [vmem:[%s17162_s1 + $0xb8] sm:$0xff]  ;;  %v187_v49 = vld [vmem:[%s17162_s1 + $0xc0] sm:$0xff]  ;;  %v188_v50 = vld [vmem:[%s17162_s1 + $0xc8] sm:$0xff] }
  0x8f   :  { %667 = vmatprep.subr.bf16.mxu0 %v12572_v9  ;;  %853 = vperm.xlu0 %12558, %v169_v23   ;;  %v189_v51 = vld [vmem:[%s17162_s1 + $0xd0] sm:$0xff]  ;;  %v190_v52 = vld [vmem:[%s17162_s1 + $0xd8] sm:$0xff]  ;;  %v191_v53 = vld [vmem:[%s17162_s1 + $0xe0] sm:$0xff] }
  0x90   :  { %v192_v54 = vld [vmem:[%s17162_s1 + $0xe8] sm:$0xff]  ;;  %v193_v55 = vld [vmem:[%s17162_s1 + $0xf0] sm:$0xff]  ;;  %v194_v56 = vld [vmem:[%s17162_s1 + $0xf8] sm:$0xff] }
  0x91   :  { %868 = vperm.xlu1 %12559, %v172_v34   ;;  %v195_v57 = vld [vmem:[%s17162_s1 + $0x100] sm:$0xff]  ;;  %v196_v58 = vld [vmem:[%s17162_s1 + $0x108] sm:$0xff]  ;;  %v197_v59 = vld [vmem:[%s17162_s1 + $0x110] sm:$0xff] }
  0x92   :  { %668 = vmatpush1.bf16.msra.mxu0 %v12574_v10  ;;  %v198_v60 = vld [vmem:[%s17162_s1 + $0x118] sm:$0xff]  ;;  %v199_v61 = vld [vmem:[%s17162_s1 + $0x120] sm:$0xff]  ;;  %v200_v62 = vld [vmem:[%s17162_s1 + $0x128] sm:$0xff] }
  0x93   :  { %669 = vmatprep.subr.bf16.mxu0 %v12575_v11  ;;  %863 = vperm.xlu0 %12558, %v171_v26   ;;  %v201_v63 = vld [vmem:[%s17162_s1 + $0x130] sm:$0xff]  ;;  %v202_v1 = vld [vmem:[%s17162_s1 + $0x138] sm:$0xff]  ;;  %v203_v2 = vld [vmem:[%s17162_s1 + $0x140] sm:$0xff] }
  0x94   :  { %v204_v3 = vld [vmem:[%s17162_s1 + $0x148] sm:$0xff]  ;;  %v205_v4 = vld [vmem:[%s17162_s1 + $0x150] sm:$0xff]  ;;  %v206_v5 = vld [vmem:[%s17162_s1 + $0x158] sm:$0xff] }
  0x95   :  { %878 = vperm.xlu1 %12559, %v174_v36   ;;  %v207_v6 = vld [vmem:[%s17162_s1 + $0x160] sm:$0xff]  ;;  %v208_v7 = vld [vmem:[%s17162_s1 + $0x168] sm:$0xff]  ;;  %v209_v8 = vld [vmem:[%s17162_s1 + $0x170] sm:$0xff] }
  0x96   :  { %670 = vmatpush1.bf16.msra.mxu0 %v12577_v13  ;;  %v210_v9 = vld [vmem:[%s17162_s1 + $0x178] sm:$0xff]  ;;  %v211_v10 = vld [vmem:[%s17162_s1 + $0x180] sm:$0xff]  ;;  %v212_v11 = vld [vmem:[%s17162_s1 + $0x188] sm:$0xff] }
  0x97   :  { %671 = vmatprep.subr.bf16.mxu0 %v12578_v15  ;;  %873 = vperm.xlu0 %12558, %v173_v35   ;;  %v213_v12 = vld [vmem:[%s17162_s1 + $0x190] sm:$0xff]  ;;  %v214_v13 = vld [vmem:[%s17162_s1 + $0x198] sm:$0xff]  ;;  %v215_v14 = vld [vmem:[%s17162_s1 + $0x1a0] sm:$0xff] }
  0x98   :  { %v216_v15 = vld [vmem:[%s17162_s1 + $0x1a8] sm:$0xff]  ;;  %v217_v16 = vld [vmem:[%s17162_s1 + $0x1b0] sm:$0xff]  ;;  %v218_v18 = vld [vmem:[%s17162_s1 + $0x1b8] sm:$0xff] }
  0x99   :  { %888 = vperm.xlu1 %12559, %v176_v38   ;;  %v220_v20 = vld [vmem:[%s17162_s1 + $0x1c8] sm:$0xff]  ;;  %v221_v21 = vld [vmem:[%s17162_s1 + $0x1d0] sm:$0xff]  ;;  %v223_v23 = vld [vmem:[%s17162_s1 + $0x1e0] sm:$0xff] }
  0x9a   :  { %672 = vmatpush1.bf16.msra.mxu0 %v12580_v17  ;;  %v12592_v17 = vld [vmem:[#allocation6 + $0x4] ss:$8 sps:$4 sm:$0xff]   ;;  %v226_v26 = vld [vmem:[%s17162_s1 + $0x1f8] sm:$0xff] }
  0x9b   :  { %673 = vmatprep.subr.bf16.mxu0 %v12581_v19  ;;  %883 = vperm.xlu0 %12558, %v175_v37   ;;  %v219_v19 = vld [vmem:[%s17162_s1 + $0x1c0] sm:$0xff]  ;;  %v224_v24 = vld [vmem:[%s17162_s1 + $0x1e8] sm:$0xff]  ;;  %v426_v34 = vld [vmem:[%s17165_s4 + $0x38] sm:$0xff] }
  0x9c   :  { %1563 = vmatprep.mubr.bf16.mxu1 %v12592_v17  ;;  %v427_v35 = vld [vmem:[%s17165_s4 + $0x40] sm:$0xff]  ;;  %v428_v38 = vld [vmem:[%s17165_s4 + $0x48] sm:$0xff] }
  0x9d   :  { %898 = vperm.xlu1 %12559, %v178_v40  }
  0x9e   :  { %674 = vmatpush1.bf16.msra.mxu0 %v12583_v22  ;;  %v222_v22 = vld [vmem:[%s17162_s1 + $0x1d8] sm:$0xff] }
  0x9f   :  { %2627 = vmatprep.subr.bf16.mxu0 %v17178_v0  ;;  %893 = vperm.xlu0 %12558, %v177_v39   ;;  %v429_v39 = vld [vmem:[%s17165_s4 + $0x50] sm:$0xff] }
  0xa1   :  { %692 = vmatmul.mubr.bf16.vlgmr.msra.gmra.mrb[0].mxu0 %v12584_v25  ;;  %908 = vperm.xlu1 %12559, %v180_v42   ;;  %v225_v25 = vld [vmem:[%s17162_s1 + $0x1f0] sm:$0xff] }
  0xa2   :  { %701 = vmatprep.mubr.bf16.mxu0 %v17178_v0 }
  0xa3   :  { %903 = vperm.xlu0 %12558, %v179_v41  }
  0xa5   :  { %918 = vperm.xlu1 %12559, %v182_v44   ;;  %v430_v44 = vld [vmem:[%s17165_s4 + $0x58] sm:$0xff] }
  0xa7   :  { %913 = vperm.xlu0 %12558, %v181_v43  }
  0xa9   :  { %702 = vmatmul.mubr.bf16.gmra.mrb[4].mxu0 %v12585_v27  ;;  %928 = vperm.xlu1 %12559, %v184_v46   ;;  %v419_v27 = vld [vmem:[%s17165_s4] sm:$0xff] }
  0xaa   :  { %711 = vmatprep.mubr.bf16.mxu0 %v17178_v0 }
  0xab   :  { %923 = vperm.xlu0 %12558, %v183_v45   ;;  %v431_v45 = vld [vmem:[%s17165_s4 + $0x60] sm:$0xff] }
  0xad   :  { %938 = vperm.xlu1 %12559, %v186_v48   ;;  %v432_v48 = vld [vmem:[%s17165_s4 + $0x68] sm:$0xff] }
  0xaf   :  { %933 = vperm.xlu0 %12558, %v185_v47  }
  0xb1   :  { %712 = vmatmul.mubr.bf16.gmra.mrb[8].mxu0 %v12586_v28  ;;  %948 = vperm.xlu1 %12559, %v188_v50   ;;  %v420_v28 = vld [vmem:[%s17165_s4 + $0x8] sm:$0xff] }
  0xb2   :  { %721 = vmatprep.mubr.bf16.mxu0 %v17178_v0 }
  0xb3   :  { %943 = vperm.xlu0 %12558, %v187_v49   ;;  %v433_v49 = vld [vmem:[%s17165_s4 + $0x70] sm:$0xff] }
  0xb5   :  { %958 = vperm.xlu1 %12559, %v190_v52  }
  0xb7   :  { %953 = vperm.xlu0 %12558, %v189_v51  }
  0xb9   :  { %722 = vmatmul.mubr.bf16.gmra.mrb[12].mxu0 %v12587_v29  ;;  %968 = vperm.xlu1 %12559, %v192_v54   ;;  %v421_v29 = vld [vmem:[%s17165_s4 + $0x10] sm:$0xff]  ;;  %v434_v54 = vld [vmem:[%s17165_s4 + $0x78] sm:$0xff] }
  0xba   :  { %731 = vmatprep.mubr.bf16.mxu0 %v17178_v0 }
  0xbb   :  { %963 = vperm.xlu0 %12558, %v191_v53  }
  0xbd   :  { %978 = vperm.xlu1 %12559, %v194_v56  }
  0xbf   :  { %973 = vperm.xlu0 %12558, %v193_v55   ;;  %v435_v55 = vld [vmem:[%s17165_s4 + $0x80] sm:$0xff] }
  0xc1   :  { %732 = vmatmul.mubr.bf16.gmra.mrb[16].mxu0 %v12588_v30  ;;  %988 = vperm.xlu1 %12559, %v196_v58   ;;  %v422_v30 = vld [vmem:[%s17165_s4 + $0x18] sm:$0xff]  ;;  %v436_v58 = vld [vmem:[%s17165_s4 + $0x88] sm:$0xff] }
  0xc2   :  { %741 = vmatprep.mubr.bf16.mxu0 %v17178_v0 }
  0xc3   :  { %983 = vperm.xlu0 %12558, %v195_v57  }
  0xc5   :  { %998 = vperm.xlu1 %12559, %v198_v60  }
  0xc7   :  { %993 = vperm.xlu0 %12558, %v197_v59   ;;  %v437_v59 = vld [vmem:[%s17165_s4 + $0x90] sm:$0xff] }
  0xc9   :  { %742 = vmatmul.mubr.bf16.gmra.mrb[20].mxu0 %v12589_v31  ;;  %1008 = vperm.xlu1 %12559, %v200_v62   ;;  %v423_v31 = vld [vmem:[%s17165_s4 + $0x20] sm:$0xff] }
  0xca   :  { %751 = vmatprep.mubr.bf16.mxu0 %v17178_v0 }
  0xcb   :  { %1003 = vperm.xlu0 %12558, %v199_v61  }
  0xcd   :  { %1018 = vperm.xlu1 %12559, %v202_v1   ;;  %v438_v1 = vld [vmem:[%s17165_s4 + $0x98] sm:$0xff] }
  0xcf   :  { %1013 = vperm.xlu0 %12558, %v201_v63  }
  0xd1   :  { %752 = vmatmul.mubr.bf16.gmra.mrb[24].mxu0 %v12590_v32  ;;  %1028 = vperm.xlu1 %12559, %v204_v3   ;;  %v424_v32 = vld [vmem:[%s17165_s4 + $0x28] sm:$0xff] }
  0xd2   :  { %761 = vmatprep.mubr.bf16.mxu0 %v17178_v0 }
  0xd3   :  { %1023 = vperm.xlu0 %12558, %v203_v2   ;;  %v439_v2 = vld [vmem:[%s17165_s4 + $0xa0] sm:$0xff] }
  0xd5   :  { %1038 = vperm.xlu1 %12559, %v206_v5  }
  0xd7   :  { %1033 = vperm.xlu0 %12558, %v205_v4  }
  0xd9   :  { %762 = vmatmul.mubr.bf16.gmra.mrb[28].mxu0 %v12591_v33  ;;  %1048 = vperm.xlu1 %12559, %v208_v7   ;;  %v425_v33 = vld [vmem:[%s17165_s4 + $0x30] sm:$0xff] }
  0xda   :  { %v441_v7 = vld [vmem:[%s17165_s4 + $0xb0] sm:$0xff] }
  0xdb   :  { %1043 = vperm.xlu0 %12558, %v207_v6   ;;  %v440_v6 = vld [vmem:[%s17165_s4 + $0xa8] sm:$0xff] }
  0xdd   :  { %1058 = vperm.xlu1 %12559, %v210_v9  }
  0xdf   :  { %1053 = vperm.xlu0 %12558, %v209_v8  }
  0xe1   :  { %1068 = vperm.xlu1 %12559, %v212_v11  }
  0xe3   :  { %1063 = vperm.xlu0 %12558, %v211_v10  }
  0xe5   :  { %1078 = vperm.xlu1 %12559, %v214_v13   ;;  %v442_v13 = vld [vmem:[%s17165_s4 + $0xb8] sm:$0xff] }
  0xe7   :  { %1073 = vperm.xlu0 %12558, %v213_v12  }
  0xe9   :  { %1088 = vperm.xlu1 %12559, %v216_v15  }
  0xeb   :  { %1083 = vperm.xlu0 %12558, %v215_v14   ;;  %v443_v14 = vld [vmem:[%s17165_s4 + $0xc0] sm:$0xff] }
  0xed   :  { %1098 = vperm.xlu1 %12559, %v218_v18   ;;  %v444_v18 = vld [vmem:[%s17165_s4 + $0xc8] sm:$0xff] }
  0xef   :  { %1093 = vperm.xlu0 %12558, %v217_v16  }
  0xf1   :  { %1108 = vperm.xlu1 %12559, %v220_v20  }
  0xf3   :  { %1103 = vperm.xlu0 %12558, %v219_v19   ;;  %v445_v19 = vld [vmem:[%s17165_s4 + $0xd0] sm:$0xff] }
  0xf5   :  { %1118 = vperm.xlu1 %12559, %v222_v22  }
  0xf7   :  { %1113 = vperm.xlu0 %12558, %v221_v21  }
  0xf9   :  { %1128 = vperm.xlu1 %12559, %v224_v24  }
  0xfb   :  { %1123 = vperm.xlu0 %12558, %v223_v23  }
  0xfd   :  { %1138 = vperm.xlu1 %12559, %v226_v26   ;;  %v446_v26 = vld [vmem:[%s17165_s4 + $0xd8] sm:$0xff] }
  0xff   :  { %1133 = vperm.xlu0 %12558, %v225_v25  }
 0x100   :  { %v14178_v12 = vpop.permute.xlu1 %833 }
 0x101   :  { %3212 = vperm.xlu1 %12559, %v420_v28  }
 0x102   :  { %v14166_v5 = vpop.permute.xlu0 %823 }
 0x103   :  { %3207 = vperm.xlu0 %12558, %v419_v27   ;;  %v447_v27 = vld [vmem:[%s17165_s4 + $0xe0] sm:$0xff] }
 0x104   :  { %v14197_v21 = vpop.permute.xlu1 %838 }
 0x105   :  { %3222 = vperm.xlu1 %12559, %v422_v30  }
 0x106   :  { %v14187_v15 = vpop.permute.xlu0 %828 }
 0x107   :  { %3217 = vperm.xlu0 %12558, %v421_v29  }
 0x108   :  { %v14212_v29 = vpop.permute.xlu1 %848 }
 0x109   :  { %3232 = vperm.xlu1 %12559, %v424_v32   ;;  %v449_v32 = vld [vmem:[%s17165_s4 + $0xf0] sm:$0xff] }
 0x10a   :  { %v14203_v25 = vpop.permute.xlu0 %843 }
 0x10b   :  { %3227 = vperm.xlu0 %12558, %v423_v31   ;;  %v448_v31 = vld [vmem:[%s17165_s4 + $0xe8] sm:$0xff] }
 0x10d   :  { %3242 = vperm.xlu1 %12559, %v426_v34  }
 0x10f   :  { %3237 = vperm.xlu0 %12558, %v425_v33  }
 0x111   :  { %3252 = vperm.xlu1 %12559, %v428_v38  }
 0x113   :  { %3247 = vperm.xlu0 %12558, %v427_v35  }
 0x115   :  { %3262 = vperm.xlu1 %12559, %v430_v44  }
 0x117   :  { %3257 = vperm.xlu0 %12558, %v429_v39   ;;  %v450_v39 = vld [vmem:[%s17165_s4 + $0xf8] sm:$0xff] }
 0x119   :  { %3272 = vperm.xlu1 %12559, %v432_v48   ;;  %v452_v48 = vld [vmem:[%s17165_s4 + $0x108] sm:$0xff] }
 0x11b   :  { %3267 = vperm.xlu0 %12558, %v431_v45  }
 0x11d   :  { %3282 = vperm.xlu1 %12559, %v434_v54  }
 0x11f   :  { %3277 = vperm.xlu0 %12558, %v433_v49   ;;  %v453_v49 = vld [vmem:[%s17165_s4 + $0x110] sm:$0xff] }
 0x121   :  { %3292 = vperm.xlu1 %12559, %v436_v58   ;;  %v454_v58 = vld [vmem:[%s17165_s4 + $0x118] sm:$0xff] }
 0x123   :  { %3287 = vperm.xlu0 %12558, %v435_v55  }
 0x125   :  { %3302 = vperm.xlu1 %12559, %v438_v1  }
 0x127   :  { %3297 = vperm.xlu0 %12558, %v437_v59   ;;  %v455_v59 = vld [vmem:[%s17165_s4 + $0x120] sm:$0xff] }
 0x129   :  { %3312 = vperm.xlu1 %12559, %v440_v6  }
 0x12b   :  { %3307 = vperm.xlu0 %12558, %v439_v2   ;;  %v456_v2 = vld [vmem:[%s17165_s4 + $0x128] sm:$0xff] }
 0x12d   :  { %3322 = vperm.xlu1 %12559, %v442_v13  }
 0x12f   :  { %3317 = vperm.xlu0 %12558, %v441_v7  }
 0x131   :  { %3332 = vperm.xlu1 %12559, %v444_v18   ;;  %v459_v18 = vld [vmem:[%s17165_s4 + $0x140] sm:$0xff] }
 0x133   :  { %3327 = vperm.xlu0 %12558, %v443_v14  }
 0x135   :  { %3342 = vperm.xlu1 %12559, %v446_v26  }
 0x137   :  { %3337 = vperm.xlu0 %12558, %v445_v19  }
 0x139   :  { %3352 = vperm.xlu1 %12559, %v448_v31   ;;  %v473_v31 = vld [vmem:[%s17165_s4 + $0x1b0] sm:$0xff] }
 0x13b   :  { %3347 = vperm.xlu0 %12558, %v447_v27  }
 0x13d   :  { %3362 = vperm.xlu1 %12559, %v450_v39   ;;  %v475_v39 = vld [vmem:[%s17165_s4 + $0x1c0] sm:$0xff] }
 0x13f   :  { %3357 = vperm.xlu0 %12558, %v449_v32  }
 0x141   :  { %3372 = vperm.xlu1 %12559, %v452_v48   ;;  %v12597_v48 = vld [vmem:[#allocation6 + $0x10] ss:$8 sps:$4 sm:$0xff]  }
 0x145   :  { %3382 = vperm.xlu1 %12559, %v454_v58   ;;  %v480_v58 = vld [vmem:[%s17165_s4 + $0x1e8] sm:$0xff] }
 0x149   :  { %3392 = vperm.xlu1 %12559, %v456_v2   ;;  %v12601_v2 = vld [vmem:[#allocation6 + $0x34] ss:$8 sps:$4 sm:$0xff]  }
 0x174   :  { %v693_v36 = vpop.f32.mrb[0].mxu0 }
 0x175   :  { %v14107_v37 = vpop.f32.mrb[1].mxu0 }
 0x176   :  { %v697_v40 = vpop.f32.mrb[2].mxu0 }
 0x177   :  { %v14115_v41 = vpop.f32.mrb[3].mxu0  ;;  %v772_v42 = vpack.c.bf16 %v697_v40, %v693_v36  ;;  %v14224_v36 = vpop.permute.xlu0 %853  ;;  %v451_v40 = vld [vmem:[%s17165_s4 + $0x100] sm:$0xff] }
 0x178   :  { %v788_v43 = vpack.c.bf16 %v14115_v41, %v14107_v37  ;;  %3367 = vperm.xlu0 %12558, %v451_v40   ;;  %v462_v37 = vld [vmem:[%s17165_s4 + $0x158] sm:$0xff]  ;;  %v463_v41 = vld [vmem:[%s17165_s4 + $0x160] sm:$0xff] }
 0x179   :  { %1532 = vmatpush1.bf16.msra.mxu1 %v772_v42  ;;  %v14235_v42 = vpop.permute.xlu1 %858 }
 0x17a   :  { %1533 = vmatprep.subr.bf16.mxu1 %v17178_v0 }
 0x17c   :  { %v703_v46 = vpop.f32.mrb[4].mxu0  ;;  %3377 = vperm.xlu0 %12558, %v453_v49  }
 0x17d   :  { %v14126_v47 = vpop.f32.mrb[5].mxu0 }
 0x17e   :  { %v707_v50 = vpop.f32.mrb[6].mxu0 }
 0x17f   :  { %v773_v51 = vpack.c.bf16 %v707_v50, %v703_v46  ;;  %v14134_v52 = vpop.f32.mrb[7].mxu0  ;;  %v14239_v46 = vpop.permute.xlu0 %863 }
 0x180   :  { %v789_v53 = vpack.c.bf16 %v14134_v52, %v14126_v47  ;;  %3387 = vperm.xlu0 %12558, %v455_v59   ;;  %v464_v52 = vld [vmem:[%s17165_s4 + $0x168] sm:$0xff] }
 0x181   :  { %1534 = vmatpush1.bf16.msra.mxu1 %v773_v51 }
 0x182   :  { %1535 = vmatprep.subr.bf16.mxu1 %v17178_v0 }
 0x184   :  { %v713_v56 = vpop.f32.mrb[8].mxu0 }
 0x185   :  { %v14145_v57 = vpop.f32.mrb[9].mxu0 }
 0x186   :  { %v717_v60 = vpop.f32.mrb[10].mxu0 }
 0x187   :  { %v774_v61 = vpack.c.bf16 %v717_v60, %v713_v56  ;;  %v14153_v62 = vpop.f32.mrb[11].mxu0  ;;  %v14251_v56 = vpop.permute.xlu1 %868 }
 0x188   :  { %v790_v63 = vpack.c.bf16 %v14153_v62, %v14145_v57  ;;  %v14260_v60 = vpop.permute.xlu0 %873  ;;  %v466_v57 = vld [vmem:[%s17165_s4 + $0x178] sm:$0xff]  ;;  %v467_v62 = vld [vmem:[%s17165_s4 + $0x180] sm:$0xff] }
 0x189   :  { %1536 = vmatpush1.bf16.msra.mxu1 %v774_v61 }
 0x18a   :  { %1537 = vmatprep.subr.bf16.mxu1 %v17178_v0 }
 0x18b   :  { %v14270_v7 = vpop.permute.xlu1 %878 }
 0x18c   :  { %v723_v3 = vpop.f32.mrb[12].mxu0  ;;  %v14276_v14 = vpop.permute.xlu0 %883 }
 0x18d   :  { %v14164_v4 = vpop.f32.mrb[13].mxu0 }
 0x18e   :  { %v727_v8 = vpop.f32.mrb[14].mxu0 }
 0x18f   :  { %v775_v9 = vpack.c.bf16 %v727_v8, %v723_v3  ;;  %v14174_v10 = vpop.f32.mrb[15].mxu0  ;;  %v457_v3 = vld [vmem:[%s17165_s4 + $0x130] sm:$0xff]  ;;  %v14285_v19 = vpop.permute.xlu1 %888 }
 0x190   :  { %v791_v11 = vpack.c.bf16 %v14174_v10, %v14164_v4  ;;  %3397 = vperm.xlu0 %12558, %v457_v3   ;;  %v14297_v26 = vpop.permute.xlu0 %893  ;;  %v468_v4 = vld [vmem:[%s17165_s4 + $0x188] sm:$0xff]  ;;  %v469_v10 = vld [vmem:[%s17165_s4 + $0x190] sm:$0xff] }
 0x191   :  { %1538 = vmatpush1.bf16.msra.mxu1 %v775_v9 }
 0x192   :  { %1539 = vmatprep.subr.bf16.mxu1 %v17178_v0 }
 0x194   :  { %v733_v16 = vpop.f32.mrb[16].mxu0  ;;  %3407 = vperm.xlu0 %12558, %v459_v18   ;;  %v14314_v47 = vpop.permute.xlu0 %903  ;;  %v12607_v18 = vld [vmem:[#allocation6 + $0x54] ss:$8 sps:$4 sm:$0xff]  }
 0x195   :  { %v14189_v17 = vpop.f32.mrb[17].mxu0 }
 0x196   :  { %v737_v20 = vpop.f32.mrb[18].mxu0 }
 0x197   :  { %v776_v22 = vpack.c.bf16 %v737_v20, %v733_v16  ;;  %v14199_v23 = vpop.f32.mrb[19].mxu0  ;;  %v458_v16 = vld [vmem:[%s17165_s4 + $0x138] sm:$0xff]  ;;  %v460_v20 = vld [vmem:[%s17165_s4 + $0x148] sm:$0xff] }
 0x198   :  { %v792_v24 = vpack.c.bf16 %v14199_v23, %v14189_v17  ;;  %3402 = vperm.xlu1 %12559, %v458_v16   ;;  %v470_v23 = vld [vmem:[%s17165_s4 + $0x198] sm:$0xff]  ;;  %v12606_v16 = vld [vmem:[#allocation6 + $0x40] ss:$8 sps:$4 sm:$0xff]  }
 0x199   :  { %1540 = vmatpush1.bf16.msra.mxu1 %v776_v22  ;;  %v461_v22 = vld [vmem:[%s17165_s4 + $0x150] sm:$0xff] }
 0x19a   :  { %1541 = vmatprep.subr.bf16.mxu1 %v17178_v0  ;;  %3417 = vperm.xlu0 %12558, %v461_v22   ;;  %v12610_v22 = vld [vmem:[#allocation6 + $0x64] ss:$8 sps:$4 sm:$0xff]  }
 0x19c   :  { %v743_v28 = vpop.f32.mrb[20].mxu0  ;;  %3412 = vperm.xlu1 %12559, %v460_v20   ;;  %v12609_v20 = vld [vmem:[#allocation6 + $0x50] ss:$8 sps:$4 sm:$0xff]  }
 0x19d   :  { %v14214_v30 = vpop.f32.mrb[21].mxu0 }
 0x19e   :  { %v747_v33 = vpop.f32.mrb[22].mxu0  ;;  %3427 = vperm.xlu0 %12558, %v463_v41   ;;  %v12613_v41 = vld [vmem:[#allocation6 + $0x74] ss:$8 sps:$4 sm:$0xff]  }
 0x19f   :  { %v777_v34 = vpack.c.bf16 %v747_v33, %v743_v28  ;;  %v14222_v35 = vpop.f32.mrb[23].mxu0  ;;  %v12594_v33 = vld [vmem:[#allocation6] ss:$8 sps:$4 sm:$0xff]  }
 0x1a0   :  { %v793_v38 = vpack.c.bf16 %v14222_v35, %v14214_v30  ;;  %3422 = vperm.xlu1 %12559, %v462_v37   ;;  %v472_v30 = vld [vmem:[%s17165_s4 + $0x1a8] sm:$0xff]  ;;  %v474_v35 = vld [vmem:[%s17165_s4 + $0x1b8] sm:$0xff] }
 0x1a1   :  { %1542 = vmatpush1.bf16.msra.mxu1 %v777_v34  ;;  %v12595_v34 = vld [vmem:[#allocation6 + $0x14] ss:$8 sps:$4 sm:$0xff]   ;;  %v12612_v37 = vld [vmem:[#allocation6 + $0x60] ss:$8 sps:$4 sm:$0xff]  }
 0x1a2   :  { %1543 = vmatprep.subr.bf16.mxu1 %v17178_v0 }
 0x1a4   :  { %v753_v44 = vpop.f32.mrb[24].mxu0  ;;  %3432 = vperm.xlu1 %12559, %v464_v52   ;;  %v12615_v52 = vld [vmem:[#allocation6 + $0x70] ss:$8 sps:$4 sm:$0xff]  }
 0x1a5   :  { %v14237_v45 = vpop.f32.mrb[25].mxu0 }
 0x1a6   :  { %v757_v50 = vpop.f32.mrb[26].mxu0 }
 0x1a7   :  { %v778_v51 = vpack.c.bf16 %v757_v50, %v753_v44  ;;  %v14247_v54 = vpop.f32.mrb[27].mxu0  ;;  %v476_v44 = vld [vmem:[%s17165_s4 + $0x1c8] sm:$0xff] }
 0x1a8   :  { %v794_v55 = vpack.c.bf16 %v14247_v54, %v14237_v45  ;;  %3442 = vperm.xlu1 %12559, %v466_v57   ;;  %v477_v45 = vld [vmem:[%s17165_s4 + $0x1d0] sm:$0xff]  ;;  %v12598_v50 = vld [vmem:[#allocation6 + $0x24] ss:$8 sps:$4 sm:$0xff]   ;;  %v12618_v57 = vld [vmem:[#allocation6 + $0x80] ss:$8 sps:$4 sm:$0xff]  }
 0x1a9   :  { %1544 = vmatpush1.bf16.msra.mxu1 %v778_v51  ;;  %v478_v51 = vld [vmem:[%s17165_s4 + $0x1d8] sm:$0xff]  ;;  %v479_v54 = vld [vmem:[%s17165_s4 + $0x1e0] sm:$0xff] }
 0x1aa   :  { %1545 = vmatprep.subr.bf16.mxu1 %v17178_v0 }
 0x1ac   :  { %v763_v61 = vpop.f32.mrb[28].mxu0 }
 0x1ad   :  { %v14262_v1 = vpop.f32.mrb[29].mxu0 }
 0x1ae   :  { %v767_v6 = vpop.f32.mrb[30].mxu0 }
 0x1af   :  { %v779_v8 = vpack.c.bf16 %v767_v6, %v763_v61  ;;  %v14272_v9 = vpop.f32.mrb[31].mxu0  ;;  %v481_v61 = vld [vmem:[%s17165_s4 + $0x1f0] sm:$0xff]  ;;  %v482_v6 = vld [vmem:[%s17165_s4 + $0x1f8] sm:$0xff] }
 0x1b0   :  { %v795_v13 = vpack.c.bf16 %v14272_v9, %v14262_v1  ;;  %v12600_v1 = vld [vmem:[#allocation6 + $0x20] ss:$8 sps:$4 sm:$0xff]   ;;  %v12603_v9 = vld [vmem:[#allocation6 + $0x30] ss:$8 sps:$4 sm:$0xff]  }
 0x1b1   :  { %1546 = vmatpush1.bf16.msra.mxu1 %v779_v8 }
 0x1b2   :  { %1547 = vmatprep.subr.bf16.mxu1 %v17178_v0 }
 0x1b5   :  { %1548 = vmatpush1.bf16.msra.mxu1 %v788_v43  ;;  %v14309_v43 = vpop.permute.xlu1 %898  ;;  %3452 = vperm.xlu1 %12559, %v468_v4   ;;  %v12621_v4 = vld [vmem:[#allocation6 + $0x90] ss:$8 sps:$4 sm:$0xff]  }
 0x1b6   :  { %1549 = vmatprep.subr.bf16.mxu1 %v17178_v0 }
 0x1b9   :  { %1550 = vmatpush1.bf16.msra.mxu1 %v789_v53  ;;  %v465_v53 = vld [vmem:[%s17165_s4 + $0x170] sm:$0xff]  ;;  %v14323_v27 = vpop.permute.xlu1 %908  ;;  %3462 = vperm.xlu1 %12559, %v470_v23   ;;  %v12624_v23 = vld [vmem:[#allocation6 + $0xa0] ss:$8 sps:$4 sm:$0xff]  }
 0x1ba   :  { %1551 = vmatprep.subr.bf16.mxu1 %v17178_v0  ;;  %3437 = vperm.xlu0 %12558, %v465_v53   ;;  %v12616_v53 = vld [vmem:[#allocation6 + $0x84] ss:$8 sps:$4 sm:$0xff]  }
 0x1bd   :  { %1552 = vmatpush1.bf16.msra.mxu1 %v790_v63  ;;  %v14335_v63 = vpop.permute.xlu0 %913 }
 0x1be   :  { %1553 = vmatprep.subr.bf16.mxu1 %v17178_v0  ;;  %3447 = vperm.xlu0 %12558, %v467_v62   ;;  %v12619_v62 = vld [vmem:[#allocation6 + $0x94] ss:$8 sps:$4 sm:$0xff]  }
 0x1c1   :  { %1554 = vmatpush1.bf16.msra.mxu1 %v791_v11  ;;  %v14347_v11 = vpop.permute.xlu1 %918  ;;  %v14352_v17 = vpop.permute.xlu0 %923  ;;  %3472 = vperm.xlu1 %12559, %v472_v30   ;;  %v12627_v30 = vld [vmem:[#allocation6 + $0xb0] ss:$8 sps:$4 sm:$0xff]  }
 0x1c2   :  { %1555 = vmatprep.subr.bf16.mxu1 %v17178_v0  ;;  %3457 = vperm.xlu0 %12558, %v469_v10   ;;  %v12622_v10 = vld [vmem:[#allocation6 + $0xa4] ss:$8 sps:$4 sm:$0xff]  }
 0x1c5   :  { %1556 = vmatpush1.bf16.msra.mxu1 %v792_v24  ;;  %v471_v24 = vld [vmem:[%s17165_s4 + $0x1a0] sm:$0xff]  ;;  %v14361_v28 = vpop.permute.xlu1 %928  ;;  %v14373_v32 = vpop.permute.xlu0 %933  ;;  %3482 = vperm.xlu1 %12559, %v474_v35   ;;  %v12633_v35 = vld [vmem:[#allocation6 + $0xd0] ss:$8 sps:$4 sm:$0xff]  }
 0x1c6   :  { %1557 = vmatprep.subr.bf16.mxu1 %v17178_v0  ;;  %3467 = vperm.xlu0 %12558, %v471_v24   ;;  %v12625_v24 = vld [vmem:[#allocation6 + $0xb4] ss:$8 sps:$4 sm:$0xff]  }
 0x1c9   :  { %1558 = vmatpush1.bf16.msra.mxu1 %v793_v38  ;;  %v14378_v38 = vpop.permute.xlu1 %938  ;;  %v14383_v40 = vpop.permute.xlu0 %943  ;;  %3492 = vperm.xlu1 %12559, %v476_v44   ;;  %v12636_v44 = vld [vmem:[#allocation6 + $0xe0] ss:$8 sps:$4 sm:$0xff]  }
 0x1ca   :  { %1559 = vmatprep.subr.bf16.mxu1 %v17178_v0  ;;  %3477 = vperm.xlu0 %12558, %v473_v31   ;;  %v12628_v31 = vld [vmem:[#allocation6 + $0xc4] ss:$8 sps:$4 sm:$0xff]  }
 0x1cd   :  { %1560 = vmatpush1.bf16.msra.mxu1 %v794_v55  ;;  %v14391_v49 = vpop.permute.xlu1 %948  ;;  %v14399_v55 = vpop.permute.xlu0 %953  ;;  %3502 = vperm.xlu1 %12559, %v478_v51   ;;  %v12642_v51 = vld [vmem:[#allocation6 + $0x100] ss:$8 sps:$4 sm:$0xff]  }
 0x1ce   :  { %1561 = vmatprep.subr.bf16.mxu1 %v17178_v0  ;;  %3487 = vperm.xlu0 %12558, %v475_v39   ;;  %v12634_v39 = vld [vmem:[#allocation6 + $0xe4] ss:$8 sps:$4 sm:$0xff]  }
 0x1d1   :  { %1562 = vmatpush1.bf16.msra.mxu1 %v795_v13  ;;  %v14404_v59 = vpop.permute.xlu1 %958  ;;  %3512 = vperm.xlu1 %12559, %v480_v58   ;;  %v14409_v3 = vpop.permute.xlu0 %963  ;;  %v12604_v13 = vld [vmem:[#allocation6 + $0x44] ss:$8 sps:$4 sm:$0xff]   ;;  %v12645_v58 = vld [vmem:[#allocation6 + $0x110] ss:$8 sps:$4 sm:$0xff]  }
 0x1d2   :  { %3497 = vperm.xlu0 %12558, %v477_v45   ;;  %v12637_v45 = vld [vmem:[#allocation6 + $0xf4] ss:$8 sps:$4 sm:$0xff]  }
 0x1d4   :  { %1564 = vmatmul.mubr.bf16.vlgmr.msra.gmra.mrb[0].mxu1 %v12594_v33  ;;  %v12630_v33 = vld [vmem:[#allocation6 + $0xc0] ss:$8 sps:$4 sm:$0xff]  }
 0x1d5   :  { %1571 = vmatprep.mubr.bf16.mxu1 %v12595_v34  ;;  %v14414_v8 = vpop.permute.xlu1 %968  ;;  %3522 = vperm.xlu1 %12559, %v482_v6   ;;  %v12631_v34 = vld [vmem:[#allocation6 + $0xd4] ss:$8 sps:$4 sm:$0xff]   ;;  %v12651_v6 = vld [vmem:[#allocation6 + $0x130] ss:$8 sps:$4 sm:$0xff]  }
 0x1d6   :  { %3507 = vperm.xlu0 %12558, %v479_v54   ;;  %v12643_v54 = vld [vmem:[#allocation6 + $0x114] ss:$8 sps:$4 sm:$0xff]  }
 0x1da   :  { %3517 = vperm.xlu0 %12558, %v481_v61   ;;  %v12646_v61 = vld [vmem:[#allocation6 + $0x124] ss:$8 sps:$4 sm:$0xff]  }
 0x1dc   :  { %1572 = vmatmul.mubr.bf16.gmra.mrb[4].mxu1 %v12597_v48  ;;  %v12639_v48 = vld [vmem:[#allocation6 + $0xf0] ss:$8 sps:$4 sm:$0xff]  }
 0x1dd   :  { %1579 = vmatprep.mubr.bf16.mxu1 %v12598_v50  ;;  %v12640_v50 = vld [vmem:[#allocation6 + $0x104] ss:$8 sps:$4 sm:$0xff]  }
 0x1e4   :  { %1580 = vmatmul.mubr.bf16.gmra.mrb[8].mxu1 %v12600_v1  ;;  %v12648_v1 = vld [vmem:[#allocation6 + $0x120] ss:$8 sps:$4 sm:$0xff]  }
 0x1e5   :  { %1587 = vmatprep.mubr.bf16.mxu1 %v12601_v2  ;;  %v12649_v2 = vld [vmem:[#allocation6 + $0x134] ss:$8 sps:$4 sm:$0xff]  }
 0x1ec   :  { %1588 = vmatmul.mubr.bf16.gmra.mrb[12].mxu1 %v12603_v9  ;;  %v12652_v9 = vld [vmem:[#allocation6 + $0x144] ss:$8 sps:$4 sm:$0xff]  }
 0x1ed   :  { %1595 = vmatprep.mubr.bf16.mxu1 %v12604_v13  ;;  %v12654_v13 = vld [vmem:[#allocation6 + $0x140] ss:$8 sps:$4 sm:$0xff]  }
 0x1f4   :  { %1596 = vmatmul.mubr.bf16.gmra.mrb[16].mxu1 %v12606_v16  ;;  %v12655_v16 = vld [vmem:[#allocation6 + $0x154] ss:$8 sps:$4 sm:$0xff]  }
 0x1f5   :  { %1603 = vmatprep.mubr.bf16.mxu1 %v12607_v18  ;;  %v12657_v18 = vld [vmem:[#allocation6 + $0x150] ss:$8 sps:$4 sm:$0xff]  }
 0x1fc   :  { %1604 = vmatmul.mubr.bf16.gmra.mrb[20].mxu1 %v12609_v20  ;;  %v12658_v20 = vld [vmem:[#allocation6 + $0x164] ss:$8 sps:$4 sm:$0xff]  }
 0x1fd   :  { %1611 = vmatprep.mubr.bf16.mxu1 %v12610_v22  ;;  %v12660_v22 = vld [vmem:[#allocation6 + $0x160] ss:$8 sps:$4 sm:$0xff]  }
 0x204   :  { %1612 = vmatmul.mubr.bf16.gmra.mrb[24].mxu1 %v12612_v37  ;;  %v12661_v37 = vld [vmem:[#allocation6 + $0x174] ss:$8 sps:$4 sm:$0xff]  }
 0x205   :  { %1619 = vmatprep.mubr.bf16.mxu1 %v12613_v41  ;;  %v12663_v41 = vld [vmem:[#allocation6 + $0x170] ss:$8 sps:$4 sm:$0xff]  }
 0x20c   :  { %1620 = vmatmul.mubr.bf16.gmra.mrb[28].mxu1 %v12615_v52  ;;  %v12664_v52 = vld [vmem:[#allocation6 + $0x184] ss:$8 sps:$4 sm:$0xff]  }
 0x20d   :  { %1627 = vmatprep.mubr.bf16.mxu1 %v12616_v53  ;;  %v12666_v53 = vld [vmem:[#allocation6 + $0x180] ss:$8 sps:$4 sm:$0xff]  }
 0x214   :  { %1628 = vmatmul.mubr.bf16.gmra.mrb[32].mxu1 %v12618_v57  ;;  %v12667_v57 = vld [vmem:[#allocation6 + $0x194] ss:$8 sps:$4 sm:$0xff]  }
 0x215   :  { %1635 = vmatprep.mubr.bf16.mxu1 %v12619_v62  ;;  %v12669_v62 = vld [vmem:[#allocation6 + $0x190] ss:$8 sps:$4 sm:$0xff]  }
 0x21c   :  { %1636 = vmatmul.mubr.bf16.gmra.mrb[36].mxu1 %v12621_v4  ;;  %v12670_v4 = vld [vmem:[#allocation6 + $0x1a4] ss:$8 sps:$4 sm:$0xff]  }
 0x21d   :  { %1643 = vmatprep.mubr.bf16.mxu1 %v12622_v10  ;;  %v12672_v10 = vld [vmem:[#allocation6 + $0x1a0] ss:$8 sps:$4 sm:$0xff]  }
 0x224   :  { %1644 = vmatmul.mubr.bf16.gmra.mrb[40].mxu1 %v12624_v23  ;;  %v14419_v23 = vld [vmem:[%s17168_s7] ss:$0 sm:$0xff] }
 0x225   :  { %1651 = vmatprep.mubr.bf16.mxu1 %v12625_v24  ;;  %v12673_v24 = vld [vmem:[#allocation6 + $0x1b4] ss:$8 sps:$4 sm:$0xff]  }
 0x22c   :  { %1652 = vmatmul.mubr.bf16.gmra.mrb[44].mxu1 %v12627_v30  ;;  %v1147_v30 = vmul.f32 %v14419_v23, %v14166_v5 }
 0x22d   :  { %1659 = vmatprep.mubr.bf16.mxu1 %v12628_v31  ;;  %v1148_v31 = vmul.f32 %v14419_v23, %v14187_v15  ;;  %v1149_v15 = vmul.f32 %v14419_v23, %v14178_v12 }
 0x234   :  { %1660 = vmatmul.mubr.bf16.gmra.mrb[48].mxu1 %v12630_v33 }
 0x235   :  { %1667 = vmatprep.mubr.bf16.mxu1 %v12631_v34  ;;  %v14428_v34 = vld [vmem:[%s17169_s8] ss:$0 sm:$0xff] }
 0x23c   :  { %1668 = vmatmul.mubr.bf16.gmra.mrb[52].mxu1 %v12633_v35 }
 0x23d   :  { %1675 = vmatprep.mubr.bf16.mxu1 %v12634_v39 }
 0x244   :  { %1676 = vmatmul.mubr.bf16.gmra.mrb[56].mxu1 %v12636_v44  ;;  %v12675_v44 = vld [vmem:[#allocation6 + $0x1b0] ss:$8 sps:$4 sm:$0xff]  }
 0x245   :  { %1683 = vmatprep.mubr.bf16.mxu1 %v12637_v45 }
 0x24c   :  { %1684 = vmatmul.mubr.bf16.gmra.mrb[60].mxu1 %v12639_v48  ;;  %v12676_v48 = vld [vmem:[#allocation6 + $0x1c4] ss:$8 sps:$4 sm:$0xff]  }
 0x24d   :  { %1691 = vmatprep.mubr.bf16.mxu1 %v12640_v50 }
 0x254   :  { %1692 = vmatmul.mubr.bf16.gmra.mrb[64].mxu1 %v12642_v51 }
 0x255   :  { %1699 = vmatprep.mubr.bf16.mxu1 %v12643_v54  ;;  %v12690_v54 = vld [vmem:[%s17164_s3 + $0x4] ss:$16 sps:$4 sm:$0xff]  }
 0x256   :  { %2659 = vmatprep.mubr.bf16.mxu0 %v12690_v54 }
 0x25c   :  { %1700 = vmatmul.mubr.bf16.gmra.mrb[68].mxu1 %v12645_v58 }
 0x25d   :  { %1707 = vmatprep.mubr.bf16.mxu1 %v12646_v61  ;;  %v1150_v61 = vmul.f32 %v14419_v23, %v14197_v21 }
 0x264   :  { %1708 = vmatmul.mubr.bf16.gmra.mrb[72].mxu1 %v12648_v1 }
 0x265   :  { %1715 = vmatprep.mubr.bf16.mxu1 %v12649_v2 }
 0x26c   :  { %1716 = vmatmul.mubr.bf16.gmra.mrb[76].mxu1 %v12651_v6 }
 0x26d   :  { %1723 = vmatprep.mubr.bf16.mxu1 %v12652_v9 }
 0x274   :  { %1724 = vmatmul.mubr.bf16.gmra.mrb[80].mxu1 %v12654_v13 }
 0x275   :  { %1731 = vmatprep.mubr.bf16.mxu1 %v12655_v16 }
 0x27c   :  { %1732 = vmatmul.mubr.bf16.gmra.mrb[84].mxu1 %v12657_v18  ;;  %v12678_v18 = vld [vmem:[#allocation6 + $0x1c0] ss:$8 sps:$4 sm:$0xff]  }
 0x27d   :  { %1739 = vmatprep.mubr.bf16.mxu1 %v12658_v20 }
 0x284   :  { %1740 = vmatmul.mubr.bf16.gmra.mrb[88].mxu1 %v12660_v22  ;;  %v12679_v22 = vld [vmem:[#allocation6 + $0x1d4] ss:$8 sps:$4 sm:$0xff]  }
 0x285   :  { %1747 = vmatprep.mubr.bf16.mxu1 %v12661_v37 }
 0x28c   :  { %1748 = vmatmul.mubr.bf16.gmra.mrb[92].mxu1 %v12663_v41 }
 0x28d   :  { %1755 = vmatprep.mubr.bf16.mxu1 %v12664_v52  ;;  %v1151_v52 = vmul.f32 %v14419_v23, %v14203_v25 }
 0x294   :  { %1756 = vmatmul.mubr.bf16.gmra.mrb[96].mxu1 %v12666_v53  ;;  %v1152_v53 = vmul.f32 %v14419_v23, %v14212_v29 }
 0x295   :  { %1763 = vmatprep.mubr.bf16.mxu1 %v12667_v57 }
 0x29c   :  { %1764 = vmatmul.mubr.bf16.gmra.mrb[100].mxu1 %v12669_v62 }
 0x29d   :  { %1771 = vmatprep.mubr.bf16.mxu1 %v12670_v4 }
 0x2a4   :  { %1772 = vmatmul.mubr.bf16.gmra.mrb[104].mxu1 %v12672_v10 }
 0x2a5   :  { %1779 = vmatprep.mubr.bf16.mxu1 %v12673_v24 }
 0x2a7   :  { %v1565_v33 = vpop.f32.mrb[0].mxu1 }
 0x2a8   :  { %v1566_v35 = vadd.f32 %v1565_v33, %v1147_v30  ;;  %v1567_v39 = vpop.f32.mrb[1].mxu1 }
 0x2a9   :  { %v1568_v45 = vpop.f32.mrb[2].mxu1 }
 0x2aa   :  { %v1827_v50 = vadd.f32 %v14428_v34, %v1566_v35  ;;  %v1569_v51 = vadd.f32 %v1568_v45, %v1148_v31  ;;  %v1570_v5 = vpop.f32.mrb[3].mxu1  ;;  %v12681_v31 = vld [vmem:[#allocation6 + $0x1d0] ss:$8 sps:$4 sm:$0xff]   ;;  %v12682_v35 = vld [vmem:[#allocation6 + $0x1e4] ss:$8 sps:$4 sm:$0xff]   ;;  %v1153_v45 = vmul.f32 %v14419_v23, %v14224_v36 }
 0x2ac   :  { %v1828_v58 = vadd.f32 %v14428_v34, %v1569_v51  ;;  %1780 = vmatmul.mubr.bf16.gmra.mrb[108].mxu1 %v12675_v44  ;;  %v1891_v1 = vmax.f32 %v1827_v50, 0.0 }
 0x2ad   :  { %1787 = vmatprep.mubr.bf16.mxu1 %v12676_v48  ;;  %v1154_v48 = vmul.f32 %v14419_v23, %v14235_v42 }
 0x2ae   :  { %v1892_v2 = vmax.f32 %v1828_v58, 0.0 }
 0x2af   :  { %v1573_v6 = vpop.f32.mrb[4].mxu1 }
 0x2b0   :  { %v1574_v9 = vadd.f32 %v1573_v6, %v1149_v15  ;;  %v1575_v13 = vpop.f32.mrb[5].mxu1  ;;  %v1955_v16 = vpack.c.bf16 %v1892_v2, %v1891_v1  ;;  %v12685_v2 = vld [vmem:[#allocation6 + $0x1f4] ss:$8 sps:$4 sm:$0xff]  }
 0x2b1   :  { %v1576_v20 = vpop.f32.mrb[6].mxu1  ;;  %v1155_v13 = vmul.f32 %v14419_v23, %v14239_v46  ;;  %v1157_v46 = vmul.f32 %v14419_v23, %v14260_v60  ;;  %v1159_v60 = vmul.f32 %v14419_v23, %v14276_v14  ;;  %v1161_v14 = vmul.f32 %v14419_v23, %v14297_v26 }
 0x2b2   :  { %v1829_v37 = vadd.f32 %v14428_v34, %v1574_v9  ;;  %v1577_v12 = vadd.f32 %v1576_v20, %v1150_v61  ;;  %v1578_v41 = vpop.f32.mrb[7].mxu1  ;;  %2628 = vmatpush1.bf16.msra.mxu0 %v1955_v16  ;;  %v12684_v61 = vld [vmem:[#allocation6 + $0x1e0] ss:$8 sps:$4 sm:$0xff]   ;;  %v1156_v16 = vmul.f32 %v14419_v23, %v14251_v56 }
 0x2b3   :  { %2629 = vmatprep.subr.bf16.mxu0 %v17178_v0 }
 0x2b4   :  { %v1830_v21 = vadd.f32 %v14428_v34, %v1577_v12  ;;  %1788 = vmatmul.mubr.bf16.gmra.mrb[112].mxu1 %v12678_v18  ;;  %v1893_v57 = vmax.f32 %v1829_v37, 0.0 }
 0x2b5   :  { %1795 = vmatprep.mubr.bf16.mxu1 %v12679_v22 }
 0x2b6   :  { %v1894_v62 = vmax.f32 %v1830_v21, 0.0 }
 0x2b7   :  { %v1581_v4 = vpop.f32.mrb[8].mxu1 }
 0x2b8   :  { %v1582_v10 = vadd.f32 %v1581_v4, %v1151_v52  ;;  %v1583_v24 = vpop.f32.mrb[9].mxu1  ;;  %v1956_v30 = vpack.c.bf16 %v1894_v62, %v1893_v57  ;;  %v12687_v52 = vld [vmem:[#allocation6 + $0x1f0] ss:$8 sps:$4 sm:$0xff]   ;;  %v1158_v4 = vmul.f32 %v14419_v23, %v14270_v7  ;;  %v1160_v7 = vmul.f32 %v14419_v23, %v14285_v19 }
 0x2b9   :  { %v1584_v33 = vpop.f32.mrb[10].mxu1  ;;  %v1162_v19 = vmul.f32 %v14419_v23, %v14309_v43 }
 0x2ba   :  { %v1831_v39 = vadd.f32 %v14428_v34, %v1582_v10  ;;  %v1585_v44 = vadd.f32 %v1584_v33, %v1152_v53  ;;  %v1586_v25 = vpop.f32.mrb[11].mxu1  ;;  %2630 = vmatpush1.bf16.msra.mxu0 %v1956_v30 }
 0x2bb   :  { %2631 = vmatprep.subr.bf16.mxu0 %v17178_v0 }
 0x2bc   :  { %v1832_v29 = vadd.f32 %v14428_v34, %v1585_v44  ;;  %1796 = vmatmul.mubr.bf16.gmra.mrb[116].mxu1 %v12681_v31  ;;  %v1895_v50 = vmax.f32 %v1831_v39, 0.0 }
 0x2bd   :  { %1803 = vmatprep.mubr.bf16.mxu1 %v12682_v35 }
 0x2be   :  { %v1896_v51 = vmax.f32 %v1832_v29, 0.0 }
 0x2bf   :  { %v1589_v5 = vpop.f32.mrb[12].mxu1 }
 0x2c0   :  { %v1590_v54 = vadd.f32 %v1589_v5, %v1153_v45  ;;  %v1591_v15 = vpop.f32.mrb[13].mxu1  ;;  %v1957_v58 = vpack.c.bf16 %v1896_v51, %v1895_v50 }
 0x2c1   :  { %v1592_v1 = vpop.f32.mrb[14].mxu1 }
 0x2c2   :  { %v1833_v6 = vadd.f32 %v14428_v34, %v1590_v54  ;;  %v1593_v9 = vadd.f32 %v1592_v1, %v1154_v48  ;;  %v1594_v36 = vpop.f32.mrb[15].mxu1  ;;  %2632 = vmatpush1.bf16.msra.mxu0 %v1957_v58 }
 0x2c3   :  { %2633 = vmatprep.subr.bf16.mxu0 %v17178_v0 }
 0x2c4   :  { %v1834_v42 = vadd.f32 %v14428_v34, %v1593_v9  ;;  %1804 = vmatmul.mubr.bf16.gmra.mrb[120].mxu1 %v12684_v61  ;;  %v1897_v18 = vmax.f32 %v1833_v6, 0.0 }
 0x2c5   :  { %1811 = vmatprep.mubr.bf16.mxu1 %v12685_v2 }
 0x2c6   :  { %v1898_v20 = vmax.f32 %v1834_v42, 0.0 }
 0x2c7   :  { %v1597_v22 = vpop.f32.mrb[16].mxu1 }
 0x2c8   :  { %v1598_v37 = vadd.f32 %v1597_v22, %v1155_v13  ;;  %v1599_v12 = vpop.f32.mrb[17].mxu1  ;;  %v1958_v41 = vpack.c.bf16 %v1898_v20, %v1897_v18 }
 0x2c9   :  { %v1600_v21 = vpop.f32.mrb[18].mxu1 }
 0x2ca   :  { %v1835_v53 = vadd.f32 %v14428_v34, %v1598_v37  ;;  %v1601_v57 = vadd.f32 %v1600_v21, %v1156_v16  ;;  %v1602_v62 = vpop.f32.mrb[19].mxu1  ;;  %2634 = vmatpush1.bf16.msra.mxu0 %v1958_v41  ;;  %v1163_v41 = vmul.f32 %v14419_v23, %v14314_v47  ;;  %v1165_v47 = vmul.f32 %v14419_v23, %v14335_v63 }
 0x2cb   :  { %2635 = vmatprep.subr.bf16.mxu0 %v17178_v0  ;;  %v1167_v63 = vmul.f32 %v14419_v23, %v14352_v17  ;;  %v1169_v17 = vmul.f32 %v14419_v23, %v14373_v32  ;;  %v1171_v32 = vmul.f32 %v14419_v23, %v14383_v40  ;;  %v1173_v40 = vmul.f32 %v14419_v23, %v14399_v55 }
 0x2cc   :  { %v1836_v56 = vadd.f32 %v14428_v34, %v1601_v57  ;;  %1812 = vmatmul.mubr.bf16.gmra.mrb[124].mxu1 %v12687_v52  ;;  %v1899_v10 = vmax.f32 %v1835_v53, 0.0  ;;  %v1164_v53 = vmul.f32 %v14419_v23, %v14323_v27  ;;  %v1166_v27 = vmul.f32 %v14419_v23, %v14347_v11 }
 0x2cd   :  { %v1168_v11 = vmul.f32 %v14419_v23, %v14361_v28  ;;  %v1170_v28 = vmul.f32 %v14419_v23, %v14378_v38  ;;  %v1172_v38 = vmul.f32 %v14419_v23, %v14391_v49  ;;  %v1174_v49 = vmul.f32 %v14419_v23, %v14404_v59 }
 0x2ce   :  { %v1900_v24 = vmax.f32 %v1836_v56, 0.0  ;;  %v1175_v55 = vmul.f32 %v14419_v23, %v14409_v3  ;;  %v1176_v59 = vmul.f32 %v14419_v23, %v14414_v8  ;;  %v974_v3 = vpop.permute.xlu0 %973 }
 0x2cf   :  { %v1605_v30 = vpop.f32.mrb[20].mxu1 }
 0x2d0   :  { %v1606_v31 = vadd.f32 %v1605_v30, %v1157_v46  ;;  %v1607_v33 = vpop.f32.mrb[21].mxu1  ;;  %v1959_v35 = vpack.c.bf16 %v1900_v24, %v1899_v10 }
 0x2d1   :  { %v1608_v39 = vpop.f32.mrb[22].mxu1 }
 0x2d2   :  { %v1837_v44 = vadd.f32 %v14428_v34, %v1606_v31  ;;  %v1609_v25 = vadd.f32 %v1608_v39, %v1158_v4  ;;  %v1610_v45 = vpop.f32.mrb[23].mxu1  ;;  %2636 = vmatpush1.bf16.msra.mxu0 %v1959_v35 }
 0x2d3   :  { %2637 = vmatprep.subr.bf16.mxu0 %v17178_v0 }
 0x2d4   :  { %v1838_v29 = vadd.f32 %v14428_v34, %v1609_v25  ;;  %v1901_v48 = vmax.f32 %v1837_v44, 0.0 }
 0x2d6   :  { %v1902_v50 = vmax.f32 %v1838_v29, 0.0 }
 0x2d7   :  { %v1613_v51 = vpop.f32.mrb[24].mxu1 }
 0x2d8   :  { %v1614_v5 = vadd.f32 %v1613_v51, %v1159_v60  ;;  %v1615_v54 = vpop.f32.mrb[25].mxu1  ;;  %v1960_v15 = vpack.c.bf16 %v1902_v50, %v1901_v48 }
 0x2d9   :  { %v1616_v58 = vpop.f32.mrb[26].mxu1 }
 0x2da   :  { %v1839_v61 = vadd.f32 %v14428_v34, %v1614_v5  ;;  %v1617_v1 = vadd.f32 %v1616_v58, %v1160_v7  ;;  %v1618_v2 = vpop.f32.mrb[27].mxu1  ;;  %2638 = vmatpush1.bf16.msra.mxu0 %v1960_v15 }
 0x2db   :  { %2639 = vmatprep.subr.bf16.mxu0 %v17178_v0 }
 0x2dc   :  { %v1840_v6 = vadd.f32 %v14428_v34, %v1617_v1  ;;  %v1903_v9 = vmax.f32 %v1839_v61, 0.0 }
 0x2de   :  { %v1904_v36 = vmax.f32 %v1840_v6, 0.0 }
 0x2df   :  { %v1621_v13 = vpop.f32.mrb[28].mxu1 }
 0x2e0   :  { %v1622_v42 = vadd.f32 %v1621_v13, %v1161_v14  ;;  %v1623_v16 = vpop.f32.mrb[29].mxu1  ;;  %v1961_v18 = vpack.c.bf16 %v1904_v36, %v1903_v9 }
 0x2e1   :  { %v1624_v20 = vpop.f32.mrb[30].mxu1 }
 0x2e2   :  { %v1841_v22 = vadd.f32 %v14428_v34, %v1622_v42  ;;  %v1625_v37 = vadd.f32 %v1624_v20, %v1162_v19  ;;  %v1626_v12 = vpop.f32.mrb[31].mxu1  ;;  %2640 = vmatpush1.bf16.msra.mxu0 %v1961_v18 }
 0x2e3   :  { %2641 = vmatprep.subr.bf16.mxu0 %v17178_v0 }
 0x2e4   :  { %v1842_v26 = vadd.f32 %v14428_v34, %v1625_v37  ;;  %v1905_v43 = vmax.f32 %v1841_v22, 0.0 }
 0x2e6   :  { %v1906_v52 = vmax.f32 %v1842_v26, 0.0 }
 0x2e7   :  { %v1629_v21 = vpop.f32.mrb[32].mxu1 }
 0x2e8   :  { %v1630_v57 = vadd.f32 %v1629_v21, %v1163_v41  ;;  %v1631_v62 = vpop.f32.mrb[33].mxu1  ;;  %v1962_v46 = vpack.c.bf16 %v1906_v52, %v1905_v43 }
 0x2e9   :  { %v1632_v56 = vpop.f32.mrb[34].mxu1 }
 0x2ea   :  { %v1843_v4 = vadd.f32 %v14428_v34, %v1630_v57  ;;  %v1633_v10 = vadd.f32 %v1632_v56, %v1164_v53  ;;  %v1634_v24 = vpop.f32.mrb[35].mxu1  ;;  %2642 = vmatpush1.bf16.msra.mxu0 %v1962_v46 }
 0x2eb   :  { %2643 = vmatprep.subr.bf16.mxu0 %v17178_v0 }
 0x2ec   :  { %v1844_v30 = vadd.f32 %v14428_v34, %v1633_v10  ;;  %v1907_v31 = vmax.f32 %v1843_v4, 0.0 }
 0x2ee   :  { %v1908_v33 = vmax.f32 %v1844_v30, 0.0 }
 0x2ef   :  { %v1637_v35 = vpop.f32.mrb[36].mxu1 }
 0x2f0   :  { %v1638_v39 = vadd.f32 %v1637_v35, %v1165_v47  ;;  %v1639_v44 = vpop.f32.mrb[37].mxu1  ;;  %v1963_v25 = vpack.c.bf16 %v1908_v33, %v1907_v31 }
 0x2f1   :  { %v1640_v45 = vpop.f32.mrb[38].mxu1 }
 0x2f2   :  { %v1845_v60 = vadd.f32 %v14428_v34, %v1638_v39  ;;  %v1641_v29 = vadd.f32 %v1640_v45, %v1166_v27  ;;  %v1642_v7 = vpop.f32.mrb[39].mxu1  ;;  %2644 = vmatpush1.bf16.msra.mxu0 %v1963_v25 }
 0x2f3   :  { %2645 = vmatprep.subr.bf16.mxu0 %v17178_v0 }
 0x2f4   :  { %v1846_v48 = vadd.f32 %v14428_v34, %v1641_v29  ;;  %v1909_v50 = vmax.f32 %v1845_v60, 0.0 }
 0x2f6   :  { %v1910_v51 = vmax.f32 %v1846_v48, 0.0 }
 0x2f7   :  { %v1645_v5 = vpop.f32.mrb[40].mxu1 }
 0x2f8   :  { %v1646_v54 = vadd.f32 %v1645_v5, %v1167_v63  ;;  %v1647_v15 = vpop.f32.mrb[41].mxu1  ;;  %v1964_v58 = vpack.c.bf16 %v1910_v51, %v1909_v50 }
 0x2f9   :  { %v1648_v61 = vpop.f32.mrb[42].mxu1  ;;  %v1177_v15 = vmul.f32 %v14419_v23, %v974_v3 }
 0x2fa   :  { %v1847_v1 = vadd.f32 %v14428_v34, %v1646_v54  ;;  %v1649_v2 = vadd.f32 %v1648_v61, %v1168_v11  ;;  %v1650_v14 = vpop.f32.mrb[43].mxu1  ;;  %2646 = vmatpush1.bf16.msra.mxu0 %v1964_v58 }
 0x2fb   :  { %2647 = vmatprep.subr.bf16.mxu0 %v17178_v0 }
 0x2fc   :  { %v1848_v6 = vadd.f32 %v14428_v34, %v1649_v2  ;;  %v1911_v19 = vmax.f32 %v1847_v1, 0.0  ;;  %v979_v1 = vpop.permute.xlu1 %978 }
 0x2fd   :  { %v1178_v2 = vmul.f32 %v14419_v23, %v979_v1 }
 0x2fe   :  { %v1912_v9 = vmax.f32 %v1848_v6, 0.0 }
 0x2ff   :  { %v1653_v36 = vpop.f32.mrb[44].mxu1 }
 0x300   :  { %v1654_v13 = vadd.f32 %v1653_v36, %v1169_v17  ;;  %v1655_v42 = vpop.f32.mrb[45].mxu1  ;;  %v1965_v16 = vpack.c.bf16 %v1912_v9, %v1911_v19 }
 0x301   :  { %v1656_v18 = vpop.f32.mrb[46].mxu1  ;;  %v984_v42 = vpop.permute.xlu0 %983 }
 0x302   :  { %v1849_v20 = vadd.f32 %v14428_v34, %v1654_v13  ;;  %v1657_v22 = vadd.f32 %v1656_v18, %v1170_v28  ;;  %v1658_v37 = vpop.f32.mrb[47].mxu1  ;;  %2648 = vmatpush1.bf16.msra.mxu0 %v1965_v16  ;;  %v1179_v16 = vmul.f32 %v14419_v23, %v984_v42 }
 0x303   :  { %2649 = vmatprep.subr.bf16.mxu0 %v17178_v0 }
 0x304   :  { %v1850_v12 = vadd.f32 %v14428_v34, %v1657_v22  ;;  %v1913_v26 = vmax.f32 %v1849_v20, 0.0  ;;  %v989_v22 = vpop.permute.xlu1 %988 }
 0x306   :  { %v1914_v41 = vmax.f32 %v1850_v12, 0.0  ;;  %v1180_v12 = vmul.f32 %v14419_v23, %v989_v22 }
 0x307   :  { %v1661_v43 = vpop.f32.mrb[48].mxu1 }
 0x308   :  { %v1662_v52 = vadd.f32 %v1661_v43, %v1171_v32  ;;  %v1663_v21 = vpop.f32.mrb[49].mxu1  ;;  %v1966_v53 = vpack.c.bf16 %v1914_v41, %v1913_v26 }
 0x309   :  { %v1664_v57 = vpop.f32.mrb[50].mxu1 }
 0x30a   :  { %v1851_v62 = vadd.f32 %v14428_v34, %v1662_v52  ;;  %v1665_v46 = vadd.f32 %v1664_v57, %v1172_v38  ;;  %v1666_v56 = vpop.f32.mrb[51].mxu1  ;;  %2650 = vmatpush1.bf16.msra.mxu0 %v1966_v53  ;;  %v12688_v38 = vld [vmem:[%s17164_s3] ss:$16 sps:$4 sm:$0xff]   ;;  %v12691_v57 = vld [vmem:[%s17164_s3 + $0x24] ss:$16 sps:$4 sm:$0xff]  }
 0x30b   :  { %2651 = vmatprep.subr.bf16.mxu0 %v17178_v0 }
 0x30c   :  { %v1852_v4 = vadd.f32 %v14428_v34, %v1665_v46  ;;  %v1915_v10 = vmax.f32 %v1851_v62, 0.0  ;;  %v994_v46 = vpop.permute.xlu0 %993 }
 0x30d   :  { %v1181_v56 = vmul.f32 %v14419_v23, %v994_v46 }
 0x30e   :  { %v1916_v24 = vmax.f32 %v1852_v4, 0.0 }
 0x30f   :  { %v1669_v30 = vpop.f32.mrb[52].mxu1 }
 0x310   :  { %v1670_v47 = vadd.f32 %v1669_v30, %v1173_v40  ;;  %v1671_v31 = vpop.f32.mrb[53].mxu1  ;;  %v1967_v33 = vpack.c.bf16 %v1916_v24, %v1915_v10  ;;  %v999_v10 = vpop.permute.xlu1 %998 }
 0x311   :  { %v1672_v35 = vpop.f32.mrb[54].mxu1  ;;  %v1182_v30 = vmul.f32 %v14419_v23, %v999_v10 }
 0x312   :  { %v1853_v27 = vadd.f32 %v14428_v34, %v1670_v47  ;;  %v1673_v39 = vadd.f32 %v1672_v35, %v1174_v49  ;;  %v1674_v44 = vpop.f32.mrb[55].mxu1  ;;  %2652 = vmatpush1.bf16.msra.mxu0 %v1967_v33  ;;  %v12693_v35 = vld [vmem:[%s17164_s3 + $0x20] ss:$16 sps:$4 sm:$0xff]  }
 0x313   :  { %2653 = vmatprep.subr.bf16.mxu0 %v17178_v0 }
 0x314   :  { %v1854_v25 = vadd.f32 %v14428_v34, %v1673_v39  ;;  %v1917_v45 = vmax.f32 %v1853_v27, 0.0 }
 0x316   :  { %v1918_v60 = vmax.f32 %v1854_v25, 0.0  ;;  %v12694_v25 = vld [vmem:[%s17164_s3 + $0x44] ss:$16 sps:$4 sm:$0xff]  }
 0x317   :  { %v1677_v29 = vpop.f32.mrb[56].mxu1 }
 0x318   :  { %v1678_v7 = vadd.f32 %v1677_v29, %v1175_v55  ;;  %v1679_v48 = vpop.f32.mrb[57].mxu1  ;;  %v1968_v63 = vpack.c.bf16 %v1918_v60, %v1917_v45  ;;  %v1004_v45 = vpop.permute.xlu0 %1003 }
 0x319   :  { %v1680_v50 = vpop.f32.mrb[58].mxu1  ;;  %v1183_v60 = vmul.f32 %v14419_v23, %v1004_v45 }
 0x31a   :  { %v1855_v51 = vadd.f32 %v14428_v34, %v1678_v7  ;;  %v1681_v5 = vadd.f32 %v1680_v50, %v1176_v59  ;;  %v1682_v11 = vpop.f32.mrb[59].mxu1  ;;  %2654 = vmatpush1.bf16.msra.mxu0 %v1968_v63  ;;  %v1009_v7 = vpop.permute.xlu1 %1008 }
 0x31b   :  { %2655 = vmatprep.subr.bf16.mxu0 %v17178_v0  ;;  %v1184_v63 = vmul.f32 %v14419_v23, %v1009_v7 }
 0x31c   :  { %v1856_v54 = vadd.f32 %v14428_v34, %v1681_v5  ;;  %v1919_v58 = vmax.f32 %v1855_v51, 0.0 }
 0x31e   :  { %v1920_v61 = vmax.f32 %v1856_v54, 0.0  ;;  %v12696_v54 = vld [vmem:[%s17164_s3 + $0x40] ss:$16 sps:$4 sm:$0xff]  }
 0x31f   :  { %v1685_v8 = vpop.f32.mrb[60].mxu1 }
 0x320   :  { %v1686_v14 = vadd.f32 %v1685_v8, %v1177_v15  ;;  %v1687_v6 = vpop.f32.mrb[61].mxu1  ;;  %v1969_v17 = vpack.c.bf16 %v1920_v61, %v1919_v58  ;;  %v12697_v61 = vld [vmem:[%s17164_s3 + $0x64] ss:$16 sps:$4 sm:$0xff]   ;;  %v1014_v8 = vpop.permute.xlu0 %1013 }
 0x321   :  { %v1688_v19 = vpop.f32.mrb[62].mxu1 }
 0x322   :  { %v1857_v9 = vadd.f32 %v14428_v34, %v1686_v14  ;;  %v1689_v36 = vadd.f32 %v1688_v19, %v1178_v2  ;;  %v1690_v28 = vpop.f32.mrb[63].mxu1  ;;  %2656 = vmatpush1.bf16.msra.mxu0 %v1969_v17  ;;  %v1185_v2 = vmul.f32 %v14419_v23, %v1014_v8  ;;  %v1019_v17 = vpop.permute.xlu1 %1018 }
 0x323   :  { %2657 = vmatprep.subr.bf16.mxu0 %v17178_v0 }
 0x324   :  { %v1858_v13 = vadd.f32 %v14428_v34, %v1689_v36  ;;  %v1921_v18 = vmax.f32 %v1857_v9, 0.0  ;;  %v1186_v9 = vmul.f32 %v14419_v23, %v1019_v17 }
 0x326   :  { %v1922_v20 = vmax.f32 %v1858_v13, 0.0 }
 0x327   :  { %v1693_v37 = vpop.f32.mrb[64].mxu1 }
 0x328   :  { %v1694_v32 = vadd.f32 %v1693_v37, %v1179_v16  ;;  %v1695_v26 = vpop.f32.mrb[65].mxu1  ;;  %v1970_v41 = vpack.c.bf16 %v1922_v20, %v1921_v18  ;;  %v12699_v16 = vld [vmem:[%s17164_s3 + $0x60] ss:$16 sps:$4 sm:$0xff]   ;;  %v12700_v37 = vld [vmem:[%s17164_s3 + $0x84] ss:$16 sps:$4 sm:$0xff]  }
 0x329   :  { %v1696_v43 = vpop.f32.mrb[66].mxu1 }
 0x32a   :  { %v1859_v52 = vadd.f32 %v14428_v34, %v1694_v32  ;;  %v1697_v21 = vadd.f32 %v1696_v43, %v1180_v12  ;;  %2658 = vmatpush1.bf16.msra.mxu0 %v1970_v41  ;;  %v1698_v53 = vpop.f32.mrb[67].mxu1  ;;  %v1024_v32 = vpop.permute.xlu0 %1023 }
 0x32b   :  { %2916 = vmatprep.subr.bf16.mxu0 %v17178_v0  ;;  %v1187_v26 = vmul.f32 %v14419_v23, %v1024_v32 }
 0x32c   :  { %v1860_v62 = vadd.f32 %v14428_v34, %v1697_v21  ;;  %v1923_v4 = vmax.f32 %v1859_v52, 0.0 }
 0x32d   :  { %2660 = vmatmul.mubr.bf16.vlgmr.msra.gmra.mrb[32].mxu0 %v12688_v38  ;;  %v1029_v38 = vpop.permute.xlu1 %1028 }
 0x32e   :  { %v1924_v40 = vmax.f32 %v1860_v62, 0.0  ;;  %2667 = vmatprep.mubr.bf16.mxu0 %v12691_v57  ;;  %v1188_v21 = vmul.f32 %v14419_v23, %v1029_v38 }
 0x32f   :  { %v1701_v24 = vpop.f32.mrb[68].mxu1 }
 0x330   :  { %v1702_v49 = vadd.f32 %v1701_v24, %v1181_v56  ;;  %v1703_v47 = vpop.f32.mrb[69].mxu1  ;;  %v1971_v31 = vpack.c.bf16 %v1924_v40, %v1923_v4  ;;  %v12702_v56 = vld [vmem:[%s17164_s3 + $0x80] ss:$16 sps:$4 sm:$0xff]   ;;  %v12703_v24 = vld [vmem:[%s17164_s3 + $0xa4] ss:$16 sps:$4 sm:$0xff]  }
 0x331   :  { %v1704_v33 = vpop.f32.mrb[70].mxu1 }
 0x332   :  { %v1861_v27 = vadd.f32 %v14428_v34, %v1702_v49  ;;  %v1705_v39 = vadd.f32 %v1704_v33, %v1182_v30  ;;  %2917 = vmatpush1.bf16.msra.mxu0 %v1971_v31  ;;  %v1706_v44 = vpop.f32.mrb[71].mxu1  ;;  %v1034_v49 = vpop.permute.xlu0 %1033 }
 0x333   :  { %2918 = vmatprep.subr.bf16.mxu0 %v17178_v0  ;;  %v1189_v47 = vmul.f32 %v14419_v23, %v1034_v49 }
 0x334   :  { %v1862_v55 = vadd.f32 %v14428_v34, %v1705_v39  ;;  %v1925_v29 = vmax.f32 %v1861_v27, 0.0 }
 0x335   :  { %2668 = vmatmul.mubr.bf16.gmra.mrb[36].mxu0 %v12693_v35  ;;  %v1039_v35 = vpop.permute.xlu1 %1038 }
 0x336   :  { %v1926_v59 = vmax.f32 %v1862_v55, 0.0  ;;  %2675 = vmatprep.mubr.bf16.mxu0 %v12694_v25  ;;  %v1190_v39 = vmul.f32 %v14419_v23, %v1039_v35 }
 0x337   :  { %v1709_v48 = vpop.f32.mrb[72].mxu1 }
 0x338   :  { %v1710_v50 = vadd.f32 %v1709_v48, %v1183_v60  ;;  %v1711_v51 = vpop.f32.mrb[73].mxu1  ;;  %v1972_v5 = vpack.c.bf16 %v1926_v59, %v1925_v29  ;;  %v12705_v60 = vld [vmem:[%s17164_s3 + $0xa0] ss:$16 sps:$4 sm:$0xff]   ;;  %v12706_v48 = vld [vmem:[%s17164_s3 + $0xc4] ss:$16 sps:$4 sm:$0xff]  }
 0x339   :  { %v1712_v11 = vpop.f32.mrb[74].mxu1 }
 0x33a   :  { %v1863_v3 = vadd.f32 %v14428_v34, %v1710_v50  ;;  %v1713_v15 = vadd.f32 %v1712_v11, %v1184_v63  ;;  %2919 = vmatpush1.bf16.msra.mxu0 %v1972_v5  ;;  %v1714_v58 = vpop.f32.mrb[75].mxu1  ;;  %v1044_v50 = vpop.permute.xlu0 %1043 }
 0x33b   :  { %2920 = vmatprep.subr.bf16.mxu0 %v17178_v0  ;;  %v1191_v51 = vmul.f32 %v14419_v23, %v1044_v50 }
 0x33c   :  { %v1864_v1 = vadd.f32 %v14428_v34, %v1713_v15  ;;  %v1927_v14 = vmax.f32 %v1863_v3, 0.0 }
 0x33d   :  { %2676 = vmatmul.mubr.bf16.gmra.mrb[40].mxu0 %v12696_v54  ;;  %v1049_v54 = vpop.permute.xlu1 %1048 }
 0x33e   :  { %v1928_v6 = vmax.f32 %v1864_v1, 0.0  ;;  %2683 = vmatprep.mubr.bf16.mxu0 %v12697_v61  ;;  %v1192_v15 = vmul.f32 %v14419_v23, %v1049_v54 }
 0x33f   :  { %v1717_v19 = vpop.f32.mrb[76].mxu1 }
 0x340   :  { %v1718_v36 = vadd.f32 %v1717_v19, %v1185_v2  ;;  %v1719_v28 = vpop.f32.mrb[77].mxu1  ;;  %v1973_v13 = vpack.c.bf16 %v1928_v6, %v1927_v14  ;;  %v12708_v2 = vld [vmem:[%s17164_s3 + $0xc0] ss:$16 sps:$4 sm:$0xff]   ;;  %v12709_v19 = vld [vmem:[%s17164_s3 + $0xe4] ss:$16 sps:$4 sm:$0xff]  }
 0x341   :  { %v1720_v42 = vpop.f32.mrb[78].mxu1 }
 0x342   :  { %v1865_v18 = vadd.f32 %v14428_v34, %v1718_v36  ;;  %v1721_v20 = vadd.f32 %v1720_v42, %v1186_v9  ;;  %2921 = vmatpush1.bf16.msra.mxu0 %v1973_v13  ;;  %v1722_v22 = vpop.f32.mrb[79].mxu1  ;;  %v1054_v36 = vpop.permute.xlu0 %1053 }
 0x343   :  { %2922 = vmatprep.subr.bf16.mxu0 %v17178_v0  ;;  %v1193_v28 = vmul.f32 %v14419_v23, %v1054_v36 }
 0x344   :  { %v1866_v12 = vadd.f32 %v14428_v34, %v1721_v20  ;;  %v1929_v41 = vmax.f32 %v1865_v18, 0.0 }
 0x345   :  { %2684 = vmatmul.mubr.bf16.gmra.mrb[44].mxu0 %v12699_v16  ;;  %v1059_v16 = vpop.permute.xlu1 %1058 }
 0x346   :  { %v1930_v43 = vmax.f32 %v1866_v12, 0.0  ;;  %2691 = vmatprep.mubr.bf16.mxu0 %v12700_v37  ;;  %v1194_v20 = vmul.f32 %v14419_v23, %v1059_v16 }
 0x347   :  { %v1725_v52 = vpop.f32.mrb[80].mxu1 }
 0x348   :  { %v1726_v53 = vadd.f32 %v1725_v52, %v1187_v26  ;;  %v1727_v57 = vpop.f32.mrb[81].mxu1  ;;  %v1974_v62 = vpack.c.bf16 %v1930_v43, %v1929_v41  ;;  %v12711_v26 = vld [vmem:[%s17164_s3 + $0xe0] ss:$16 sps:$4 sm:$0xff]   ;;  %v12712_v52 = vld [vmem:[%s17164_s3 + $0x104] ss:$16 sps:$4 sm:$0xff]  }
 0x349   :  { %v1728_v46 = vpop.f32.mrb[82].mxu1 }
 0x34a   :  { %v1867_v4 = vadd.f32 %v14428_v34, %v1726_v53  ;;  %v1729_v40 = vadd.f32 %v1728_v46, %v1188_v21  ;;  %2923 = vmatpush1.bf16.msra.mxu0 %v1974_v62  ;;  %v1730_v10 = vpop.f32.mrb[83].mxu1  ;;  %v1064_v53 = vpop.permute.xlu0 %1063 }
 0x34b   :  { %2924 = vmatprep.subr.bf16.mxu0 %v17178_v0  ;;  %v1195_v57 = vmul.f32 %v14419_v23, %v1064_v53 }
 0x34c   :  { %v1868_v30 = vadd.f32 %v14428_v34, %v1729_v40  ;;  %v1931_v31 = vmax.f32 %v1867_v4, 0.0 }
 0x34d   :  { %2692 = vmatmul.mubr.bf16.gmra.mrb[48].mxu0 %v12702_v56  ;;  %v1069_v56 = vpop.permute.xlu1 %1068 }
 0x34e   :  { %v1932_v33 = vmax.f32 %v1868_v30, 0.0  ;;  %2699 = vmatprep.mubr.bf16.mxu0 %v12703_v24  ;;  %v1196_v40 = vmul.f32 %v14419_v23, %v1069_v56 }
 0x34f   :  { %v1733_v27 = vpop.f32.mrb[84].mxu1 }
 0x350   :  { %v1734_v44 = vadd.f32 %v1733_v27, %v1189_v47  ;;  %v1735_v25 = vpop.f32.mrb[85].mxu1  ;;  %v1975_v55 = vpack.c.bf16 %v1932_v33, %v1931_v31  ;;  %v12714_v47 = vld [vmem:[%s17164_s3 + $0x100] ss:$16 sps:$4 sm:$0xff]   ;;  %v12715_v27 = vld [vmem:[%s17164_s3 + $0x124] ss:$16 sps:$4 sm:$0xff]  }
 0x351   :  { %v1736_v45 = vpop.f32.mrb[86].mxu1 }
 0x352   :  { %v1869_v29 = vadd.f32 %v14428_v34, %v1734_v44  ;;  %v1737_v59 = vadd.f32 %v1736_v45, %v1190_v39  ;;  %2925 = vmatpush1.bf16.msra.mxu0 %v1975_v55  ;;  %v1738_v7 = vpop.f32.mrb[87].mxu1  ;;  %v1074_v44 = vpop.permute.xlu0 %1073 }
 0x353   :  { %2926 = vmatprep.subr.bf16.mxu0 %v17178_v0  ;;  %v1197_v25 = vmul.f32 %v14419_v23, %v1074_v44  ;;  %v12726_v44 = vld [vmem:[%s17164_s3 + $0x180] ss:$16 sps:$4 sm:$0xff]  }
 0x354   :  { %v1870_v63 = vadd.f32 %v14428_v34, %v1737_v59  ;;  %v1933_v5 = vmax.f32 %v1869_v29, 0.0 }
 0x355   :  { %2700 = vmatmul.mubr.bf16.gmra.mrb[52].mxu0 %v12705_v60  ;;  %v1079_v60 = vpop.permute.xlu1 %1078 }
 0x356   :  { %v1934_v11 = vmax.f32 %v1870_v63, 0.0  ;;  %2707 = vmatprep.mubr.bf16.mxu0 %v12706_v48  ;;  %v1198_v59 = vmul.f32 %v14419_v23, %v1079_v60 }
 0x357   :  { %v1741_v3 = vpop.f32.mrb[88].mxu1 }
 0x358   :  { %v1742_v58 = vadd.f32 %v1741_v3, %v1191_v51  ;;  %v1743_v61 = vpop.f32.mrb[89].mxu1  ;;  %v1976_v1 = vpack.c.bf16 %v1934_v11, %v1933_v5  ;;  %v12717_v51 = vld [vmem:[%s17164_s3 + $0x120] ss:$16 sps:$4 sm:$0xff]   ;;  %v12718_v3 = vld [vmem:[%s17164_s3 + $0x144] ss:$16 sps:$4 sm:$0xff]  }
 0x359   :  { %v1744_v8 = vpop.f32.mrb[90].mxu1 }
 0x35a   :  { %v1871_v14 = vadd.f32 %v14428_v34, %v1742_v58  ;;  %v1745_v6 = vadd.f32 %v1744_v8, %v1192_v15  ;;  %2927 = vmatpush1.bf16.msra.mxu0 %v1976_v1  ;;  %v1746_v17 = vpop.f32.mrb[91].mxu1  ;;  %v1084_v58 = vpop.permute.xlu0 %1083 }
 0x35b   :  { %2928 = vmatprep.subr.bf16.mxu0 %v17178_v0  ;;  %v1199_v61 = vmul.f32 %v14419_v23, %v1084_v58 }
 0x35c   :  { %v1872_v9 = vadd.f32 %v14428_v34, %v1745_v6  ;;  %v1935_v13 = vmax.f32 %v1871_v14, 0.0 }
 0x35d   :  { %2708 = vmatmul.mubr.bf16.gmra.mrb[56].mxu0 %v12708_v2  ;;  %v1089_v2 = vpop.permute.xlu1 %1088 }
 0x35e   :  { %v1936_v42 = vmax.f32 %v1872_v9, 0.0  ;;  %2715 = vmatprep.mubr.bf16.mxu0 %v12709_v19  ;;  %v1200_v6 = vmul.f32 %v14419_v23, %v1089_v2 }
 0x35f   :  { %v1749_v18 = vpop.f32.mrb[92].mxu1 }
 0x360   :  { %v1750_v22 = vadd.f32 %v1749_v18, %v1193_v28  ;;  %v1751_v37 = vpop.f32.mrb[93].mxu1  ;;  %v1977_v12 = vpack.c.bf16 %v1936_v42, %v1935_v13  ;;  %v12720_v28 = vld [vmem:[%s17164_s3 + $0x140] ss:$16 sps:$4 sm:$0xff]   ;;  %v12721_v18 = vld [vmem:[%s17164_s3 + $0x164] ss:$16 sps:$4 sm:$0xff]  }
 0x361   :  { %v1752_v32 = vpop.f32.mrb[94].mxu1 }
 0x362   :  { %v1873_v41 = vadd.f32 %v14428_v34, %v1750_v22  ;;  %v1753_v43 = vadd.f32 %v1752_v32, %v1194_v20  ;;  %2929 = vmatpush1.bf16.msra.mxu0 %v1977_v12  ;;  %v1754_v38 = vpop.f32.mrb[95].mxu1  ;;  %v1094_v22 = vpop.permute.xlu0 %1093 }
 0x363   :  { %2930 = vmatprep.subr.bf16.mxu0 %v17178_v0  ;;  %v1201_v37 = vmul.f32 %v14419_v23, %v1094_v22 }
 0x364   :  { %v1874_v21 = vadd.f32 %v14428_v34, %v1753_v43  ;;  %v1937_v62 = vmax.f32 %v1873_v41, 0.0 }
 0x365   :  { %2716 = vmatmul.mubr.bf16.gmra.mrb[60].mxu0 %v12711_v26  ;;  %v1099_v26 = vpop.permute.xlu1 %1098 }
 0x366   :  { %v1938_v46 = vmax.f32 %v1874_v21, 0.0  ;;  %2723 = vmatprep.mubr.bf16.mxu0 %v12712_v52  ;;  %v1202_v43 = vmul.f32 %v14419_v23, %v1099_v26 }
 0x367   :  { %v1757_v4 = vpop.f32.mrb[96].mxu1 }
 0x368   :  { %v1758_v10 = vadd.f32 %v1757_v4, %v1195_v57  ;;  %v1759_v24 = vpop.f32.mrb[97].mxu1  ;;  %v1978_v30 = vpack.c.bf16 %v1938_v46, %v1937_v62  ;;  %v12723_v57 = vld [vmem:[%s17164_s3 + $0x160] ss:$16 sps:$4 sm:$0xff]   ;;  %v12724_v4 = vld [vmem:[%s17164_s3 + $0x184] ss:$16 sps:$4 sm:$0xff]  }
 0x369   :  { %v1760_v49 = vpop.f32.mrb[98].mxu1 }
 0x36a   :  { %v1875_v31 = vadd.f32 %v14428_v34, %v1758_v10  ;;  %v1761_v33 = vadd.f32 %v1760_v49, %v1196_v40  ;;  %2931 = vmatpush1.bf16.msra.mxu0 %v1978_v30  ;;  %v1762_v35 = vpop.f32.mrb[99].mxu1  ;;  %v1104_v40 = vpop.permute.xlu0 %1103  ;;  %v14673_v10 = vld [vmem:[%s17168_s7] ss:$0 sm:$0xff] }
 0x36b   :  { %2932 = vmatprep.subr.bf16.mxu0 %v17178_v0  ;;  %v1203_v24 = vmul.f32 %v14673_v10, %v1104_v40 }
 0x36c   :  { %v1876_v39 = vadd.f32 %v14428_v34, %v1761_v33  ;;  %v1939_v55 = vmax.f32 %v1875_v31, 0.0 }
 0x36d   :  { %2724 = vmatmul.mubr.bf16.gmra.mrb[64].mxu0 %v12714_v47  ;;  %v1109_v47 = vpop.permute.xlu1 %1108 }
 0x36e   :  { %v1940_v45 = vmax.f32 %v1876_v39, 0.0  ;;  %2731 = vmatprep.mubr.bf16.mxu0 %v12715_v27  ;;  %v1204_v33 = vmul.f32 %v14673_v10, %v1109_v47  ;;  %v12736_v47 = vld [vmem:[%s17164_s3 + $0x204] ss:$16 sps:$4 sm:$0xff]  }
 0x36f   :  { %v1765_v29 = vpop.f32.mrb[100].mxu1 }
 0x370   :  { %v1766_v7 = vadd.f32 %v1765_v29, %v1197_v25  ;;  %v1767_v48 = vpop.f32.mrb[101].mxu1  ;;  %v1979_v63 = vpack.c.bf16 %v1940_v45, %v1939_v55  ;;  %v14683_v25 = vld [vmem:[%s17169_s8] ss:$0 sm:$0xff]  ;;  %v12727_v29 = vld [vmem:[%s17164_s3 + $0x1a4] ss:$16 sps:$4 sm:$0xff]  }
 0x371   :  { %v1768_v50 = vpop.f32.mrb[102].mxu1 }
 0x372   :  { %v1877_v5 = vadd.f32 %v14428_v34, %v1766_v7  ;;  %v1769_v11 = vadd.f32 %v1768_v50, %v1198_v59  ;;  %2933 = vmatpush1.bf16.msra.mxu0 %v1979_v63  ;;  %v1770_v54 = vpop.f32.mrb[103].mxu1  ;;  %v1114_v7 = vpop.permute.xlu0 %1113 }
 0x373   :  { %2934 = vmatprep.subr.bf16.mxu0 %v17178_v0  ;;  %v1205_v48 = vmul.f32 %v14673_v10, %v1114_v7  ;;  %v12751_v7 = vld [vmem:[%s17164_s3 + $0x2a4] ss:$16 sps:$4 sm:$0xff]  }
 0x374   :  { %v1878_v15 = vadd.f32 %v14428_v34, %v1769_v11  ;;  %v1941_v1 = vmax.f32 %v1877_v5, 0.0 }
 0x375   :  { %2732 = vmatmul.mubr.bf16.gmra.mrb[68].mxu0 %v12717_v51  ;;  %v1119_v51 = vpop.permute.xlu1 %1118 }
 0x376   :  { %v1942_v8 = vmax.f32 %v1878_v15, 0.0  ;;  %2739 = vmatprep.mubr.bf16.mxu0 %v12718_v3  ;;  %v1206_v11 = vmul.f32 %v14673_v10, %v1119_v51  ;;  %v12757_v51 = vld [vmem:[%s17164_s3 + $0x2e4] ss:$16 sps:$4 sm:$0xff]  }
 0x377   :  { %v1773_v14 = vpop.f32.mrb[104].mxu1 }
 0x378   :  { %v1774_v17 = vadd.f32 %v1773_v14, %v1199_v61  ;;  %v1775_v19 = vpop.f32.mrb[105].mxu1  ;;  %v1980_v9 = vpack.c.bf16 %v1942_v8, %v1941_v1  ;;  %v12729_v61 = vld [vmem:[%s17164_s3 + $0x1a0] ss:$16 sps:$4 sm:$0xff]   ;;  %v12730_v14 = vld [vmem:[%s17164_s3 + $0x1c4] ss:$16 sps:$4 sm:$0xff]  }
 0x379   :  { %v1776_v36 = vpop.f32.mrb[106].mxu1 }
 0x37a   :  { %v1879_v13 = vadd.f32 %v14428_v34, %v1774_v17  ;;  %v1777_v42 = vadd.f32 %v1776_v36, %v1200_v6  ;;  %2935 = vmatpush1.bf16.msra.mxu0 %v1980_v9  ;;  %v1778_v16 = vpop.f32.mrb[107].mxu1  ;;  %v1124_v17 = vpop.permute.xlu0 %1123 }
 0x37b   :  { %2936 = vmatprep.subr.bf16.mxu0 %v17178_v0  ;;  %v1207_v19 = vmul.f32 %v14673_v10, %v1124_v17  ;;  %v12777_v17 = vld [vmem:[%s17164_s3 + $0x3a0] ss:$16 sps:$4 sm:$0xff]  }
 0x37c   :  { %v1880_v20 = vadd.f32 %v14428_v34, %v1777_v42  ;;  %v1943_v12 = vmax.f32 %v1879_v13, 0.0 }
 0x37d   :  { %2740 = vmatmul.mubr.bf16.gmra.mrb[72].mxu0 %v12720_v28  ;;  %v1129_v28 = vpop.permute.xlu1 %1128 }
 0x37e   :  { %v1944_v32 = vmax.f32 %v1880_v20, 0.0  ;;  %2747 = vmatprep.mubr.bf16.mxu0 %v12721_v18  ;;  %v1208_v42 = vmul.f32 %v14673_v10, %v1129_v28  ;;  %v12783_v28 = vld [vmem:[%s17164_s3 + $0x3e0] ss:$16 sps:$4 sm:$0xff]  }
 0x37f   :  { %v1781_v41 = vpop.f32.mrb[108].mxu1 }
 0x380   :  { %v1782_v38 = vadd.f32 %v1781_v41, %v1201_v37  ;;  %v1783_v52 = vpop.f32.mrb[109].mxu1  ;;  %v1981_v21 = vpack.c.bf16 %v1944_v32, %v1943_v12  ;;  %v12732_v37 = vld [vmem:[%s17164_s3 + $0x1c0] ss:$16 sps:$4 sm:$0xff]   ;;  %v12733_v41 = vld [vmem:[%s17164_s3 + $0x1e4] ss:$16 sps:$4 sm:$0xff]  }
 0x381   :  { %v1784_v53 = vpop.f32.mrb[110].mxu1 }
 0x382   :  { %v1881_v62 = vadd.f32 %v14428_v34, %v1782_v38  ;;  %v1785_v46 = vadd.f32 %v1784_v53, %v1202_v43  ;;  %2937 = vmatpush1.bf16.msra.mxu0 %v1981_v21  ;;  %v1786_v56 = vpop.f32.mrb[111].mxu1  ;;  %v1134_v38 = vpop.permute.xlu0 %1133 }
 0x383   :  { %2938 = vmatprep.subr.bf16.mxu0 %v17178_v0  ;;  %v1209_v52 = vmul.f32 %v14673_v10, %v1134_v38  ;;  %v12802_v38 = vld [vmem:[%s17164_s3 + $0xcc] ss:$16 sps:$4 sm:$0xff]  }
 0x384   :  { %v1882_v23 = vadd.f32 %v14428_v34, %v1785_v46  ;;  %v1945_v30 = vmax.f32 %v1881_v62, 0.0 }
 0x385   :  { %2748 = vmatmul.mubr.bf16.gmra.mrb[76].mxu0 %v12723_v57  ;;  %v1139_v57 = vpop.permute.xlu1 %1138 }
 0x386   :  { %v1946_v49 = vmax.f32 %v1882_v23, 0.0  ;;  %2755 = vmatprep.mubr.bf16.mxu0 %v12724_v4  ;;  %v1210_v46 = vmul.f32 %v14673_v10, %v1139_v57  ;;  %v12808_v57 = vld [vmem:[%s17164_s3 + $0x10c] ss:$16 sps:$4 sm:$0xff]  }
 0x387   :  { %v1789_v31 = vpop.f32.mrb[112].mxu1 }
 0x388   :  { %v1790_v35 = vadd.f32 %v1789_v31, %v1203_v24  ;;  %v1791_v27 = vpop.f32.mrb[113].mxu1  ;;  %v1982_v39 = vpack.c.bf16 %v1946_v49, %v1945_v30  ;;  %v12735_v24 = vld [vmem:[%s17164_s3 + $0x1e0] ss:$16 sps:$4 sm:$0xff]  }
 0x389   :  { %v1792_v34 = vpop.f32.mrb[114].mxu1 }
 0x38a   :  { %v1883_v55 = vadd.f32 %v14683_v25, %v1790_v35  ;;  %v1793_v45 = vadd.f32 %v1792_v34, %v1204_v33  ;;  %2939 = vmatpush1.bf16.msra.mxu0 %v1982_v39  ;;  %v1794_v60 = vpop.f32.mrb[115].mxu1  ;;  %v12738_v39 = vld [vmem:[%s17164_s3 + $0x200] ss:$16 sps:$4 sm:$0xff]   ;;  %v12739_v34 = vld [vmem:[%s17164_s3 + $0x224] ss:$16 sps:$4 sm:$0xff]  }
 0x38b   :  { %2940 = vmatprep.subr.bf16.mxu0 %v17178_v0  ;;  %v12747_v60 = vld [vmem:[%s17164_s3 + $0x260] ss:$16 sps:$4 sm:$0xff]  }
 0x38c   :  { %v1884_v59 = vadd.f32 %v14683_v25, %v1793_v45  ;;  %v1947_v63 = vmax.f32 %v1883_v55, 0.0  ;;  %v12744_v55 = vld [vmem:[%s17164_s3 + $0x240] ss:$16 sps:$4 sm:$0xff]   ;;  %v12745_v45 = vld [vmem:[%s17164_s3 + $0x264] ss:$16 sps:$4 sm:$0xff]  }
 0x38d   :  { %2756 = vmatmul.mubr.bf16.gmra.mrb[80].mxu0 %v12726_v44  ;;  %v12741_v44 = vld [vmem:[%s17164_s3 + $0x220] ss:$16 sps:$4 sm:$0xff]  }
 0x38e   :  { %v1948_v50 = vmax.f32 %v1884_v59, 0.0  ;;  %2763 = vmatprep.mubr.bf16.mxu0 %v12727_v29  ;;  %v12748_v29 = vld [vmem:[%s17164_s3 + $0x284] ss:$16 sps:$4 sm:$0xff]   ;;  %v12750_v59 = vld [vmem:[%s17164_s3 + $0x280] ss:$16 sps:$4 sm:$0xff]  }
 0x38f   :  { %v1797_v5 = vpop.f32.mrb[116].mxu1 }
 0x390   :  { %v1798_v54 = vadd.f32 %v1797_v5, %v1205_v48  ;;  %v1799_v3 = vpop.f32.mrb[117].mxu1  ;;  %v1983_v15 = vpack.c.bf16 %v1948_v50, %v1947_v63  ;;  %v12753_v48 = vld [vmem:[%s17164_s3 + $0x2a0] ss:$16 sps:$4 sm:$0xff]   ;;  %v12754_v63 = vld [vmem:[%s17164_s3 + $0x2c4] ss:$16 sps:$4 sm:$0xff]  }
 0x391   :  { %v1800_v58 = vpop.f32.mrb[118].mxu1  ;;  %v12756_v50 = vld [vmem:[%s17164_s3 + $0x2c0] ss:$16 sps:$4 sm:$0xff]   ;;  %v12763_v3 = vld [vmem:[%s17164_s3 + $0x324] ss:$16 sps:$4 sm:$0xff]  }
 0x392   :  { %v1885_v1 = vadd.f32 %v14683_v25, %v1798_v54  ;;  %v1801_v8 = vadd.f32 %v1800_v58, %v1206_v11  ;;  %2941 = vmatpush1.bf16.msra.mxu0 %v1983_v15  ;;  %v1802_v2 = vpop.f32.mrb[119].mxu1  ;;  %v12759_v5 = vld [vmem:[%s17164_s3 + $0x2e0] ss:$16 sps:$4 sm:$0xff]   ;;  %v12760_v11 = vld [vmem:[%s17164_s3 + $0x304] ss:$16 sps:$4 sm:$0xff]  }
 0x393   :  { %2942 = vmatprep.subr.bf16.mxu0 %v17178_v0  ;;  %v12762_v54 = vld [vmem:[%s17164_s3 + $0x300] ss:$16 sps:$4 sm:$0xff]   ;;  %v12766_v58 = vld [vmem:[%s17164_s3 + $0x344] ss:$16 sps:$4 sm:$0xff]  }
 0x394   :  { %v1886_v6 = vadd.f32 %v14683_v25, %v1801_v8  ;;  %v1949_v9 = vmax.f32 %v1885_v1, 0.0  ;;  %v12765_v15 = vld [vmem:[%s17164_s3 + $0x320] ss:$16 sps:$4 sm:$0xff]   ;;  %v12769_v1 = vld [vmem:[%s17164_s3 + $0x364] ss:$16 sps:$4 sm:$0xff]  }
 0x395   :  { %2764 = vmatmul.mubr.bf16.gmra.mrb[84].mxu0 %v12729_v61  ;;  %v12768_v61 = vld [vmem:[%s17164_s3 + $0x340] ss:$16 sps:$4 sm:$0xff]   ;;  %v12772_v2 = vld [vmem:[%s17164_s3 + $0x384] ss:$16 sps:$4 sm:$0xff]  }
 0x396   :  { %v1950_v36 = vmax.f32 %v1886_v6, 0.0  ;;  %2771 = vmatprep.mubr.bf16.mxu0 %v12730_v14  ;;  %v12771_v8 = vld [vmem:[%s17164_s3 + $0x360] ss:$16 sps:$4 sm:$0xff]   ;;  %v12775_v6 = vld [vmem:[%s17164_s3 + $0x3a4] ss:$16 sps:$4 sm:$0xff]  }
 0x397   :  { %v1805_v13 = vpop.f32.mrb[120].mxu1  ;;  %v12774_v14 = vld [vmem:[%s17164_s3 + $0x380] ss:$16 sps:$4 sm:$0xff]  }
 0x398   :  { %v1806_v16 = vadd.f32 %v1805_v13, %v1207_v19  ;;  %v1807_v18 = vpop.f32.mrb[121].mxu1  ;;  %v1984_v20 = vpack.c.bf16 %v1950_v36, %v1949_v9  ;;  %v12778_v19 = vld [vmem:[%s17164_s3 + $0x3c4] ss:$16 sps:$4 sm:$0xff]   ;;  %v12780_v9 = vld [vmem:[%s17164_s3 + $0x3c0] ss:$16 sps:$4 sm:$0xff]  }
 0x399   :  { %v1808_v22 = vpop.f32.mrb[122].mxu1  ;;  %v12781_v36 = vld [vmem:[%s17164_s3 + $0x3e4] ss:$16 sps:$4 sm:$0xff]   ;;  %v12786_v13 = vld [vmem:[%s17164_s3 + $0xc] ss:$16 sps:$4 sm:$0xff]  }
 0x39a   :  { %v1887_v12 = vadd.f32 %v14683_v25, %v1806_v16  ;;  %v1809_v32 = vadd.f32 %v1808_v22, %v1208_v42  ;;  %2943 = vmatpush1.bf16.msra.mxu0 %v1984_v20  ;;  %v1810_v26 = vpop.f32.mrb[123].mxu1  ;;  %v12784_v42 = vld [vmem:[%s17164_s3 + $0x8] ss:$16 sps:$4 sm:$0xff]   ;;  %v12787_v16 = vld [vmem:[%s17164_s3 + $0x2c] ss:$16 sps:$4 sm:$0xff]  }
 0x39b   :  { %2944 = vmatprep.subr.bf16.mxu0 %v17178_v0  ;;  %v12789_v18 = vld [vmem:[%s17164_s3 + $0x28] ss:$16 sps:$4 sm:$0xff]   ;;  %v12790_v20 = vld [vmem:[%s17164_s3 + $0x4c] ss:$16 sps:$4 sm:$0xff]  }
 0x39c   :  { %v1888_v43 = vadd.f32 %v14683_v25, %v1809_v32  ;;  %v1951_v21 = vmax.f32 %v1887_v12, 0.0  ;;  %v12792_v22 = vld [vmem:[%s17164_s3 + $0x48] ss:$16 sps:$4 sm:$0xff]   ;;  %v12796_v32 = vld [vmem:[%s17164_s3 + $0x8c] ss:$16 sps:$4 sm:$0xff]  }
 0x39d   :  { %2772 = vmatmul.mubr.bf16.gmra.mrb[88].mxu0 %v12732_v37  ;;  %v12793_v37 = vld [vmem:[%s17164_s3 + $0x6c] ss:$16 sps:$4 sm:$0xff]   ;;  %v12795_v12 = vld [vmem:[%s17164_s3 + $0x68] ss:$16 sps:$4 sm:$0xff]  }
 0x39e   :  { %v1952_v53 = vmax.f32 %v1888_v43, 0.0  ;;  %2779 = vmatprep.mubr.bf16.mxu0 %v12733_v41  ;;  %v12798_v26 = vld [vmem:[%s17164_s3 + $0x88] ss:$16 sps:$4 sm:$0xff]   ;;  %v12799_v41 = vld [vmem:[%s17164_s3 + $0xac] ss:$16 sps:$4 sm:$0xff]  }
 0x39f   :  { %v1813_v62 = vpop.f32.mrb[124].mxu1  ;;  %v12801_v43 = vld [vmem:[%s17164_s3 + $0xa8] ss:$16 sps:$4 sm:$0xff]  }
 0x3a0   :  { %v1814_v56 = vadd.f32 %v1813_v62, %v1209_v52  ;;  %v1815_v4 = vpop.f32.mrb[125].mxu1  ;;  %v1985_v23 = vpack.c.bf16 %v1952_v53, %v1951_v21  ;;  %v12804_v52 = vld [vmem:[%s17164_s3 + $0xc8] ss:$16 sps:$4 sm:$0xff]   ;;  %v12805_v21 = vld [vmem:[%s17164_s3 + $0xec] ss:$16 sps:$4 sm:$0xff]  }
 0x3a1   :  { %v1816_v40 = vpop.f32.mrb[126].mxu1  ;;  %v12807_v53 = vld [vmem:[%s17164_s3 + $0xe8] ss:$16 sps:$4 sm:$0xff]  }
 0x3a2   :  { %v1889_v30 = vadd.f32 %v14683_v25, %v1814_v56  ;;  %v1817_v49 = vadd.f32 %v1816_v40, %v1210_v46  ;;  %2945 = vmatpush1.bf16.msra.mxu0 %v1985_v23  ;;  %v1818_v31 = vpop.f32.mrb[127].mxu1  ;;  %v12810_v62 = vld [vmem:[%s17164_s3 + $0x108] ss:$16 sps:$4 sm:$0xff]   ;;  %v12811_v46 = vld [vmem:[%s17164_s3 + $0x12c] ss:$16 sps:$4 sm:$0xff]   ;;  %v12859_v56 = vld [vmem:[#allocation11] sm:$0xff]  }
 0x3a3   :  { %2946 = vmatprep.subr.bf16.mxu0 %v17178_v0  ;;  %v12860_v4 = vld [vmem:[#allocation11 + $0x8] sm:$0xff]   ;;  %11647 = vmatprep.subr.bf16.mxu1 %v12859_v56  ;;  %v12869_v31 = vld [vmem:[#allocation11 + $0x20] sm:$0xff]  }
 0x3a4   :  { %v1890_v10 = vadd.f32 %v14683_v25, %v1817_v49  ;;  %v1953_v33 = vmax.f32 %v1889_v30, 0.0  ;;  %v12742_v25 = vld [vmem:[%s17164_s3 + $0x244] ss:$16 sps:$4 sm:$0xff]   ;;  %11648 = vmatpush3.bf16.msra.mxu1 %v12859_v56  ;;  %v12813_v23 = vld [vmem:[%s17164_s3 + $0x128] ss:$16 sps:$4 sm:$0xff]  }
 0x3a5   :  { %2780 = vmatmul.mubr.bf16.gmra.mrb[92].mxu0 %v12735_v24  ;;  %11649 = vmatprep.subr.bf16.mxu1 %v12860_v4  ;;  %v12814_v40 = vld [vmem:[%s17164_s3 + $0x14c] ss:$16 sps:$4 sm:$0xff]   ;;  %v12864_v24 = vld [vmem:[#allocation11 + $0x10] sm:$0xff]   ;;  %v12816_v49 = vld [vmem:[%s17164_s3 + $0x148] ss:$16 sps:$4 sm:$0xff]  }
 0x3a6   :  { %v1954_v35 = vmax.f32 %v1890_v10, 0.0  ;;  %2787 = vmatprep.mubr.bf16.mxu0 %v12736_v47  ;;  %v12865_v30 = vld [vmem:[#allocation11 + $0x18] sm:$0xff]  }
 0x3a7   :  { %v12817_v47 = vld [vmem:[%s17164_s3 + $0x16c] ss:$16 sps:$4 sm:$0xff]   ;;  %v12819_v10 = vld [vmem:[%s17164_s3 + $0x168] ss:$16 sps:$4 sm:$0xff]  }
 0x3a8   :  { %v1986_v27 = vpack.c.bf16 %v1954_v35, %v1953_v33  ;;  %11650 = vmatpush3.bf16.msra.mxu1 %v12860_v4  ;;  %v12870_v33 = vld [vmem:[#allocation11 + $0x28] sm:$0xff]  }
 0x3a9   :  { %11651 = vmatprep.subr.bf16.mxu1 %v12864_v24  ;;  %v12820_v35 = vld [vmem:[%s17164_s3 + $0x18c] ss:$16 sps:$4 sm:$0xff]  }
 0x3aa   :  { %2947 = vmatpush1.bf16.msra.mxu0 %v1986_v27  ;;  %v12874_v27 = vld [vmem:[#allocation11 + $0x30] sm:$0xff]  }
 0x3ac   :  { %11652 = vmatpush3.bf16.msra.mxu1 %v12864_v24 }
 0x3ad   :  { %2788 = vmatmul.mubr.bf16.gmra.mrb[96].mxu0 %v12738_v39  ;;  %11653 = vmatprep.subr.bf16.mxu1 %v12865_v30  ;;  %v12822_v39 = vld [vmem:[%s17164_s3 + $0x188] ss:$16 sps:$4 sm:$0xff]  }
 0x3ae   :  { %2795 = vmatprep.mubr.bf16.mxu0 %v12739_v34  ;;  %v12875_v34 = vld [vmem:[#allocation11 + $0x38] sm:$0xff]  }
 0x3b0   :  { %11654 = vmatpush3.bf16.msra.mxu1 %v12865_v30 }
 0x3b1   :  { %11655 = vmatprep.subr.bf16.mxu1 %v12869_v31 }
 0x3b4   :  { %11656 = vmatpush3.bf16.msra.mxu1 %v12869_v31 }
 0x3b5   :  { %2796 = vmatmul.mubr.bf16.gmra.mrb[100].mxu0 %v12741_v44  ;;  %11657 = vmatprep.subr.bf16.mxu1 %v12870_v33  ;;  %v12823_v44 = vld [vmem:[%s17164_s3 + $0x1ac] ss:$16 sps:$4 sm:$0xff]  }
 0x3b6   :  { %2803 = vmatprep.mubr.bf16.mxu0 %v12742_v25  ;;  %v12825_v25 = vld [vmem:[%s17164_s3 + $0x1a8] ss:$16 sps:$4 sm:$0xff]  }
 0x3b8   :  { %11658 = vmatpush3.bf16.msra.mxu1 %v12870_v33 }
 0x3b9   :  { %11659 = vmatprep.subr.bf16.mxu1 %v12874_v27 }
 0x3bc   :  { %11660 = vmatpush3.bf16.msra.mxu1 %v12874_v27 }
 0x3bd   :  { %2804 = vmatmul.mubr.bf16.gmra.mrb[104].mxu0 %v12744_v55  ;;  %11661 = vmatprep.subr.bf16.mxu1 %v12875_v34  ;;  %v12826_v55 = vld [vmem:[%s17164_s3 + $0x1cc] ss:$16 sps:$4 sm:$0xff]  }
 0x3be   :  { %2811 = vmatprep.mubr.bf16.mxu0 %v12745_v45  ;;  %v12828_v45 = vld [vmem:[%s17164_s3 + $0x1c8] ss:$16 sps:$4 sm:$0xff]  }
 0x3c0   :  { %11662 = vmatpush3.bf16.msra.mxu1 %v12875_v34 }
 0x3c5   :  { %2812 = vmatmul.mubr.bf16.gmra.mrb[108].mxu0 %v12747_v60  ;;  %v12829_v60 = vld [vmem:[%s17164_s3 + $0x1ec] ss:$16 sps:$4 sm:$0xff]  }
 0x3c6   :  { %2819 = vmatprep.mubr.bf16.mxu0 %v12748_v29  ;;  %v12831_v29 = vld [vmem:[%s17164_s3 + $0x1e8] ss:$16 sps:$4 sm:$0xff]  }
 0x3cd   :  { %2820 = vmatmul.mubr.bf16.gmra.mrb[112].mxu0 %v12750_v59  ;;  %v12832_v59 = vld [vmem:[%s17164_s3 + $0x20c] ss:$16 sps:$4 sm:$0xff]  }
 0x3ce   :  { %2827 = vmatprep.mubr.bf16.mxu0 %v12751_v7  ;;  %v12834_v7 = vld [vmem:[%s17164_s3 + $0x208] ss:$16 sps:$4 sm:$0xff]  }
 0x3d5   :  { %2828 = vmatmul.mubr.bf16.gmra.mrb[116].mxu0 %v12753_v48  ;;  %v12835_v48 = vld [vmem:[%s17164_s3 + $0x22c] ss:$16 sps:$4 sm:$0xff]  }
 0x3d6   :  { %2835 = vmatprep.mubr.bf16.mxu0 %v12754_v63  ;;  %v12837_v63 = vld [vmem:[%s17164_s3 + $0x228] ss:$16 sps:$4 sm:$0xff]  }
 0x3dd   :  { %2836 = vmatmul.mubr.bf16.gmra.mrb[120].mxu0 %v12756_v50  ;;  %v12838_v50 = vld [vmem:[%s17164_s3 + $0x24c] ss:$16 sps:$4 sm:$0xff]  }
 0x3de   :  { %2843 = vmatprep.mubr.bf16.mxu0 %v12757_v51  ;;  %v12840_v51 = vld [vmem:[%s17164_s3 + $0x248] ss:$16 sps:$4 sm:$0xff]  }
 0x3e5   :  { %2844 = vmatmul.mubr.bf16.gmra.mrb[124].mxu0 %v12759_v5  ;;  %v12841_v5 = vld [vmem:[%s17164_s3 + $0x26c] ss:$16 sps:$4 sm:$0xff]  }
 0x3e6   :  { %2851 = vmatprep.mubr.bf16.mxu0 %v12760_v11  ;;  %v12843_v11 = vld [vmem:[%s17164_s3 + $0x268] ss:$16 sps:$4 sm:$0xff]  }
 0x3ed   :  { %2852 = vmatmul.mubr.bf16.gmra.mrb[128].mxu0 %v12762_v54  ;;  %v12844_v54 = vld [vmem:[%s17164_s3 + $0x28c] ss:$16 sps:$4 sm:$0xff]  }
 0x3ee   :  { %2859 = vmatprep.mubr.bf16.mxu0 %v12763_v3  ;;  %v12846_v3 = vld [vmem:[%s17164_s3 + $0x288] ss:$16 sps:$4 sm:$0xff]  }
 0x3f5   :  { %2860 = vmatmul.mubr.bf16.gmra.mrb[132].mxu0 %v12765_v15  ;;  %v12847_v15 = vld [vmem:[%s17164_s3 + $0x2ac] ss:$16 sps:$4 sm:$0xff]  }
 0x3f6   :  { %2867 = vmatprep.mubr.bf16.mxu0 %v12766_v58  ;;  %v12849_v58 = vld [vmem:[%s17164_s3 + $0x2a8] ss:$16 sps:$4 sm:$0xff]  }
 0x3fd   :  { %2868 = vmatmul.mubr.bf16.gmra.mrb[136].mxu0 %v12768_v61  ;;  %v12850_v61 = vld [vmem:[%s17164_s3 + $0x2cc] ss:$16 sps:$4 sm:$0xff]  }
 0x3fe   :  { %2875 = vmatprep.mubr.bf16.mxu0 %v12769_v1  ;;  %v12852_v1 = vld [vmem:[%s17164_s3 + $0x2c8] ss:$16 sps:$4 sm:$0xff]  }
 0x405   :  { %2876 = vmatmul.mubr.bf16.gmra.mrb[140].mxu0 %v12771_v8  ;;  %v12853_v8 = vld [vmem:[%s17164_s3 + $0x2ec] ss:$16 sps:$4 sm:$0xff]  }
 0x406   :  { %2883 = vmatprep.mubr.bf16.mxu0 %v12772_v2  ;;  %v12855_v2 = vld [vmem:[%s17164_s3 + $0x2e8] ss:$16 sps:$4 sm:$0xff]  }
 0x40d   :  { %2884 = vmatmul.mubr.bf16.gmra.mrb[144].mxu0 %v12774_v14  ;;  %v12856_v14 = vld [vmem:[%s17164_s3 + $0x30c] ss:$16 sps:$4 sm:$0xff]  }
 0x40e   :  { %2891 = vmatprep.mubr.bf16.mxu0 %v12775_v6  ;;  %v12858_v6 = vld [vmem:[%s17164_s3 + $0x308] ss:$16 sps:$4 sm:$0xff]  }
 0x415   :  { %2892 = vmatmul.mubr.bf16.gmra.mrb[148].mxu0 %v12777_v17  ;;  %v12861_v17 = vld [vmem:[%s17164_s3 + $0x32c] ss:$16 sps:$4 sm:$0xff]  }
 0x416   :  { %2899 = vmatprep.mubr.bf16.mxu0 %v12778_v19  ;;  %v12863_v19 = vld [vmem:[%s17164_s3 + $0x328] ss:$16 sps:$4 sm:$0xff]  }
 0x41d   :  { %2900 = vmatmul.mubr.bf16.gmra.mrb[152].mxu0 %v12780_v9  ;;  %v12866_v9 = vld [vmem:[%s17164_s3 + $0x34c] ss:$16 sps:$4 sm:$0xff]  }
 0x41e   :  { %2907 = vmatprep.mubr.bf16.mxu0 %v12781_v36  ;;  %v12868_v36 = vld [vmem:[%s17164_s3 + $0x348] ss:$16 sps:$4 sm:$0xff]  }
 0x425   :  { %2908 = vmatmul.mubr.bf16.gmra.mrb[156].mxu0 %v12783_v28  ;;  %v12871_v28 = vld [vmem:[%s17164_s3 + $0x36c] ss:$16 sps:$4 sm:$0xff]  }
 0x426   :  { %2948 = vmatprep.mubr.bf16.mxu0 %v12786_v13 }
 0x42d   :  { %2949 = vmatmul.mubr.bf16.vlgmr.msra.gmra.mrb[32].mxu0 %v12784_v42  ;;  %v14982_v42 = vpop.permute.xlu0 %3207 }
 0x42e   :  { %2956 = vmatprep.mubr.bf16.mxu0 %v12787_v16 }
 0x435   :  { %2957 = vmatmul.mubr.bf16.gmra.mrb[36].mxu0 %v12789_v18  ;;  %v12873_v18 = vld [vmem:[%s17164_s3 + $0x368] ss:$16 sps:$4 sm:$0xff]  }
 0x436   :  { %2964 = vmatprep.mubr.bf16.mxu0 %v12790_v20  ;;  %v14987_v20 = vpop.permute.xlu1 %3212 }
 0x43d   :  { %2965 = vmatmul.mubr.bf16.gmra.mrb[40].mxu0 %v12792_v22 }
 0x43e   :  { %2972 = vmatprep.mubr.bf16.mxu0 %v12793_v37  ;;  %v12876_v37 = vld [vmem:[%s17164_s3 + $0x38c] ss:$16 sps:$4 sm:$0xff]  }
 0x445   :  { %2973 = vmatmul.mubr.bf16.gmra.mrb[44].mxu0 %v12795_v12 }
 0x446   :  { %2980 = vmatprep.mubr.bf16.mxu0 %v12796_v32 }
 0x44d   :  { %2981 = vmatmul.mubr.bf16.gmra.mrb[48].mxu0 %v12798_v26 }
 0x44e   :  { %2988 = vmatprep.mubr.bf16.mxu0 %v12799_v41 }
 0x455   :  { %2989 = vmatmul.mubr.bf16.gmra.mrb[52].mxu0 %v12801_v43 }
 0x456   :  { %2996 = vmatprep.mubr.bf16.mxu0 %v12802_v38  ;;  %v14994_v38 = vpop.permute.xlu0 %3217 }
 0x45a   :  { %v15006_v24 = vpop.permute.xlu0 %3227 }
 0x45d   :  { %2997 = vmatmul.mubr.bf16.gmra.mrb[56].mxu0 %v12804_v52 }
 0x45e   :  { %3004 = vmatprep.mubr.bf16.mxu0 %v12805_v21  ;;  %v12878_v21 = vld [vmem:[%s17164_s3 + $0x388] ss:$16 sps:$4 sm:$0xff]  }
 0x465   :  { %3005 = vmatmul.mubr.bf16.gmra.mrb[60].mxu0 %v12807_v53  ;;  %v14999_v53 = vpop.permute.xlu1 %3222 }
 0x466   :  { %3012 = vmatprep.mubr.bf16.mxu0 %v12808_v57 }
 0x46d   :  { %3013 = vmatmul.mubr.bf16.gmra.mrb[64].mxu0 %v12810_v62  ;;  %v12879_v62 = vld [vmem:[%s17164_s3 + $0x3ac] ss:$16 sps:$4 sm:$0xff]  }
 0x46e   :  { %3020 = vmatprep.mubr.bf16.mxu0 %v12811_v46 }
 0x475   :  { %3021 = vmatmul.mubr.bf16.gmra.mrb[68].mxu0 %v12813_v23 }
 0x476   :  { %3028 = vmatprep.mubr.bf16.mxu0 %v12814_v40 }
 0x47d   :  { %3029 = vmatmul.mubr.bf16.gmra.mrb[72].mxu0 %v12816_v49  ;;  %v12881_v49 = vld [vmem:[%s17164_s3 + $0x3a8] ss:$16 sps:$4 sm:$0xff]  }
 0x47e   :  { %3036 = vmatprep.mubr.bf16.mxu0 %v12817_v47  ;;  %v15011_v47 = vpop.permute.xlu1 %3232 }
 0x485   :  { %3037 = vmatmul.mubr.bf16.gmra.mrb[76].mxu0 %v12819_v10  ;;  %v12882_v10 = vld [vmem:[%s17164_s3 + $0x3cc] ss:$16 sps:$4 sm:$0xff]  }
 0x486   :  { %3044 = vmatprep.mubr.bf16.mxu0 %v12820_v35 }
 0x48d   :  { %3045 = vmatmul.mubr.bf16.gmra.mrb[80].mxu0 %v12822_v39 }
 0x48e   :  { %3052 = vmatprep.mubr.bf16.mxu0 %v12823_v44  ;;  %v15018_v44 = vpop.permute.xlu0 %3237 }
 0x495   :  { %3053 = vmatmul.mubr.bf16.gmra.mrb[84].mxu0 %v12825_v25 }
 0x496   :  { %3060 = vmatprep.mubr.bf16.mxu0 %v12826_v55  ;;  %v12884_v55 = vld [vmem:[%s17164_s3 + $0x3c8] ss:$16 sps:$4 sm:$0xff]  }
 0x49d   :  { %3061 = vmatmul.mubr.bf16.gmra.mrb[88].mxu0 %v12828_v45  ;;  %v15023_v45 = vpop.permute.xlu1 %3242 }
 0x49e   :  { %3068 = vmatprep.mubr.bf16.mxu0 %v12829_v60 }
 0x4a5   :  { %3069 = vmatmul.mubr.bf16.gmra.mrb[92].mxu0 %v12831_v29  ;;  %v12885_v29 = vld [vmem:[%s17164_s3 + $0x3ec] ss:$16 sps:$4 sm:$0xff]  }
 0x4a6   :  { %3076 = vmatprep.mubr.bf16.mxu0 %v12832_v59 }
 0x4ad   :  { %3077 = vmatmul.mubr.bf16.gmra.mrb[96].mxu0 %v12834_v7 }
 0x4ae   :  { %3084 = vmatprep.mubr.bf16.mxu0 %v12835_v48 }
 0x4b5   :  { %3085 = vmatmul.mubr.bf16.gmra.mrb[100].mxu0 %v12837_v63 }
 0x4b6   :  { %3092 = vmatprep.mubr.bf16.mxu0 %v12838_v50 }
 0x4bd   :  { %3093 = vmatmul.mubr.bf16.gmra.mrb[104].mxu0 %v12840_v51  ;;  %v15030_v51 = vpop.permute.xlu0 %3247 }
 0x4be   :  { %3100 = vmatprep.mubr.bf16.mxu0 %v12841_v5 }
 0x4c5   :  { %3101 = vmatmul.mubr.bf16.gmra.mrb[108].mxu0 %v12843_v11  ;;  %v12887_v11 = vld [vmem:[%s17164_s3 + $0x3e8] ss:$16 sps:$4 sm:$0xff]  }
 0x4c6   :  { %3108 = vmatprep.mubr.bf16.mxu0 %v12844_v54  ;;  %v15035_v54 = vpop.permute.xlu1 %3252 }
 0x4cd   :  { %3109 = vmatmul.mubr.bf16.gmra.mrb[112].mxu0 %v12846_v3 }
 0x4ce   :  { %3116 = vmatprep.mubr.bf16.mxu0 %v12847_v15 }
 0x4d5   :  { %3117 = vmatmul.mubr.bf16.gmra.mrb[116].mxu0 %v12849_v58 }
 0x4d6   :  { %3124 = vmatprep.mubr.bf16.mxu0 %v12850_v61 }
 0x4dd   :  { %3125 = vmatmul.mubr.bf16.gmra.mrb[120].mxu0 %v12852_v1 }
 0x4de   :  { %3132 = vmatprep.mubr.bf16.mxu0 %v12853_v8 }
 0x4e5   :  { %3133 = vmatmul.mubr.bf16.gmra.mrb[124].mxu0 %v12855_v2  ;;  %v15039_v2 = vpop.permute.xlu0 %3257 }
 0x4e6   :  { %3140 = vmatprep.mubr.bf16.mxu0 %v12856_v14 }
 0x4ed   :  { %3141 = vmatmul.mubr.bf16.gmra.mrb[128].mxu0 %v12858_v6  ;;  %v15041_v6 = vpop.permute.xlu1 %3262 }
 0x4ee   :  { %3148 = vmatprep.mubr.bf16.mxu0 %v12861_v17 }
 0x4f5   :  { %3149 = vmatmul.mubr.bf16.gmra.mrb[132].mxu0 %v12863_v19 }
 0x4f6   :  { %3156 = vmatprep.mubr.bf16.mxu0 %v12866_v9 }
 0x4fd   :  { %3157 = vmatmul.mubr.bf16.gmra.mrb[136].mxu0 %v12868_v36 }
 0x4fe   :  { %3164 = vmatprep.mubr.bf16.mxu0 %v12871_v28 }
 0x500   :  { %v2950_v13 = vpop.f32.mrb[32].mxu0 }
 0x501   :  { %v2952_v16 = vpop.f32.mrb[33].mxu0  ;;  %v3525_v12 = vmul.f32 %v14982_v42, %v2950_v13 }
 0x502   :  { %v2953_v22 = vpop.f32.mrb[34].mxu0  ;;  %v15045_v16 = vpop.permute.xlu0 %3267 }
 0x503   :  { %v3526_v32 = vmul.f32 %v14987_v20, %v2953_v22  ;;  %v2955_v26 = vpop.f32.mrb[35].mxu0  ;;  %v15047_v22 = vpop.permute.xlu1 %3272 }
 0x505   :  { %3165 = vmatmul.mubr.bf16.gmra.mrb[140].mxu0 %v12873_v18  ;;  %v3589_v41 = vpack.c.bf16 %v3526_v32, %v3525_v12 }
 0x506   :  { %3172 = vmatprep.mubr.bf16.mxu0 %v12876_v37 }
 0x507   :  { %11663 = vmatprep.mubr.bf16.mxu1 %v3589_v41 }
 0x508   :  { %v2958_v43 = vpop.f32.mrb[36].mxu0 }
 0x509   :  { %v2960_v52 = vpop.f32.mrb[37].mxu0  ;;  %v3527_v46 = vmul.f32 %v14994_v38, %v2958_v43 }
 0x50a   :  { %v2961_v57 = vpop.f32.mrb[38].mxu0  ;;  %v15051_v52 = vpop.permute.xlu0 %3277 }
 0x50b   :  { %v3528_v56 = vmul.f32 %v14999_v53, %v2961_v57  ;;  %v2963_v4 = vpop.f32.mrb[39].mxu0  ;;  %v15053_v57 = vpop.permute.xlu1 %3282 }
 0x50d   :  { %v3590_v23 = vpack.c.bf16 %v3528_v56, %v3527_v46  ;;  %3173 = vmatmul.mubr.bf16.gmra.mrb[144].mxu0 %v12878_v21 }
 0x50e   :  { %3180 = vmatprep.mubr.bf16.mxu0 %v12879_v62 }
 0x50f   :  { %11664 = vmatmul.mubr.bf16.vlgmr.msra.gmra.mrb[128].mxu1 %v3590_v23 }
 0x510   :  { %v2966_v40 = vpop.f32.mrb[40].mxu0 }
 0x511   :  { %v2968_v30 = vpop.f32.mrb[41].mxu0  ;;  %v3529_v33 = vmul.f32 %v15006_v24, %v2966_v40 }
 0x512   :  { %v2969_v31 = vpop.f32.mrb[42].mxu0  ;;  %v15057_v30 = vpop.permute.xlu0 %3287 }
 0x513   :  { %v3530_v35 = vmul.f32 %v15011_v47, %v2969_v31  ;;  %v2971_v27 = vpop.f32.mrb[43].mxu0  ;;  %v15059_v31 = vpop.permute.xlu1 %3292 }
 0x515   :  { %3181 = vmatmul.mubr.bf16.gmra.mrb[148].mxu0 %v12881_v49  ;;  %v3591_v39 = vpack.c.bf16 %v3530_v35, %v3529_v33 }
 0x516   :  { %3188 = vmatprep.mubr.bf16.mxu0 %v12882_v10 }
 0x517   :  { %11667 = vmatprep.mubr.bf16.mxu1 %v3591_v39 }
 0x518   :  { %v2974_v34 = vpop.f32.mrb[44].mxu0 }
 0x519   :  { %v2976_v25 = vpop.f32.mrb[45].mxu0  ;;  %v3531_v59 = vmul.f32 %v15018_v44, %v2974_v34 }
 0x51a   :  { %v2977_v60 = vpop.f32.mrb[46].mxu0  ;;  %v15063_v25 = vpop.permute.xlu0 %3297 }
 0x51b   :  { %v3532_v7 = vmul.f32 %v15023_v45, %v2977_v60  ;;  %v2979_v48 = vpop.f32.mrb[47].mxu0  ;;  %v15065_v60 = vpop.permute.xlu1 %3302 }
 0x51d   :  { %3189 = vmatmul.mubr.bf16.gmra.mrb[152].mxu0 %v12884_v55  ;;  %v3592_v63 = vpack.c.bf16 %v3532_v7, %v3531_v59 }
 0x51e   :  { %3196 = vmatprep.mubr.bf16.mxu0 %v12885_v29 }
 0x51f   :  { %11668 = vmatmul.mubr.bf16.gmra.mrb[132].mxu1 %v3592_v63 }
 0x520   :  { %v2982_v50 = vpop.f32.mrb[48].mxu0 }
 0x521   :  { %v2984_v5 = vpop.f32.mrb[49].mxu0  ;;  %v3533_v15 = vmul.f32 %v15030_v51, %v2982_v50 }
 0x522   :  { %v2985_v3 = vpop.f32.mrb[50].mxu0  ;;  %v15069_v5 = vpop.permute.xlu0 %3307 }
 0x523   :  { %v3534_v58 = vmul.f32 %v15035_v54, %v2985_v3  ;;  %v2987_v61 = vpop.f32.mrb[51].mxu0  ;;  %v15071_v3 = vpop.permute.xlu1 %3312 }
 0x525   :  { %3197 = vmatmul.mubr.bf16.gmra.mrb[156].mxu0 %v12887_v11  ;;  %v3593_v1 = vpack.c.bf16 %v3534_v58, %v3533_v15 }
 0x527   :  { %11671 = vmatprep.mubr.bf16.mxu1 %v3593_v1 }
 0x528   :  { %v2990_v8 = vpop.f32.mrb[52].mxu0 }
 0x529   :  { %v2992_v14 = vpop.f32.mrb[53].mxu0  ;;  %v3535_v19 = vmul.f32 %v15039_v2, %v2990_v8 }
 0x52a   :  { %v2993_v17 = vpop.f32.mrb[54].mxu0 }
 0x52b   :  { %v3536_v9 = vmul.f32 %v15041_v6, %v2993_v17  ;;  %v2995_v36 = vpop.f32.mrb[55].mxu0  ;;  %v15075_v17 = vpop.permute.xlu0 %3317 }
 0x52d   :  { %v3594_v28 = vpack.c.bf16 %v3536_v9, %v3535_v19  ;;  %v15077_v9 = vpop.permute.xlu1 %3322 }
 0x52f   :  { %11672 = vmatmul.mubr.bf16.gmra.mrb[136].mxu1 %v3594_v28 }
 0x530   :  { %v2998_v13 = vpop.f32.mrb[56].mxu0 }
 0x531   :  { %v3000_v18 = vpop.f32.mrb[57].mxu0  ;;  %v3537_v12 = vmul.f32 %v15045_v16, %v2998_v13 }
 0x532   :  { %v3001_v37 = vpop.f32.mrb[58].mxu0 }
 0x533   :  { %v3538_v32 = vmul.f32 %v15047_v22, %v3001_v37  ;;  %v3003_v26 = vpop.f32.mrb[59].mxu0 }
 0x535   :  { %v3595_v41 = vpack.c.bf16 %v3538_v32, %v3537_v12  ;;  %v15081_v32 = vpop.permute.xlu0 %3327 }
 0x537   :  { %11675 = vmatprep.mubr.bf16.mxu1 %v3595_v41  ;;  %v15083_v41 = vpop.permute.xlu1 %3332 }
 0x538   :  { %v3006_v43 = vpop.f32.mrb[60].mxu0 }
 0x539   :  { %v3008_v21 = vpop.f32.mrb[61].mxu0  ;;  %v3539_v46 = vmul.f32 %v15051_v52, %v3006_v43 }
 0x53a   :  { %v3009_v62 = vpop.f32.mrb[62].mxu0 }
 0x53b   :  { %v3540_v56 = vmul.f32 %v15053_v57, %v3009_v62  ;;  %v3011_v4 = vpop.f32.mrb[63].mxu0 }
 0x53c   :  { %v12888_v4 = vld [vmem:[#allocation12] sm:$0xff]  }
 0x53d   :  { %v3596_v23 = vpack.c.bf16 %v3540_v56, %v3539_v46  ;;  %11727 = vmatprep.subr.bf16.mxu1 %v12888_v4 }
 0x53e   :  { %11728 = vmatpush3.bf16.msra.mxu1 %v12888_v4  ;;  %v12895_v4 = vld [vmem:[#allocation12 + $0x38] sm:$0xff]  }
 0x53f   :  { %11676 = vmatmul.mubr.bf16.gmra.mrb[140].mxu1 %v3596_v23 }
 0x540   :  { %v3014_v40 = vpop.f32.mrb[64].mxu0 }
 0x541   :  { %v3016_v49 = vpop.f32.mrb[65].mxu0  ;;  %v3541_v33 = vmul.f32 %v15057_v30, %v3014_v40  ;;  %v15087_v40 = vpop.permute.xlu0 %3337 }
 0x542   :  { %v3017_v10 = vpop.f32.mrb[66].mxu0 }
 0x543   :  { %v3542_v35 = vmul.f32 %v15059_v31, %v3017_v10  ;;  %v3019_v27 = vpop.f32.mrb[67].mxu0  ;;  %v12889_v10 = vld [vmem:[#allocation12 + $0x8] sm:$0xff]  }
 0x544   :  { %11729 = vmatprep.subr.bf16.mxu1 %v12889_v10 }
 0x545   :  { %v3597_v39 = vpack.c.bf16 %v3542_v35, %v3541_v33  ;;  %v15089_v33 = vpop.permute.xlu1 %3342  ;;  %11730 = vmatpush3.bf16.msra.mxu1 %v12889_v10 }
 0x546   :  { %17254 = vst [vmem:[#allocation21_spill] sm:$0xff] %v15089_v33 }
 0x547   :  { %11679 = vmatprep.mubr.bf16.mxu1 %v3597_v39 }
 0x548   :  { %v3022_v34 = vpop.f32.mrb[68].mxu0 }
 0x549   :  { %v3024_v55 = vpop.f32.mrb[69].mxu0  ;;  %v3543_v59 = vmul.f32 %v15063_v25, %v3022_v34 }
 0x54a   :  { %v3025_v29 = vpop.f32.mrb[70].mxu0 }
 0x54b   :  { %v3544_v7 = vmul.f32 %v15065_v60, %v3025_v29  ;;  %v3027_v48 = vpop.f32.mrb[71].mxu0  ;;  %v12890_v29 = vld [vmem:[#allocation12 + $0x10] sm:$0xff]  }
 0x54c   :  { %11731 = vmatprep.subr.bf16.mxu1 %v12890_v29 }
 0x54d   :  { %v3598_v63 = vpack.c.bf16 %v3544_v7, %v3543_v59  ;;  %11732 = vmatpush3.bf16.msra.mxu1 %v12890_v29  ;;  %v15093_v7 = vpop.permute.xlu0 %3347 }
 0x54e   :  { %17255 = vst [vmem:[#allocation22_spill] sm:$0xff] %v15093_v7 }
 0x54f   :  { %11680 = vmatmul.mubr.bf16.gmra.mrb[144].mxu1 %v3598_v63  ;;  %v12891_v63 = vld [vmem:[#allocation12 + $0x18] sm:$0xff]  }
 0x550   :  { %v3030_v50 = vpop.f32.mrb[72].mxu0  ;;  %11733 = vmatprep.subr.bf16.mxu1 %v12891_v63 }
 0x551   :  { %v3032_v11 = vpop.f32.mrb[73].mxu0  ;;  %v3545_v58 = vmul.f32 %v15069_v5, %v3030_v50  ;;  %v15095_v50 = vpop.permute.xlu1 %3352  ;;  %11734 = vmatpush3.bf16.msra.mxu1 %v12891_v63 }
 0x552   :  { %v3033_v15 = vpop.f32.mrb[74].mxu0  ;;  %17256 = vst [vmem:[#allocation23_spill] sm:$0xff] %v15095_v50 }
 0x553   :  { %v3546_v61 = vmul.f32 %v15071_v3, %v3033_v15  ;;  %v3035_v1 = vpop.f32.mrb[75].mxu0 }
 0x555   :  { %v3599_v8 = vpack.c.bf16 %v3546_v61, %v3545_v58 }
 0x557   :  { %11683 = vmatprep.mubr.bf16.mxu1 %v3599_v8  ;;  %v12892_v8 = vld [vmem:[#allocation12 + $0x20] sm:$0xff]  }
 0x558   :  { %v3038_v14 = vpop.f32.mrb[76].mxu0  ;;  %11735 = vmatprep.subr.bf16.mxu1 %v12892_v8 }
 0x559   :  { %v3040_v19 = vpop.f32.mrb[77].mxu0  ;;  %v3547_v28 = vmul.f32 %v15075_v17, %v3038_v14  ;;  %11736 = vmatpush3.bf16.msra.mxu1 %v12892_v8 }
 0x55a   :  { %v3041_v36 = vpop.f32.mrb[78].mxu0  ;;  %v15099_v19 = vpop.permute.xlu0 %3357 }
 0x55b   :  { %v3548_v13 = vmul.f32 %v15077_v9, %v3041_v36  ;;  %v3043_v18 = vpop.f32.mrb[79].mxu0  ;;  %17257 = vst [vmem:[#allocation24_spill] sm:$0xff] %v15099_v19 }
 0x55d   :  { %v3600_v37 = vpack.c.bf16 %v3548_v13, %v3547_v28  ;;  %v12893_v28 = vld [vmem:[#allocation12 + $0x28] sm:$0xff]   ;;  %v15101_v13 = vpop.permute.xlu1 %3362 }
 0x55e   :  { %17258 = vst [vmem:[#allocation25_spill] sm:$0xff] %v15101_v13  ;;  %11737 = vmatprep.subr.bf16.mxu1 %v12893_v28 }
 0x55f   :  { %11684 = vmatmul.mubr.bf16.gmra.mrb[148].mxu1 %v3600_v37 }
 0x560   :  { %v3046_v12 = vpop.f32.mrb[80].mxu0  ;;  %11738 = vmatpush3.bf16.msra.mxu1 %v12893_v28 }
 0x561   :  { %v3048_v26 = vpop.f32.mrb[81].mxu0  ;;  %v3549_v21 = vmul.f32 %v15081_v32, %v3046_v12 }
 0x562   :  { %v3049_v43 = vpop.f32.mrb[82].mxu0 }
 0x563   :  { %v3550_v62 = vmul.f32 %v15083_v41, %v3049_v43  ;;  %v3051_v46 = vpop.f32.mrb[83].mxu0 }
 0x564   :  { %v15105_v46 = vpop.permute.xlu0 %3367 }
 0x565   :  { %v3601_v56 = vpack.c.bf16 %v3550_v62, %v3549_v21  ;;  %v12894_v21 = vld [vmem:[#allocation12 + $0x30] sm:$0xff]   ;;  %17259 = vst [vmem:[#allocation26_spill] sm:$0xff] %v15105_v46 }
 0x566   :  { %11739 = vmatprep.subr.bf16.mxu1 %v12894_v21 }
 0x567   :  { %11687 = vmatprep.mubr.bf16.mxu1 %v3601_v56  ;;  %11740 = vmatpush3.bf16.msra.mxu1 %v12894_v21 }
 0x568   :  { %v3054_v23 = vpop.f32.mrb[84].mxu0  ;;  %11741 = vmatprep.subr.bf16.mxu1 %v12895_v4 }
 0x569   :  { %v3056_v49 = vpop.f32.mrb[85].mxu0  ;;  %v3551_v27 = vmul.f32 %v15087_v40, %v3054_v23  ;;  %v15107_v23 = vpop.permute.xlu1 %3372 }
 0x56a   :  { %v3057_v35 = vpop.f32.mrb[86].mxu0  ;;  %17260 = vst [vmem:[#allocation27_spill] sm:$0xff] %v15107_v23 }
 0x56b   :  { %v3552_v39 = vmul.f32 %v15089_v33, %v3057_v35  ;;  %v3059_v34 = vpop.f32.mrb[87].mxu0  ;;  %11742 = vmatpush3.bf16.msra.mxu1 %v12895_v4 }
 0x56d   :  { %v3602_v55 = vpack.c.bf16 %v3552_v39, %v3551_v27 }
 0x56f   :  { %11688 = vmatmul.mubr.bf16.gmra.mrb[152].mxu1 %v3602_v55  ;;  %v15111_v55 = vpop.permute.xlu0 %3377 }
 0x570   :  { %v3062_v59 = vpop.f32.mrb[88].mxu0  ;;  %17261 = vst [vmem:[#allocation28_spill] sm:$0xff] %v15111_v55 }
 0x571   :  { %v3064_v48 = vpop.f32.mrb[89].mxu0  ;;  %v3553_v15 = vmul.f32 %v15093_v7, %v3062_v59  ;;  %v15113_v59 = vpop.permute.xlu1 %3382 }
 0x572   :  { %v3065_v11 = vpop.f32.mrb[90].mxu0  ;;  %17262 = vst [vmem:[#allocation29_spill] sm:$0xff] %v15113_v59 }
 0x573   :  { %v3554_v58 = vmul.f32 %v15095_v50, %v3065_v11  ;;  %v3067_v61 = vpop.f32.mrb[91].mxu0 }
 0x575   :  { %v3603_v1 = vpack.c.bf16 %v3554_v58, %v3553_v15 }
 0x577   :  { %11691 = vmatprep.mubr.bf16.mxu1 %v3603_v1  ;;  %v15117_v1 = vpop.permute.xlu0 %3387 }
 0x578   :  { %v3070_v14 = vpop.f32.mrb[92].mxu0  ;;  %17263 = vst [vmem:[#allocation30_spill] sm:$0xff] %v15117_v1 }
 0x579   :  { %v3072_v36 = vpop.f32.mrb[93].mxu0  ;;  %v3555_v37 = vmul.f32 %v15099_v19, %v3070_v14  ;;  %v15119_v14 = vpop.permute.xlu1 %3392 }
 0x57a   :  { %v3073_v18 = vpop.f32.mrb[94].mxu0  ;;  %17264 = vst [vmem:[#allocation31_spill] sm:$0xff] %v15119_v14 }
 0x57b   :  { %v3556_v12 = vmul.f32 %v15101_v13, %v3073_v18  ;;  %v3075_v26 = vpop.f32.mrb[95].mxu0 }
 0x57d   :  { %v3604_v43 = vpack.c.bf16 %v3556_v12, %v3555_v37 }
 0x57f   :  { %11692 = vmatmul.mubr.bf16.gmra.mrb[156].mxu1 %v3604_v43  ;;  %v15123_v43 = vpop.permute.xlu0 %3397 }
 0x580   :  { %v3078_v62 = vpop.f32.mrb[96].mxu0  ;;  %17265 = vst [vmem:[#allocation32_spill] sm:$0xff] %v15123_v43 }
 0x581   :  { %v3080_v56 = vpop.f32.mrb[97].mxu0  ;;  %v3557_v10 = vmul.f32 %v15105_v46, %v3078_v62  ;;  %v15125_v62 = vpop.permute.xlu1 %3402 }
 0x582   :  { %v3081_v49 = vpop.f32.mrb[98].mxu0  ;;  %17266 = vst [vmem:[#allocation33_spill] sm:$0xff] %v15125_v62 }
 0x583   :  { %v3558_v35 = vmul.f32 %v15107_v23, %v3081_v49  ;;  %v3083_v27 = vpop.f32.mrb[99].mxu0 }
 0x585   :  { %v3605_v39 = vpack.c.bf16 %v3558_v35, %v3557_v10 }
 0x587   :  { %11695 = vmatprep.mubr.bf16.mxu1 %v3605_v39  ;;  %v15129_v39 = vpop.permute.xlu0 %3407 }
 0x588   :  { %v3086_v34 = vpop.f32.mrb[100].mxu0  ;;  %17267 = vst [vmem:[#allocation34_spill] sm:$0xff] %v15129_v39 }
 0x589   :  { %v3088_v29 = vpop.f32.mrb[101].mxu0  ;;  %v3559_v63 = vmul.f32 %v15111_v55, %v3086_v34 }
 0x58a   :  { %v3089_v48 = vpop.f32.mrb[102].mxu0  ;;  %v15131_v29 = vpop.permute.xlu1 %3412 }
 0x58b   :  { %v3560_v11 = vmul.f32 %v15113_v59, %v3089_v48  ;;  %v3091_v15 = vpop.f32.mrb[103].mxu0  ;;  %17268 = vst [vmem:[#allocation35_spill] sm:$0xff] %v15131_v29 }
 0x58d   :  { %v3606_v58 = vpack.c.bf16 %v3560_v11, %v3559_v63 }
 0x58f   :  { %11696 = vmatmul.mubr.bf16.gmra.mrb[160].mxu1 %v3606_v58 }
 0x590   :  { %v3094_v61 = vpop.f32.mrb[104].mxu0 }
 0x591   :  { %v3096_v8 = vpop.f32.mrb[105].mxu0  ;;  %v3561_v28 = vmul.f32 %v15117_v1, %v3094_v61 }
 0x592   :  { %v3097_v36 = vpop.f32.mrb[106].mxu0  ;;  %v15135_v8 = vpop.permute.xlu0 %3417 }
 0x593   :  { %v3562_v18 = vmul.f32 %v15119_v14, %v3097_v36  ;;  %v3099_v37 = vpop.f32.mrb[107].mxu0  ;;  %17269 = vst [vmem:[#allocation36_spill] sm:$0xff] %v15135_v8 }
 0x595   :  { %v3607_v12 = vpack.c.bf16 %v3562_v18, %v3561_v28  ;;  %v15137_v28 = vpop.permute.xlu1 %3422 }
 0x596   :  { %17270 = vst [vmem:[#allocation37_spill] sm:$0xff] %v15137_v28 }
 0x597   :  { %11699 = vmatprep.mubr.bf16.mxu1 %v3607_v12 }
 0x598   :  { %v3102_v26 = vpop.f32.mrb[108].mxu0 }
 0x599   :  { %v3104_v21 = vpop.f32.mrb[109].mxu0  ;;  %v3563_v4 = vmul.f32 %v15123_v43, %v3102_v26 }
 0x59a   :  { %v3105_v56 = vpop.f32.mrb[110].mxu0 }
 0x59b   :  { %v3564_v49 = vmul.f32 %v15125_v62, %v3105_v56  ;;  %v3107_v10 = vpop.f32.mrb[111].mxu0 }
 0x59c   :  { %v15143_v10 = vpop.permute.xlu1 %3432 }
 0x59d   :  { %v3608_v35 = vpack.c.bf16 %v3564_v49, %v3563_v4  ;;  %v15141_v4 = vpop.permute.xlu0 %3427  ;;  %17272 = vst [vmem:[#allocation39_spill] sm:$0xff] %v15143_v10 }
 0x59e   :  { %17271 = vst [vmem:[#allocation38_spill] sm:$0xff] %v15141_v4 }
 0x59f   :  { %11700 = vmatmul.mubr.bf16.gmra.mrb[164].mxu1 %v3608_v35 }
 0x5a0   :  { %v3110_v27 = vpop.f32.mrb[112].mxu0 }
 0x5a1   :  { %v3112_v34 = vpop.f32.mrb[113].mxu0  ;;  %v3565_v63 = vmul.f32 %v15129_v39, %v3110_v27 }
 0x5a2   :  { %v3113_v48 = vpop.f32.mrb[114].mxu0 }
 0x5a3   :  { %v3566_v11 = vmul.f32 %v15131_v29, %v3113_v48  ;;  %v3115_v15 = vpop.f32.mrb[115].mxu0 }
 0x5a4   :  { %v15147_v15 = vpop.permute.xlu0 %3437 }
 0x5a5   :  { %v3609_v58 = vpack.c.bf16 %v3566_v11, %v3565_v63  ;;  %17273 = vst [vmem:[#allocation40_spill] sm:$0xff] %v15147_v15 }
 0x5a7   :  { %11703 = vmatprep.mubr.bf16.mxu1 %v3609_v58 }
 0x5a8   :  { %v3118_v61 = vpop.f32.mrb[116].mxu0 }
 0x5a9   :  { %v3120_v36 = vpop.f32.mrb[117].mxu0  ;;  %v3567_v37 = vmul.f32 %v15135_v8, %v3118_v61  ;;  %v15149_v61 = vpop.permute.xlu1 %3442 }
 0x5aa   :  { %v3121_v18 = vpop.f32.mrb[118].mxu0  ;;  %17274 = vst [vmem:[#allocation41_spill] sm:$0xff] %v15149_v61 }
 0x5ab   :  { %v3568_v12 = vmul.f32 %v15137_v28, %v3121_v18  ;;  %v3123_v26 = vpop.f32.mrb[119].mxu0 }
 0x5ad   :  { %v3610_v21 = vpack.c.bf16 %v3568_v12, %v3567_v37 }
 0x5af   :  { %11704 = vmatmul.mubr.bf16.gmra.mrb[168].mxu1 %v3610_v21 }
 0x5b0   :  { %v3126_v56 = vpop.f32.mrb[120].mxu0 }
 0x5b1   :  { %v3128_v49 = vpop.f32.mrb[121].mxu0  ;;  %v3569_v27 = vmul.f32 %v15141_v4, %v3126_v56  ;;  %v15153_v56 = vpop.permute.xlu0 %3447 }
 0x5b2   :  { %v3129_v35 = vpop.f32.mrb[122].mxu0  ;;  %17275 = vst [vmem:[#allocation42_spill] sm:$0xff] %v15153_v56 }
 0x5b3   :  { %v3570_v34 = vmul.f32 %v15143_v10, %v3129_v35  ;;  %v3131_v48 = vpop.f32.mrb[123].mxu0  ;;  %v15155_v35 = vpop.permute.xlu1 %3452 }
 0x5b4   :  { %17276 = vst [vmem:[#allocation43_spill] sm:$0xff] %v15155_v35 }
 0x5b5   :  { %v3611_v63 = vpack.c.bf16 %v3570_v34, %v3569_v27  ;;  %v15159_v0 = vpop.permute.xlu0 %3457 }
 0x5b6   :  { %17277 = vst [vmem:[#allocation44_spill] sm:$0xff] %v15159_v0 }
 0x5b7   :  { %11707 = vmatprep.mubr.bf16.mxu1 %v3611_v63 }
 0x5b8   :  { %v3134_v11 = vpop.f32.mrb[124].mxu0 }
 0x5b9   :  { %v3136_v58 = vpop.f32.mrb[125].mxu0  ;;  %v3571_v18 = vmul.f32 %v15147_v15, %v3134_v11 }
 0x5ba   :  { %v3137_v36 = vpop.f32.mrb[126].mxu0 }
 0x5bb   :  { %v3572_v37 = vmul.f32 %v15149_v61, %v3137_v36  ;;  %v3139_v12 = vpop.f32.mrb[127].mxu0 }
 0x5bd   :  { %v3612_v26 = vpack.c.bf16 %v3572_v37, %v3571_v18  ;;  %v15161_v18 = vpop.permute.xlu1 %3462 }
 0x5be   :  { %17278 = vst [vmem:[#allocation45_spill] sm:$0xff] %v15161_v18 }
 0x5bf   :  { %11708 = vmatmul.mubr.bf16.gmra.mrb[172].mxu1 %v3612_v26 }
 0x5c0   :  { %v3142_v21 = vpop.f32.mrb[128].mxu0 }
 0x5c1   :  { %v3144_v49 = vpop.f32.mrb[129].mxu0  ;;  %v3573_v34 = vmul.f32 %v15153_v56, %v3142_v21  ;;  %v15165_v56 = vpop.permute.xlu0 %3467 }
 0x5c2   :  { %v3145_v27 = vpop.f32.mrb[130].mxu0  ;;  %17279 = vst [vmem:[#allocation46_spill] sm:$0xff] %v15165_v56 }
 0x5c3   :  { %v3574_v48 = vmul.f32 %v15155_v35, %v3145_v27  ;;  %v3147_v63 = vpop.f32.mrb[131].mxu0 }
 0x5c5   :  { %v3613_v58 = vpack.c.bf16 %v3574_v48, %v3573_v34  ;;  %v15167_v34 = vpop.permute.xlu1 %3472 }
 0x5c6   :  { %17280 = vst [vmem:[#allocation47_spill] sm:$0xff] %v15167_v34 }
 0x5c7   :  { %11711 = vmatprep.mubr.bf16.mxu1 %v3613_v58 }
 0x5c8   :  { %v3150_v11 = vpop.f32.mrb[132].mxu0 }
 0x5c9   :  { %v3152_v36 = vpop.f32.mrb[133].mxu0  ;;  %v3575_v12 = vmul.f32 %v15159_v0, %v3150_v11  ;;  %v15171_v0 = vpop.permute.xlu0 %3477 }
 0x5ca   :  { %v3153_v37 = vpop.f32.mrb[134].mxu0  ;;  %17281 = vst [vmem:[#allocation48_spill] sm:$0xff] %v15171_v0 }
 0x5cb   :  { %v3576_v26 = vmul.f32 %v15161_v18, %v3153_v37  ;;  %v3155_v49 = vpop.f32.mrb[135].mxu0 }
 0x5cd   :  { %v3614_v61 = vpack.c.bf16 %v3576_v26, %v3575_v12  ;;  %v15173_v12 = vpop.permute.xlu1 %3482 }
 0x5ce   :  { %17282 = vst [vmem:[#allocation49_spill] sm:$0xff] %v15173_v12 }
 0x5cf   :  { %11712 = vmatmul.mubr.bf16.gmra.mrb[176].mxu1 %v3614_v61 }
 0x5d0   :  { %v3158_v21 = vpop.f32.mrb[136].mxu0 }
 0x5d1   :  { %v3160_v27 = vpop.f32.mrb[137].mxu0  ;;  %v3577_v63 = vmul.f32 %v15165_v56, %v3158_v21  ;;  %v15177_v21 = vpop.permute.xlu0 %3487 }
 0x5d2   :  { %v3161_v48 = vpop.f32.mrb[138].mxu0  ;;  %17283 = vst [vmem:[#allocation50_spill] sm:$0xff] %v15177_v21 }
 0x5d3   :  { %v3578_v58 = vmul.f32 %v15167_v34, %v3161_v48  ;;  %v3163_v36 = vpop.f32.mrb[139].mxu0 }
 0x5d5   :  { %v3615_v35 = vpack.c.bf16 %v3578_v58, %v3577_v63  ;;  %v15184_v63 = vpop.permute.xlu1 %3492 }
 0x5d6   :  { %17284 = vst [vmem:[#allocation51_spill] sm:$0xff] %v15184_v63 }
 0x5d7   :  { %11715 = vmatprep.mubr.bf16.mxu1 %v3615_v35  ;;  %v15182_v35 = vld [vmem:[%s17171_s10] ss:$0 sm:$0xff] }
 0x5d8   :  { %v3166_v11 = vpop.f32.mrb[140].mxu0 }
 0x5d9   :  { %v3168_v37 = vpop.f32.mrb[141].mxu0  ;;  %v3579_v26 = vmul.f32 %v15171_v0, %v3166_v11 }
 0x5da   :  { %v3169_v61 = vpop.f32.mrb[142].mxu0 }
 0x5db   :  { %v3580_v49 = vmul.f32 %v15173_v12, %v3169_v61  ;;  %v3171_v27 = vpop.f32.mrb[143].mxu0 }
 0x5dd   :  { %v3616_v18 = vpack.c.bf16 %v3580_v49, %v3579_v26 }
 0x5df   :  { %11716 = vmatmul.mubr.bf16.gmra.mrb[180].mxu1 %v3616_v18 }
 0x5e0   :  { %v3174_v48 = vpop.f32.mrb[144].mxu0 }
 0x5e1   :  { %v3176_v58 = vpop.f32.mrb[145].mxu0  ;;  %v3581_v11 = vmul.f32 %v15177_v21, %v3174_v48  ;;  %v15194_v21 = vpop.permute.xlu1 %3502 }
 0x5e2   :  { %v3177_v36 = vpop.f32.mrb[146].mxu0  ;;  %v11665_v37 = vpop.f32.mrb[128].mxu1  ;;  %17286 = vst [vmem:[#allocation53_spill] sm:$0xff] %v15194_v21 }
 0x5e3   :  { %v3582_v61 = vmul.f32 %v15184_v63, %v3177_v36  ;;  %v3179_v27 = vpop.f32.mrb[147].mxu0  ;;  %v3726_v26 = vpop.f32.mrb[129].mxu1  ;;  %v3735_v18 = vadd.f32 %v11665_v37, %v15182_v35 }
 0x5e4   :  { %v11666_v49 = vpop.f32.mrb[130].mxu1  ;;  %v3727_v12 = vadd.f32 %v15182_v35, %v3726_v26  ;;  %v15192_v27 = vpop.permute.xlu0 %3497 }
 0x5e5   :  { %v3729_v0 = vpop.f32.mrb[131].mxu1  ;;  %v3617_v34 = vpack.c.bf16 %v3582_v61, %v3581_v11  ;;  %v3738_v56 = vadd.f32 %v11666_v49, %v15182_v35  ;;  %v3983_v10 = vmax.f32 %v3735_v18, 0.0  ;;  %17285 = vst [vmem:[#allocation52_spill] sm:$0xff] %v15192_v27  ;;  %v15200_v49 = vpop.permute.xlu1 %3512 }
 0x5e6   :  { %v3981_v15 = vmax.f32 %v3727_v12, 0.0  ;;  %v3730_v58 = vadd.f32 %v15182_v35, %v3729_v0  ;;  %17288 = vst [vmem:[#allocation55_spill] sm:$0xff] %v15200_v49 }
 0x5e7   :  { %11719 = vmatprep.mubr.bf16.mxu1 %v3617_v34  ;;  %v3984_v4 = vmax.f32 %v3738_v56, 0.0 }
 0x5e8   :  { %4077 = vadd.xlane.f32.xlu0 %v3981_v15  ;;  %v3182_v48 = vpop.f32.mrb[148].mxu0  ;;  %v3982_v36 = vmax.f32 %v3730_v58, 0.0  ;;  %v15198_v56 = vpop.permute.xlu0 %3507 }
 0x5e9   :  { %v3184_v63 = vpop.f32.mrb[149].mxu0  ;;  %v4046_v37 = vpack.c.bf16 %v3984_v4, %v3983_v10  ;;  %v3583_v61 = vmul.f32 %v15192_v27, %v3182_v48  ;;  %17287 = vst [vmem:[#allocation54_spill] sm:$0xff] %v15198_v56 }
 0x5ea   :  { %4079 = vadd.xlane.f32.xlu1 %v3982_v36  ;;  %v3185_v26 = vpop.f32.mrb[150].mxu0  ;;  %v4045_v11 = vpack.c.bf16 %v3982_v36, %v3981_v15 }
 0x5eb   :  { %v3584_v12 = vmul.f32 %v15194_v21, %v3185_v26  ;;  %v3187_v0 = vpop.f32.mrb[151].mxu0 }
 0x5ec   :  { %4081 = vadd.xlane.f32.xlu0 %v3983_v10 }
 0x5ed   :  { %v3618_v34 = vpack.c.bf16 %v3584_v12, %v3583_v61 }
 0x5ef   :  { %11720 = vmatmul.mubr.bf16.gmra.mrb[184].mxu1 %v3618_v34 }
 0x5f0   :  { %4083 = vadd.xlane.f32.xlu0 %v3984_v4  ;;  %v3190_v18 = vpop.f32.mrb[152].mxu0 }
 0x5f1   :  { %v3192_v63 = vpop.f32.mrb[153].mxu0  ;;  %v3585_v8 = vmul.f32 %v15198_v56, %v3190_v18  ;;  %v15210_v56 = vpop.permute.xlu1 %3522 }
 0x5f2   :  { %v3193_v58 = vpop.f32.mrb[154].mxu0  ;;  %v11669_v28 = vpop.f32.mrb[132].mxu1  ;;  %17290 = vst [vmem:[#allocation57_spill] sm:$0xff] %v15210_v56 }
 0x5f3   :  { %v3586_v15 = vmul.f32 %v15200_v49, %v3193_v58  ;;  %v3195_v48 = vpop.f32.mrb[155].mxu0  ;;  %v3742_v36 = vpop.f32.mrb[133].mxu1  ;;  %v3751_v26 = vadd.f32 %v11669_v28, %v15182_v35 }
 0x5f4   :  { %v11670_v10 = vpop.f32.mrb[134].mxu1  ;;  %v3743_v61 = vadd.f32 %v15182_v35, %v3742_v36  ;;  %v15208_v48 = vpop.permute.xlu0 %3517 }
 0x5f5   :  { %v3745_v12 = vpop.f32.mrb[135].mxu1  ;;  %v3619_v0 = vpack.c.bf16 %v3586_v15, %v3585_v8  ;;  %v3754_v4 = vadd.f32 %v11670_v10, %v15182_v35  ;;  %v3987_v21 = vmax.f32 %v3751_v26, 0.0  ;;  %17289 = vst [vmem:[#allocation56_spill] sm:$0xff] %v15208_v48 }
 0x5f6   :  { %v3985_v34 = vmax.f32 %v3743_v61, 0.0  ;;  %v3746_v63 = vadd.f32 %v15182_v35, %v3745_v12 }
 0x5f7   :  { %11723 = vmatprep.mubr.bf16.mxu1 %v3619_v0  ;;  %v3988_v27 = vmax.f32 %v3754_v4, 0.0 }
 0x5f8   :  { %4085 = vadd.xlane.f32.xlu1 %v3985_v34  ;;  %v3198_v18 = vpop.f32.mrb[156].mxu0  ;;  %v3986_v58 = vmax.f32 %v3746_v63, 0.0 }
 0x5f9   :  { %v3200_v49 = vpop.f32.mrb[157].mxu0  ;;  %v4048_v28 = vpack.c.bf16 %v3988_v27, %v3987_v21  ;;  %v3587_v15 = vmul.f32 %v15208_v48, %v3198_v18 }
 0x5fa   :  { %4087 = vadd.xlane.f32.xlu0 %v3986_v58  ;;  %v3201_v36 = vpop.f32.mrb[158].mxu0  ;;  %v4047_v8 = vpack.c.bf16 %v3986_v58, %v3985_v34 }
 0x5fb   :  { %v3588_v10 = vmul.f32 %v15210_v56, %v3201_v36  ;;  %v3203_v61 = vpop.f32.mrb[159].mxu0 }
 0x5fc   :  { %4089 = vadd.xlane.f32.xlu1 %v3987_v21 }
 0x5fd   :  { %v3620_v26 = vpack.c.bf16 %v3588_v10, %v3587_v15 }
 0x5fe   :  { %4091 = vadd.xlane.f32.xlu0 %v3988_v27 }
 0x5ff   :  { %11724 = vmatmul.mubr.bf16.gmra.mrb[188].mxu1 %v3620_v26 }
 0x600   :  { %11743 = vmatprep.mubr.bf16.mxu1 %v4045_v11 }
 0x602   :  { %v11673_v12 = vpop.f32.mrb[136].mxu1 }
 0x603   :  { %v3758_v0 = vpop.f32.mrb[137].mxu1  ;;  %v3767_v49 = vadd.f32 %v11673_v12, %v15182_v35 }
 0x604   :  { %v11674_v4 = vpop.f32.mrb[138].mxu1  ;;  %v3759_v63 = vadd.f32 %v15182_v35, %v3758_v0 }
 0x605   :  { %v3761_v29 = vpop.f32.mrb[139].mxu1  ;;  %v3770_v34 = vadd.f32 %v11674_v4, %v15182_v35  ;;  %v3991_v36 = vmax.f32 %v3767_v49, 0.0 }
 0x606   :  { %v3989_v58 = vmax.f32 %v3759_v63, 0.0  ;;  %v3762_v18 = vadd.f32 %v15182_v35, %v3761_v29 }
 0x607   :  { %11744 = vmatmul.mubr.bf16.vlgmr.msra.gmra.mrb[192].mxu1 %v4046_v37  ;;  %v3992_v21 = vmax.f32 %v3770_v34, 0.0 }
 0x608   :  { %4093 = vadd.xlane.f32.xlu1 %v3989_v58  ;;  %11747 = vmatprep.mubr.bf16.mxu1 %v4047_v8  ;;  %v3990_v27 = vmax.f32 %v3762_v18, 0.0 }
 0x609   :  { %v4050_v11 = vpack.c.bf16 %v3992_v21, %v3991_v36 }
 0x60a   :  { %4095 = vadd.xlane.f32.xlu0 %v3990_v27  ;;  %v4049_v15 = vpack.c.bf16 %v3990_v27, %v3989_v58 }
 0x60c   :  { %4097 = vadd.xlane.f32.xlu1 %v3991_v36 }
 0x60e   :  { %4099 = vadd.xlane.f32.xlu0 %v3992_v21 }
 0x60f   :  { %11748 = vmatmul.mubr.bf16.gmra.mrb[196].mxu1 %v4048_v28 }
 0x610   :  { %11751 = vmatprep.mubr.bf16.mxu1 %v4049_v15 }
 0x612   :  { %v11677_v10 = vpop.f32.mrb[140].mxu1 }
 0x613   :  { %v3774_v61 = vpop.f32.mrb[141].mxu1  ;;  %v3783_v26 = vadd.f32 %v11677_v10, %v15182_v35 }
 0x614   :  { %v11678_v12 = vpop.f32.mrb[142].mxu1  ;;  %v3775_v29 = vadd.f32 %v15182_v35, %v3774_v61 }
 0x615   :  { %v3777_v37 = vpop.f32.mrb[143].mxu1  ;;  %v3786_v0 = vadd.f32 %v11678_v12, %v15182_v35  ;;  %v3995_v4 = vmax.f32 %v3783_v26, 0.0 }
 0x616   :  { %v3993_v49 = vmax.f32 %v3775_v29, 0.0  ;;  %v3778_v8 = vadd.f32 %v15182_v35, %v3777_v37 }
 0x617   :  { %11752 = vmatmul.mubr.bf16.gmra.mrb[200].mxu1 %v4050_v11  ;;  %v3996_v63 = vmax.f32 %v3786_v0, 0.0 }
 0x618   :  { %4101 = vadd.xlane.f32.xlu1 %v3993_v49  ;;  %v3994_v34 = vmax.f32 %v3778_v8, 0.0 }
 0x619   :  { %v4052_v28 = vpack.c.bf16 %v3996_v63, %v3995_v4 }
 0x61a   :  { %4103 = vadd.xlane.f32.xlu0 %v3994_v34  ;;  %v4051_v58 = vpack.c.bf16 %v3994_v34, %v3993_v49 }
 0x61c   :  { %4105 = vadd.xlane.f32.xlu1 %v3995_v4  ;;  %11755 = vmatprep.mubr.bf16.mxu1 %v4051_v58 }
 0x61e   :  { %4107 = vadd.xlane.f32.xlu0 %v3996_v63 }
 0x61f   :  { %11756 = vmatmul.mubr.bf16.gmra.mrb[204].mxu1 %v4052_v28 }
 0x622   :  { %v11681_v18 = vpop.f32.mrb[144].mxu1 }
 0x623   :  { %v3790_v36 = vpop.f32.mrb[145].mxu1  ;;  %v3799_v21 = vadd.f32 %v11681_v18, %v15182_v35 }
 0x624   :  { %v11682_v27 = vpop.f32.mrb[146].mxu1  ;;  %v3791_v15 = vadd.f32 %v15182_v35, %v3790_v36 }
 0x625   :  { %v3802_v11 = vadd.f32 %v11682_v27, %v15182_v35  ;;  %v3793_v10 = vpop.f32.mrb[147].mxu1  ;;  %v3999_v12 = vmax.f32 %v3799_v21, 0.0 }
 0x626   :  { %v3997_v61 = vmax.f32 %v3791_v15, 0.0  ;;  %v3794_v26 = vadd.f32 %v15182_v35, %v3793_v10 }
 0x627   :  { %v4000_v29 = vmax.f32 %v3802_v11, 0.0 }
 0x628   :  { %4109 = vadd.xlane.f32.xlu1 %v3997_v61  ;;  %v3998_v37 = vmax.f32 %v3794_v26, 0.0 }
 0x629   :  { %v4054_v0 = vpack.c.bf16 %v4000_v29, %v3999_v12 }
 0x62a   :  { %4111 = vadd.xlane.f32.xlu0 %v3998_v37  ;;  %v4053_v49 = vpack.c.bf16 %v3998_v37, %v3997_v61 }
 0x62c   :  { %4113 = vadd.xlane.f32.xlu1 %v3999_v12  ;;  %11759 = vmatprep.mubr.bf16.mxu1 %v4053_v49 }
 0x62d   :  { %11760 = vmatmul.mubr.bf16.gmra.mrb[208].mxu1 %v4054_v0 }
 0x62e   :  { %4115 = vadd.xlane.f32.xlu0 %v4000_v29 }
 0x632   :  { %v11685_v8 = vpop.f32.mrb[148].mxu1 }
 0x633   :  { %v3806_v4 = vpop.f32.mrb[149].mxu1  ;;  %v3815_v63 = vadd.f32 %v11685_v8, %v15182_v35 }
 0x634   :  { %v11686_v34 = vpop.f32.mrb[150].mxu1  ;;  %v3807_v28 = vadd.f32 %v15182_v35, %v3806_v4 }
 0x635   :  { %v3818_v58 = vadd.f32 %v11686_v34, %v15182_v35  ;;  %v3809_v18 = vpop.f32.mrb[151].mxu1  ;;  %v4003_v27 = vmax.f32 %v3815_v63, 0.0 }
 0x636   :  { %v4001_v36 = vmax.f32 %v3807_v28, 0.0  ;;  %v3810_v21 = vadd.f32 %v15182_v35, %v3809_v18 }
 0x637   :  { %v4004_v15 = vmax.f32 %v3818_v58, 0.0 }
 0x638   :  { %4117 = vadd.xlane.f32.xlu1 %v4001_v36  ;;  %v4002_v11 = vmax.f32 %v3810_v21, 0.0 }
 0x639   :  { %v4056_v10 = vpack.c.bf16 %v4004_v15, %v4003_v27 }
 0x63a   :  { %4119 = vadd.xlane.f32.xlu0 %v4002_v11  ;;  %v4055_v61 = vpack.c.bf16 %v4002_v11, %v4001_v36 }
 0x63c   :  { %4121 = vadd.xlane.f32.xlu1 %v4003_v27  ;;  %11763 = vmatprep.mubr.bf16.mxu1 %v4055_v61 }
 0x63d   :  { %11764 = vmatmul.mubr.bf16.gmra.mrb[212].mxu1 %v4056_v10 }
 0x63e   :  { %4123 = vadd.xlane.f32.xlu0 %v4004_v15 }
 0x642   :  { %v11689_v26 = vpop.f32.mrb[152].mxu1 }
 0x643   :  { %v3822_v12 = vpop.f32.mrb[153].mxu1  ;;  %v3831_v29 = vadd.f32 %v11689_v26, %v15182_v35 }
 0x644   :  { %v11690_v37 = vpop.f32.mrb[154].mxu1  ;;  %v3823_v0 = vadd.f32 %v15182_v35, %v3822_v12 }
 0x645   :  { %v3834_v49 = vadd.f32 %v11690_v37, %v15182_v35  ;;  %v3825_v8 = vpop.f32.mrb[155].mxu1  ;;  %v4007_v34 = vmax.f32 %v3831_v29, 0.0 }
 0x646   :  { %v4005_v4 = vmax.f32 %v3823_v0, 0.0  ;;  %v3826_v63 = vadd.f32 %v15182_v35, %v3825_v8 }
 0x647   :  { %v4008_v28 = vmax.f32 %v3834_v49, 0.0 }
 0x648   :  { %4125 = vadd.xlane.f32.xlu1 %v4005_v4  ;;  %v4006_v58 = vmax.f32 %v3826_v63, 0.0 }
 0x649   :  { %v4058_v18 = vpack.c.bf16 %v4008_v28, %v4007_v34 }
 0x64a   :  { %4127 = vadd.xlane.f32.xlu0 %v4006_v58  ;;  %v4057_v36 = vpack.c.bf16 %v4006_v58, %v4005_v4 }
 0x64c   :  { %4129 = vadd.xlane.f32.xlu1 %v4007_v34  ;;  %11767 = vmatprep.mubr.bf16.mxu1 %v4057_v36 }
 0x64d   :  { %11768 = vmatmul.mubr.bf16.gmra.mrb[216].mxu1 %v4058_v18 }
 0x64e   :  { %4131 = vadd.xlane.f32.xlu0 %v4008_v28 }
 0x652   :  { %v11693_v21 = vpop.f32.mrb[156].mxu1 }
 0x653   :  { %v3838_v27 = vpop.f32.mrb[157].mxu1  ;;  %v3847_v15 = vadd.f32 %v11693_v21, %v15182_v35 }
 0x654   :  { %v11694_v11 = vpop.f32.mrb[158].mxu1  ;;  %v3839_v10 = vadd.f32 %v15182_v35, %v3838_v27 }
 0x655   :  { %v3850_v61 = vadd.f32 %v11694_v11, %v15182_v35  ;;  %v3841_v26 = vpop.f32.mrb[159].mxu1  ;;  %v4011_v37 = vmax.f32 %v3847_v15, 0.0 }
 0x656   :  { %v4009_v12 = vmax.f32 %v3839_v10, 0.0  ;;  %v3842_v29 = vadd.f32 %v15182_v35, %v3841_v26 }
 0x657   :  { %v4012_v0 = vmax.f32 %v3850_v61, 0.0 }
 0x658   :  { %4133 = vadd.xlane.f32.xlu1 %v4009_v12  ;;  %v4010_v49 = vmax.f32 %v3842_v29, 0.0 }
 0x659   :  { %v4060_v8 = vpack.c.bf16 %v4012_v0, %v4011_v37 }
 0x65a   :  { %4135 = vadd.xlane.f32.xlu0 %v4010_v49  ;;  %v4059_v4 = vpack.c.bf16 %v4010_v49, %v4009_v12 }
 0x65c   :  { %4137 = vadd.xlane.f32.xlu1 %v4011_v37  ;;  %11771 = vmatprep.mubr.bf16.mxu1 %v4059_v4 }
 0x65d   :  { %11772 = vmatmul.mubr.bf16.gmra.mrb[220].mxu1 %v4060_v8 }
 0x65e   :  { %4139 = vadd.xlane.f32.xlu0 %v4012_v0 }
 0x662   :  { %v11697_v63 = vpop.f32.mrb[160].mxu1 }
 0x663   :  { %v3854_v34 = vpop.f32.mrb[161].mxu1  ;;  %v3863_v28 = vadd.f32 %v11697_v63, %v15182_v35 }
 0x664   :  { %v11698_v58 = vpop.f32.mrb[162].mxu1  ;;  %v3855_v18 = vadd.f32 %v15182_v35, %v3854_v34 }
 0x665   :  { %v3866_v36 = vadd.f32 %v11698_v58, %v15182_v35  ;;  %v3857_v21 = vpop.f32.mrb[163].mxu1  ;;  %v4015_v11 = vmax.f32 %v3863_v28, 0.0 }
 0x666   :  { %v4013_v27 = vmax.f32 %v3855_v18, 0.0  ;;  %v3858_v15 = vadd.f32 %v15182_v35, %v3857_v21 }
 0x667   :  { %v4016_v10 = vmax.f32 %v3866_v36, 0.0 }
 0x668   :  { %4141 = vadd.xlane.f32.xlu1 %v4013_v27  ;;  %v4014_v61 = vmax.f32 %v3858_v15, 0.0 }
 0x669   :  { %v4062_v26 = vpack.c.bf16 %v4016_v10, %v4015_v11 }
 0x66a   :  { %4143 = vadd.xlane.f32.xlu0 %v4014_v61  ;;  %v4061_v12 = vpack.c.bf16 %v4014_v61, %v4013_v27 }
 0x66c   :  { %4145 = vadd.xlane.f32.xlu1 %v4015_v11  ;;  %11775 = vmatprep.mubr.bf16.mxu1 %v4061_v12 }
 0x66d   :  { %11776 = vmatmul.mubr.bf16.gmra.mrb[224].mxu1 %v4062_v26 }
 0x66e   :  { %4147 = vadd.xlane.f32.xlu0 %v4016_v10 }
 0x672   :  { %v11701_v29 = vpop.f32.mrb[164].mxu1 }
 0x673   :  { %v3870_v37 = vpop.f32.mrb[165].mxu1  ;;  %v3879_v0 = vadd.f32 %v11701_v29, %v15182_v35 }
 0x674   :  { %v11702_v49 = vpop.f32.mrb[166].mxu1  ;;  %v3871_v8 = vadd.f32 %v15182_v35, %v3870_v37 }
 0x675   :  { %v3882_v4 = vadd.f32 %v11702_v49, %v15182_v35  ;;  %v3873_v63 = vpop.f32.mrb[167].mxu1  ;;  %v4019_v58 = vmax.f32 %v3879_v0, 0.0 }
 0x676   :  { %v4017_v34 = vmax.f32 %v3871_v8, 0.0  ;;  %v3874_v28 = vadd.f32 %v15182_v35, %v3873_v63 }
 0x677   :  { %v4020_v18 = vmax.f32 %v3882_v4, 0.0 }
 0x678   :  { %4149 = vadd.xlane.f32.xlu1 %v4017_v34  ;;  %v4018_v36 = vmax.f32 %v3874_v28, 0.0 }
 0x679   :  { %v4064_v21 = vpack.c.bf16 %v4020_v18, %v4019_v58 }
 0x67a   :  { %4151 = vadd.xlane.f32.xlu0 %v4018_v36  ;;  %v4063_v27 = vpack.c.bf16 %v4018_v36, %v4017_v34 }
 0x67c   :  { %4153 = vadd.xlane.f32.xlu1 %v4019_v58  ;;  %11779 = vmatprep.mubr.bf16.mxu1 %v4063_v27 }
 0x67d   :  { %11780 = vmatmul.mubr.bf16.gmra.mrb[228].mxu1 %v4064_v21 }
 0x67e   :  { %4155 = vadd.xlane.f32.xlu0 %v4020_v18 }
 0x682   :  { %v11705_v15 = vpop.f32.mrb[168].mxu1 }
 0x683   :  { %v3886_v11 = vpop.f32.mrb[169].mxu1  ;;  %v3895_v10 = vadd.f32 %v11705_v15, %v15182_v35 }
 0x684   :  { %v11706_v61 = vpop.f32.mrb[170].mxu1  ;;  %v3887_v26 = vadd.f32 %v15182_v35, %v3886_v11 }
 0x685   :  { %v3898_v12 = vadd.f32 %v11706_v61, %v15182_v35  ;;  %v3889_v29 = vpop.f32.mrb[171].mxu1  ;;  %v4023_v49 = vmax.f32 %v3895_v10, 0.0 }
 0x686   :  { %v4021_v37 = vmax.f32 %v3887_v26, 0.0  ;;  %v3890_v0 = vadd.f32 %v15182_v35, %v3889_v29 }
 0x687   :  { %v4024_v8 = vmax.f32 %v3898_v12, 0.0 }
 0x688   :  { %4157 = vadd.xlane.f32.xlu1 %v4021_v37  ;;  %v4022_v4 = vmax.f32 %v3890_v0, 0.0 }
 0x689   :  { %v4066_v63 = vpack.c.bf16 %v4024_v8, %v4023_v49 }
 0x68a   :  { %4159 = vadd.xlane.f32.xlu0 %v4022_v4  ;;  %v4065_v34 = vpack.c.bf16 %v4022_v4, %v4021_v37 }
 0x68c   :  { %4161 = vadd.xlane.f32.xlu1 %v4023_v49  ;;  %11783 = vmatprep.mubr.bf16.mxu1 %v4065_v34 }
 0x68d   :  { %11784 = vmatmul.mubr.bf16.gmra.mrb[232].mxu1 %v4066_v63 }
 0x68e   :  { %4163 = vadd.xlane.f32.xlu0 %v4024_v8 }
 0x692   :  { %v11709_v28 = vpop.f32.mrb[172].mxu1 }
 0x693   :  { %v3902_v58 = vpop.f32.mrb[173].mxu1  ;;  %v3911_v18 = vadd.f32 %v11709_v28, %v15182_v35 }
 0x694   :  { %v11710_v36 = vpop.f32.mrb[174].mxu1  ;;  %v3903_v21 = vadd.f32 %v15182_v35, %v3902_v58 }
 0x695   :  { %v3914_v27 = vadd.f32 %v11710_v36, %v15182_v35  ;;  %v3905_v15 = vpop.f32.mrb[175].mxu1  ;;  %v4027_v61 = vmax.f32 %v3911_v18, 0.0 }
 0x696   :  { %v4025_v11 = vmax.f32 %v3903_v21, 0.0  ;;  %v3906_v10 = vadd.f32 %v15182_v35, %v3905_v15 }
 0x697   :  { %v4028_v26 = vmax.f32 %v3914_v27, 0.0 }
 0x698   :  { %4165 = vadd.xlane.f32.xlu1 %v4025_v11  ;;  %v4026_v12 = vmax.f32 %v3906_v10, 0.0 }
 0x699   :  { %v4068_v29 = vpack.c.bf16 %v4028_v26, %v4027_v61 }
 0x69a   :  { %4167 = vadd.xlane.f32.xlu0 %v4026_v12  ;;  %v4067_v37 = vpack.c.bf16 %v4026_v12, %v4025_v11 }
 0x69c   :  { %4169 = vadd.xlane.f32.xlu1 %v4027_v61  ;;  %11787 = vmatprep.mubr.bf16.mxu1 %v4067_v37 }
 0x69d   :  { %11788 = vmatmul.mubr.bf16.gmra.mrb[236].mxu1 %v4068_v29 }
 0x69e   :  { %4171 = vadd.xlane.f32.xlu0 %v4028_v26 }
 0x6a2   :  { %v11713_v0 = vpop.f32.mrb[176].mxu1 }
 0x6a3   :  { %v3918_v49 = vpop.f32.mrb[177].mxu1  ;;  %v3927_v8 = vadd.f32 %v11713_v0, %v15182_v35 }
 0x6a4   :  { %v11714_v4 = vpop.f32.mrb[178].mxu1  ;;  %v3919_v63 = vadd.f32 %v15182_v35, %v3918_v49 }
 0x6a5   :  { %v3930_v34 = vadd.f32 %v11714_v4, %v15182_v35  ;;  %v3921_v28 = vpop.f32.mrb[179].mxu1  ;;  %v4031_v36 = vmax.f32 %v3927_v8, 0.0 }
 0x6a6   :  { %v4029_v58 = vmax.f32 %v3919_v63, 0.0  ;;  %v3922_v18 = vadd.f32 %v15182_v35, %v3921_v28 }
 0x6a7   :  { %v4032_v21 = vmax.f32 %v3930_v34, 0.0 }
 0x6a8   :  { %4173 = vadd.xlane.f32.xlu1 %v4029_v58  ;;  %v4030_v27 = vmax.f32 %v3922_v18, 0.0 }
 0x6a9   :  { %v4070_v15 = vpack.c.bf16 %v4032_v21, %v4031_v36 }
 0x6aa   :  { %4175 = vadd.xlane.f32.xlu0 %v4030_v27  ;;  %v4069_v11 = vpack.c.bf16 %v4030_v27, %v4029_v58 }
 0x6ac   :  { %4177 = vadd.xlane.f32.xlu1 %v4031_v36  ;;  %11791 = vmatprep.mubr.bf16.mxu1 %v4069_v11 }
 0x6ad   :  { %11792 = vmatmul.mubr.bf16.gmra.mrb[240].mxu1 %v4070_v15 }
 0x6ae   :  { %4179 = vadd.xlane.f32.xlu0 %v4032_v21 }
 0x6b2   :  { %v11717_v10 = vpop.f32.mrb[180].mxu1 }
 0x6b3   :  { %v3934_v61 = vpop.f32.mrb[181].mxu1  ;;  %v3943_v26 = vadd.f32 %v11717_v10, %v15182_v35 }
 0x6b4   :  { %v11718_v12 = vpop.f32.mrb[182].mxu1  ;;  %v3935_v29 = vadd.f32 %v15182_v35, %v3934_v61 }
 0x6b5   :  { %v3946_v37 = vadd.f32 %v11718_v12, %v15182_v35  ;;  %v3937_v0 = vpop.f32.mrb[183].mxu1  ;;  %v4035_v4 = vmax.f32 %v3943_v26, 0.0 }
 0x6b6   :  { %v4033_v49 = vmax.f32 %v3935_v29, 0.0  ;;  %v3938_v8 = vadd.f32 %v15182_v35, %v3937_v0 }
 0x6b7   :  { %v4036_v63 = vmax.f32 %v3946_v37, 0.0 }
 0x6b8   :  { %4181 = vadd.xlane.f32.xlu1 %v4033_v49  ;;  %v4034_v34 = vmax.f32 %v3938_v8, 0.0 }
 0x6b9   :  { %v4072_v28 = vpack.c.bf16 %v4036_v63, %v4035_v4 }
 0x6ba   :  { %4183 = vadd.xlane.f32.xlu0 %v4034_v34  ;;  %v4071_v58 = vpack.c.bf16 %v4034_v34, %v4033_v49 }
 0x6bc   :  { %4185 = vadd.xlane.f32.xlu1 %v4035_v4  ;;  %11795 = vmatprep.mubr.bf16.mxu1 %v4071_v58 }
 0x6bd   :  { %11796 = vmatmul.mubr.bf16.gmra.mrb[244].mxu1 %v4072_v28 }
 0x6be   :  { %4187 = vadd.xlane.f32.xlu0 %v4036_v63 }
 0x6c2   :  { %v11721_v18 = vpop.f32.mrb[184].mxu1 }
 0x6c3   :  { %v3950_v36 = vpop.f32.mrb[185].mxu1  ;;  %v3959_v21 = vadd.f32 %v11721_v18, %v15182_v35 }
 0x6c4   :  { %v11722_v27 = vpop.f32.mrb[186].mxu1  ;;  %v3951_v15 = vadd.f32 %v15182_v35, %v3950_v36 }
 0x6c5   :  { %v3962_v11 = vadd.f32 %v11722_v27, %v15182_v35  ;;  %v3953_v10 = vpop.f32.mrb[187].mxu1  ;;  %v4039_v12 = vmax.f32 %v3959_v21, 0.0 }
 0x6c6   :  { %v4037_v61 = vmax.f32 %v3951_v15, 0.0  ;;  %v3954_v26 = vadd.f32 %v15182_v35, %v3953_v10 }
 0x6c7   :  { %v4040_v29 = vmax.f32 %v3962_v11, 0.0  ;;  %v15273_v11 = vld [vmem:[%s17173_s12] ss:$0 sm:$0xff] }
 0x6c8   :  { %4189 = vadd.xlane.f32.xlu1 %v4037_v61  ;;  %v4038_v37 = vmax.f32 %v3954_v26, 0.0 }
 0x6c9   :  { %v4074_v0 = vpack.c.bf16 %v4040_v29, %v4039_v12 }
 0x6ca   :  { %4191 = vadd.xlane.f32.xlu0 %v4038_v37  ;;  %v4073_v49 = vpack.c.bf16 %v4038_v37, %v4037_v61 }
 0x6cc   :  { %4193 = vadd.xlane.f32.xlu1 %v4039_v12  ;;  %11799 = vmatprep.mubr.bf16.mxu1 %v4073_v49 }
 0x6cd   :  { %11800 = vmatmul.mubr.bf16.gmra.mrb[248].mxu1 %v4074_v0 }
 0x6ce   :  { %4195 = vadd.xlane.f32.xlu0 %v4040_v29 }
 0x6d2   :  { %v11725_v8 = vpop.f32.mrb[188].mxu1 }
 0x6d3   :  { %v3966_v4 = vpop.f32.mrb[189].mxu1  ;;  %v3975_v63 = vadd.f32 %v11725_v8, %v15182_v35 }
 0x6d4   :  { %v11726_v34 = vpop.f32.mrb[190].mxu1  ;;  %v3967_v28 = vadd.f32 %v15182_v35, %v3966_v4 }
 0x6d5   :  { %v3978_v58 = vadd.f32 %v11726_v34, %v15182_v35  ;;  %v3969_v18 = vpop.f32.mrb[191].mxu1  ;;  %v4043_v27 = vmax.f32 %v3975_v63, 0.0 }
 0x6d6   :  { %v4041_v36 = vmax.f32 %v3967_v28, 0.0  ;;  %v3970_v21 = vadd.f32 %v15182_v35, %v3969_v18 }
 0x6d7   :  { %v4044_v15 = vmax.f32 %v3978_v58, 0.0 }
 0x6d8   :  { %4197 = vadd.xlane.f32.xlu1 %v4041_v36  ;;  %v4042_v10 = vmax.f32 %v3970_v21, 0.0 }
 0x6d9   :  { %v4076_v61 = vpack.c.bf16 %v4044_v15, %v4043_v27 }
 0x6da   :  { %v11745_v26 = vpop.f32.mrb[192].mxu1  ;;  %4199 = vadd.xlane.f32.xlu0 %v4042_v10  ;;  %v4075_v12 = vpack.c.bf16 %v4042_v10, %v4041_v36 }
 0x6db   :  { %v4384_v29 = vadd.f32 %v11745_v26, %v15273_v11  ;;  %v4375_v37 = vpop.f32.mrb[193].mxu1 }
 0x6dc   :  { %v4376_v0 = vadd.f32 %v15273_v11, %v4375_v37  ;;  %v11746_v49 = vpop.f32.mrb[194].mxu1  ;;  %4201 = vadd.xlane.f32.xlu1 %v4043_v27  ;;  %11803 = vmatprep.mubr.bf16.mxu1 %v4075_v12 }
 0x6dd   :  { %v4387_v35 = vadd.f32 %v11746_v49, %v15273_v11  ;;  %v4378_v8 = vpop.f32.mrb[195].mxu1  ;;  %11804 = vmatmul.mubr.bf16.gmra.mrb[252].mxu1 %v4076_v61  ;;  %v4632_v63 = vmax.f32 %v4384_v29, 0.0 }
 0x6de   :  { %v4379_v4 = vadd.f32 %v15273_v11, %v4378_v8  ;;  %4203 = vadd.xlane.f32.xlu0 %v4044_v15  ;;  %v4630_v28 = vmax.f32 %v4376_v0, 0.0 }
 0x6df   :  { %v4633_v34 = vmax.f32 %v4387_v35, 0.0 }
 0x6e0   :  { %v4631_v58 = vmax.f32 %v4379_v4, 0.0 }
 0x6e1   :  { %v4695_v18 = vpack.c.bf16 %v4633_v34, %v4632_v63 }
 0x6e2   :  { %v4694_v36 = vpack.c.bf16 %v4631_v58, %v4630_v28  ;;  %v11749_v21 = vpop.f32.mrb[196].mxu1 }
 0x6e3   :  { %v4400_v10 = vadd.f32 %v11749_v21, %v15273_v11  ;;  %v4391_v26 = vpop.f32.mrb[197].mxu1 }
 0x6e4   :  { %v4392_v27 = vadd.f32 %v15273_v11, %v4391_v26  ;;  %v11750_v12 = vpop.f32.mrb[198].mxu1 }
 0x6e5   :  { %v4403_v37 = vadd.f32 %v11750_v12, %v15273_v11  ;;  %v4394_v49 = vpop.f32.mrb[199].mxu1  ;;  %v4636_v8 = vmax.f32 %v4400_v10, 0.0 }
 0x6e6   :  { %v4395_v61 = vadd.f32 %v15273_v11, %v4394_v49  ;;  %v4634_v29 = vmax.f32 %v4392_v27, 0.0 }
 0x6e7   :  { %v4637_v15 = vmax.f32 %v4403_v37, 0.0 }
 0x6e8   :  { %v4635_v35 = vmax.f32 %v4395_v61, 0.0 }
 0x6e9   :  { %v15283_v0 = vpack.c.bf16 %v4637_v15, %v4636_v8 }
 0x6ea   :  { %v4696_v4 = vpack.c.bf16 %v4635_v35, %v4634_v29  ;;  %v11753_v63 = vpop.f32.mrb[200].mxu1 }
 0x6eb   :  { %v4416_v34 = vadd.f32 %v11753_v63, %v15273_v11  ;;  %v4407_v28 = vpop.f32.mrb[201].mxu1 }
 0x6ec   :  { %v4408_v58 = vadd.f32 %v15273_v11, %v4407_v28  ;;  %v11754_v21 = vpop.f32.mrb[202].mxu1 }
 0x6ed   :  { %v4419_v26 = vadd.f32 %v11754_v21, %v15273_v11  ;;  %v4410_v12 = vpop.f32.mrb[203].mxu1  ;;  %v4640_v49 = vmax.f32 %v4416_v34, 0.0 }
 0x6ee   :  { %v4411_v56 = vadd.f32 %v15273_v11, %v4410_v12  ;;  %v4638_v37 = vmax.f32 %v4408_v58, 0.0 }
 0x6ef   :  { %v4641_v10 = vmax.f32 %v4419_v26, 0.0 }
 0x6f0   :  { %v4639_v27 = vmax.f32 %v4411_v56, 0.0 }
 0x6f1   :  { %v15289_v61 = vpack.c.bf16 %v4641_v10, %v4640_v49 }
 0x6f2   :  { %v15291_v8 = vpack.c.bf16 %v4639_v27, %v4638_v37  ;;  %v11757_v15 = vpop.f32.mrb[204].mxu1 }
 0x6f3   :  { %v4432_v29 = vadd.f32 %v11757_v15, %v15273_v11  ;;  %v4423_v35 = vpop.f32.mrb[205].mxu1 }
 0x6f4   :  { %v4424_v63 = vadd.f32 %v15273_v11, %v4423_v35  ;;  %v11758_v28 = vpop.f32.mrb[206].mxu1 }
 0x6f5   :  { %v4435_v21 = vadd.f32 %v11758_v28, %v15273_v11  ;;  %v4426_v48 = vpop.f32.mrb[207].mxu1  ;;  %v4644_v34 = vmax.f32 %v4432_v29, 0.0 }
 0x6f6   :  { %v4427_v12 = vadd.f32 %v15273_v11, %v4426_v48  ;;  %v4642_v58 = vmax.f32 %v4424_v63, 0.0 }
 0x6f7   :  { %v4645_v26 = vmax.f32 %v4435_v21, 0.0 }
 0x6f8   :  { %v4643_v56 = vmax.f32 %v4427_v12, 0.0 }
 0x6f9   :  { %v15297_v49 = vpack.c.bf16 %v4645_v26, %v4644_v34 }
 0x6fa   :  { %v15299_v10 = vpack.c.bf16 %v4643_v56, %v4642_v58 }
 0x700   :  { %v11761_v37 = vpop.f32.mrb[208].mxu1 }
 0x701   :  { %v4448_v27 = vadd.f32 %v11761_v37, %v15273_v11  ;;  %v4439_v15 = vpop.f32.mrb[209].mxu1 }
 0x702   :  { %v4440_v35 = vadd.f32 %v15273_v11, %v4439_v15  ;;  %v11762_v39 = vpop.f32.mrb[210].mxu1 }
 0x703   :  { %v4451_v28 = vadd.f32 %v11762_v39, %v15273_v11  ;;  %v4442_v62 = vpop.f32.mrb[211].mxu1  ;;  %v4648_v29 = vmax.f32 %v4448_v27, 0.0 }
 0x704   :  { %v4443_v48 = vadd.f32 %v15273_v11, %v4442_v62  ;;  %v4646_v63 = vmax.f32 %v4440_v35, 0.0 }
 0x705   :  { %v4649_v21 = vmax.f32 %v4451_v28, 0.0 }
 0x706   :  { %v4647_v12 = vmax.f32 %v4443_v48, 0.0 }
 0x707   :  { %v4703_v34 = vpack.c.bf16 %v4649_v21, %v4648_v29 }
 0x708   :  { %v4702_v26 = vpack.c.bf16 %v4647_v12, %v4646_v63 }
 0x70a   :  { %11087 = vmatprep.subr.bf16.mxu1 %v4702_v26 }
 0x70b   :  { %11088 = vmatpush3.bf16.msra.mxu1 %v4694_v36 }
 0x70c   :  { %11089 = vmatprep.subr.bf16.mxu1 %v4703_v34 }
 0x70f   :  { %11090 = vmatpush3.bf16.msra.mxu1 %v4695_v18 }
 0x710   :  { %v11765_v58 = vpop.f32.mrb[212].mxu1 }
 0x711   :  { %v4464_v56 = vadd.f32 %v11765_v58, %v15273_v11  ;;  %v4455_v37 = vpop.f32.mrb[213].mxu1 }
 0x712   :  { %v4456_v15 = vadd.f32 %v15273_v11, %v4455_v37  ;;  %v11766_v39 = vpop.f32.mrb[214].mxu1 }
 0x713   :  { %v4467_v43 = vadd.f32 %v11766_v39, %v15273_v11  ;;  %v4458_v62 = vpop.f32.mrb[215].mxu1  ;;  %v4652_v35 = vmax.f32 %v4464_v56, 0.0 }
 0x714   :  { %v4459_v27 = vadd.f32 %v15273_v11, %v4458_v62  ;;  %v4650_v48 = vmax.f32 %v4456_v15, 0.0 }
 0x715   :  { %v4653_v28 = vmax.f32 %v4467_v43, 0.0 }
 0x716   :  { %v4651_v29 = vmax.f32 %v4459_v27, 0.0 }
 0x717   :  { %v4705_v21 = vpack.c.bf16 %v4653_v28, %v4652_v35 }
 0x718   :  { %v4704_v36 = vpack.c.bf16 %v4651_v29, %v4650_v48 }
 0x71a   :  { %11091 = vmatprep.subr.bf16.mxu1 %v4704_v36 }
 0x71b   :  { %11092 = vmatpush3.bf16.msra.mxu1 %v4696_v4 }
 0x71c   :  { %11093 = vmatprep.subr.bf16.mxu1 %v4705_v21 }
 0x71f   :  { %11094 = vmatpush3.bf16.msra.mxu1 %v15283_v0 }
 0x720   :  { %v11769_v18 = vpop.f32.mrb[216].mxu1 }
 0x721   :  { %v4480_v63 = vadd.f32 %v11769_v18, %v15273_v11  ;;  %v4471_v12 = vpop.f32.mrb[217].mxu1 }
 0x722   :  { %v4472_v34 = vadd.f32 %v15273_v11, %v4471_v12  ;;  %v11770_v26 = vpop.f32.mrb[218].mxu1 }
 0x723   :  { %v4483_v58 = vadd.f32 %v11770_v26, %v15273_v11  ;;  %v4474_v56 = vpop.f32.mrb[219].mxu1  ;;  %v4656_v37 = vmax.f32 %v4480_v63, 0.0 }
 0x724   :  { %v4475_v43 = vadd.f32 %v15273_v11, %v4474_v56  ;;  %v4654_v39 = vmax.f32 %v4472_v34, 0.0  ;;  %v12896_v56 = vld [vmem:[#allocation8] ss:$16 sps:$4 sm:$0xff]  }
 0x725   :  { %v4657_v15 = vmax.f32 %v4483_v58, 0.0 }
 0x726   :  { %v4655_v62 = vmax.f32 %v4475_v43, 0.0  ;;  %v12901_v43 = vld [vmem:[#allocation8 + $0xc] ss:$16 sps:$4 sm:$0xff]  }
 0x727   :  { %v4707_v4 = vpack.c.bf16 %v4657_v15, %v4656_v37  ;;  %5015 = vmatprep.mubr.bf16.mxu0 %v12901_v43 }
 0x728   :  { %v4706_v27 = vpack.c.bf16 %v4655_v62, %v4654_v39 }
 0x72a   :  { %11095 = vmatprep.subr.bf16.mxu1 %v4706_v27  ;;  %v12904_v27 = vld [vmem:[#allocation8 + $0x24] ss:$16 sps:$4 sm:$0xff]  }
 0x72b   :  { %11096 = vmatpush3.bf16.msra.mxu1 %v15291_v8 }
 0x72c   :  { %11097 = vmatprep.subr.bf16.mxu1 %v4707_v4 }
 0x72f   :  { %11098 = vmatpush3.bf16.msra.mxu1 %v15289_v61  ;;  %v12898_v61 = vld [vmem:[#allocation8 + $0x4] ss:$16 sps:$4 sm:$0xff]  }
 0x730   :  { %v11773_v0 = vpop.f32.mrb[220].mxu1  ;;  %4918 = vmatprep.mubr.bf16.mxu1 %v12898_v61 }
 0x731   :  { %v4496_v35 = vadd.f32 %v11773_v0, %v15273_v11  ;;  %v4487_v28 = vpop.f32.mrb[221].mxu1 }
 0x732   :  { %v4488_v48 = vadd.f32 %v15273_v11, %v4487_v28  ;;  %v11774_v29 = vpop.f32.mrb[222].mxu1 }
 0x733   :  { %v4499_v21 = vadd.f32 %v11774_v29, %v15273_v11  ;;  %v4490_v36 = vpop.f32.mrb[223].mxu1  ;;  %v4660_v63 = vmax.f32 %v4496_v35, 0.0 }
 0x734   :  { %v4491_v18 = vadd.f32 %v15273_v11, %v4490_v36  ;;  %v4658_v34 = vmax.f32 %v4488_v48, 0.0 }
 0x735   :  { %v4661_v12 = vmax.f32 %v4499_v21, 0.0  ;;  %v12902_v21 = vld [vmem:[#allocation8 + $0x20] ss:$16 sps:$4 sm:$0xff]  }
 0x736   :  { %v4659_v26 = vmax.f32 %v4491_v18, 0.0 }
 0x737   :  { %v4709_v8 = vpack.c.bf16 %v4661_v12, %v4660_v63  ;;  %v12910_v63 = vld [vmem:[#allocation8 + $0x44] ss:$16 sps:$4 sm:$0xff]   ;;  %v12908_v12 = vld [vmem:[#allocation8 + $0x40] ss:$16 sps:$4 sm:$0xff]  }
 0x738   :  { %v4708_v58 = vpack.c.bf16 %v4659_v26, %v4658_v34 }
 0x73a   :  { %11099 = vmatprep.subr.bf16.mxu1 %v4708_v58 }
 0x73b   :  { %11100 = vmatpush3.bf16.msra.mxu1 %v15299_v10 }
 0x73c   :  { %11101 = vmatprep.subr.bf16.mxu1 %v4709_v8 }
 0x73f   :  { %11102 = vmatpush3.bf16.msra.mxu1 %v15297_v49 }
 0x740   :  { %v11777_v37 = vpop.f32.mrb[224].mxu1 }
 0x741   :  { %v4512_v15 = vadd.f32 %v11777_v37, %v15273_v11  ;;  %v4503_v39 = vpop.f32.mrb[225].mxu1 }
 0x742   :  { %v4504_v62 = vadd.f32 %v15273_v11, %v4503_v39  ;;  %v11778_v4 = vpop.f32.mrb[226].mxu1  ;;  %4919 = vmatmul.mubr.bf16.vlgmr.msra.gmra.mrb[0].mxu1 %v12896_v56  ;;  %v12916_v56 = vld [vmem:[#allocation8 + $0x64] ss:$16 sps:$4 sm:$0xff]  }
 0x743   :  { %v4515_v0 = vadd.f32 %v11778_v4, %v15273_v11  ;;  %v4506_v10 = vpop.f32.mrb[227].mxu1  ;;  %4926 = vmatprep.mubr.bf16.mxu1 %v12904_v27  ;;  %v4664_v28 = vmax.f32 %v4512_v15, 0.0 }
 0x744   :  { %v4507_v35 = vadd.f32 %v15273_v11, %v4506_v10  ;;  %v4662_v49 = vmax.f32 %v4504_v62, 0.0 }
 0x745   :  { %v4665_v48 = vmax.f32 %v4515_v0, 0.0  ;;  %v12914_v0 = vld [vmem:[#allocation8 + $0x60] ss:$16 sps:$4 sm:$0xff]  }
 0x746   :  { %v4663_v29 = vmax.f32 %v4507_v35, 0.0 }
 0x747   :  { %v15326_v36 = vpack.c.bf16 %v4665_v48, %v4664_v28  ;;  %v12922_v28 = vld [vmem:[#allocation8 + $0x84] ss:$16 sps:$4 sm:$0xff]   ;;  %v12920_v48 = vld [vmem:[#allocation8 + $0x80] ss:$16 sps:$4 sm:$0xff]  }
 0x748   :  { %v15328_v18 = vpack.c.bf16 %v4663_v29, %v4662_v49 }
 0x74a   :  { %4927 = vmatmul.mubr.bf16.gmra.mrb[4].mxu1 %v12902_v21 }
 0x74b   :  { %4934 = vmatprep.mubr.bf16.mxu1 %v12910_v63 }
 0x750   :  { %v11781_v34 = vpop.f32.mrb[228].mxu1 }
 0x751   :  { %v4528_v26 = vadd.f32 %v11781_v34, %v15273_v11  ;;  %v4519_v8 = vpop.f32.mrb[229].mxu1  ;;  %v12928_v34 = vld [vmem:[#allocation8 + $0xa4] ss:$16 sps:$4 sm:$0xff]  }
 0x752   :  { %v4520_v58 = vadd.f32 %v15273_v11, %v4519_v8  ;;  %v11782_v61 = vpop.f32.mrb[230].mxu1  ;;  %4935 = vmatmul.mubr.bf16.gmra.mrb[8].mxu1 %v12908_v12 }
 0x753   :  { %v4531_v43 = vadd.f32 %v11782_v61, %v15273_v11  ;;  %v4522_v37 = vpop.f32.mrb[231].mxu1  ;;  %4942 = vmatprep.mubr.bf16.mxu1 %v12916_v56  ;;  %v4668_v39 = vmax.f32 %v4528_v26, 0.0 }
 0x754   :  { %v4523_v15 = vadd.f32 %v15273_v11, %v4522_v37  ;;  %v4666_v4 = vmax.f32 %v4520_v58, 0.0 }
 0x755   :  { %v4669_v62 = vmax.f32 %v4531_v43, 0.0 }
 0x756   :  { %v4667_v27 = vmax.f32 %v4523_v15, 0.0  ;;  %v12926_v15 = vld [vmem:[#allocation8 + $0xa0] ss:$16 sps:$4 sm:$0xff]  }
 0x757   :  { %v15334_v10 = vpack.c.bf16 %v4669_v62, %v4668_v39 }
 0x758   :  { %v15336_v35 = vpack.c.bf16 %v4667_v27, %v4666_v4  ;;  %v12934_v4 = vld [vmem:[#allocation8 + $0xc4] ss:$16 sps:$4 sm:$0xff]   ;;  %v12932_v27 = vld [vmem:[#allocation8 + $0xc0] ss:$16 sps:$4 sm:$0xff]  }
 0x75a   :  { %4943 = vmatmul.mubr.bf16.gmra.mrb[12].mxu1 %v12914_v0 }
 0x75b   :  { %4950 = vmatprep.mubr.bf16.mxu1 %v12922_v28 }
 0x760   :  { %v11785_v49 = vpop.f32.mrb[232].mxu1 }
 0x761   :  { %v4544_v29 = vadd.f32 %v11785_v49, %v15273_v11  ;;  %v4535_v21 = vpop.f32.mrb[233].mxu1 }
 0x762   :  { %v4536_v63 = vadd.f32 %v15273_v11, %v4535_v21  ;;  %v11786_v12 = vpop.f32.mrb[234].mxu1  ;;  %4951 = vmatmul.mubr.bf16.gmra.mrb[16].mxu1 %v12920_v48 }
 0x763   :  { %v4547_v26 = vadd.f32 %v11786_v12, %v15273_v11  ;;  %v4538_v8 = vpop.f32.mrb[235].mxu1  ;;  %4958 = vmatprep.mubr.bf16.mxu1 %v12928_v34  ;;  %v4672_v61 = vmax.f32 %v4544_v29, 0.0  ;;  %v12940_v29 = vld [vmem:[#allocation8 + $0xe4] ss:$16 sps:$4 sm:$0xff]  }
 0x764   :  { %v4539_v58 = vadd.f32 %v15273_v11, %v4538_v8  ;;  %v4670_v43 = vmax.f32 %v4536_v63, 0.0 }
 0x765   :  { %v4673_v56 = vmax.f32 %v4547_v26, 0.0 }
 0x766   :  { %v4671_v37 = vmax.f32 %v4539_v58, 0.0 }
 0x767   :  { %v15342_v39 = vpack.c.bf16 %v4673_v56, %v4672_v61  ;;  %v12938_v56 = vld [vmem:[#allocation8 + $0xe0] ss:$16 sps:$4 sm:$0xff]  }
 0x768   :  { %v15344_v62 = vpack.c.bf16 %v4671_v37, %v4670_v43 }
 0x76a   :  { %4959 = vmatmul.mubr.bf16.gmra.mrb[20].mxu1 %v12926_v15  ;;  %v12944_v15 = vld [vmem:[#allocation9 + $0x80] ss:$8 sps:$4 sm:$0xff]  }
 0x76b   :  { %4966 = vmatprep.mubr.bf16.mxu1 %v12934_v4  ;;  %v12946_v4 = vld [vmem:[#allocation9 + $0x84] ss:$8 sps:$4 sm:$0xff]  }
 0x76c   :  { %5185 = vmatprep.subr.bf16.mxu1 %v12946_v4  ;;  %v12953_v4 = vld [vmem:[#allocation9 + $0xb0] ss:$8 sps:$4 sm:$0xff]  }
 0x76d   :  { %5186 = vmatpush1.bf16.msra.mxu1 %v12944_v15 }
 0x770   :  { %v11789_v0 = vpop.f32.mrb[236].mxu1 }
 0x771   :  { %v4560_v28 = vadd.f32 %v11789_v0, %v15273_v11  ;;  %v4551_v48 = vpop.f32.mrb[237].mxu1  ;;  %v17291_v0 = vmov 0  }
 0x772   :  { %v4552_v49 = vadd.f32 %v15273_v11, %v4551_v48  ;;  %v11790_v21 = vpop.f32.mrb[238].mxu1  ;;  %4967 = vmatmul.mubr.bf16.gmra.mrb[24].mxu1 %v12932_v27  ;;  %v12949_v27 = vld [vmem:[#allocation9 + $0x94] ss:$8 sps:$4 sm:$0xff]   ;;  %v12947_v48 = vld [vmem:[#allocation9 + $0x90] ss:$8 sps:$4 sm:$0xff]  }
 0x773   :  { %v4563_v63 = vadd.f32 %v11790_v21, %v15273_v11  ;;  %v4554_v12 = vpop.f32.mrb[239].mxu1  ;;  %4974 = vmatprep.mubr.bf16.mxu1 %v12940_v29  ;;  %v4676_v26 = vmax.f32 %v4560_v28, 0.0  ;;  %5187 = vmatprep.subr.bf16.mxu1 %v12949_v27  ;;  %v12952_v21 = vld [vmem:[#allocation9 + $0xa4] ss:$8 sps:$4 sm:$0xff]  }
 0x774   :  { %v4555_v34 = vadd.f32 %v15273_v11, %v4554_v12  ;;  %v4674_v58 = vmax.f32 %v4552_v49, 0.0  ;;  %5188 = vmatpush1.bf16.msra.mxu1 %v12947_v48 }
 0x775   :  { %v4677_v8 = vmax.f32 %v4563_v63, 0.0  ;;  %v12950_v63 = vld [vmem:[#allocation9 + $0xa0] ss:$8 sps:$4 sm:$0xff]   ;;  %5189 = vmatprep.subr.bf16.mxu1 %v12952_v21 }
 0x776   :  { %v4675_v61 = vmax.f32 %v4555_v34, 0.0 }
 0x777   :  { %v15350_v43 = vpack.c.bf16 %v4677_v8, %v4676_v26  ;;  %v12955_v26 = vld [vmem:[#allocation9 + $0xb4] ss:$8 sps:$4 sm:$0xff]  }
 0x778   :  { %v15352_v37 = vpack.c.bf16 %v4675_v61, %v4674_v58  ;;  %5190 = vmatpush1.bf16.msra.mxu1 %v12950_v63 }
 0x779   :  { %5191 = vmatprep.subr.bf16.mxu1 %v12955_v26 }
 0x77a   :  { %4975 = vmatmul.mubr.bf16.gmra.mrb[28].mxu1 %v12938_v56 }
 0x77b   :  { %5217 = vmatprep.mubr.bf16.mxu1 %v17291_v0 }
 0x77c   :  { %5192 = vmatpush1.bf16.msra.mxu1 %v12953_v4  ;;  %v12961_v4 = vld [vmem:[#allocation9 + $0xd4] ss:$8 sps:$4 sm:$0xff]  }
 0x780   :  { %v11793_v28 = vpop.f32.mrb[240].mxu1 }
 0x781   :  { %v4576_v49 = vadd.f32 %v11793_v28, %v15273_v11  ;;  %v4567_v29 = vpop.f32.mrb[241].mxu1  ;;  %v12958_v28 = vld [vmem:[#allocation9 + $0xc4] ss:$8 sps:$4 sm:$0xff]  }
 0x782   :  { %v4568_v12 = vadd.f32 %v15273_v11, %v4567_v29  ;;  %v11794_v34 = vpop.f32.mrb[242].mxu1  ;;  %v12956_v29 = vld [vmem:[#allocation9 + $0xc0] ss:$8 sps:$4 sm:$0xff]   ;;  %5193 = vmatprep.subr.bf16.mxu1 %v12958_v28 }
 0x783   :  { %v4579_v8 = vadd.f32 %v11794_v34, %v15273_v11  ;;  %v4570_v58 = vpop.f32.mrb[243].mxu1  ;;  %v4680_v56 = vmax.f32 %v4576_v49, 0.0  ;;  %5194 = vmatpush1.bf16.msra.mxu1 %v12956_v29 }
 0x784   :  { %v4571_v61 = vadd.f32 %v15273_v11, %v4570_v58  ;;  %v4678_v27 = vmax.f32 %v4568_v12, 0.0  ;;  %5195 = vmatprep.subr.bf16.mxu1 %v12961_v4 }
 0x785   :  { %v4681_v15 = vmax.f32 %v4579_v8, 0.0 }
 0x786   :  { %v4679_v14 = vmax.f32 %v4571_v61, 0.0 }
 0x787   :  { %v4719_v48 = vpack.c.bf16 %v4681_v15, %v4680_v56  ;;  %v12959_v15 = vld [vmem:[#allocation9 + $0xd0] ss:$8 sps:$4 sm:$0xff]  }
 0x788   :  { %v4718_v1 = vpack.c.bf16 %v4679_v14, %v4678_v27  ;;  %5196 = vmatpush1.bf16.msra.mxu1 %v12959_v15 }
 0x78a   :  { %11151 = vmatprep.subr.bf16.mxu0 %v4718_v1 }
 0x78b   :  { %11152 = vmatpush3.bf16.msra.mxu0 %v15328_v18 }
 0x78c   :  { %11153 = vmatprep.subr.bf16.mxu0 %v4719_v48 }
 0x78f   :  { %11154 = vmatpush3.bf16.msra.mxu0 %v15326_v36 }
 0x790   :  { %v11797_v21 = vpop.f32.mrb[244].mxu1 }
 0x791   :  { %v4592_v49 = vadd.f32 %v11797_v21, %v15273_v11  ;;  %v4583_v63 = vpop.f32.mrb[245].mxu1 }
 0x792   :  { %v4584_v12 = vadd.f32 %v15273_v11, %v4583_v63  ;;  %v11798_v34 = vpop.f32.mrb[246].mxu1 }
 0x793   :  { %v4595_v26 = vadd.f32 %v11798_v34, %v15273_v11  ;;  %v4586_v14 = vpop.f32.mrb[247].mxu1  ;;  %v4684_v1 = vmax.f32 %v4592_v49, 0.0 }
 0x794   :  { %v4587_v8 = vadd.f32 %v15273_v11, %v4586_v14  ;;  %v4682_v61 = vmax.f32 %v4584_v12, 0.0 }
 0x795   :  { %v4685_v58 = vmax.f32 %v4595_v26, 0.0 }
 0x796   :  { %v4683_v18 = vmax.f32 %v4587_v8, 0.0 }
 0x797   :  { %v4721_v56 = vpack.c.bf16 %v4685_v58, %v4684_v1 }
 0x798   :  { %v4720_v36 = vpack.c.bf16 %v4683_v18, %v4682_v61 }
 0x79a   :  { %11155 = vmatprep.subr.bf16.mxu0 %v4720_v36 }
 0x79b   :  { %11156 = vmatpush3.bf16.msra.mxu0 %v15336_v35 }
 0x79c   :  { %11157 = vmatprep.subr.bf16.mxu0 %v4721_v56 }
 0x79f   :  { %11158 = vmatpush3.bf16.msra.mxu0 %v15334_v10 }
 0x7a0   :  { %v11801_v27 = vpop.f32.mrb[248].mxu1 }
 0x7a1   :  { %v4608_v28 = vadd.f32 %v11801_v27, %v15273_v11  ;;  %v4599_v48 = vpop.f32.mrb[249].mxu1 }
 0x7a2   :  { %v4600_v29 = vadd.f32 %v15273_v11, %v4599_v48  ;;  %v11802_v21 = vpop.f32.mrb[250].mxu1 }
 0x7a3   :  { %v4611_v49 = vadd.f32 %v11802_v21, %v15273_v11  ;;  %v4602_v63 = vpop.f32.mrb[251].mxu1  ;;  %v4688_v34 = vmax.f32 %v4608_v28, 0.0 }
 0x7a4   :  { %v4603_v12 = vadd.f32 %v15273_v11, %v4602_v63  ;;  %v4686_v14 = vmax.f32 %v4600_v29, 0.0  ;;  %v12907_v63 = vld [vmem:[#allocation8 + $0x28] ss:$16 sps:$4 sm:$0xff]  }
 0x7a5   :  { %v4689_v26 = vmax.f32 %v4611_v49, 0.0  ;;  %v12905_v49 = vld [vmem:[#allocation8 + $0x2c] ss:$16 sps:$4 sm:$0xff]  }
 0x7a6   :  { %v4687_v8 = vmax.f32 %v4603_v12, 0.0  ;;  %v12913_v12 = vld [vmem:[#allocation8 + $0x48] ss:$16 sps:$4 sm:$0xff]  }
 0x7a7   :  { %v4723_v35 = vpack.c.bf16 %v4689_v26, %v4688_v34  ;;  %v12917_v34 = vld [vmem:[#allocation8 + $0x6c] ss:$16 sps:$4 sm:$0xff]   ;;  %v12919_v26 = vld [vmem:[#allocation8 + $0x68] ss:$16 sps:$4 sm:$0xff]  }
 0x7a8   :  { %v4722_v1 = vpack.c.bf16 %v4687_v8, %v4686_v14  ;;  %v12923_v14 = vld [vmem:[#allocation8 + $0x8c] ss:$16 sps:$4 sm:$0xff]  }
 0x7a9   :  { %v12929_v8 = vld [vmem:[#allocation8 + $0xac] ss:$16 sps:$4 sm:$0xff]  }
 0x7aa   :  { %11159 = vmatprep.subr.bf16.mxu0 %v4722_v1  ;;  %v12937_v1 = vld [vmem:[#allocation8 + $0xc8] ss:$16 sps:$4 sm:$0xff]  }
 0x7ab   :  { %11160 = vmatpush3.bf16.msra.mxu0 %v15344_v62 }
 0x7ac   :  { %11161 = vmatprep.subr.bf16.mxu0 %v4723_v35  ;;  %v12935_v35 = vld [vmem:[#allocation8 + $0xcc] ss:$16 sps:$4 sm:$0xff]  }
 0x7af   :  { %11162 = vmatpush3.bf16.msra.mxu0 %v15342_v39  ;;  %v12899_v39 = vld [vmem:[#allocation8 + $0x8] ss:$16 sps:$4 sm:$0xff]  }
 0x7b0   :  { %v11805_v10 = vpop.f32.mrb[252].mxu1 }
 0x7b1   :  { %v4624_v58 = vadd.f32 %v11805_v10, %v15273_v11  ;;  %v4615_v61 = vpop.f32.mrb[253].mxu1  ;;  %v12941_v10 = vld [vmem:[#allocation8 + $0xec] ss:$16 sps:$4 sm:$0xff]  }
 0x7b2   :  { %v4616_v18 = vadd.f32 %v15273_v11, %v4615_v61  ;;  %v11806_v56 = vpop.f32.mrb[254].mxu1  ;;  %v13034_v61 = vld [vmem:[#allocation6 + $0x4] ss:$8 sps:$4 sm:$0xff]  }
 0x7b3   :  { %v4627_v15 = vadd.f32 %v11806_v56, %v15273_v11  ;;  %v4618_v4 = vpop.f32.mrb[255].mxu1  ;;  %v4692_v27 = vmax.f32 %v4624_v58, 0.0  ;;  %v12943_v58 = vld [vmem:[#allocation8 + $0xe8] ss:$16 sps:$4 sm:$0xff]   ;;  %v12964_v56 = vld [vmem:[#allocation9 + $0xe4] ss:$8 sps:$4 sm:$0xff]  }
 0x7b4   :  { %v4619_v36 = vadd.f32 %v15273_v11, %v4618_v4  ;;  %v4690_v48 = vmax.f32 %v4616_v18, 0.0  ;;  %v12911_v11 = vld [vmem:[#allocation8 + $0x4c] ss:$16 sps:$4 sm:$0xff]   ;;  %v12962_v4 = vld [vmem:[#allocation9 + $0xe0] ss:$8 sps:$4 sm:$0xff]   ;;  %5197 = vmatprep.subr.bf16.mxu1 %v12964_v56 }
 0x7b5   :  { %v4693_v28 = vmax.f32 %v4627_v15, 0.0  ;;  %5198 = vmatpush1.bf16.msra.mxu1 %v12962_v4 }
 0x7b6   :  { %v4691_v29 = vmax.f32 %v4619_v36, 0.0 }
 0x7b7   :  { %v4725_v62 = vpack.c.bf16 %v4693_v28, %v4692_v27 }
 0x7b8   :  { %v4724_v21 = vpack.c.bf16 %v4691_v29, %v4690_v48  ;;  %v12967_v29 = vld [vmem:[#allocation9 + $0xf4] ss:$8 sps:$4 sm:$0xff]  }
 0x7b9   :  { %5199 = vmatprep.subr.bf16.mxu1 %v12967_v29 }
 0x7ba   :  { %11163 = vmatprep.subr.bf16.mxu0 %v4724_v21 }
 0x7bb   :  { %11164 = vmatpush3.bf16.msra.mxu0 %v15352_v37  ;;  %v12925_v37 = vld [vmem:[#allocation8 + $0x88] ss:$16 sps:$4 sm:$0xff]  }
 0x7bc   :  { %11165 = vmatprep.subr.bf16.mxu0 %v4725_v62  ;;  %v12965_v62 = vld [vmem:[#allocation9 + $0xf0] ss:$8 sps:$4 sm:$0xff]  }
 0x7bd   :  { %5200 = vmatpush1.bf16.msra.mxu1 %v12965_v62 }
 0x7be   :  { %5875 = vmatprep.subr.bf16.mxu1 %v17291_v0 }
 0x7bf   :  { %11166 = vmatpush3.bf16.msra.mxu0 %v15350_v43  ;;  %v12931_v43 = vld [vmem:[#allocation8 + $0xa8] ss:$16 sps:$4 sm:$0xff]  }
 0x7c0   :  { %5418 = vmatprep.subr.bf16.mxu0 %v17291_v0 }
 0x7c2   :  { %5016 = vmatmul.mubr.bf16.vlgmr.msra.gmra.mrb[160].mxu0 %v12899_v39 }
 0x7c3   :  { %5023 = vmatprep.mubr.bf16.mxu0 %v12905_v49 }
 0x7ca   :  { %5024 = vmatmul.mubr.bf16.gmra.mrb[164].mxu0 %v12907_v63 }
 0x7cb   :  { %5031 = vmatprep.mubr.bf16.mxu0 %v12911_v11 }
 0x7d2   :  { %5032 = vmatmul.mubr.bf16.gmra.mrb[168].mxu0 %v12913_v12 }
 0x7d3   :  { %5039 = vmatprep.mubr.bf16.mxu0 %v12917_v34 }
 0x7da   :  { %5040 = vmatmul.mubr.bf16.gmra.mrb[172].mxu0 %v12919_v26 }
 0x7db   :  { %5047 = vmatprep.mubr.bf16.mxu0 %v12923_v14 }
 0x7e2   :  { %5048 = vmatmul.mubr.bf16.gmra.mrb[176].mxu0 %v12925_v37 }
 0x7e3   :  { %5055 = vmatprep.mubr.bf16.mxu0 %v12929_v8 }
 0x7ea   :  { %5056 = vmatmul.mubr.bf16.gmra.mrb[180].mxu0 %v12931_v43 }
 0x7eb   :  { %5063 = vmatprep.mubr.bf16.mxu0 %v12935_v35 }
 0x7f2   :  { %5064 = vmatmul.mubr.bf16.gmra.mrb[184].mxu0 %v12937_v1 }
 0x7f3   :  { %5071 = vmatprep.mubr.bf16.mxu0 %v12941_v10 }
 0x7fa   :  { %5072 = vmatmul.mubr.bf16.gmra.mrb[188].mxu0 %v12943_v58 }
 0x7fb   :  { %5450 = vmatprep.mubr.bf16.mxu0 %v13034_v61 }
 0x815   :  { %v11103_v18 = vpop.f32.mrb[0].mxu1 }
 0x816   :  { %v11104_v15 = vpop.f32.mrb[1].mxu1 }
 0x817   :  { %v11105_v36 = vadd.f32 %v11104_v15, %v11103_v18  ;;  %v11106_v27 = vpop.f32.mrb[2].mxu1 }
 0x818   :  { %v11107_v28 = vpop.f32.mrb[3].mxu1 }
 0x819   :  { %v11108_v48 = vadd.f32 %v11107_v28, %v11106_v27 }
 0x81d   :  { %v11109_v21 = vpop.f32.mrb[4].mxu1 }
 0x81e   :  { %v11110_v39 = vpop.f32.mrb[5].mxu1 }
 0x81f   :  { %v11111_v49 = vadd.f32 %v11110_v39, %v11109_v21  ;;  %v11112_v63 = vpop.f32.mrb[6].mxu1 }
 0x820   :  { %v11113_v11 = vpop.f32.mrb[7].mxu1 }
 0x821   :  { %v11114_v12 = vadd.f32 %v11113_v11, %v11112_v63 }
 0x825   :  { %v11115_v34 = vpop.f32.mrb[8].mxu1 }
 0x826   :  { %v11116_v26 = vpop.f32.mrb[9].mxu1 }
 0x827   :  { %v11117_v14 = vadd.f32 %v11116_v26, %v11115_v34  ;;  %v11118_v37 = vpop.f32.mrb[10].mxu1 }
 0x828   :  { %v11119_v8 = vpop.f32.mrb[11].mxu1 }
 0x829   :  { %v11120_v43 = vadd.f32 %v11119_v8, %v11118_v37 }
 0x82d   :  { %v11121_v35 = vpop.f32.mrb[12].mxu1 }
 0x82e   :  { %v11122_v1 = vpop.f32.mrb[13].mxu1 }
 0x82f   :  { %v15381_v10 = vadd.f32 %v11122_v1, %v11121_v35  ;;  %v11124_v58 = vpop.f32.mrb[14].mxu1 }
 0x830   :  { %v11125_v61 = vpop.f32.mrb[15].mxu1 }
 0x831   :  { %v15383_v18 = vadd.f32 %v11125_v61, %v11124_v58 }
 0x835   :  { %v11127_v56 = vpop.f32.mrb[16].mxu1 }
 0x836   :  { %v11128_v15 = vpop.f32.mrb[17].mxu1 }
 0x837   :  { %v15385_v4 = vadd.f32 %v11128_v15, %v11127_v56  ;;  %v11130_v27 = vpop.f32.mrb[18].mxu1 }
 0x838   :  { %v11131_v28 = vpop.f32.mrb[19].mxu1 }
 0x839   :  { %v15387_v29 = vadd.f32 %v11131_v28, %v11130_v27 }
 0x83d   :  { %v11133_v62 = vpop.f32.mrb[20].mxu1 }
 0x83e   :  { %v11134_v21 = vpop.f32.mrb[21].mxu1 }
 0x83f   :  { %v15389_v39 = vadd.f32 %v11134_v21, %v11133_v62  ;;  %v11136_v63 = vpop.f32.mrb[22].mxu1 }
 0x840   :  { %v11137_v11 = vpop.f32.mrb[23].mxu1 }
 0x841   :  { %v15391_v34 = vadd.f32 %v11137_v11, %v11136_v63 }
 0x845   :  { %v11139_v26 = vpop.f32.mrb[24].mxu1 }
 0x846   :  { %v11140_v37 = vpop.f32.mrb[25].mxu1 }
 0x847   :  { %v15393_v8 = vadd.f32 %v11140_v37, %v11139_v26  ;;  %v11142_v35 = vpop.f32.mrb[26].mxu1 }
 0x848   :  { %v11143_v1 = vpop.f32.mrb[27].mxu1 }
 0x849   :  { %v15395_v58 = vadd.f32 %v11143_v1, %v11142_v35 }
 0x84d   :  { %v11145_v61 = vpop.f32.mrb[28].mxu1 }
 0x84e   :  { %v11146_v56 = vpop.f32.mrb[29].mxu1 }
 0x84f   :  { %v15397_v15 = vadd.f32 %v11146_v56, %v11145_v61  ;;  %v11148_v27 = vpop.f32.mrb[30].mxu1 }
 0x850   :  { %v11149_v28 = vpop.f32.mrb[31].mxu1 }
 0x851   :  { %v15399_v62 = vadd.f32 %v11149_v28, %v11148_v27 }
 0x895   :  { %v11167_v21 = vpop.f32.mrb[160].mxu0 }
 0x896   :  { %v11168_v59 = vpop.f32.mrb[161].mxu0 }
 0x897   :  { %v11169_v63 = vadd.f32 %v11168_v59, %v11167_v21  ;;  %v11170_v11 = vpop.f32.mrb[162].mxu0 }
 0x898   :  { %v11171_v55 = vpop.f32.mrb[163].mxu0 }
 0x899   :  { %v5018_v23 = vadd.f32 %v11169_v63, %v11105_v36  ;;  %v11172_v26 = vadd.f32 %v11171_v55, %v11170_v11 }
 0x89b   :  { %v5021_v37 = vadd.f32 %v11172_v26, %v11108_v48 }
 0x89d   :  { %v5080_v46 = vpack.c.bf16 %v5021_v37, %v5018_v23  ;;  %v11173_v13 = vpop.f32.mrb[164].mxu0 }
 0x89e   :  { %v11174_v35 = vpop.f32.mrb[165].mxu0 }
 0x89f   :  { %v11175_v1 = vadd.f32 %v11174_v35, %v11173_v13  ;;  %v11176_v19 = vpop.f32.mrb[166].mxu0  ;;  %5218 = vmatmul.mubr.bf16.vlgmr.msra.gmra.mrb[32].mxu1 %v5080_v46 }
 0x8a0   :  { %v11177_v61 = vpop.f32.mrb[167].mxu0  ;;  %5227 = vmatprep.mubr.bf16.mxu1 %v17291_v0 }
 0x8a1   :  { %v5026_v56 = vadd.f32 %v11175_v1, %v11111_v49  ;;  %v11178_v27 = vadd.f32 %v11177_v61, %v11176_v19 }
 0x8a3   :  { %v5029_v28 = vadd.f32 %v11178_v27, %v11114_v12 }
 0x8a5   :  { %v5081_v50 = vpack.c.bf16 %v5029_v28, %v5026_v56  ;;  %v11179_v7 = vpop.f32.mrb[168].mxu0 }
 0x8a6   :  { %v11180_v59 = vpop.f32.mrb[169].mxu0 }
 0x8a7   :  { %v11181_v21 = vadd.f32 %v11180_v59, %v11179_v7  ;;  %v11182_v33 = vpop.f32.mrb[170].mxu0  ;;  %5228 = vmatmul.mubr.bf16.gmra.mrb[36].mxu1 %v5081_v50 }
 0x8a8   :  { %v11183_v55 = vpop.f32.mrb[171].mxu0  ;;  %5237 = vmatprep.mubr.bf16.mxu1 %v17291_v0 }
 0x8a9   :  { %v5034_v23 = vadd.f32 %v11181_v21, %v11117_v14  ;;  %v11184_v36 = vadd.f32 %v11183_v55, %v11182_v33 }
 0x8ab   :  { %v5037_v13 = vadd.f32 %v11184_v36, %v11120_v43 }
 0x8ad   :  { %v5082_v48 = vpack.c.bf16 %v5037_v13, %v5034_v23  ;;  %v11185_v46 = vpop.f32.mrb[172].mxu0 }
 0x8ae   :  { %v11186_v63 = vpop.f32.mrb[173].mxu0 }
 0x8af   :  { %v11187_v11 = vadd.f32 %v11186_v63, %v11185_v46  ;;  %v11188_v26 = vpop.f32.mrb[174].mxu0  ;;  %5238 = vmatmul.mubr.bf16.gmra.mrb[40].mxu1 %v5082_v48 }
 0x8b0   :  { %v11189_v19 = vpop.f32.mrb[175].mxu0  ;;  %5247 = vmatprep.mubr.bf16.mxu1 %v17291_v0 }
 0x8b1   :  { %v5042_v49 = vadd.f32 %v11187_v11, %v15381_v10  ;;  %v11190_v7 = vadd.f32 %v11189_v19, %v11188_v26 }
 0x8b3   :  { %v5045_v50 = vadd.f32 %v11190_v7, %v15383_v18 }
 0x8b5   :  { %v5083_v12 = vpack.c.bf16 %v5045_v50, %v5042_v49  ;;  %v11191_v37 = vpop.f32.mrb[176].mxu0 }
 0x8b6   :  { %v11192_v35 = vpop.f32.mrb[177].mxu0 }
 0x8b7   :  { %v11193_v14 = vadd.f32 %v11192_v35, %v11191_v37  ;;  %v11194_v33 = vpop.f32.mrb[178].mxu0  ;;  %5248 = vmatmul.mubr.bf16.gmra.mrb[44].mxu1 %v5083_v12 }
 0x8b8   :  { %v11195_v43 = vpop.f32.mrb[179].mxu0  ;;  %5257 = vmatprep.mubr.bf16.mxu1 %v17291_v0 }
 0x8b9   :  { %v5050_v1 = vadd.f32 %v11193_v14, %v15385_v4  ;;  %v11196_v61 = vadd.f32 %v11195_v43, %v11194_v33 }
 0x8bb   :  { %v5053_v56 = vadd.f32 %v11196_v61, %v15387_v29 }
 0x8bd   :  { %v5084_v27 = vpack.c.bf16 %v5053_v56, %v5050_v1  ;;  %v11197_v28 = vpop.f32.mrb[180].mxu0 }
 0x8be   :  { %v11198_v10 = vpop.f32.mrb[181].mxu0 }
 0x8bf   :  { %v11199_v59 = vadd.f32 %v11198_v10, %v11197_v28  ;;  %v11200_v21 = vpop.f32.mrb[182].mxu0  ;;  %5258 = vmatmul.mubr.bf16.gmra.mrb[48].mxu1 %v5084_v27 }
 0x8c0   :  { %v11201_v18 = vpop.f32.mrb[183].mxu0  ;;  %5267 = vmatprep.mubr.bf16.mxu1 %v17291_v0 }
 0x8c1   :  { %v5058_v55 = vadd.f32 %v11199_v59, %v15389_v39  ;;  %v11202_v23 = vadd.f32 %v11201_v18, %v11200_v21 }
 0x8c3   :  { %v5061_v36 = vadd.f32 %v11202_v23, %v15391_v34 }
 0x8c5   :  { %v5085_v13 = vpack.c.bf16 %v5061_v36, %v5058_v55  ;;  %v11203_v48 = vpop.f32.mrb[184].mxu0 }
 0x8c6   :  { %v11204_v4 = vpop.f32.mrb[185].mxu0 }
 0x8c7   :  { %v11205_v46 = vadd.f32 %v11204_v4, %v11203_v48  ;;  %v11206_v63 = vpop.f32.mrb[186].mxu0  ;;  %5268 = vmatmul.mubr.bf16.gmra.mrb[52].mxu1 %v5085_v13 }
 0x8c8   :  { %v11207_v29 = vpop.f32.mrb[187].mxu0  ;;  %5277 = vmatprep.mubr.bf16.mxu1 %v17291_v0 }
 0x8c9   :  { %v5066_v11 = vadd.f32 %v11205_v46, %v15393_v8  ;;  %v11208_v26 = vadd.f32 %v11207_v29, %v11206_v63  ;;  %v13035_v8 = vld [vmem:[%s17164_s3 + $0x4] ss:$16 sps:$4 sm:$0xff]  }
 0x8cb   :  { %v5069_v19 = vadd.f32 %v11208_v26, %v15395_v58 }
 0x8cd   :  { %v5086_v49 = vpack.c.bf16 %v5069_v19, %v5066_v11  ;;  %v11209_v7 = vpop.f32.mrb[188].mxu0 }
 0x8ce   :  { %v11210_v39 = vpop.f32.mrb[189].mxu0 }
 0x8cf   :  { %v11211_v50 = vadd.f32 %v11210_v39, %v11209_v7  ;;  %v11212_v12 = vpop.f32.mrb[190].mxu0  ;;  %5278 = vmatmul.mubr.bf16.gmra.mrb[56].mxu1 %v5086_v49 }
 0x8d0   :  { %v11213_v34 = vpop.f32.mrb[191].mxu0  ;;  %5287 = vmatprep.mubr.bf16.mxu1 %v17291_v0 }
 0x8d1   :  { %v5074_v37 = vadd.f32 %v11211_v50, %v15397_v15  ;;  %v11214_v35 = vadd.f32 %v11213_v34, %v11212_v12 }
 0x8d3   :  { %v5077_v14 = vadd.f32 %v11214_v35, %v15399_v62 }
 0x8d5   :  { %v5087_v33 = vpack.c.bf16 %v5077_v14, %v5074_v37 }
 0x8d7   :  { %5288 = vmatmul.mubr.bf16.gmra.mrb[60].mxu1 %v5087_v33 }
 0x8d8   :  { %5907 = vmatprep.mubr.bf16.mxu1 %v13035_v8 }
 0x972   :  { %v5219_v58 = vpop.f32.mrb[32].mxu1 }
 0x973   :  { %v15421_v43 = vpop.f32.mrb[33].mxu1 }
 0x974   :  { %v5223_v1 = vpop.f32.mrb[34].mxu1 }
 0x975   :  { %v5298_v61 = vpack.c.bf16 %v5223_v1, %v5219_v58  ;;  %v5225_v56 = vpop.f32.mrb[35].mxu1 }
 0x976   :  { %v5314_v27 = vpack.c.bf16 %v5225_v56, %v15421_v43 }
 0x977   :  { %5419 = vmatpush1.bf16.msra.mxu0 %v5298_v61 }
 0x978   :  { %5420 = vmatprep.subr.bf16.mxu0 %v17291_v0 }
 0x97a   :  { %v5229_v15 = vpop.f32.mrb[36].mxu1 }
 0x97b   :  { %v5231_v62 = vpop.f32.mrb[37].mxu1 }
 0x97c   :  { %v5233_v28 = vpop.f32.mrb[38].mxu1 }
 0x97d   :  { %v5299_v10 = vpack.c.bf16 %v5233_v28, %v5229_v15  ;;  %v5235_v59 = vpop.f32.mrb[39].mxu1 }
 0x97e   :  { %v5315_v21 = vpack.c.bf16 %v5235_v59, %v5231_v62 }
 0x97f   :  { %5421 = vmatpush1.bf16.msra.mxu0 %v5299_v10 }
 0x980   :  { %5422 = vmatprep.subr.bf16.mxu0 %v17291_v0 }
 0x982   :  { %v5239_v18 = vpop.f32.mrb[40].mxu1 }
 0x983   :  { %v5241_v55 = vpop.f32.mrb[41].mxu1 }
 0x984   :  { %v5243_v23 = vpop.f32.mrb[42].mxu1 }
 0x985   :  { %v5300_v36 = vpack.c.bf16 %v5243_v23, %v5239_v18  ;;  %v5245_v13 = vpop.f32.mrb[43].mxu1  ;;  %v13038_v23 = vld [vmem:[#allocation6 + $0x10] ss:$8 sps:$4 sm:$0xff]  }
 0x986   :  { %v5316_v48 = vpack.c.bf16 %v5245_v13, %v5241_v55  ;;  %v13040_v13 = vld [vmem:[#allocation6 + $0x20] ss:$8 sps:$4 sm:$0xff]  }
 0x987   :  { %5423 = vmatpush1.bf16.msra.mxu0 %v5300_v36  ;;  %v13039_v36 = vld [vmem:[#allocation6 + $0x24] ss:$8 sps:$4 sm:$0xff]  }
 0x988   :  { %5424 = vmatprep.subr.bf16.mxu0 %v17291_v0 }
 0x98a   :  { %v5249_v4 = vpop.f32.mrb[44].mxu1 }
 0x98b   :  { %v5251_v46 = vpop.f32.mrb[45].mxu1 }
 0x98c   :  { %v5253_v63 = vpop.f32.mrb[46].mxu1 }
 0x98d   :  { %v5301_v29 = vpack.c.bf16 %v5253_v63, %v5249_v4  ;;  %v5255_v11 = vpop.f32.mrb[47].mxu1  ;;  %v13042_v4 = vld [vmem:[#allocation6 + $0x30] ss:$8 sps:$4 sm:$0xff]   ;;  %v13044_v63 = vld [vmem:[#allocation6 + $0x40] ss:$8 sps:$4 sm:$0xff]  }
 0x98e   :  { %v5317_v26 = vpack.c.bf16 %v5255_v11, %v5251_v46  ;;  %v13043_v46 = vld [vmem:[#allocation6 + $0x44] ss:$8 sps:$4 sm:$0xff]   ;;  %v13046_v11 = vld [vmem:[#allocation6 + $0x50] ss:$8 sps:$4 sm:$0xff]  }
 0x98f   :  { %5425 = vmatpush1.bf16.msra.mxu0 %v5301_v29  ;;  %v13045_v29 = vld [vmem:[#allocation6 + $0x54] ss:$8 sps:$4 sm:$0xff]  }
 0x990   :  { %5426 = vmatprep.subr.bf16.mxu0 %v17291_v0 }
 0x992   :  { %v5259_v19 = vpop.f32.mrb[48].mxu1 }
 0x993   :  { %v5261_v49 = vpop.f32.mrb[49].mxu1 }
 0x994   :  { %v5263_v7 = vpop.f32.mrb[50].mxu1 }
 0x995   :  { %v5302_v39 = vpack.c.bf16 %v5263_v7, %v5259_v19  ;;  %v5265_v50 = vpop.f32.mrb[51].mxu1  ;;  %v13048_v19 = vld [vmem:[#allocation6 + $0x60] ss:$8 sps:$4 sm:$0xff]   ;;  %v13050_v7 = vld [vmem:[#allocation6 + $0x70] ss:$8 sps:$4 sm:$0xff]  }
 0x996   :  { %v5318_v12 = vpack.c.bf16 %v5265_v50, %v5261_v49  ;;  %v13049_v49 = vld [vmem:[#allocation6 + $0x74] ss:$8 sps:$4 sm:$0xff]   ;;  %v13052_v50 = vld [vmem:[#allocation6 + $0x80] ss:$8 sps:$4 sm:$0xff]  }
 0x997   :  { %5427 = vmatpush1.bf16.msra.mxu0 %v5302_v39  ;;  %v13051_v39 = vld [vmem:[#allocation6 + $0x84] ss:$8 sps:$4 sm:$0xff]  }
 0x998   :  { %5428 = vmatprep.subr.bf16.mxu0 %v17291_v0 }
 0x99a   :  { %v5269_v34 = vpop.f32.mrb[52].mxu1 }
 0x99b   :  { %v5271_v37 = vpop.f32.mrb[53].mxu1 }
 0x99c   :  { %v5273_v35 = vpop.f32.mrb[54].mxu1 }
 0x99d   :  { %v5303_v14 = vpack.c.bf16 %v5273_v35, %v5269_v34  ;;  %v5275_v33 = vpop.f32.mrb[55].mxu1  ;;  %v13054_v34 = vld [vmem:[#allocation6 + $0x90] ss:$8 sps:$4 sm:$0xff]   ;;  %v13056_v35 = vld [vmem:[#allocation6 + $0xa0] ss:$8 sps:$4 sm:$0xff]  }
 0x99e   :  { %v5319_v8 = vpack.c.bf16 %v5275_v33, %v5271_v37  ;;  %v13055_v37 = vld [vmem:[#allocation6 + $0xa4] ss:$8 sps:$4 sm:$0xff]   ;;  %v13058_v33 = vld [vmem:[#allocation6 + $0xb0] ss:$8 sps:$4 sm:$0xff]  }
 0x99f   :  { %5429 = vmatpush1.bf16.msra.mxu0 %v5303_v14  ;;  %v13057_v14 = vld [vmem:[#allocation6 + $0xb4] ss:$8 sps:$4 sm:$0xff]  }
 0x9a0   :  { %5430 = vmatprep.subr.bf16.mxu0 %v17291_v0 }
 0x9a2   :  { %v5279_v58 = vpop.f32.mrb[56].mxu1 }
 0x9a3   :  { %v5281_v43 = vpop.f32.mrb[57].mxu1 }
 0x9a4   :  { %v5283_v1 = vpop.f32.mrb[58].mxu1 }
 0x9a5   :  { %v5304_v61 = vpack.c.bf16 %v5283_v1, %v5279_v58  ;;  %v5285_v56 = vpop.f32.mrb[59].mxu1  ;;  %v13060_v58 = vld [vmem:[#allocation6 + $0xc0] ss:$8 sps:$4 sm:$0xff]   ;;  %v13062_v1 = vld [vmem:[#allocation6 + $0xd0] ss:$8 sps:$4 sm:$0xff]  }
 0x9a6   :  { %v5320_v15 = vpack.c.bf16 %v5285_v56, %v5281_v43  ;;  %v13061_v43 = vld [vmem:[#allocation6 + $0xd4] ss:$8 sps:$4 sm:$0xff]   ;;  %v13064_v56 = vld [vmem:[#allocation6 + $0xe0] ss:$8 sps:$4 sm:$0xff]  }
 0x9a7   :  { %5431 = vmatpush1.bf16.msra.mxu0 %v5304_v61  ;;  %v13063_v61 = vld [vmem:[#allocation6 + $0xe4] ss:$8 sps:$4 sm:$0xff]  }
 0x9a8   :  { %5432 = vmatprep.subr.bf16.mxu0 %v17291_v0 }
 0x9aa   :  { %v5289_v62 = vpop.f32.mrb[60].mxu1 }
 0x9ab   :  { %v5291_v28 = vpop.f32.mrb[61].mxu1 }
 0x9ac   :  { %v5293_v10 = vpop.f32.mrb[62].mxu1 }
 0x9ad   :  { %v5305_v59 = vpack.c.bf16 %v5293_v10, %v5289_v62  ;;  %v5295_v18 = vpop.f32.mrb[63].mxu1  ;;  %v13066_v62 = vld [vmem:[#allocation6 + $0xf0] ss:$8 sps:$4 sm:$0xff]   ;;  %v13068_v10 = vld [vmem:[#allocation6 + $0x100] ss:$8 sps:$4 sm:$0xff]  }
 0x9ae   :  { %v5321_v55 = vpack.c.bf16 %v5295_v18, %v5291_v28  ;;  %v13067_v28 = vld [vmem:[#allocation6 + $0x104] ss:$8 sps:$4 sm:$0xff]   ;;  %v13070_v18 = vld [vmem:[#allocation6 + $0x110] ss:$8 sps:$4 sm:$0xff]  }
 0x9af   :  { %5433 = vmatpush1.bf16.msra.mxu0 %v5305_v59  ;;  %v13069_v59 = vld [vmem:[#allocation6 + $0x114] ss:$8 sps:$4 sm:$0xff]  }
 0x9b0   :  { %5434 = vmatprep.subr.bf16.mxu0 %v17291_v0 }
 0x9b3   :  { %5435 = vmatpush1.bf16.msra.mxu0 %v5314_v27  ;;  %v13036_v27 = vld [vmem:[#allocation6] ss:$8 sps:$4 sm:$0xff]  }
 0x9b4   :  { %5436 = vmatprep.subr.bf16.mxu0 %v17291_v0 }
 0x9b7   :  { %5437 = vmatpush1.bf16.msra.mxu0 %v5315_v21  ;;  %v13037_v21 = vld [vmem:[#allocation6 + $0x14] ss:$8 sps:$4 sm:$0xff]  }
 0x9b8   :  { %5438 = vmatprep.subr.bf16.mxu0 %v17291_v0 }
 0x9bb   :  { %5439 = vmatpush1.bf16.msra.mxu0 %v5316_v48  ;;  %v13041_v48 = vld [vmem:[#allocation6 + $0x34] ss:$8 sps:$4 sm:$0xff]  }
 0x9bc   :  { %5440 = vmatprep.subr.bf16.mxu0 %v17291_v0 }
 0x9bf   :  { %5441 = vmatpush1.bf16.msra.mxu0 %v5317_v26  ;;  %v13047_v26 = vld [vmem:[#allocation6 + $0x64] ss:$8 sps:$4 sm:$0xff]  }
 0x9c0   :  { %5442 = vmatprep.subr.bf16.mxu0 %v17291_v0 }
 0x9c3   :  { %5443 = vmatpush1.bf16.msra.mxu0 %v5318_v12  ;;  %v13053_v12 = vld [vmem:[#allocation6 + $0x94] ss:$8 sps:$4 sm:$0xff]  }
 0x9c4   :  { %5444 = vmatprep.subr.bf16.mxu0 %v17291_v0 }
 0x9c7   :  { %5445 = vmatpush1.bf16.msra.mxu0 %v5319_v8  ;;  %v13059_v8 = vld [vmem:[#allocation6 + $0xc4] ss:$8 sps:$4 sm:$0xff]  }
 0x9c8   :  { %5446 = vmatprep.subr.bf16.mxu0 %v17291_v0 }
 0x9cb   :  { %5447 = vmatpush1.bf16.msra.mxu0 %v5320_v15  ;;  %v13065_v15 = vld [vmem:[#allocation6 + $0xf4] ss:$8 sps:$4 sm:$0xff]  }
 0x9cc   :  { %5448 = vmatprep.subr.bf16.mxu0 %v17291_v0 }
 0x9cf   :  { %5449 = vmatpush1.bf16.msra.mxu0 %v5321_v55  ;;  %v13071_v55 = vld [vmem:[#allocation6 + $0x124] ss:$8 sps:$4 sm:$0xff]  }
 0x9d2   :  { %5451 = vmatmul.mubr.bf16.vlgmr.msra.gmra.mrb[192].mxu0 %v13036_v27  ;;  %v13072_v27 = vld [vmem:[#allocation6 + $0x120] ss:$8 sps:$4 sm:$0xff]  }
 0x9d3   :  { %5458 = vmatprep.mubr.bf16.mxu0 %v13037_v21  ;;  %v13073_v21 = vld [vmem:[#allocation6 + $0x134] ss:$8 sps:$4 sm:$0xff]  }
 0x9da   :  { %5459 = vmatmul.mubr.bf16.gmra.mrb[196].mxu0 %v13038_v23  ;;  %v13074_v23 = vld [vmem:[#allocation6 + $0x130] ss:$8 sps:$4 sm:$0xff]  }
 0x9db   :  { %5466 = vmatprep.mubr.bf16.mxu0 %v13039_v36  ;;  %v13075_v36 = vld [vmem:[#allocation6 + $0x144] ss:$8 sps:$4 sm:$0xff]  }
 0x9e2   :  { %5467 = vmatmul.mubr.bf16.gmra.mrb[200].mxu0 %v13040_v13  ;;  %v13076_v13 = vld [vmem:[#allocation6 + $0x140] ss:$8 sps:$4 sm:$0xff]  }
 0x9e3   :  { %5474 = vmatprep.mubr.bf16.mxu0 %v13041_v48  ;;  %v13077_v48 = vld [vmem:[#allocation6 + $0x154] ss:$8 sps:$4 sm:$0xff]  }
 0x9ea   :  { %5475 = vmatmul.mubr.bf16.gmra.mrb[204].mxu0 %v13042_v4  ;;  %v13078_v4 = vld [vmem:[#allocation6 + $0x150] ss:$8 sps:$4 sm:$0xff]  }
 0x9eb   :  { %5482 = vmatprep.mubr.bf16.mxu0 %v13043_v46  ;;  %v13079_v46 = vld [vmem:[#allocation6 + $0x164] ss:$8 sps:$4 sm:$0xff]  }
 0x9f2   :  { %5483 = vmatmul.mubr.bf16.gmra.mrb[208].mxu0 %v13044_v63  ;;  %v13080_v63 = vld [vmem:[#allocation6 + $0x160] ss:$8 sps:$4 sm:$0xff]  }
 0x9f3   :  { %5490 = vmatprep.mubr.bf16.mxu0 %v13045_v29  ;;  %v13081_v29 = vld [vmem:[#allocation6 + $0x174] ss:$8 sps:$4 sm:$0xff]  }
 0x9fa   :  { %5491 = vmatmul.mubr.bf16.gmra.mrb[212].mxu0 %v13046_v11  ;;  %v13082_v11 = vld [vmem:[#allocation6 + $0x170] ss:$8 sps:$4 sm:$0xff]  }
 0x9fb   :  { %5498 = vmatprep.mubr.bf16.mxu0 %v13047_v26  ;;  %v13083_v26 = vld [vmem:[#allocation6 + $0x184] ss:$8 sps:$4 sm:$0xff]  }
 0xa02   :  { %5499 = vmatmul.mubr.bf16.gmra.mrb[216].mxu0 %v13048_v19  ;;  %v13084_v19 = vld [vmem:[#allocation6 + $0x180] ss:$8 sps:$4 sm:$0xff]  }
 0xa03   :  { %5506 = vmatprep.mubr.bf16.mxu0 %v13049_v49  ;;  %v13085_v49 = vld [vmem:[#allocation6 + $0x194] ss:$8 sps:$4 sm:$0xff]  }
 0xa0a   :  { %5507 = vmatmul.mubr.bf16.gmra.mrb[220].mxu0 %v13050_v7  ;;  %v13086_v7 = vld [vmem:[#allocation6 + $0x190] ss:$8 sps:$4 sm:$0xff]  }
 0xa0b   :  { %5514 = vmatprep.mubr.bf16.mxu0 %v13051_v39  ;;  %v4078_v39 = vpop.xlane.xlu0 %4077 }
 0xa12   :  { %5515 = vmatmul.mubr.bf16.gmra.mrb[224].mxu0 %v13052_v50  ;;  %v13087_v50 = vld [vmem:[#allocation6 + $0x1a4] ss:$8 sps:$4 sm:$0xff]  }
 0xa13   :  { %5522 = vmatprep.mubr.bf16.mxu0 %v13053_v12  ;;  %v4080_v12 = vpop.xlane.xlu1 %4079 }
 0xa1a   :  { %5523 = vmatmul.mubr.bf16.gmra.mrb[228].mxu0 %v13054_v34  ;;  %v4206_v34 = vmul.f32 0.0078125, %v4078_v39 }
 0xa1b   :  { %5530 = vmatprep.mubr.bf16.mxu0 %v13055_v37  ;;  %v15442_v37 = vld [vmem:[%s17168_s7 + $0x1] ss:$0 sm:$0xff] }
 0xa22   :  { %5531 = vmatmul.mubr.bf16.gmra.mrb[232].mxu0 %v13056_v35  ;;  %v4082_v35 = vpop.xlane.xlu0 %4081 }
 0xa23   :  { %5538 = vmatprep.mubr.bf16.mxu0 %v13057_v14  ;;  %v4207_v14 = vmul.f32 0.0078125, %v4080_v12 }
 0xa2a   :  { %5539 = vmatmul.mubr.bf16.gmra.mrb[236].mxu0 %v13058_v33  ;;  %v13088_v33 = vld [vmem:[#allocation6 + $0x1a0] ss:$8 sps:$4 sm:$0xff]  }
 0xa2b   :  { %5546 = vmatprep.mubr.bf16.mxu0 %v13059_v8  ;;  %v13089_v8 = vld [vmem:[#allocation6 + $0x1b4] ss:$8 sps:$4 sm:$0xff]  }
 0xa32   :  { %5547 = vmatmul.mubr.bf16.gmra.mrb[240].mxu0 %v13060_v58  ;;  %v5354_v58 = vmul.f32 %v15442_v37, %v4206_v34 }
 0xa33   :  { %5554 = vmatprep.mubr.bf16.mxu0 %v13061_v43 }
 0xa3a   :  { %5555 = vmatmul.mubr.bf16.gmra.mrb[244].mxu0 %v13062_v1  ;;  %v15448_v1 = vld [vmem:[%s17169_s8 + $0x1] ss:$0 sm:$0xff] }
 0xa3b   :  { %5562 = vmatprep.mubr.bf16.mxu0 %v13063_v61  ;;  %v5355_v61 = vmul.f32 %v15442_v37, %v4207_v14 }
 0xa42   :  { %5563 = vmatmul.mubr.bf16.gmra.mrb[248].mxu0 %v13064_v56 }
 0xa43   :  { %5570 = vmatprep.mubr.bf16.mxu0 %v13065_v15 }
 0xa4a   :  { %5571 = vmatmul.mubr.bf16.gmra.mrb[252].mxu0 %v13066_v62  ;;  %v4084_v62 = vpop.xlane.xlu0 %4083 }
 0xa4b   :  { %5578 = vmatprep.mubr.bf16.mxu0 %v13067_v28 }
 0xa52   :  { %5579 = vmatmul.mubr.bf16.gmra.mrb[0].mxu0 %v13068_v10  ;;  %v4208_v10 = vmul.f32 0.0078125, %v4082_v35 }
 0xa53   :  { %5586 = vmatprep.mubr.bf16.mxu0 %v13069_v59 }
 0xa5a   :  { %5587 = vmatmul.mubr.bf16.gmra.mrb[4].mxu0 %v13070_v18 }
 0xa5b   :  { %5594 = vmatprep.mubr.bf16.mxu0 %v13071_v55 }
 0xa62   :  { %5595 = vmatmul.mubr.bf16.gmra.mrb[8].mxu0 %v13072_v27  ;;  %v4209_v27 = vmul.f32 0.0078125, %v4084_v62 }
 0xa63   :  { %5602 = vmatprep.mubr.bf16.mxu0 %v13073_v21 }
 0xa6a   :  { %5603 = vmatmul.mubr.bf16.gmra.mrb[12].mxu0 %v13074_v23  ;;  %v13090_v23 = vld [vmem:[#allocation6 + $0x1b0] ss:$8 sps:$4 sm:$0xff]  }
 0xa6b   :  { %5610 = vmatprep.mubr.bf16.mxu0 %v13075_v36  ;;  %v13091_v36 = vld [vmem:[#allocation6 + $0x1c4] ss:$8 sps:$4 sm:$0xff]  }
 0xa72   :  { %5611 = vmatmul.mubr.bf16.gmra.mrb[16].mxu0 %v13076_v13  ;;  %v5356_v13 = vmul.f32 %v15442_v37, %v4208_v10 }
 0xa73   :  { %5618 = vmatprep.mubr.bf16.mxu0 %v13077_v48 }
 0xa7a   :  { %5619 = vmatmul.mubr.bf16.gmra.mrb[20].mxu0 %v13078_v4 }
 0xa7b   :  { %5626 = vmatprep.mubr.bf16.mxu0 %v13079_v46  ;;  %v4086_v46 = vpop.xlane.xlu1 %4085 }
 0xa7c   :  { %v4210_v39 = vmul.f32 0.0078125, %v4086_v46  ;;  %v13095_v46 = vld [vmem:[#allocation6 + $0x1e4] ss:$8 sps:$4 sm:$0xff]  }
 0xa82   :  { %5627 = vmatmul.mubr.bf16.gmra.mrb[24].mxu0 %v13080_v63 }
 0xa83   :  { %5634 = vmatprep.mubr.bf16.mxu0 %v13081_v29  ;;  %v5357_v29 = vmul.f32 %v15442_v37, %v4209_v27 }
 0xa8a   :  { %5635 = vmatmul.mubr.bf16.gmra.mrb[28].mxu0 %v13082_v11 }
 0xa8b   :  { %5642 = vmatprep.mubr.bf16.mxu0 %v13083_v26 }
 0xa92   :  { %5643 = vmatmul.mubr.bf16.gmra.mrb[32].mxu0 %v13084_v19 }
 0xa93   :  { %5650 = vmatprep.mubr.bf16.mxu0 %v13085_v49  ;;  %v4088_v49 = vpop.xlane.xlu0 %4087 }
 0xa94   :  { %v4211_v35 = vmul.f32 0.0078125, %v4088_v49 }
 0xa96   :  { %v5359_v62 = vmul.f32 %v15442_v37, %v4211_v35 }
 0xa9a   :  { %5651 = vmatmul.mubr.bf16.gmra.mrb[36].mxu0 %v13086_v7 }
 0xa9b   :  { %5658 = vmatprep.mubr.bf16.mxu0 %v13087_v50 }
 0xaa2   :  { %5659 = vmatmul.mubr.bf16.gmra.mrb[40].mxu0 %v13088_v33  ;;  %v13092_v33 = vld [vmem:[#allocation6 + $0x1c0] ss:$8 sps:$4 sm:$0xff]  }
 0xaa3   :  { %5666 = vmatprep.mubr.bf16.mxu0 %v13089_v8  ;;  %v13093_v8 = vld [vmem:[#allocation6 + $0x1d4] ss:$8 sps:$4 sm:$0xff]  }
 0xaa5   :  { %v5452_v43 = vpop.f32.mrb[192].mxu0 }
 0xaa6   :  { %v5453_v56 = vadd.f32 %v5452_v43, %v5354_v58  ;;  %v5454_v15 = vpop.f32.mrb[193].mxu0  ;;  %v5358_v58 = vmul.f32 %v15442_v37, %v4210_v39 }
 0xaa7   :  { %v5455_v28 = vpop.f32.mrb[194].mxu0 }
 0xaa8   :  { %v5715_v59 = vadd.f32 %v15448_v1, %v5453_v56  ;;  %v5456_v18 = vadd.f32 %v5455_v28, %v5355_v61  ;;  %v5457_v55 = vpop.f32.mrb[195].mxu0  ;;  %v4090_v56 = vpop.xlane.xlu1 %4089 }
 0xaa9   :  { %v4212_v27 = vmul.f32 0.0078125, %v4090_v56  ;;  %v13097_v56 = vld [vmem:[#allocation6 + $0x1f4] ss:$8 sps:$4 sm:$0xff]  }
 0xaaa   :  { %v5716_v21 = vadd.f32 %v15448_v1, %v5456_v18  ;;  %5667 = vmatmul.mubr.bf16.gmra.mrb[44].mxu0 %v13090_v23  ;;  %v5779_v48 = vmax.f32 %v5715_v59, 0.0  ;;  %v4092_v18 = vpop.xlane.xlu0 %4091 }
 0xaab   :  { %5674 = vmatprep.mubr.bf16.mxu0 %v13091_v36 }
 0xaac   :  { %v5780_v4 = vmax.f32 %v5716_v21, 0.0 }
 0xaad   :  { %v5460_v63 = vpop.f32.mrb[196].mxu0 }
 0xaae   :  { %v5461_v11 = vadd.f32 %v5460_v63, %v5356_v13  ;;  %v5462_v26 = vpop.f32.mrb[197].mxu0  ;;  %v5843_v19 = vpack.c.bf16 %v5780_v4, %v5779_v48  ;;  %v4213_v13 = vmul.f32 0.0078125, %v4092_v18  ;;  %v13094_v4 = vld [vmem:[#allocation6 + $0x1d0] ss:$8 sps:$4 sm:$0xff]   ;;  %v5360_v63 = vmul.f32 %v15442_v37, %v4212_v27 }
 0xaaf   :  { %v5463_v7 = vpop.f32.mrb[198].mxu0  ;;  %v4094_v26 = vpop.xlane.xlu1 %4093 }
 0xab0   :  { %v5717_v50 = vadd.f32 %v15448_v1, %v5461_v11  ;;  %v5464_v12 = vadd.f32 %v5463_v7, %v5357_v29  ;;  %v5465_v34 = vpop.f32.mrb[199].mxu0  ;;  %5876 = vmatpush1.bf16.msra.mxu1 %v5843_v19  ;;  %v5361_v49 = vmul.f32 %v15442_v37, %v4213_v13  ;;  %v4214_v35 = vmul.f32 0.0078125, %v4094_v26 }
 0xab1   :  { %5877 = vmatprep.subr.bf16.mxu1 %v17291_v0 }
 0xab2   :  { %v5718_v14 = vadd.f32 %v15448_v1, %v5464_v12  ;;  %5675 = vmatmul.mubr.bf16.gmra.mrb[48].mxu0 %v13092_v33  ;;  %v5781_v43 = vmax.f32 %v5717_v50, 0.0  ;;  %v4096_v12 = vpop.xlane.xlu0 %4095 }
 0xab3   :  { %5682 = vmatprep.mubr.bf16.mxu0 %v13093_v8 }
 0xab4   :  { %v5782_v61 = vmax.f32 %v5718_v14, 0.0 }
 0xab5   :  { %v5468_v15 = vpop.f32.mrb[200].mxu0 }
 0xab6   :  { %v5469_v28 = vadd.f32 %v5468_v15, %v5358_v58  ;;  %v5470_v10 = vpop.f32.mrb[201].mxu0  ;;  %v5844_v59 = vpack.c.bf16 %v5782_v61, %v5781_v43  ;;  %v4215_v58 = vmul.f32 0.0078125, %v4096_v12  ;;  %v13096_v61 = vld [vmem:[#allocation6 + $0x1e0] ss:$8 sps:$4 sm:$0xff]   ;;  %v5362_v15 = vmul.f32 %v15442_v37, %v4214_v35 }
 0xab7   :  { %v5471_v55 = vpop.f32.mrb[202].mxu0  ;;  %v4098_v10 = vpop.xlane.xlu1 %4097 }
 0xab8   :  { %v5719_v21 = vadd.f32 %v15448_v1, %v5469_v28  ;;  %v5472_v23 = vadd.f32 %v5471_v55, %v5359_v62  ;;  %v5473_v36 = vpop.f32.mrb[203].mxu0  ;;  %5878 = vmatpush1.bf16.msra.mxu1 %v5844_v59  ;;  %v5363_v18 = vmul.f32 %v15442_v37, %v4215_v58  ;;  %v4216_v13 = vmul.f32 0.0078125, %v4098_v10 }
 0xab9   :  { %5879 = vmatprep.subr.bf16.mxu1 %v17291_v0 }
 0xaba   :  { %v5720_v48 = vadd.f32 %v15448_v1, %v5472_v23  ;;  %5683 = vmatmul.mubr.bf16.gmra.mrb[52].mxu0 %v13094_v4  ;;  %v5783_v29 = vmax.f32 %v5719_v21, 0.0  ;;  %v4100_v23 = vpop.xlane.xlu0 %4099  ;;  %v5364_v26 = vmul.f32 %v15442_v37, %v4216_v13 }
 0xabb   :  { %5690 = vmatprep.mubr.bf16.mxu0 %v13095_v46 }
 0xabc   :  { %v5784_v11 = vmax.f32 %v5720_v48, 0.0 }
 0xabd   :  { %v5476_v19 = vpop.f32.mrb[204].mxu0 }
 0xabe   :  { %v5477_v7 = vadd.f32 %v5476_v19, %v5360_v63  ;;  %v5478_v39 = vpop.f32.mrb[205].mxu0  ;;  %v5845_v50 = vpack.c.bf16 %v5784_v11, %v5783_v29  ;;  %v4217_v63 = vmul.f32 0.0078125, %v4100_v23  ;;  %v13098_v11 = vld [vmem:[#allocation6 + $0x1f0] ss:$8 sps:$4 sm:$0xff]  }
 0xabf   :  { %v5479_v34 = vpop.f32.mrb[206].mxu0 }
 0xac0   :  { %v5721_v14 = vadd.f32 %v15448_v1, %v5477_v7  ;;  %v5480_v33 = vadd.f32 %v5479_v34, %v5361_v49  ;;  %v5481_v8 = vpop.f32.mrb[207].mxu0  ;;  %5880 = vmatpush1.bf16.msra.mxu1 %v5845_v50  ;;  %v4102_v7 = vpop.xlane.xlu1 %4101  ;;  %v5365_v50 = vmul.f32 %v15442_v37, %v4217_v63 }
 0xac1   :  { %5881 = vmatprep.subr.bf16.mxu1 %v17291_v0  ;;  %v4218_v8 = vmul.f32 0.0078125, %v4102_v7 }
 0xac2   :  { %v5722_v43 = vadd.f32 %v15448_v1, %v5480_v33  ;;  %5691 = vmatmul.mubr.bf16.gmra.mrb[56].mxu0 %v13096_v61  ;;  %v5785_v62 = vmax.f32 %v5721_v14, 0.0  ;;  %v4104_v14 = vpop.xlane.xlu0 %4103 }
 0xac3   :  { %5698 = vmatprep.mubr.bf16.mxu0 %v13097_v56  ;;  %v4219_v56 = vmul.f32 0.0078125, %v4104_v14 }
 0xac4   :  { %v5786_v28 = vmax.f32 %v5722_v43, 0.0 }
 0xac5   :  { %v5484_v59 = vpop.f32.mrb[208].mxu0 }
 0xac6   :  { %v5485_v55 = vadd.f32 %v5484_v59, %v5362_v15  ;;  %v5486_v27 = vpop.f32.mrb[209].mxu0  ;;  %v5846_v21 = vpack.c.bf16 %v5786_v28, %v5785_v62  ;;  %v5366_v62 = vmul.f32 %v15442_v37, %v4218_v8  ;;  %v4106_v59 = vpop.xlane.xlu1 %4105 }
 0xac7   :  { %v5487_v36 = vpop.f32.mrb[210].mxu0 }
 0xac8   :  { %v5723_v48 = vadd.f32 %v15448_v1, %v5485_v55  ;;  %v5488_v4 = vadd.f32 %v5487_v36, %v5363_v18  ;;  %v5489_v46 = vpop.f32.mrb[211].mxu0  ;;  %5882 = vmatpush1.bf16.msra.mxu1 %v5846_v21  ;;  %v5367_v55 = vmul.f32 %v15442_v37, %v4219_v56  ;;  %v4108_v36 = vpop.xlane.xlu0 %4107 }
 0xac9   :  { %5883 = vmatprep.subr.bf16.mxu1 %v17291_v0 }
 0xaca   :  { %v5724_v29 = vadd.f32 %v15448_v1, %v5488_v4  ;;  %5699 = vmatmul.mubr.bf16.gmra.mrb[60].mxu0 %v13098_v11  ;;  %v5787_v19 = vmax.f32 %v5723_v48, 0.0  ;;  %v4220_v48 = vmul.f32 0.0078125, %v4106_v59  ;;  %v4110_v7 = vpop.xlane.xlu1 %4109 }
 0xacb   :  { %v4222_v8 = vmul.f32 0.0078125, %v4110_v7 }
 0xacc   :  { %v5788_v49 = vmax.f32 %v5724_v29, 0.0  ;;  %v4221_v29 = vmul.f32 0.0078125, %v4108_v36  ;;  %v4112_v14 = vpop.xlane.xlu0 %4111 }
 0xacd   :  { %v5492_v39 = vpop.f32.mrb[212].mxu0  ;;  %v4223_v56 = vmul.f32 0.0078125, %v4112_v14 }
 0xace   :  { %v5493_v12 = vadd.f32 %v5492_v39, %v5364_v26  ;;  %v5494_v34 = vpop.f32.mrb[213].mxu0  ;;  %v5847_v35 = vpack.c.bf16 %v5788_v49, %v5787_v19  ;;  %v5368_v26 = vmul.f32 %v15442_v37, %v4220_v48  ;;  %v4114_v59 = vpop.xlane.xlu1 %4113 }
 0xacf   :  { %v5495_v33 = vpop.f32.mrb[214].mxu0  ;;  %v4224_v48 = vmul.f32 0.0078125, %v4114_v59 }
 0xad0   :  { %v5725_v58 = vadd.f32 %v15448_v1, %v5493_v12  ;;  %v5496_v43 = vadd.f32 %v5495_v33, %v5365_v50  ;;  %v5497_v61 = vpop.f32.mrb[215].mxu0  ;;  %5884 = vmatpush1.bf16.msra.mxu1 %v5847_v35  ;;  %v5369_v50 = vmul.f32 %v15442_v37, %v4221_v29  ;;  %v4116_v36 = vpop.xlane.xlu0 %4115 }
 0xad1   :  { %5885 = vmatprep.subr.bf16.mxu1 %v17291_v0  ;;  %v4225_v29 = vmul.f32 0.0078125, %v4116_v36 }
 0xad2   :  { %v5726_v15 = vadd.f32 %v15448_v1, %v5496_v43  ;;  %v5789_v28 = vmax.f32 %v5725_v58, 0.0  ;;  %v4118_v7 = vpop.xlane.xlu1 %4117 }
 0xad4   :  { %v5790_v10 = vmax.f32 %v5726_v15, 0.0  ;;  %v4120_v14 = vpop.xlane.xlu0 %4119 }
 0xad5   :  { %v5500_v18 = vpop.f32.mrb[216].mxu0 }
 0xad6   :  { %v5501_v27 = vadd.f32 %v5500_v18, %v5366_v62  ;;  %v5502_v21 = vpop.f32.mrb[217].mxu0  ;;  %v5848_v23 = vpack.c.bf16 %v5790_v10, %v5789_v28  ;;  %v5370_v62 = vmul.f32 %v15442_v37, %v4222_v8  ;;  %v4226_v8 = vmul.f32 0.0078125, %v4118_v7  ;;  %v4122_v59 = vpop.xlane.xlu1 %4121 }
 0xad7   :  { %v5503_v13 = vpop.f32.mrb[218].mxu0 }
 0xad8   :  { %v5727_v4 = vadd.f32 %v15448_v1, %v5501_v27  ;;  %v5504_v46 = vadd.f32 %v5503_v13, %v5367_v55  ;;  %v5505_v63 = vpop.f32.mrb[219].mxu0  ;;  %5886 = vmatpush1.bf16.msra.mxu1 %v5848_v23  ;;  %v5371_v55 = vmul.f32 %v15442_v37, %v4223_v56  ;;  %v4227_v56 = vmul.f32 0.0078125, %v4120_v14  ;;  %v4124_v36 = vpop.xlane.xlu0 %4123 }
 0xad9   :  { %5887 = vmatprep.subr.bf16.mxu1 %v17291_v0 }
 0xada   :  { %v5728_v11 = vadd.f32 %v15448_v1, %v5504_v46  ;;  %v5791_v19 = vmax.f32 %v5727_v4, 0.0  ;;  %v4126_v7 = vpop.xlane.xlu1 %4125 }
 0xadc   :  { %v5792_v49 = vmax.f32 %v5728_v11, 0.0  ;;  %v4128_v14 = vpop.xlane.xlu0 %4127 }
 0xadd   :  { %v5508_v39 = vpop.f32.mrb[220].mxu0 }
 0xade   :  { %v5509_v12 = vadd.f32 %v5508_v39, %v5368_v26  ;;  %v5510_v34 = vpop.f32.mrb[221].mxu0  ;;  %v5849_v35 = vpack.c.bf16 %v5792_v49, %v5791_v19  ;;  %v5372_v26 = vmul.f32 %v15442_v37, %v4224_v48  ;;  %v4228_v48 = vmul.f32 0.0078125, %v4122_v59  ;;  %v4130_v59 = vpop.xlane.xlu1 %4129 }
 0xadf   :  { %v5511_v33 = vpop.f32.mrb[222].mxu0 }
 0xae0   :  { %v5729_v58 = vadd.f32 %v15448_v1, %v5509_v12  ;;  %v5512_v43 = vadd.f32 %v5511_v33, %v5369_v50  ;;  %v5513_v61 = vpop.f32.mrb[223].mxu0  ;;  %5888 = vmatpush1.bf16.msra.mxu1 %v5849_v35  ;;  %v5373_v50 = vmul.f32 %v15442_v37, %v4225_v29  ;;  %v4229_v29 = vmul.f32 0.0078125, %v4124_v36  ;;  %v4132_v36 = vpop.xlane.xlu0 %4131 }
 0xae1   :  { %5889 = vmatprep.subr.bf16.mxu1 %v17291_v0 }
 0xae2   :  { %v5730_v15 = vadd.f32 %v15448_v1, %v5512_v43  ;;  %v5793_v28 = vmax.f32 %v5729_v58, 0.0 }
 0xae4   :  { %v5794_v10 = vmax.f32 %v5730_v15, 0.0 }
 0xae5   :  { %v5516_v18 = vpop.f32.mrb[224].mxu0 }
 0xae6   :  { %v5517_v27 = vadd.f32 %v5516_v18, %v5370_v62  ;;  %v5518_v21 = vpop.f32.mrb[225].mxu0  ;;  %v5850_v23 = vpack.c.bf16 %v5794_v10, %v5793_v28  ;;  %v5374_v62 = vmul.f32 %v15442_v37, %v4226_v8  ;;  %v4230_v8 = vmul.f32 0.0078125, %v4126_v7  ;;  %v4134_v7 = vpop.xlane.xlu1 %4133 }
 0xae7   :  { %v5519_v13 = vpop.f32.mrb[226].mxu0 }
 0xae8   :  { %v5731_v4 = vadd.f32 %v15448_v1, %v5517_v27  ;;  %v5520_v46 = vadd.f32 %v5519_v13, %v5371_v55  ;;  %v5521_v63 = vpop.f32.mrb[227].mxu0  ;;  %5890 = vmatpush1.bf16.msra.mxu1 %v5850_v23  ;;  %v5375_v55 = vmul.f32 %v15442_v37, %v4227_v56  ;;  %v4231_v56 = vmul.f32 0.0078125, %v4128_v14  ;;  %v4136_v14 = vpop.xlane.xlu0 %4135 }
 0xae9   :  { %5891 = vmatprep.subr.bf16.mxu1 %v17291_v0 }
 0xaea   :  { %v5732_v11 = vadd.f32 %v15448_v1, %v5520_v46  ;;  %v5795_v19 = vmax.f32 %v5731_v4, 0.0 }
 0xaec   :  { %v5796_v49 = vmax.f32 %v5732_v11, 0.0 }
 0xaed   :  { %v5524_v39 = vpop.f32.mrb[228].mxu0 }
 0xaee   :  { %v5525_v12 = vadd.f32 %v5524_v39, %v5372_v26  ;;  %v5526_v34 = vpop.f32.mrb[229].mxu0  ;;  %v5851_v35 = vpack.c.bf16 %v5796_v49, %v5795_v19  ;;  %v5376_v26 = vmul.f32 %v15442_v37, %v4228_v48  ;;  %v4232_v48 = vmul.f32 0.0078125, %v4130_v59  ;;  %v4138_v59 = vpop.xlane.xlu1 %4137 }
 0xaef   :  { %v5527_v33 = vpop.f32.mrb[230].mxu0 }
 0xaf0   :  { %v5733_v58 = vadd.f32 %v15448_v1, %v5525_v12  ;;  %v5528_v43 = vadd.f32 %v5527_v33, %v5373_v50  ;;  %v5529_v61 = vpop.f32.mrb[231].mxu0  ;;  %5892 = vmatpush1.bf16.msra.mxu1 %v5851_v35  ;;  %v5377_v50 = vmul.f32 %v15442_v37, %v4229_v29  ;;  %v4233_v29 = vmul.f32 0.0078125, %v4132_v36  ;;  %v4140_v36 = vpop.xlane.xlu0 %4139 }
 0xaf1   :  { %5893 = vmatprep.subr.bf16.mxu1 %v17291_v0 }
 0xaf2   :  { %v5734_v15 = vadd.f32 %v15448_v1, %v5528_v43  ;;  %v5797_v28 = vmax.f32 %v5733_v58, 0.0 }
 0xaf4   :  { %v5798_v10 = vmax.f32 %v5734_v15, 0.0 }
 0xaf5   :  { %v5532_v18 = vpop.f32.mrb[232].mxu0 }
 0xaf6   :  { %v5533_v27 = vadd.f32 %v5532_v18, %v5374_v62  ;;  %v5534_v21 = vpop.f32.mrb[233].mxu0  ;;  %v5852_v23 = vpack.c.bf16 %v5798_v10, %v5797_v28  ;;  %v5378_v62 = vmul.f32 %v15442_v37, %v4230_v8  ;;  %v4234_v8 = vmul.f32 0.0078125, %v4134_v7  ;;  %v4142_v7 = vpop.xlane.xlu1 %4141 }
 0xaf7   :  { %v5535_v13 = vpop.f32.mrb[234].mxu0 }
 0xaf8   :  { %v5735_v4 = vadd.f32 %v15448_v1, %v5533_v27  ;;  %v5536_v46 = vadd.f32 %v5535_v13, %v5375_v55  ;;  %v5537_v63 = vpop.f32.mrb[235].mxu0  ;;  %5894 = vmatpush1.bf16.msra.mxu1 %v5852_v23  ;;  %v5379_v55 = vmul.f32 %v15442_v37, %v4231_v56  ;;  %v4235_v56 = vmul.f32 0.0078125, %v4136_v14  ;;  %v4144_v14 = vpop.xlane.xlu0 %4143 }
 0xaf9   :  { %5895 = vmatprep.subr.bf16.mxu1 %v17291_v0 }
 0xafa   :  { %v5736_v11 = vadd.f32 %v15448_v1, %v5536_v46  ;;  %v5799_v19 = vmax.f32 %v5735_v4, 0.0 }
 0xafc   :  { %v5800_v49 = vmax.f32 %v5736_v11, 0.0 }
 0xafd   :  { %v5540_v39 = vpop.f32.mrb[236].mxu0 }
 0xafe   :  { %v5541_v12 = vadd.f32 %v5540_v39, %v5376_v26  ;;  %v5542_v34 = vpop.f32.mrb[237].mxu0  ;;  %v5853_v35 = vpack.c.bf16 %v5800_v49, %v5799_v19  ;;  %v5380_v26 = vmul.f32 %v15442_v37, %v4232_v48  ;;  %v4236_v48 = vmul.f32 0.0078125, %v4138_v59  ;;  %v4146_v59 = vpop.xlane.xlu1 %4145 }
 0xaff   :  { %v5543_v33 = vpop.f32.mrb[238].mxu0 }
 0xb00   :  { %v5737_v58 = vadd.f32 %v15448_v1, %v5541_v12  ;;  %v5544_v43 = vadd.f32 %v5543_v33, %v5377_v50  ;;  %v5545_v61 = vpop.f32.mrb[239].mxu0  ;;  %5896 = vmatpush1.bf16.msra.mxu1 %v5853_v35  ;;  %v5381_v50 = vmul.f32 %v15442_v37, %v4233_v29  ;;  %v4237_v29 = vmul.f32 0.0078125, %v4140_v36  ;;  %v4148_v36 = vpop.xlane.xlu0 %4147 }
 0xb01   :  { %5897 = vmatprep.subr.bf16.mxu1 %v17291_v0 }
 0xb02   :  { %v5738_v15 = vadd.f32 %v15448_v1, %v5544_v43  ;;  %v5801_v28 = vmax.f32 %v5737_v58, 0.0 }
 0xb04   :  { %v5802_v10 = vmax.f32 %v5738_v15, 0.0 }
 0xb05   :  { %v5548_v18 = vpop.f32.mrb[240].mxu0 }
 0xb06   :  { %v5549_v27 = vadd.f32 %v5548_v18, %v5378_v62  ;;  %v5550_v21 = vpop.f32.mrb[241].mxu0  ;;  %v5854_v23 = vpack.c.bf16 %v5802_v10, %v5801_v28  ;;  %v5382_v62 = vmul.f32 %v15442_v37, %v4234_v8  ;;  %v4238_v8 = vmul.f32 0.0078125, %v4142_v7 }
 0xb07   :  { %v5551_v13 = vpop.f32.mrb[242].mxu0 }
 0xb08   :  { %v5739_v4 = vadd.f32 %v15448_v1, %v5549_v27  ;;  %v5552_v46 = vadd.f32 %v5551_v13, %v5379_v55  ;;  %v5553_v63 = vpop.f32.mrb[243].mxu0  ;;  %5898 = vmatpush1.bf16.msra.mxu1 %v5854_v23  ;;  %v5383_v55 = vmul.f32 %v15442_v37, %v4235_v56  ;;  %v4239_v56 = vmul.f32 0.0078125, %v4144_v14 }
 0xb09   :  { %5899 = vmatprep.subr.bf16.mxu1 %v17291_v0 }
 0xb0a   :  { %v5740_v11 = vadd.f32 %v15448_v1, %v5552_v46  ;;  %v5803_v19 = vmax.f32 %v5739_v4, 0.0 }
 0xb0c   :  { %v5804_v49 = vmax.f32 %v5740_v11, 0.0 }
 0xb0d   :  { %v5556_v39 = vpop.f32.mrb[244].mxu0 }
 0xb0e   :  { %v5557_v12 = vadd.f32 %v5556_v39, %v5380_v26  ;;  %v5558_v34 = vpop.f32.mrb[245].mxu0  ;;  %v5855_v35 = vpack.c.bf16 %v5804_v49, %v5803_v19  ;;  %v5384_v26 = vmul.f32 %v15442_v37, %v4236_v48  ;;  %v4240_v48 = vmul.f32 0.0078125, %v4146_v59 }
 0xb0f   :  { %v5559_v33 = vpop.f32.mrb[246].mxu0 }
 0xb10   :  { %v5741_v58 = vadd.f32 %v15448_v1, %v5557_v12  ;;  %v5560_v43 = vadd.f32 %v5559_v33, %v5381_v50  ;;  %v5561_v61 = vpop.f32.mrb[247].mxu0  ;;  %5900 = vmatpush1.bf16.msra.mxu1 %v5855_v35  ;;  %v5385_v50 = vmul.f32 %v15442_v37, %v4237_v29  ;;  %v4241_v29 = vmul.f32 0.0078125, %v4148_v36 }
 0xb11   :  { %5901 = vmatprep.subr.bf16.mxu1 %v17291_v0 }
 0xb12   :  { %v5742_v15 = vadd.f32 %v15448_v1, %v5560_v43  ;;  %v5805_v28 = vmax.f32 %v5741_v58, 0.0 }
 0xb14   :  { %v5806_v10 = vmax.f32 %v5742_v15, 0.0 }
 0xb15   :  { %v5564_v18 = vpop.f32.mrb[248].mxu0 }
 0xb16   :  { %v5565_v27 = vadd.f32 %v5564_v18, %v5382_v62  ;;  %v5566_v21 = vpop.f32.mrb[249].mxu0  ;;  %v5856_v23 = vpack.c.bf16 %v5806_v10, %v5805_v28  ;;  %v5386_v62 = vmul.f32 %v15442_v37, %v4238_v8  ;;  %v4152_v8 = vpop.xlane.xlu0 %4151 }
 0xb17   :  { %v5567_v13 = vpop.f32.mrb[250].mxu0 }
 0xb18   :  { %v5743_v4 = vadd.f32 %v15448_v1, %v5565_v27  ;;  %v5568_v46 = vadd.f32 %v5567_v13, %v5383_v55  ;;  %v5569_v63 = vpop.f32.mrb[251].mxu0  ;;  %5902 = vmatpush1.bf16.msra.mxu1 %v5856_v23  ;;  %v5387_v55 = vmul.f32 %v15442_v37, %v4239_v56 }
 0xb19   :  { %5903 = vmatprep.subr.bf16.mxu1 %v17291_v0 }
 0xb1a   :  { %v5744_v11 = vadd.f32 %v15448_v1, %v5568_v46  ;;  %v5807_v19 = vmax.f32 %v5743_v4, 0.0 }
 0xb1c   :  { %v5808_v49 = vmax.f32 %v5744_v11, 0.0 }
 0xb1d   :  { %v5572_v39 = vpop.f32.mrb[252].mxu0 }
 0xb1e   :  { %v5573_v12 = vadd.f32 %v5572_v39, %v5384_v26  ;;  %v5574_v34 = vpop.f32.mrb[253].mxu0  ;;  %v5857_v35 = vpack.c.bf16 %v5808_v49, %v5807_v19  ;;  %v13099_v26 = vld [vmem:[%s17164_s3] ss:$16 sps:$4 sm:$0xff]   ;;  %v5388_v19 = vmul.f32 %v15442_v37, %v4240_v48  ;;  %v13100_v39 = vld [vmem:[%s17164_s3 + $0x24] ss:$16 sps:$4 sm:$0xff]  }
 0xb1f   :  { %v5575_v33 = vpop.f32.mrb[254].mxu0  ;;  %v5389_v34 = vmul.f32 %v15442_v37, %v4241_v29 }
 0xb20   :  { %v5745_v58 = vadd.f32 %v15448_v1, %v5573_v12  ;;  %v5576_v43 = vadd.f32 %v5575_v33, %v5385_v50  ;;  %v5577_v61 = vpop.f32.mrb[255].mxu0  ;;  %5904 = vmatpush1.bf16.msra.mxu1 %v5857_v35  ;;  %v4150_v50 = vpop.xlane.xlu1 %4149 }
 0xb21   :  { %5905 = vmatprep.subr.bf16.mxu1 %v17291_v0 }
 0xb22   :  { %v5746_v15 = vadd.f32 %v15448_v1, %v5576_v43  ;;  %v5809_v28 = vmax.f32 %v5745_v58, 0.0  ;;  %v4242_v43 = vmul.f32 0.0078125, %v4150_v50 }
 0xb24   :  { %v5810_v10 = vmax.f32 %v5746_v15, 0.0  ;;  %v5390_v59 = vmul.f32 %v15442_v37, %v4242_v43 }
 0xb25   :  { %v5580_v18 = vpop.f32.mrb[0].mxu0 }
 0xb26   :  { %v5581_v27 = vadd.f32 %v5580_v18, %v5386_v62  ;;  %v5582_v21 = vpop.f32.mrb[1].mxu0  ;;  %v5858_v23 = vpack.c.bf16 %v5810_v10, %v5809_v28  ;;  %v4243_v62 = vmul.f32 0.0078125, %v4152_v8  ;;  %v13101_v10 = vld [vmem:[%s17164_s3 + $0x20] ss:$16 sps:$4 sm:$0xff]  }
 0xb27   :  { %v5583_v13 = vpop.f32.mrb[2].mxu0  ;;  %v4154_v21 = vpop.xlane.xlu1 %4153 }
 0xb28   :  { %v5747_v4 = vadd.f32 %v15448_v1, %v5581_v27  ;;  %v5584_v46 = vadd.f32 %v5583_v13, %v5387_v55  ;;  %5906 = vmatpush1.bf16.msra.mxu1 %v5858_v23  ;;  %v5585_v63 = vpop.f32.mrb[3].mxu0  ;;  %v13102_v27 = vld [vmem:[%s17164_s3 + $0x44] ss:$16 sps:$4 sm:$0xff]   ;;  %v5391_v36 = vmul.f32 %v15442_v37, %v4243_v62  ;;  %v4244_v29 = vmul.f32 0.0078125, %v4154_v21 }
 0xb29   :  { %6164 = vmatprep.subr.bf16.mxu1 %v17291_v0 }
 0xb2a   :  { %v5748_v11 = vadd.f32 %v15448_v1, %v5584_v46  ;;  %v5811_v49 = vmax.f32 %v5747_v4, 0.0  ;;  %v4156_v46 = vpop.xlane.xlu0 %4155  ;;  %v5392_v50 = vmul.f32 %v15442_v37, %v4244_v29 }
 0xb2b   :  { %5908 = vmatmul.mubr.bf16.vlgmr.msra.gmra.mrb[64].mxu1 %v13099_v26 }
 0xb2c   :  { %v5812_v7 = vmax.f32 %v5748_v11, 0.0  ;;  %5915 = vmatprep.mubr.bf16.mxu1 %v13100_v39  ;;  %v13103_v39 = vld [vmem:[%s17164_s3 + $0x40] ss:$16 sps:$4 sm:$0xff]  }
 0xb2d   :  { %v5588_v12 = vpop.f32.mrb[4].mxu0 }
 0xb2e   :  { %v5589_v35 = vadd.f32 %v5588_v12, %v5388_v19  ;;  %v5590_v14 = vpop.f32.mrb[5].mxu0  ;;  %v5859_v33 = vpack.c.bf16 %v5812_v7, %v5811_v49  ;;  %v4245_v49 = vmul.f32 0.0078125, %v4156_v46 }
 0xb2f   :  { %v5591_v58 = vpop.f32.mrb[6].mxu0  ;;  %v4158_v14 = vpop.xlane.xlu1 %4157 }
 0xb30   :  { %v5749_v61 = vadd.f32 %v15448_v1, %v5589_v35  ;;  %v5592_v56 = vadd.f32 %v5591_v58, %v5389_v34  ;;  %6165 = vmatpush1.bf16.msra.mxu1 %v5859_v33  ;;  %v5593_v15 = vpop.f32.mrb[7].mxu0  ;;  %v13104_v35 = vld [vmem:[%s17164_s3 + $0x64] ss:$16 sps:$4 sm:$0xff]   ;;  %v5393_v8 = vmul.f32 %v15442_v37, %v4245_v49  ;;  %v4246_v62 = vmul.f32 0.0078125, %v4158_v14 }
 0xb31   :  { %6166 = vmatprep.subr.bf16.mxu1 %v17291_v0 }
 0xb32   :  { %v5750_v28 = vadd.f32 %v15448_v1, %v5592_v56  ;;  %v5813_v18 = vmax.f32 %v5749_v61, 0.0  ;;  %v4160_v56 = vpop.xlane.xlu0 %4159  ;;  %v5394_v21 = vmul.f32 %v15442_v37, %v4246_v62 }
 0xb33   :  { %5916 = vmatmul.mubr.bf16.gmra.mrb[68].mxu1 %v13101_v10 }
 0xb34   :  { %v5814_v55 = vmax.f32 %v5750_v28, 0.0  ;;  %5923 = vmatprep.mubr.bf16.mxu1 %v13102_v27  ;;  %v13105_v27 = vld [vmem:[%s17164_s3 + $0x60] ss:$16 sps:$4 sm:$0xff]  }
 0xb35   :  { %v5596_v23 = vpop.f32.mrb[8].mxu0 }
 0xb36   :  { %v5597_v13 = vadd.f32 %v5596_v23, %v5390_v59  ;;  %v5598_v48 = vpop.f32.mrb[9].mxu0  ;;  %v5860_v4 = vpack.c.bf16 %v5814_v55, %v5813_v18  ;;  %v4247_v18 = vmul.f32 0.0078125, %v4160_v56 }
 0xb37   :  { %v5599_v63 = vpop.f32.mrb[10].mxu0  ;;  %v4162_v48 = vpop.xlane.xlu1 %4161 }
 0xb38   :  { %v5751_v11 = vadd.f32 %v15448_v1, %v5597_v13  ;;  %v5600_v26 = vadd.f32 %v5599_v63, %v5391_v36  ;;  %6167 = vmatpush1.bf16.msra.mxu1 %v5860_v4  ;;  %v5601_v19 = vpop.f32.mrb[11].mxu0  ;;  %v13106_v13 = vld [vmem:[%s17164_s3 + $0x84] ss:$16 sps:$4 sm:$0xff]   ;;  %v5395_v46 = vmul.f32 %v15442_v37, %v4247_v18  ;;  %v4248_v49 = vmul.f32 0.0078125, %v4162_v48 }
 0xb39   :  { %6168 = vmatprep.subr.bf16.mxu1 %v17291_v0 }
 0xb3a   :  { %v5752_v7 = vadd.f32 %v15448_v1, %v5600_v26  ;;  %v5815_v12 = vmax.f32 %v5751_v11, 0.0  ;;  %v4164_v26 = vpop.xlane.xlu0 %4163  ;;  %v5396_v14 = vmul.f32 %v15442_v37, %v4248_v49 }
 0xb3b   :  { %5924 = vmatmul.mubr.bf16.gmra.mrb[72].mxu1 %v13103_v39 }
 0xb3c   :  { %v5816_v34 = vmax.f32 %v5752_v7, 0.0  ;;  %5931 = vmatprep.mubr.bf16.mxu1 %v13104_v35  ;;  %v13107_v35 = vld [vmem:[%s17164_s3 + $0x80] ss:$16 sps:$4 sm:$0xff]  }
 0xb3d   :  { %v5604_v33 = vpop.f32.mrb[12].mxu0 }
 0xb3e   :  { %v5605_v58 = vadd.f32 %v5604_v33, %v5392_v50  ;;  %v5606_v43 = vpop.f32.mrb[13].mxu0  ;;  %v5861_v61 = vpack.c.bf16 %v5816_v34, %v5815_v12  ;;  %v4249_v12 = vmul.f32 0.0078125, %v4164_v26 }
 0xb3f   :  { %v5607_v15 = vpop.f32.mrb[14].mxu0  ;;  %v4166_v43 = vpop.xlane.xlu1 %4165 }
 0xb40   :  { %v5753_v28 = vadd.f32 %v15448_v1, %v5605_v58  ;;  %v5608_v10 = vadd.f32 %v5607_v15, %v5393_v8  ;;  %6169 = vmatpush1.bf16.msra.mxu1 %v5861_v61  ;;  %v5609_v59 = vpop.f32.mrb[15].mxu0  ;;  %v13108_v58 = vld [vmem:[%s17164_s3 + $0xa4] ss:$16 sps:$4 sm:$0xff]   ;;  %v5397_v56 = vmul.f32 %v15442_v37, %v4249_v12  ;;  %v4250_v18 = vmul.f32 0.0078125, %v4166_v43 }
 0xb41   :  { %6170 = vmatprep.subr.bf16.mxu1 %v17291_v0 }
 0xb42   :  { %v5754_v55 = vadd.f32 %v15448_v1, %v5608_v10  ;;  %v5817_v23 = vmax.f32 %v5753_v28, 0.0  ;;  %v4168_v10 = vpop.xlane.xlu0 %4167  ;;  %v5398_v48 = vmul.f32 %v15442_v37, %v4250_v18 }
 0xb43   :  { %5932 = vmatmul.mubr.bf16.gmra.mrb[76].mxu1 %v13105_v27 }
 0xb44   :  { %v5818_v36 = vmax.f32 %v5754_v55, 0.0  ;;  %5939 = vmatprep.mubr.bf16.mxu1 %v13106_v13  ;;  %v13109_v13 = vld [vmem:[%s17164_s3 + $0xa0] ss:$16 sps:$4 sm:$0xff]  }
 0xb45   :  { %v5612_v4 = vpop.f32.mrb[16].mxu0 }
 0xb46   :  { %v5613_v63 = vadd.f32 %v5612_v4, %v5394_v21  ;;  %v5614_v29 = vpop.f32.mrb[17].mxu0  ;;  %v5862_v11 = vpack.c.bf16 %v5818_v36, %v5817_v23  ;;  %v4251_v23 = vmul.f32 0.0078125, %v4168_v10 }
 0xb47   :  { %v5615_v19 = vpop.f32.mrb[18].mxu0  ;;  %v4170_v29 = vpop.xlane.xlu1 %4169 }
 0xb48   :  { %v5755_v7 = vadd.f32 %v15448_v1, %v5613_v63  ;;  %v5616_v39 = vadd.f32 %v5615_v19, %v5395_v46  ;;  %6171 = vmatpush1.bf16.msra.mxu1 %v5862_v11  ;;  %v5617_v50 = vpop.f32.mrb[19].mxu0  ;;  %v13110_v63 = vld [vmem:[%s17164_s3 + $0xc4] ss:$16 sps:$4 sm:$0xff]   ;;  %v5399_v26 = vmul.f32 %v15442_v37, %v4251_v23  ;;  %v4252_v12 = vmul.f32 0.0078125, %v4170_v29 }
 0xb49   :  { %6172 = vmatprep.subr.bf16.mxu1 %v17291_v0 }
 0xb4a   :  { %v5756_v34 = vadd.f32 %v15448_v1, %v5616_v39  ;;  %v5819_v33 = vmax.f32 %v5755_v7, 0.0  ;;  %v4172_v39 = vpop.xlane.xlu0 %4171  ;;  %v5400_v43 = vmul.f32 %v15442_v37, %v4252_v12 }
 0xb4b   :  { %5940 = vmatmul.mubr.bf16.gmra.mrb[80].mxu1 %v13107_v35 }
 0xb4c   :  { %v5820_v8 = vmax.f32 %v5756_v34, 0.0  ;;  %5947 = vmatprep.mubr.bf16.mxu1 %v13108_v58  ;;  %v13111_v58 = vld [vmem:[%s17164_s3 + $0xc0] ss:$16 sps:$4 sm:$0xff]  }
 0xb4d   :  { %v5620_v61 = vpop.f32.mrb[20].mxu0 }
 0xb4e   :  { %v5621_v15 = vadd.f32 %v5620_v61, %v5396_v14  ;;  %v5622_v62 = vpop.f32.mrb[21].mxu0  ;;  %v5863_v28 = vpack.c.bf16 %v5820_v8, %v5819_v33  ;;  %v4253_v33 = vmul.f32 0.0078125, %v4172_v39 }
 0xb4f   :  { %v5623_v59 = vpop.f32.mrb[22].mxu0  ;;  %v4174_v62 = vpop.xlane.xlu1 %4173 }
 0xb50   :  { %v5757_v55 = vadd.f32 %v15448_v1, %v5621_v15  ;;  %v5624_v27 = vadd.f32 %v5623_v59, %v5397_v56  ;;  %6173 = vmatpush1.bf16.msra.mxu1 %v5863_v28  ;;  %v5625_v21 = vpop.f32.mrb[23].mxu0  ;;  %v13112_v15 = vld [vmem:[%s17164_s3 + $0xe4] ss:$16 sps:$4 sm:$0xff]   ;;  %v5401_v10 = vmul.f32 %v15442_v37, %v4253_v33  ;;  %v4254_v23 = vmul.f32 0.0078125, %v4174_v62 }
 0xb51   :  { %6174 = vmatprep.subr.bf16.mxu1 %v17291_v0 }
 0xb52   :  { %v5758_v36 = vadd.f32 %v15448_v1, %v5624_v27  ;;  %v5821_v4 = vmax.f32 %v5757_v55, 0.0  ;;  %v4176_v27 = vpop.xlane.xlu0 %4175  ;;  %v5402_v29 = vmul.f32 %v15442_v37, %v4254_v23 }
 0xb53   :  { %5948 = vmatmul.mubr.bf16.gmra.mrb[84].mxu1 %v13109_v13 }
 0xb54   :  { %v5822_v46 = vmax.f32 %v5758_v36, 0.0  ;;  %5955 = vmatprep.mubr.bf16.mxu1 %v13110_v63  ;;  %v13113_v63 = vld [vmem:[%s17164_s3 + $0xe0] ss:$16 sps:$4 sm:$0xff]  }
 0xb55   :  { %v5628_v11 = vpop.f32.mrb[24].mxu0 }
 0xb56   :  { %v5629_v19 = vadd.f32 %v5628_v11, %v5398_v48  ;;  %v5630_v49 = vpop.f32.mrb[25].mxu0  ;;  %v5864_v7 = vpack.c.bf16 %v5822_v46, %v5821_v4  ;;  %v4255_v4 = vmul.f32 0.0078125, %v4176_v27 }
 0xb57   :  { %v5631_v50 = vpop.f32.mrb[26].mxu0  ;;  %v4178_v49 = vpop.xlane.xlu1 %4177 }
 0xb58   :  { %v5759_v34 = vadd.f32 %v15448_v1, %v5629_v19  ;;  %v5632_v35 = vadd.f32 %v5631_v50, %v5399_v26  ;;  %6175 = vmatpush1.bf16.msra.mxu1 %v5864_v7  ;;  %v5633_v14 = vpop.f32.mrb[27].mxu0  ;;  %v13114_v19 = vld [vmem:[%s17164_s3 + $0x104] ss:$16 sps:$4 sm:$0xff]   ;;  %v5403_v39 = vmul.f32 %v15442_v37, %v4255_v4  ;;  %v4256_v33 = vmul.f32 0.0078125, %v4178_v49 }
 0xb59   :  { %6176 = vmatprep.subr.bf16.mxu1 %v17291_v0 }
 0xb5a   :  { %v5760_v8 = vadd.f32 %v15448_v1, %v5632_v35  ;;  %v5823_v61 = vmax.f32 %v5759_v34, 0.0  ;;  %v4180_v35 = vpop.xlane.xlu0 %4179  ;;  %v5404_v62 = vmul.f32 %v15442_v37, %v4256_v33 }
 0xb5b   :  { %5956 = vmatmul.mubr.bf16.gmra.mrb[88].mxu1 %v13111_v58 }
 0xb5c   :  { %v5824_v56 = vmax.f32 %v5760_v8, 0.0  ;;  %5963 = vmatprep.mubr.bf16.mxu1 %v13112_v15  ;;  %v13115_v15 = vld [vmem:[%s17164_s3 + $0x100] ss:$16 sps:$4 sm:$0xff]  }
 0xb5d   :  { %v5636_v28 = vpop.f32.mrb[28].mxu0 }
 0xb5e   :  { %v5637_v59 = vadd.f32 %v5636_v28, %v5400_v43  ;;  %v5638_v18 = vpop.f32.mrb[29].mxu0  ;;  %v5865_v55 = vpack.c.bf16 %v5824_v56, %v5823_v61  ;;  %v4257_v61 = vmul.f32 0.0078125, %v4180_v35 }
 0xb5f   :  { %v5639_v21 = vpop.f32.mrb[30].mxu0  ;;  %v4182_v18 = vpop.xlane.xlu1 %4181 }
 0xb60   :  { %v5761_v36 = vadd.f32 %v15448_v1, %v5637_v59  ;;  %v5640_v13 = vadd.f32 %v5639_v21, %v5401_v10  ;;  %6177 = vmatpush1.bf16.msra.mxu1 %v5865_v55  ;;  %v5641_v48 = vpop.f32.mrb[31].mxu0  ;;  %v13116_v59 = vld [vmem:[%s17164_s3 + $0x124] ss:$16 sps:$4 sm:$0xff]   ;;  %v5405_v27 = vmul.f32 %v15442_v37, %v4257_v61  ;;  %v4258_v4 = vmul.f32 0.0078125, %v4182_v18 }
 0xb61   :  { %6178 = vmatprep.subr.bf16.mxu1 %v17291_v0 }
 0xb62   :  { %v5762_v46 = vadd.f32 %v15448_v1, %v5640_v13  ;;  %v5825_v11 = vmax.f32 %v5761_v36, 0.0  ;;  %v4184_v13 = vpop.xlane.xlu0 %4183 }
 0xb63   :  { %5964 = vmatmul.mubr.bf16.gmra.mrb[92].mxu1 %v13113_v63 }
 0xb64   :  { %v5826_v26 = vmax.f32 %v5762_v46, 0.0  ;;  %5971 = vmatprep.mubr.bf16.mxu1 %v13114_v19  ;;  %v13118_v19 = vld [vmem:[%s17164_s3 + $0x120] ss:$16 sps:$4 sm:$0xff]  }
 0xb65   :  { %v5644_v7 = vpop.f32.mrb[32].mxu0 }
 0xb66   :  { %v5645_v50 = vadd.f32 %v5644_v7, %v5402_v29  ;;  %v5646_v12 = vpop.f32.mrb[33].mxu0  ;;  %v5866_v34 = vpack.c.bf16 %v5826_v26, %v5825_v11  ;;  %v4259_v11 = vmul.f32 0.0078125, %v4184_v13  ;;  %v15634_v26 = vld [vmem:[%s17169_s8 + $0x1] ss:$0 sm:$0xff] }
 0xb67   :  { %v5647_v14 = vpop.f32.mrb[34].mxu0  ;;  %v4186_v12 = vpop.xlane.xlu1 %4185 }
 0xb68   :  { %v5763_v8 = vadd.f32 %v15448_v1, %v5645_v50  ;;  %v5648_v58 = vadd.f32 %v5647_v14, %v5403_v39  ;;  %6179 = vmatpush1.bf16.msra.mxu1 %v5866_v34  ;;  %v5649_v43 = vpop.f32.mrb[35].mxu0  ;;  %v13120_v50 = vld [vmem:[%s17164_s3 + $0x144] ss:$16 sps:$4 sm:$0xff]   ;;  %v4260_v61 = vmul.f32 0.0078125, %v4186_v12 }
 0xb69   :  { %6180 = vmatprep.subr.bf16.mxu1 %v17291_v0 }
 0xb6a   :  { %v5764_v56 = vadd.f32 %v15448_v1, %v5648_v58  ;;  %v5827_v28 = vmax.f32 %v5763_v8, 0.0  ;;  %v4188_v58 = vpop.xlane.xlu0 %4187 }
 0xb6b   :  { %5972 = vmatmul.mubr.bf16.gmra.mrb[96].mxu1 %v13115_v15 }
 0xb6c   :  { %v5828_v10 = vmax.f32 %v5764_v56, 0.0  ;;  %5979 = vmatprep.mubr.bf16.mxu1 %v13116_v59  ;;  %v13121_v59 = vld [vmem:[%s17164_s3 + $0x140] ss:$16 sps:$4 sm:$0xff]  }
 0xb6d   :  { %v5652_v55 = vpop.f32.mrb[36].mxu0 }
 0xb6e   :  { %v5653_v21 = vadd.f32 %v5652_v55, %v5404_v62  ;;  %v5654_v23 = vpop.f32.mrb[37].mxu0  ;;  %v5867_v36 = vpack.c.bf16 %v5828_v10, %v5827_v28  ;;  %v4261_v28 = vmul.f32 0.0078125, %v4188_v58 }
 0xb6f   :  { %v5655_v48 = vpop.f32.mrb[38].mxu0  ;;  %v4190_v23 = vpop.xlane.xlu1 %4189 }
 0xb70   :  { %v5765_v46 = vadd.f32 %v15448_v1, %v5653_v21  ;;  %v5656_v63 = vadd.f32 %v5655_v48, %v5405_v27  ;;  %6181 = vmatpush1.bf16.msra.mxu1 %v5867_v36  ;;  %v5657_v29 = vpop.f32.mrb[39].mxu0  ;;  %v15643_v1 = vld [vmem:[%s17168_s7 + $0x1] ss:$0 sm:$0xff]  ;;  %v13122_v21 = vld [vmem:[%s17164_s3 + $0x164] ss:$16 sps:$4 sm:$0xff]  }
 0xb71   :  { %6182 = vmatprep.subr.bf16.mxu1 %v17291_v0  ;;  %v5406_v49 = vmul.f32 %v15643_v1, %v4258_v4  ;;  %v5407_v35 = vmul.f32 %v15643_v1, %v4259_v11  ;;  %v5408_v18 = vmul.f32 %v15643_v1, %v4260_v61  ;;  %v5409_v13 = vmul.f32 %v15643_v1, %v4261_v28 }
 0xb72   :  { %v5766_v37 = vadd.f32 %v15634_v26, %v5656_v63  ;;  %v5829_v7 = vmax.f32 %v5765_v46, 0.0  ;;  %v4192_v63 = vpop.xlane.xlu0 %4191  ;;  %v4262_v11 = vmul.f32 0.0078125, %v4190_v23 }
 0xb73   :  { %5980 = vmatmul.mubr.bf16.gmra.mrb[100].mxu1 %v13118_v19 }
 0xb74   :  { %v5830_v39 = vmax.f32 %v5766_v37, 0.0  ;;  %5987 = vmatprep.mubr.bf16.mxu1 %v13120_v50  ;;  %v13123_v50 = vld [vmem:[%s17164_s3 + $0x160] ss:$16 sps:$4 sm:$0xff]   ;;  %v5410_v12 = vmul.f32 %v15643_v1, %v4262_v11 }
 0xb75   :  { %v5660_v34 = vpop.f32.mrb[40].mxu0 }
 0xb76   :  { %v5661_v14 = vadd.f32 %v5660_v34, %v5406_v49  ;;  %v5662_v33 = vpop.f32.mrb[41].mxu0  ;;  %v5868_v8 = vpack.c.bf16 %v5830_v39, %v5829_v7  ;;  %v4263_v7 = vmul.f32 0.0078125, %v4192_v63 }
 0xb77   :  { %v5663_v43 = vpop.f32.mrb[42].mxu0  ;;  %v4194_v33 = vpop.xlane.xlu1 %4193 }
 0xb78   :  { %v5767_v56 = vadd.f32 %v15634_v26, %v5661_v14  ;;  %v5664_v15 = vadd.f32 %v5663_v43, %v5407_v35  ;;  %6183 = vmatpush1.bf16.msra.mxu1 %v5868_v8  ;;  %v5665_v62 = vpop.f32.mrb[43].mxu0  ;;  %v13124_v14 = vld [vmem:[%s17164_s3 + $0x184] ss:$16 sps:$4 sm:$0xff]   ;;  %v5411_v58 = vmul.f32 %v15643_v1, %v4263_v7  ;;  %v4264_v28 = vmul.f32 0.0078125, %v4194_v33 }
 0xb79   :  { %6184 = vmatprep.subr.bf16.mxu1 %v17291_v0 }
 0xb7a   :  { %v5768_v10 = vadd.f32 %v15634_v26, %v5664_v15  ;;  %v5831_v55 = vmax.f32 %v5767_v56, 0.0  ;;  %v4196_v15 = vpop.xlane.xlu0 %4195  ;;  %v5412_v23 = vmul.f32 %v15643_v1, %v4264_v28 }
 0xb7b   :  { %5988 = vmatmul.mubr.bf16.gmra.mrb[104].mxu1 %v13121_v59 }
 0xb7c   :  { %v5832_v27 = vmax.f32 %v5768_v10, 0.0  ;;  %5995 = vmatprep.mubr.bf16.mxu1 %v13122_v21  ;;  %v13125_v21 = vld [vmem:[%s17164_s3 + $0x180] ss:$16 sps:$4 sm:$0xff]  }
 0xb7d   :  { %v5668_v36 = vpop.f32.mrb[44].mxu0 }
 0xb7e   :  { %v5669_v48 = vadd.f32 %v5668_v36, %v5408_v18  ;;  %v5670_v4 = vpop.f32.mrb[45].mxu0  ;;  %v5869_v46 = vpack.c.bf16 %v5832_v27, %v5831_v55  ;;  %v4265_v55 = vmul.f32 0.0078125, %v4196_v15 }
 0xb7f   :  { %v5671_v29 = vpop.f32.mrb[46].mxu0  ;;  %v4198_v4 = vpop.xlane.xlu1 %4197 }
 0xb80   :  { %v5769_v37 = vadd.f32 %v15634_v26, %v5669_v48  ;;  %v5672_v19 = vadd.f32 %v5671_v29, %v5409_v13  ;;  %6185 = vmatpush1.bf16.msra.mxu1 %v5869_v46  ;;  %v5673_v49 = vpop.f32.mrb[47].mxu0  ;;  %v13126_v48 = vld [vmem:[%s17164_s3 + $0x1a4] ss:$16 sps:$4 sm:$0xff]   ;;  %v5413_v63 = vmul.f32 %v15643_v1, %v4265_v55  ;;  %v4266_v7 = vmul.f32 0.0078125, %v4198_v4 }
 0xb81   :  { %6186 = vmatprep.subr.bf16.mxu1 %v17291_v0 }
 0xb82   :  { %v5770_v39 = vadd.f32 %v15634_v26, %v5672_v19  ;;  %v5833_v34 = vmax.f32 %v5769_v37, 0.0  ;;  %v4200_v19 = vpop.xlane.xlu0 %4199  ;;  %v5414_v33 = vmul.f32 %v15643_v1, %v4266_v7 }
 0xb83   :  { %5996 = vmatmul.mubr.bf16.gmra.mrb[108].mxu1 %v13123_v50 }
 0xb84   :  { %v5834_v35 = vmax.f32 %v5770_v39, 0.0  ;;  %6003 = vmatprep.mubr.bf16.mxu1 %v13124_v14  ;;  %v13127_v14 = vld [vmem:[%s17164_s3 + $0x1a0] ss:$16 sps:$4 sm:$0xff]  }
 0xb85   :  { %v5676_v8 = vpop.f32.mrb[48].mxu0 }
 0xb86   :  { %v5677_v43 = vadd.f32 %v5676_v8, %v5410_v12  ;;  %v5678_v61 = vpop.f32.mrb[49].mxu0  ;;  %v5870_v56 = vpack.c.bf16 %v5834_v35, %v5833_v34  ;;  %v4267_v34 = vmul.f32 0.0078125, %v4200_v19 }
 0xb87   :  { %v5679_v62 = vpop.f32.mrb[50].mxu0  ;;  %v4202_v61 = vpop.xlane.xlu1 %4201 }
 0xb88   :  { %v5771_v10 = vadd.f32 %v15634_v26, %v5677_v43  ;;  %v5680_v59 = vadd.f32 %v5679_v62, %v5411_v58  ;;  %6187 = vmatpush1.bf16.msra.mxu1 %v5870_v56  ;;  %v5681_v18 = vpop.f32.mrb[51].mxu0  ;;  %v13128_v43 = vld [vmem:[%s17164_s3 + $0x1c4] ss:$16 sps:$4 sm:$0xff]   ;;  %v5415_v15 = vmul.f32 %v15643_v1, %v4267_v34  ;;  %v4268_v55 = vmul.f32 0.0078125, %v4202_v61  ;;  %v13135_v61 = vld [vmem:[%s17164_s3 + $0x220] ss:$16 sps:$4 sm:$0xff]  }
 0xb89   :  { %6188 = vmatprep.subr.bf16.mxu1 %v17291_v0 }
 0xb8a   :  { %v5772_v27 = vadd.f32 %v15634_v26, %v5680_v59  ;;  %v5835_v36 = vmax.f32 %v5771_v10, 0.0  ;;  %v4204_v59 = vpop.xlane.xlu0 %4203  ;;  %v5416_v4 = vmul.f32 %v15643_v1, %v4268_v55  ;;  %v13143_v55 = vld [vmem:[%s17164_s3 + $0x2a0] ss:$16 sps:$4 sm:$0xff]  }
 0xb8b   :  { %6004 = vmatmul.mubr.bf16.gmra.mrb[112].mxu1 %v13125_v21 }
 0xb8c   :  { %v5836_v13 = vmax.f32 %v5772_v27, 0.0  ;;  %6011 = vmatprep.mubr.bf16.mxu1 %v13126_v48  ;;  %v13129_v48 = vld [vmem:[%s17164_s3 + $0x1c0] ss:$16 sps:$4 sm:$0xff]  }
 0xb8d   :  { %v5684_v46 = vpop.f32.mrb[52].mxu0 }
 0xb8e   :  { %v5685_v29 = vadd.f32 %v5684_v46, %v5412_v23  ;;  %v5686_v11 = vpop.f32.mrb[53].mxu0  ;;  %v5871_v37 = vpack.c.bf16 %v5836_v13, %v5835_v36  ;;  %v4269_v36 = vmul.f32 0.0078125, %v4204_v59  ;;  %v13141_v59 = vld [vmem:[%s17164_s3 + $0x280] ss:$16 sps:$4 sm:$0xff]  }
 0xb8f   :  { %v5687_v49 = vpop.f32.mrb[54].mxu0 }
 0xb90   :  { %v5773_v39 = vadd.f32 %v15634_v26, %v5685_v29  ;;  %v5688_v50 = vadd.f32 %v5687_v49, %v5413_v63  ;;  %6189 = vmatpush1.bf16.msra.mxu1 %v5871_v37  ;;  %v5689_v12 = vpop.f32.mrb[55].mxu0  ;;  %v13130_v29 = vld [vmem:[%s17164_s3 + $0x1e4] ss:$16 sps:$4 sm:$0xff]   ;;  %v5417_v37 = vmul.f32 %v15643_v1, %v4269_v36  ;;  %v13147_v36 = vld [vmem:[%s17164_s3 + $0x2e0] ss:$16 sps:$4 sm:$0xff]  }
 0xb91   :  { %6190 = vmatprep.subr.bf16.mxu1 %v17291_v0 }
 0xb92   :  { %v5774_v35 = vadd.f32 %v15634_v26, %v5688_v50  ;;  %v5837_v8 = vmax.f32 %v5773_v39, 0.0 }
 0xb93   :  { %6012 = vmatmul.mubr.bf16.gmra.mrb[116].mxu1 %v13127_v14  ;;  %v13131_v14 = vld [vmem:[%s17164_s3 + $0x1e0] ss:$16 sps:$4 sm:$0xff]  }
 0xb94   :  { %v5838_v58 = vmax.f32 %v5774_v35, 0.0  ;;  %6019 = vmatprep.mubr.bf16.mxu1 %v13128_v43  ;;  %v13133_v43 = vld [vmem:[%s17164_s3 + $0x200] ss:$16 sps:$4 sm:$0xff]  }
 0xb95   :  { %v5692_v56 = vpop.f32.mrb[56].mxu0 }
 0xb96   :  { %v5693_v62 = vadd.f32 %v5692_v56, %v5414_v33  ;;  %v5694_v28 = vpop.f32.mrb[57].mxu0  ;;  %v5872_v10 = vpack.c.bf16 %v5838_v58, %v5837_v8  ;;  %v13132_v8 = vld [vmem:[%s17164_s3 + $0x204] ss:$16 sps:$4 sm:$0xff]  }
 0xb97   :  { %v5695_v18 = vpop.f32.mrb[58].mxu0  ;;  %v13136_v56 = vld [vmem:[%s17164_s3 + $0x244] ss:$16 sps:$4 sm:$0xff]   ;;  %v13139_v28 = vld [vmem:[%s17164_s3 + $0x260] ss:$16 sps:$4 sm:$0xff]  }
 0xb98   :  { %v5775_v27 = vadd.f32 %v15634_v26, %v5693_v62  ;;  %v5696_v21 = vadd.f32 %v5695_v18, %v5415_v15  ;;  %6191 = vmatpush1.bf16.msra.mxu1 %v5872_v10  ;;  %v5697_v23 = vpop.f32.mrb[59].mxu0  ;;  %v13137_v15 = vld [vmem:[%s17164_s3 + $0x240] ss:$16 sps:$4 sm:$0xff]   ;;  %v13138_v62 = vld [vmem:[%s17164_s3 + $0x264] ss:$16 sps:$4 sm:$0xff]  }
 0xb99   :  { %6192 = vmatprep.subr.bf16.mxu1 %v17291_v0  ;;  %v13140_v10 = vld [vmem:[%s17164_s3 + $0x284] ss:$16 sps:$4 sm:$0xff]  }
 0xb9a   :  { %v5776_v13 = vadd.f32 %v15634_v26, %v5696_v21  ;;  %v5839_v46 = vmax.f32 %v5775_v27, 0.0  ;;  %v13142_v18 = vld [vmem:[%s17164_s3 + $0x2a4] ss:$16 sps:$4 sm:$0xff]   ;;  %v13145_v21 = vld [vmem:[%s17164_s3 + $0x2c0] ss:$16 sps:$4 sm:$0xff]  }
 0xb9b   :  { %6020 = vmatmul.mubr.bf16.gmra.mrb[120].mxu1 %v13129_v48  ;;  %v13144_v27 = vld [vmem:[%s17164_s3 + $0x2c4] ss:$16 sps:$4 sm:$0xff]   ;;  %v13149_v48 = vld [vmem:[%s17164_s3 + $0x300] ss:$16 sps:$4 sm:$0xff]  }
 0xb9c   :  { %v5840_v63 = vmax.f32 %v5776_v13, 0.0  ;;  %6027 = vmatprep.mubr.bf16.mxu1 %v13130_v29  ;;  %v13146_v23 = vld [vmem:[%s17164_s3 + $0x2e4] ss:$16 sps:$4 sm:$0xff]   ;;  %v13153_v29 = vld [vmem:[%s17164_s3 + $0x340] ss:$16 sps:$4 sm:$0xff]  }
 0xb9d   :  { %v5700_v11 = vpop.f32.mrb[60].mxu0  ;;  %v13148_v13 = vld [vmem:[%s17164_s3 + $0x304] ss:$16 sps:$4 sm:$0xff]  }
 0xb9e   :  { %v5701_v19 = vadd.f32 %v5700_v11, %v5416_v4  ;;  %v5702_v49 = vpop.f32.mrb[61].mxu0  ;;  %v5873_v7 = vpack.c.bf16 %v5840_v63, %v5839_v46  ;;  %v13150_v4 = vld [vmem:[%s17164_s3 + $0x324] ss:$16 sps:$4 sm:$0xff]   ;;  %v13151_v46 = vld [vmem:[%s17164_s3 + $0x320] ss:$16 sps:$4 sm:$0xff]  }
 0xb9f   :  { %v5703_v39 = vpop.f32.mrb[62].mxu0  ;;  %v13152_v63 = vld [vmem:[%s17164_s3 + $0x344] ss:$16 sps:$4 sm:$0xff]   ;;  %v13157_v49 = vld [vmem:[%s17164_s3 + $0x380] ss:$16 sps:$4 sm:$0xff]  }
 0xba0   :  { %v5777_v50 = vadd.f32 %v15634_v26, %v5701_v19  ;;  %v5704_v12 = vadd.f32 %v5703_v39, %v5417_v37  ;;  %6193 = vmatpush1.bf16.msra.mxu1 %v5873_v7  ;;  %v5705_v34 = vpop.f32.mrb[63].mxu0  ;;  %v13154_v11 = vld [vmem:[%s17164_s3 + $0x364] ss:$16 sps:$4 sm:$0xff]   ;;  %v13155_v37 = vld [vmem:[%s17164_s3 + $0x360] ss:$16 sps:$4 sm:$0xff]  }
 0xba1   :  { %6194 = vmatprep.subr.bf16.mxu1 %v17291_v0  ;;  %v13156_v19 = vld [vmem:[%s17164_s3 + $0x384] ss:$16 sps:$4 sm:$0xff]   ;;  %v13159_v39 = vld [vmem:[%s17164_s3 + $0x3a0] ss:$16 sps:$4 sm:$0xff]  }
 0xba2   :  { %v5778_v35 = vadd.f32 %v15634_v26, %v5704_v12  ;;  %v5841_v33 = vmax.f32 %v5777_v50, 0.0  ;;  %v13134_v26 = vld [vmem:[%s17164_s3 + $0x224] ss:$16 sps:$4 sm:$0xff]   ;;  %v13161_v12 = vld [vmem:[%s17164_s3 + $0x3c0] ss:$16 sps:$4 sm:$0xff]  }
 0xba3   :  { %6028 = vmatmul.mubr.bf16.gmra.mrb[124].mxu1 %v13131_v14  ;;  %v13158_v7 = vld [vmem:[%s17164_s3 + $0x3a4] ss:$16 sps:$4 sm:$0xff]   ;;  %v13164_v14 = vld [vmem:[%s17164_s3 + $0xc] ss:$16 sps:$4 sm:$0xff]  }
 0xba4   :  { %v5842_v1 = vmax.f32 %v5778_v35, 0.0  ;;  %6035 = vmatprep.mubr.bf16.mxu1 %v13132_v8  ;;  %v13160_v50 = vld [vmem:[%s17164_s3 + $0x3c4] ss:$16 sps:$4 sm:$0xff]   ;;  %v13163_v35 = vld [vmem:[%s17164_s3 + $0x3e0] ss:$16 sps:$4 sm:$0xff]  }
 0xba5   :  { %v13162_v34 = vld [vmem:[%s17164_s3 + $0x3e4] ss:$16 sps:$4 sm:$0xff]   ;;  %v13167_v8 = vld [vmem:[%s17164_s3 + $0x28] ss:$16 sps:$4 sm:$0xff]  }
 0xba6   :  { %v5874_v58 = vpack.c.bf16 %v5842_v1, %v5841_v33  ;;  %v13165_v33 = vld [vmem:[%s17164_s3 + $0x8] ss:$16 sps:$4 sm:$0xff]   ;;  %v13166_v1 = vld [vmem:[%s17164_s3 + $0x2c] ss:$16 sps:$4 sm:$0xff]  }
 0xba8   :  { %6195 = vmatpush1.bf16.msra.mxu1 %v5874_v58  ;;  %v13168_v58 = vld [vmem:[%s17164_s3 + $0x4c] ss:$16 sps:$4 sm:$0xff]  }
 0xbab   :  { %6036 = vmatmul.mubr.bf16.gmra.mrb[128].mxu1 %v13133_v43  ;;  %v13169_v43 = vld [vmem:[%s17164_s3 + $0x48] ss:$16 sps:$4 sm:$0xff]  }
 0xbac   :  { %6043 = vmatprep.mubr.bf16.mxu1 %v13134_v26  ;;  %v13170_v26 = vld [vmem:[%s17164_s3 + $0x6c] ss:$16 sps:$4 sm:$0xff]  }
 0xbb3   :  { %6044 = vmatmul.mubr.bf16.gmra.mrb[132].mxu1 %v13135_v61  ;;  %v13171_v61 = vld [vmem:[%s17164_s3 + $0x68] ss:$16 sps:$4 sm:$0xff]  }
 0xbb4   :  { %6051 = vmatprep.mubr.bf16.mxu1 %v13136_v56  ;;  %v13172_v56 = vld [vmem:[%s17164_s3 + $0x8c] ss:$16 sps:$4 sm:$0xff]  }
 0xbbb   :  { %6052 = vmatmul.mubr.bf16.gmra.mrb[136].mxu1 %v13137_v15  ;;  %v13173_v15 = vld [vmem:[%s17164_s3 + $0x88] ss:$16 sps:$4 sm:$0xff]  }
 0xbbc   :  { %6059 = vmatprep.mubr.bf16.mxu1 %v13138_v62  ;;  %v13174_v62 = vld [vmem:[%s17164_s3 + $0xac] ss:$16 sps:$4 sm:$0xff]  }
 0xbc3   :  { %6060 = vmatmul.mubr.bf16.gmra.mrb[140].mxu1 %v13139_v28  ;;  %v13175_v28 = vld [vmem:[%s17164_s3 + $0xa8] ss:$16 sps:$4 sm:$0xff]  }
 0xbc4   :  { %6067 = vmatprep.mubr.bf16.mxu1 %v13140_v10  ;;  %v13176_v10 = vld [vmem:[%s17164_s3 + $0xcc] ss:$16 sps:$4 sm:$0xff]  }
 0xbcb   :  { %6068 = vmatmul.mubr.bf16.gmra.mrb[144].mxu1 %v13141_v59  ;;  %v13177_v59 = vld [vmem:[%s17164_s3 + $0xc8] ss:$16 sps:$4 sm:$0xff]  }
 0xbcc   :  { %6075 = vmatprep.mubr.bf16.mxu1 %v13142_v18  ;;  %v13178_v18 = vld [vmem:[%s17164_s3 + $0xec] ss:$16 sps:$4 sm:$0xff]  }
 0xbd3   :  { %6076 = vmatmul.mubr.bf16.gmra.mrb[148].mxu1 %v13143_v55  ;;  %v13179_v55 = vld [vmem:[%s17164_s3 + $0xe8] ss:$16 sps:$4 sm:$0xff]  }
 0xbd4   :  { %6083 = vmatprep.mubr.bf16.mxu1 %v13144_v27  ;;  %v13180_v27 = vld [vmem:[%s17164_s3 + $0x10c] ss:$16 sps:$4 sm:$0xff]  }
 0xbdb   :  { %6084 = vmatmul.mubr.bf16.gmra.mrb[152].mxu1 %v13145_v21  ;;  %v13181_v21 = vld [vmem:[%s17164_s3 + $0x108] ss:$16 sps:$4 sm:$0xff]  }
 0xbdc   :  { %6091 = vmatprep.mubr.bf16.mxu1 %v13146_v23  ;;  %v12968_v23 = vld [vmem:[#allocation11 + $0x40] sm:$0xff]  }
 0xbdd   :  { %11807 = vmatprep.subr.bf16.mxu0 %v12968_v23 }
 0xbde   :  { %11808 = vmatpush3.bf16.msra.mxu0 %v12968_v23  ;;  %v13210_v23 = vld [vmem:[%s17164_s3 + $0x2ec] ss:$16 sps:$4 sm:$0xff]  }
 0xbe3   :  { %6092 = vmatmul.mubr.bf16.gmra.mrb[156].mxu1 %v13147_v36  ;;  %v12969_v36 = vld [vmem:[#allocation11 + $0x48] sm:$0xff]  }
 0xbe4   :  { %6099 = vmatprep.mubr.bf16.mxu1 %v13148_v13  ;;  %v13182_v13 = vld [vmem:[%s17164_s3 + $0x12c] ss:$16 sps:$4 sm:$0xff]   ;;  %11809 = vmatprep.subr.bf16.mxu0 %v12969_v36 }
 0xbe5   :  { %11810 = vmatpush3.bf16.msra.mxu0 %v12969_v36  ;;  %v13211_v36 = vld [vmem:[%s17164_s3 + $0x2e8] ss:$16 sps:$4 sm:$0xff]  }
 0xbeb   :  { %6100 = vmatmul.mubr.bf16.gmra.mrb[160].mxu1 %v13149_v48  ;;  %v13183_v48 = vld [vmem:[%s17164_s3 + $0x128] ss:$16 sps:$4 sm:$0xff]  }
 0xbec   :  { %6107 = vmatprep.mubr.bf16.mxu1 %v13150_v4  ;;  %v12970_v4 = vld [vmem:[#allocation11 + $0x50] sm:$0xff]  }
 0xbed   :  { %11811 = vmatprep.subr.bf16.mxu0 %v12970_v4 }
 0xbee   :  { %11812 = vmatpush3.bf16.msra.mxu0 %v12970_v4  ;;  %v13214_v4 = vld [vmem:[%s17164_s3 + $0x32c] ss:$16 sps:$4 sm:$0xff]  }
 0xbf3   :  { %6108 = vmatmul.mubr.bf16.gmra.mrb[164].mxu1 %v13151_v46  ;;  %v12971_v46 = vld [vmem:[#allocation11 + $0x58] sm:$0xff]  }
 0xbf4   :  { %6115 = vmatprep.mubr.bf16.mxu1 %v13152_v63  ;;  %v13184_v63 = vld [vmem:[%s17164_s3 + $0x14c] ss:$16 sps:$4 sm:$0xff]   ;;  %11813 = vmatprep.subr.bf16.mxu0 %v12971_v46 }
 0xbf5   :  { %11814 = vmatpush3.bf16.msra.mxu0 %v12971_v46  ;;  %v13215_v46 = vld [vmem:[%s17164_s3 + $0x328] ss:$16 sps:$4 sm:$0xff]  }
 0xbfb   :  { %6116 = vmatmul.mubr.bf16.gmra.mrb[168].mxu1 %v13153_v29  ;;  %v13185_v29 = vld [vmem:[%s17164_s3 + $0x148] ss:$16 sps:$4 sm:$0xff]  }
 0xbfc   :  { %6123 = vmatprep.mubr.bf16.mxu1 %v13154_v11  ;;  %v12972_v11 = vld [vmem:[#allocation11 + $0x60] sm:$0xff]  }
 0xbfd   :  { %11815 = vmatprep.subr.bf16.mxu0 %v12972_v11 }
 0xbfe   :  { %11816 = vmatpush3.bf16.msra.mxu0 %v12972_v11  ;;  %v13218_v11 = vld [vmem:[%s17164_s3 + $0x36c] ss:$16 sps:$4 sm:$0xff]  }
 0xc03   :  { %6124 = vmatmul.mubr.bf16.gmra.mrb[172].mxu1 %v13155_v37  ;;  %v13186_v37 = vld [vmem:[%s17164_s3 + $0x16c] ss:$16 sps:$4 sm:$0xff]  }
 0xc04   :  { %6131 = vmatprep.mubr.bf16.mxu1 %v13156_v19  ;;  %v12973_v19 = vld [vmem:[#allocation11 + $0x68] sm:$0xff]  }
 0xc05   :  { %11817 = vmatprep.subr.bf16.mxu0 %v12973_v19 }
 0xc06   :  { %11818 = vmatpush3.bf16.msra.mxu0 %v12973_v19 }
 0xc0b   :  { %6132 = vmatmul.mubr.bf16.gmra.mrb[176].mxu1 %v13157_v49  ;;  %v13187_v49 = vld [vmem:[%s17164_s3 + $0x168] ss:$16 sps:$4 sm:$0xff]  }
 0xc0c   :  { %6139 = vmatprep.mubr.bf16.mxu1 %v13158_v7  ;;  %v12974_v7 = vld [vmem:[#allocation11 + $0x70] sm:$0xff]  }
 0xc0d   :  { %11819 = vmatprep.subr.bf16.mxu0 %v12974_v7 }
 0xc0e   :  { %11820 = vmatpush3.bf16.msra.mxu0 %v12974_v7 }
 0xc13   :  { %6140 = vmatmul.mubr.bf16.gmra.mrb[180].mxu1 %v13159_v39  ;;  %v13188_v39 = vld [vmem:[%s17164_s3 + $0x18c] ss:$16 sps:$4 sm:$0xff]  }
 0xc14   :  { %6147 = vmatprep.mubr.bf16.mxu1 %v13160_v50  ;;  %v12975_v50 = vld [vmem:[#allocation11 + $0x78] sm:$0xff]  }
 0xc15   :  { %11821 = vmatprep.subr.bf16.mxu0 %v12975_v50 }
 0xc16   :  { %11822 = vmatpush3.bf16.msra.mxu0 %v12975_v50 }
 0xc1b   :  { %6148 = vmatmul.mubr.bf16.gmra.mrb[184].mxu1 %v13161_v12  ;;  %v13189_v12 = vld [vmem:[%s17164_s3 + $0x188] ss:$16 sps:$4 sm:$0xff]  }
 0xc1c   :  { %6155 = vmatprep.mubr.bf16.mxu1 %v13162_v34  ;;  %v13190_v34 = vld [vmem:[%s17164_s3 + $0x1ac] ss:$16 sps:$4 sm:$0xff]  }
 0xc23   :  { %6156 = vmatmul.mubr.bf16.gmra.mrb[188].mxu1 %v13163_v35  ;;  %v13191_v35 = vld [vmem:[%s17164_s3 + $0x1a8] ss:$16 sps:$4 sm:$0xff]  }
 0xc24   :  { %6196 = vmatprep.mubr.bf16.mxu1 %v13164_v14  ;;  %v13192_v14 = vld [vmem:[%s17164_s3 + $0x1cc] ss:$16 sps:$4 sm:$0xff]  }
 0xc2b   :  { %6197 = vmatmul.mubr.bf16.vlgmr.msra.gmra.mrb[64].mxu1 %v13165_v33  ;;  %v13193_v33 = vld [vmem:[%s17164_s3 + $0x1c8] ss:$16 sps:$4 sm:$0xff]  }
 0xc2c   :  { %6204 = vmatprep.mubr.bf16.mxu1 %v13166_v1  ;;  %v13194_v1 = vld [vmem:[%s17164_s3 + $0x1ec] ss:$16 sps:$4 sm:$0xff]  }
 0xc33   :  { %6205 = vmatmul.mubr.bf16.gmra.mrb[68].mxu1 %v13167_v8  ;;  %v13195_v8 = vld [vmem:[%s17164_s3 + $0x1e8] ss:$16 sps:$4 sm:$0xff]  }
 0xc34   :  { %6212 = vmatprep.mubr.bf16.mxu1 %v13168_v58  ;;  %v13196_v58 = vld [vmem:[%s17164_s3 + $0x20c] ss:$16 sps:$4 sm:$0xff]  }
 0xc3b   :  { %6213 = vmatmul.mubr.bf16.gmra.mrb[72].mxu1 %v13169_v43  ;;  %v13197_v43 = vld [vmem:[%s17164_s3 + $0x208] ss:$16 sps:$4 sm:$0xff]  }
 0xc3c   :  { %6220 = vmatprep.mubr.bf16.mxu1 %v13170_v26  ;;  %v13198_v26 = vld [vmem:[%s17164_s3 + $0x22c] ss:$16 sps:$4 sm:$0xff]  }
 0xc43   :  { %6221 = vmatmul.mubr.bf16.gmra.mrb[76].mxu1 %v13171_v61  ;;  %v13199_v61 = vld [vmem:[%s17164_s3 + $0x228] ss:$16 sps:$4 sm:$0xff]  }
 0xc44   :  { %6228 = vmatprep.mubr.bf16.mxu1 %v13172_v56  ;;  %v13200_v56 = vld [vmem:[%s17164_s3 + $0x24c] ss:$16 sps:$4 sm:$0xff]  }
 0xc4b   :  { %6229 = vmatmul.mubr.bf16.gmra.mrb[80].mxu1 %v13173_v15  ;;  %v13201_v15 = vld [vmem:[%s17164_s3 + $0x248] ss:$16 sps:$4 sm:$0xff]  }
 0xc4c   :  { %6236 = vmatprep.mubr.bf16.mxu1 %v13174_v62  ;;  %v13202_v62 = vld [vmem:[%s17164_s3 + $0x26c] ss:$16 sps:$4 sm:$0xff]  }
 0xc53   :  { %6237 = vmatmul.mubr.bf16.gmra.mrb[84].mxu1 %v13175_v28  ;;  %v13203_v28 = vld [vmem:[%s17164_s3 + $0x268] ss:$16 sps:$4 sm:$0xff]  }
 0xc54   :  { %6244 = vmatprep.mubr.bf16.mxu1 %v13176_v10  ;;  %v13204_v10 = vld [vmem:[%s17164_s3 + $0x28c] ss:$16 sps:$4 sm:$0xff]  }
 0xc5b   :  { %6245 = vmatmul.mubr.bf16.gmra.mrb[88].mxu1 %v13177_v59  ;;  %v13205_v59 = vld [vmem:[%s17164_s3 + $0x288] ss:$16 sps:$4 sm:$0xff]  }
 0xc5c   :  { %6252 = vmatprep.mubr.bf16.mxu1 %v13178_v18  ;;  %v13206_v18 = vld [vmem:[%s17164_s3 + $0x2ac] ss:$16 sps:$4 sm:$0xff]  }
 0xc63   :  { %6253 = vmatmul.mubr.bf16.gmra.mrb[92].mxu1 %v13179_v55  ;;  %v13207_v55 = vld [vmem:[%s17164_s3 + $0x2a8] ss:$16 sps:$4 sm:$0xff]  }
 0xc64   :  { %6260 = vmatprep.mubr.bf16.mxu1 %v13180_v27  ;;  %v13208_v27 = vld [vmem:[%s17164_s3 + $0x2cc] ss:$16 sps:$4 sm:$0xff]  }
 0xc6b   :  { %6261 = vmatmul.mubr.bf16.gmra.mrb[96].mxu1 %v13181_v21  ;;  %v13209_v21 = vld [vmem:[%s17164_s3 + $0x2c8] ss:$16 sps:$4 sm:$0xff]  }
 0xc6c   :  { %6268 = vmatprep.mubr.bf16.mxu1 %v13182_v13  ;;  %v13212_v13 = vld [vmem:[%s17164_s3 + $0x30c] ss:$16 sps:$4 sm:$0xff]  }
 0xc73   :  { %6269 = vmatmul.mubr.bf16.gmra.mrb[100].mxu1 %v13183_v48  ;;  %v13213_v48 = vld [vmem:[%s17164_s3 + $0x308] ss:$16 sps:$4 sm:$0xff]  }
 0xc74   :  { %6276 = vmatprep.mubr.bf16.mxu1 %v13184_v63  ;;  %v13216_v63 = vld [vmem:[%s17164_s3 + $0x34c] ss:$16 sps:$4 sm:$0xff]  }
 0xc7b   :  { %6277 = vmatmul.mubr.bf16.gmra.mrb[104].mxu1 %v13185_v29  ;;  %v13217_v29 = vld [vmem:[%s17164_s3 + $0x348] ss:$16 sps:$4 sm:$0xff]  }
 0xc7c   :  { %6284 = vmatprep.mubr.bf16.mxu1 %v13186_v37 }
 0xc83   :  { %6285 = vmatmul.mubr.bf16.gmra.mrb[108].mxu1 %v13187_v49 }
 0xc84   :  { %6292 = vmatprep.mubr.bf16.mxu1 %v13188_v39 }
 0xc8b   :  { %6293 = vmatmul.mubr.bf16.gmra.mrb[112].mxu1 %v13189_v12  ;;  %v13219_v12 = vld [vmem:[%s17164_s3 + $0x368] ss:$16 sps:$4 sm:$0xff]  }
 0xc8c   :  { %6300 = vmatprep.mubr.bf16.mxu1 %v13190_v34 }
 0xc93   :  { %6301 = vmatmul.mubr.bf16.gmra.mrb[116].mxu1 %v13191_v35  ;;  %v13220_v35 = vld [vmem:[%s17164_s3 + $0x38c] ss:$16 sps:$4 sm:$0xff]  }
 0xc94   :  { %6308 = vmatprep.mubr.bf16.mxu1 %v13192_v14 }
 0xc9b   :  { %6309 = vmatmul.mubr.bf16.gmra.mrb[120].mxu1 %v13193_v33 }
 0xc9c   :  { %6316 = vmatprep.mubr.bf16.mxu1 %v13194_v1 }
 0xca3   :  { %6317 = vmatmul.mubr.bf16.gmra.mrb[124].mxu1 %v13195_v8 }
 0xca4   :  { %6324 = vmatprep.mubr.bf16.mxu1 %v13196_v58 }
 0xcab   :  { %6325 = vmatmul.mubr.bf16.gmra.mrb[128].mxu1 %v13197_v43 }
 0xcac   :  { %6332 = vmatprep.mubr.bf16.mxu1 %v13198_v26 }
 0xcb3   :  { %6333 = vmatmul.mubr.bf16.gmra.mrb[132].mxu1 %v13199_v61  ;;  %v13221_v61 = vld [vmem:[%s17164_s3 + $0x388] ss:$16 sps:$4 sm:$0xff]  }
 0xcb4   :  { %6340 = vmatprep.mubr.bf16.mxu1 %v13200_v56  ;;  %v13222_v56 = vld [vmem:[%s17164_s3 + $0x3ac] ss:$16 sps:$4 sm:$0xff]  }
 0xcbb   :  { %6341 = vmatmul.mubr.bf16.gmra.mrb[136].mxu1 %v13201_v15 }
 0xcbc   :  { %6348 = vmatprep.mubr.bf16.mxu1 %v13202_v62 }
 0xcc3   :  { %6349 = vmatmul.mubr.bf16.gmra.mrb[140].mxu1 %v13203_v28 }
 0xcc4   :  { %6356 = vmatprep.mubr.bf16.mxu1 %v13204_v10 }
 0xccb   :  { %6357 = vmatmul.mubr.bf16.gmra.mrb[144].mxu1 %v13205_v59 }
 0xccc   :  { %6364 = vmatprep.mubr.bf16.mxu1 %v13206_v18 }
 0xcd3   :  { %6365 = vmatmul.mubr.bf16.gmra.mrb[148].mxu1 %v13207_v55  ;;  %v13223_v55 = vld [vmem:[%s17164_s3 + $0x3a8] ss:$16 sps:$4 sm:$0xff]  }
 0xcd4   :  { %6372 = vmatprep.mubr.bf16.mxu1 %v13208_v27 }
 0xcdb   :  { %6373 = vmatmul.mubr.bf16.gmra.mrb[152].mxu1 %v13209_v21  ;;  %v13224_v21 = vld [vmem:[%s17164_s3 + $0x3cc] ss:$16 sps:$4 sm:$0xff]  }
 0xcdc   :  { %6380 = vmatprep.mubr.bf16.mxu1 %v13210_v23 }
 0xce3   :  { %6381 = vmatmul.mubr.bf16.gmra.mrb[156].mxu1 %v13211_v36 }
 0xce4   :  { %6388 = vmatprep.mubr.bf16.mxu1 %v13212_v13 }
 0xceb   :  { %6389 = vmatmul.mubr.bf16.gmra.mrb[160].mxu1 %v13213_v48 }
 0xcec   :  { %6396 = vmatprep.mubr.bf16.mxu1 %v13214_v4 }
 0xcf3   :  { %6397 = vmatmul.mubr.bf16.gmra.mrb[164].mxu1 %v13215_v46 }
 0xcf4   :  { %6404 = vmatprep.mubr.bf16.mxu1 %v13216_v63 }
 0xcfb   :  { %6405 = vmatmul.mubr.bf16.gmra.mrb[168].mxu1 %v13217_v29  ;;  %v13225_v29 = vld [vmem:[%s17164_s3 + $0x3c8] ss:$16 sps:$4 sm:$0xff]  }
 0xcfc   :  { %6412 = vmatprep.mubr.bf16.mxu1 %v13218_v11  ;;  %v13226_v11 = vld [vmem:[%s17164_s3 + $0x3ec] ss:$16 sps:$4 sm:$0xff]  }
 0xcfe   :  { %v6198_v37 = vpop.f32.mrb[64].mxu1 }
 0xcff   :  { %v6200_v19 = vpop.f32.mrb[65].mxu1  ;;  %v6453_v7 = vmul.f32 %v6198_v37, %v14982_v42 }
 0xd00   :  { %v6201_v49 = vpop.f32.mrb[66].mxu1 }
 0xd01   :  { %v6454_v39 = vmul.f32 %v6201_v49, %v14987_v20  ;;  %v6203_v50 = vpop.f32.mrb[67].mxu1 }
 0xd03   :  { %6413 = vmatmul.mubr.bf16.gmra.mrb[172].mxu1 %v13219_v12  ;;  %v6517_v34 = vpack.c.bf16 %v6454_v39, %v6453_v7  ;;  %v13227_v12 = vld [vmem:[%s17164_s3 + $0x3e8] ss:$16 sps:$4 sm:$0xff]  }
 0xd04   :  { %6420 = vmatprep.mubr.bf16.mxu1 %v13220_v35  ;;  %v13228_v35 = vld [vmem:[#allocation8 + $0xc] ss:$16 sps:$4 sm:$0xff]  }
 0xd05   :  { %11823 = vmatprep.mubr.bf16.mxu0 %v6517_v34 }
 0xd06   :  { %v6206_v14 = vpop.f32.mrb[68].mxu1 }
 0xd07   :  { %v6208_v33 = vpop.f32.mrb[69].mxu1  ;;  %v6455_v8 = vmul.f32 %v6206_v14, %v14994_v38 }
 0xd08   :  { %v6209_v1 = vpop.f32.mrb[70].mxu1 }
 0xd09   :  { %v6456_v58 = vmul.f32 %v6209_v1, %v14999_v53  ;;  %v6211_v43 = vpop.f32.mrb[71].mxu1 }
 0xd0b   :  { %v6518_v26 = vpack.c.bf16 %v6456_v58, %v6455_v8  ;;  %6421 = vmatmul.mubr.bf16.gmra.mrb[176].mxu1 %v13221_v61 }
 0xd0c   :  { %6428 = vmatprep.mubr.bf16.mxu1 %v13222_v56 }
 0xd0d   :  { %11824 = vmatmul.mubr.bf16.vlgmr.msra.gmra.mrb[64].mxu0 %v6518_v26 }
 0xd0e   :  { %v6214_v15 = vpop.f32.mrb[72].mxu1 }
 0xd0f   :  { %v6216_v62 = vpop.f32.mrb[73].mxu1  ;;  %v6457_v10 = vmul.f32 %v6214_v15, %v15006_v24 }
 0xd10   :  { %v6217_v28 = vpop.f32.mrb[74].mxu1 }
 0xd11   :  { %v6458_v59 = vmul.f32 %v6217_v28, %v15011_v47  ;;  %v6219_v18 = vpop.f32.mrb[75].mxu1 }
 0xd13   :  { %6429 = vmatmul.mubr.bf16.gmra.mrb[180].mxu1 %v13223_v55  ;;  %v6519_v27 = vpack.c.bf16 %v6458_v59, %v6457_v10 }
 0xd14   :  { %6436 = vmatprep.mubr.bf16.mxu1 %v13224_v21 }
 0xd15   :  { %11827 = vmatprep.mubr.bf16.mxu0 %v6519_v27 }
 0xd16   :  { %v6222_v23 = vpop.f32.mrb[76].mxu1 }
 0xd17   :  { %v6224_v36 = vpop.f32.mrb[77].mxu1  ;;  %v6459_v48 = vmul.f32 %v6222_v23, %v15018_v44 }
 0xd18   :  { %v6225_v13 = vpop.f32.mrb[78].mxu1 }
 0xd19   :  { %v6460_v4 = vmul.f32 %v6225_v13, %v15023_v45  ;;  %v6227_v46 = vpop.f32.mrb[79].mxu1 }
 0xd1b   :  { %v6520_v63 = vpack.c.bf16 %v6460_v4, %v6459_v48  ;;  %6437 = vmatmul.mubr.bf16.gmra.mrb[184].mxu1 %v13225_v29 }
 0xd1c   :  { %6444 = vmatprep.mubr.bf16.mxu1 %v13226_v11 }
 0xd1d   :  { %11828 = vmatmul.mubr.bf16.gmra.mrb[68].mxu0 %v6520_v63 }
 0xd1e   :  { %v6230_v37 = vpop.f32.mrb[80].mxu1 }
 0xd1f   :  { %v6232_v19 = vpop.f32.mrb[81].mxu1  ;;  %v6461_v7 = vmul.f32 %v6230_v37, %v15030_v51 }
 0xd20   :  { %v6233_v49 = vpop.f32.mrb[82].mxu1 }
 0xd21   :  { %v6462_v39 = vmul.f32 %v6233_v49, %v15035_v54  ;;  %v6235_v50 = vpop.f32.mrb[83].mxu1 }
 0xd23   :  { %6445 = vmatmul.mubr.bf16.gmra.mrb[188].mxu1 %v13227_v12  ;;  %v6521_v34 = vpack.c.bf16 %v6462_v39, %v6461_v7 }
 0xd24   :  { %7786 = vmatprep.mubr.bf16.mxu1 %v13228_v35 }
 0xd25   :  { %11831 = vmatprep.mubr.bf16.mxu0 %v6521_v34 }
 0xd26   :  { %v6238_v14 = vpop.f32.mrb[84].mxu1 }
 0xd27   :  { %v6240_v33 = vpop.f32.mrb[85].mxu1  ;;  %v6463_v8 = vmul.f32 %v6238_v14, %v15039_v2 }
 0xd28   :  { %v6241_v1 = vpop.f32.mrb[86].mxu1 }
 0xd29   :  { %v6464_v58 = vmul.f32 %v6241_v1, %v15041_v6  ;;  %v6243_v43 = vpop.f32.mrb[87].mxu1 }
 0xd2b   :  { %v6522_v26 = vpack.c.bf16 %v6464_v58, %v6463_v8 }
 0xd2d   :  { %11832 = vmatmul.mubr.bf16.gmra.mrb[72].mxu0 %v6522_v26 }
 0xd2e   :  { %v6246_v61 = vpop.f32.mrb[88].mxu1 }
 0xd2f   :  { %v6248_v56 = vpop.f32.mrb[89].mxu1  ;;  %v6465_v62 = vmul.f32 %v6246_v61, %v15045_v16 }
 0xd30   :  { %v6249_v15 = vpop.f32.mrb[90].mxu1 }
 0xd31   :  { %v6466_v28 = vmul.f32 %v6249_v15, %v15047_v22  ;;  %v6251_v10 = vpop.f32.mrb[91].mxu1 }
 0xd33   :  { %v6523_v59 = vpack.c.bf16 %v6466_v28, %v6465_v62 }
 0xd35   :  { %11835 = vmatprep.mubr.bf16.mxu0 %v6523_v59 }
 0xd36   :  { %v6254_v18 = vpop.f32.mrb[92].mxu1 }
 0xd37   :  { %v6256_v55 = vpop.f32.mrb[93].mxu1  ;;  %v6467_v21 = vmul.f32 %v6254_v18, %v15051_v52 }
 0xd38   :  { %v6257_v27 = vpop.f32.mrb[94].mxu1 }
 0xd39   :  { %v6468_v23 = vmul.f32 %v6257_v27, %v15053_v57  ;;  %v6259_v36 = vpop.f32.mrb[95].mxu1 }
 0xd3b   :  { %v6524_v13 = vpack.c.bf16 %v6468_v23, %v6467_v21 }
 0xd3d   :  { %11836 = vmatmul.mubr.bf16.gmra.mrb[76].mxu0 %v6524_v13  ;;  %v12976_v13 = vld [vmem:[#allocation12 + $0x40] sm:$0xff]  }
 0xd3e   :  { %v6262_v48 = vpop.f32.mrb[96].mxu1  ;;  %11887 = vmatprep.subr.bf16.mxu0 %v12976_v13 }
 0xd3f   :  { %v6264_v4 = vpop.f32.mrb[97].mxu1  ;;  %v6469_v63 = vmul.f32 %v6262_v48, %v15057_v30  ;;  %11888 = vmatpush3.bf16.msra.mxu0 %v12976_v13 }
 0xd40   :  { %v6265_v46 = vpop.f32.mrb[98].mxu1 }
 0xd41   :  { %v6470_v29 = vmul.f32 %v6265_v46, %v15059_v31  ;;  %v6267_v11 = vpop.f32.mrb[99].mxu1  ;;  %v12977_v46 = vld [vmem:[#allocation12 + $0x48] sm:$0xff]  }
 0xd42   :  { %v17292_v11 = vld [vmem:[#allocation21_spill] sm:$0xff]  ;;  %11889 = vmatprep.subr.bf16.mxu0 %v12977_v46 }
 0xd43   :  { %v6525_v37 = vpack.c.bf16 %v6470_v29, %v6469_v63  ;;  %11890 = vmatpush3.bf16.msra.mxu0 %v12977_v46  ;;  %v17298_v46 = vld [vmem:[#allocation27_spill] sm:$0xff] }
 0xd45   :  { %11839 = vmatprep.mubr.bf16.mxu0 %v6525_v37 }
 0xd46   :  { %v6270_v19 = vpop.f32.mrb[100].mxu1 }
 0xd47   :  { %v6272_v49 = vpop.f32.mrb[101].mxu1  ;;  %v6471_v39 = vmul.f32 %v6270_v19, %v15063_v25 }
 0xd48   :  { %v6273_v7 = vpop.f32.mrb[102].mxu1 }
 0xd49   :  { %v6472_v50 = vmul.f32 %v6273_v7, %v15065_v60  ;;  %v6275_v12 = vpop.f32.mrb[103].mxu1  ;;  %v12978_v7 = vld [vmem:[#allocation12 + $0x50] sm:$0xff]  }
 0xd4a   :  { %11891 = vmatprep.subr.bf16.mxu0 %v12978_v7  ;;  %v12979_v12 = vld [vmem:[#allocation12 + $0x58] sm:$0xff]  }
 0xd4b   :  { %v6526_v34 = vpack.c.bf16 %v6472_v50, %v6471_v39  ;;  %11892 = vmatpush3.bf16.msra.mxu0 %v12978_v7 }
 0xd4c   :  { %11893 = vmatprep.subr.bf16.mxu0 %v12979_v12 }
 0xd4d   :  { %11840 = vmatmul.mubr.bf16.gmra.mrb[80].mxu0 %v6526_v34 }
 0xd4e   :  { %v6278_v35 = vpop.f32.mrb[104].mxu1 }
 0xd4f   :  { %v6280_v14 = vpop.f32.mrb[105].mxu1  ;;  %v6473_v1 = vmul.f32 %v6278_v35, %v15069_v5  ;;  %v17293_v35 = vld [vmem:[#allocation22_spill] sm:$0xff]  ;;  %11894 = vmatpush3.bf16.msra.mxu0 %v12979_v12  ;;  %v17300_v12 = vld [vmem:[#allocation29_spill] sm:$0xff] }
 0xd50   :  { %v6281_v33 = vpop.f32.mrb[106].mxu1 }
 0xd51   :  { %v6474_v8 = vmul.f32 %v6281_v33, %v15071_v3  ;;  %v6283_v58 = vpop.f32.mrb[107].mxu1  ;;  %v17294_v33 = vld [vmem:[#allocation23_spill] sm:$0xff] }
 0xd53   :  { %v6527_v43 = vpack.c.bf16 %v6474_v8, %v6473_v1 }
 0xd55   :  { %11843 = vmatprep.mubr.bf16.mxu0 %v6527_v43  ;;  %v12980_v43 = vld [vmem:[#allocation12 + $0x60] sm:$0xff]  }
 0xd56   :  { %v6286_v26 = vpop.f32.mrb[108].mxu1  ;;  %11895 = vmatprep.subr.bf16.mxu0 %v12980_v43 }
 0xd57   :  { %v6288_v61 = vpop.f32.mrb[109].mxu1  ;;  %v6475_v15 = vmul.f32 %v6286_v26, %v15075_v17  ;;  %11896 = vmatpush3.bf16.msra.mxu0 %v12980_v43 }
 0xd58   :  { %v6289_v56 = vpop.f32.mrb[110].mxu1 }
 0xd59   :  { %v6476_v62 = vmul.f32 %v6289_v56, %v15077_v9  ;;  %v6291_v28 = vpop.f32.mrb[111].mxu1  ;;  %v12981_v56 = vld [vmem:[#allocation12 + $0x68] sm:$0xff]  }
 0xd5a   :  { %11897 = vmatprep.subr.bf16.mxu0 %v12981_v56 }
 0xd5b   :  { %v6528_v10 = vpack.c.bf16 %v6476_v62, %v6475_v15  ;;  %v17295_v62 = vld [vmem:[#allocation24_spill] sm:$0xff]  ;;  %11898 = vmatpush3.bf16.msra.mxu0 %v12981_v56  ;;  %v17302_v56 = vld [vmem:[#allocation31_spill] sm:$0xff] }
 0xd5d   :  { %11844 = vmatmul.mubr.bf16.gmra.mrb[84].mxu0 %v6528_v10  ;;  %v17296_v10 = vld [vmem:[#allocation25_spill] sm:$0xff] }
 0xd5e   :  { %v6294_v59 = vpop.f32.mrb[112].mxu1 }
 0xd5f   :  { %v6296_v18 = vpop.f32.mrb[113].mxu1  ;;  %v6477_v27 = vmul.f32 %v6294_v59, %v15081_v32 }
 0xd60   :  { %v6297_v55 = vpop.f32.mrb[114].mxu1 }
 0xd61   :  { %v6478_v21 = vmul.f32 %v6297_v55, %v15083_v41  ;;  %v6299_v23 = vpop.f32.mrb[115].mxu1 }
 0xd63   :  { %v6529_v36 = vpack.c.bf16 %v6478_v21, %v6477_v27  ;;  %v12982_v27 = vld [vmem:[#allocation12 + $0x70] sm:$0xff]  }
 0xd64   :  { %11899 = vmatprep.subr.bf16.mxu0 %v12982_v27 }
 0xd65   :  { %11847 = vmatprep.mubr.bf16.mxu0 %v6529_v36  ;;  %11900 = vmatpush3.bf16.msra.mxu0 %v12982_v27  ;;  %v12983_v36 = vld [vmem:[#allocation12 + $0x78] sm:$0xff]  }
 0xd66   :  { %v6302_v48 = vpop.f32.mrb[116].mxu1  ;;  %11901 = vmatprep.subr.bf16.mxu0 %v12983_v36 }
 0xd67   :  { %v6304_v4 = vpop.f32.mrb[117].mxu1  ;;  %v6479_v29 = vmul.f32 %v6302_v48, %v15087_v40  ;;  %v17297_v48 = vld [vmem:[#allocation26_spill] sm:$0xff] }
 0xd68   :  { %v6305_v63 = vpop.f32.mrb[118].mxu1 }
 0xd69   :  { %v6480_v37 = vmul.f32 %v6305_v63, %v17292_v11  ;;  %v6307_v19 = vpop.f32.mrb[119].mxu1  ;;  %11902 = vmatpush3.bf16.msra.mxu0 %v12983_v36  ;;  %v17304_v36 = vld [vmem:[#allocation33_spill] sm:$0xff] }
 0xd6b   :  { %v6530_v49 = vpack.c.bf16 %v6480_v37, %v6479_v29 }
 0xd6d   :  { %11848 = vmatmul.mubr.bf16.gmra.mrb[88].mxu0 %v6530_v49 }
 0xd6e   :  { %v6310_v39 = vpop.f32.mrb[120].mxu1 }
 0xd6f   :  { %v6312_v50 = vpop.f32.mrb[121].mxu1  ;;  %v6481_v14 = vmul.f32 %v6310_v39, %v17293_v35  ;;  %v17299_v39 = vld [vmem:[#allocation28_spill] sm:$0xff] }
 0xd70   :  { %v6313_v34 = vpop.f32.mrb[122].mxu1 }
 0xd71   :  { %v6482_v1 = vmul.f32 %v6313_v34, %v17294_v33  ;;  %v6315_v8 = vpop.f32.mrb[123].mxu1 }
 0xd73   :  { %v6531_v58 = vpack.c.bf16 %v6482_v1, %v6481_v14 }
 0xd75   :  { %11851 = vmatprep.mubr.bf16.mxu0 %v6531_v58 }
 0xd76   :  { %v6318_v26 = vpop.f32.mrb[124].mxu1 }
 0xd77   :  { %v6320_v61 = vpop.f32.mrb[125].mxu1  ;;  %v6483_v28 = vmul.f32 %v6318_v26, %v17295_v62  ;;  %v17301_v26 = vld [vmem:[#allocation30_spill] sm:$0xff] }
 0xd78   :  { %v6321_v15 = vpop.f32.mrb[126].mxu1 }
 0xd79   :  { %v6484_v59 = vmul.f32 %v6321_v15, %v17296_v10  ;;  %v6323_v18 = vpop.f32.mrb[127].mxu1 }
 0xd7b   :  { %v6532_v55 = vpack.c.bf16 %v6484_v59, %v6483_v28 }
 0xd7d   :  { %11852 = vmatmul.mubr.bf16.gmra.mrb[92].mxu0 %v6532_v55 }
 0xd7e   :  { %v6326_v21 = vpop.f32.mrb[128].mxu1 }
 0xd7f   :  { %v6328_v23 = vpop.f32.mrb[129].mxu1  ;;  %v6485_v4 = vmul.f32 %v6326_v21, %v17297_v48  ;;  %v17303_v21 = vld [vmem:[#allocation32_spill] sm:$0xff] }
 0xd80   :  { %v6329_v13 = vpop.f32.mrb[130].mxu1 }
 0xd81   :  { %v6486_v63 = vmul.f32 %v6329_v13, %v17298_v46  ;;  %v6331_v29 = vpop.f32.mrb[131].mxu1 }
 0xd83   :  { %v6533_v37 = vpack.c.bf16 %v6486_v63, %v6485_v4 }
 0xd85   :  { %11855 = vmatprep.mubr.bf16.mxu0 %v6533_v37 }
 0xd86   :  { %v6334_v19 = vpop.f32.mrb[132].mxu1 }
 0xd87   :  { %v6336_v49 = vpop.f32.mrb[133].mxu1  ;;  %v6487_v50 = vmul.f32 %v6334_v19, %v17299_v39 }
 0xd88   :  { %v6337_v7 = vpop.f32.mrb[134].mxu1  ;;  %v17305_v49 = vld [vmem:[#allocation34_spill] sm:$0xff] }
 0xd89   :  { %v6488_v34 = vmul.f32 %v6337_v7, %v17300_v12  ;;  %v6339_v14 = vpop.f32.mrb[135].mxu1 }
 0xd8b   :  { %v6534_v1 = vpack.c.bf16 %v6488_v34, %v6487_v50  ;;  %v17306_v50 = vld [vmem:[#allocation35_spill] sm:$0xff] }
 0xd8d   :  { %11856 = vmatmul.mubr.bf16.gmra.mrb[96].mxu0 %v6534_v1 }
 0xd8e   :  { %v6342_v8 = vpop.f32.mrb[136].mxu1 }
 0xd8f   :  { %v6344_v58 = vpop.f32.mrb[137].mxu1  ;;  %v6489_v61 = vmul.f32 %v6342_v8, %v17301_v26 }
 0xd90   :  { %v6345_v43 = vpop.f32.mrb[138].mxu1 }
 0xd91   :  { %v6490_v15 = vmul.f32 %v6345_v43, %v17302_v56  ;;  %v6347_v28 = vpop.f32.mrb[139].mxu1 }
 0xd92   :  { %v17308_v28 = vld [vmem:[#allocation37_spill] sm:$0xff] }
 0xd93   :  { %v6535_v59 = vpack.c.bf16 %v6490_v15, %v6489_v61  ;;  %v17307_v61 = vld [vmem:[#allocation36_spill] sm:$0xff] }
 0xd95   :  { %11859 = vmatprep.mubr.bf16.mxu0 %v6535_v59 }
 0xd96   :  { %v6350_v18 = vpop.f32.mrb[140].mxu1 }
 0xd97   :  { %v6352_v55 = vpop.f32.mrb[141].mxu1  ;;  %v6491_v23 = vmul.f32 %v6350_v18, %v17303_v21 }
 0xd98   :  { %v6353_v27 = vpop.f32.mrb[142].mxu1 }
 0xd99   :  { %v6492_v13 = vmul.f32 %v6353_v27, %v17304_v36  ;;  %v6355_v4 = vpop.f32.mrb[143].mxu1 }
 0xd9a   :  { %v17309_v4 = vld [vmem:[#allocation38_spill] sm:$0xff] }
 0xd9b   :  { %v6536_v63 = vpack.c.bf16 %v6492_v13, %v6491_v23 }
 0xd9d   :  { %11860 = vmatmul.mubr.bf16.gmra.mrb[100].mxu0 %v6536_v63 }
 0xd9e   :  { %v6358_v29 = vpop.f32.mrb[144].mxu1 }
 0xd9f   :  { %v6360_v37 = vpop.f32.mrb[145].mxu1  ;;  %v6493_v7 = vmul.f32 %v6358_v29, %v17305_v49  ;;  %v17310_v29 = vld [vmem:[#allocation39_spill] sm:$0xff] }
 0xda0   :  { %v6361_v19 = vpop.f32.mrb[146].mxu1 }
 0xda1   :  { %v6494_v34 = vmul.f32 %v6361_v19, %v17306_v50  ;;  %v6363_v14 = vpop.f32.mrb[147].mxu1  ;;  %v17324_v50 = vld [vmem:[#allocation53_spill] sm:$0xff] }
 0xda3   :  { %v6537_v1 = vpack.c.bf16 %v6494_v34, %v6493_v7 }
 0xda5   :  { %11863 = vmatprep.mubr.bf16.mxu0 %v6537_v1 }
 0xda6   :  { %v6366_v8 = vpop.f32.mrb[148].mxu1 }
 0xda7   :  { %v6368_v58 = vpop.f32.mrb[149].mxu1  ;;  %v6495_v15 = vmul.f32 %v6366_v8, %v17307_v61  ;;  %v17312_v61 = vld [vmem:[#allocation41_spill] sm:$0xff] }
 0xda8   :  { %v6369_v43 = vpop.f32.mrb[150].mxu1  ;;  %v17311_v58 = vld [vmem:[#allocation40_spill] sm:$0xff] }
 0xda9   :  { %v6496_v59 = vmul.f32 %v6369_v43, %v17308_v28  ;;  %v6371_v18 = vpop.f32.mrb[151].mxu1  ;;  %v17313_v28 = vld [vmem:[#allocation42_spill] sm:$0xff] }
 0xdab   :  { %v6538_v55 = vpack.c.bf16 %v6496_v59, %v6495_v15 }
 0xdad   :  { %11864 = vmatmul.mubr.bf16.gmra.mrb[104].mxu0 %v6538_v55 }
 0xdae   :  { %v6374_v27 = vpop.f32.mrb[152].mxu1 }
 0xdaf   :  { %v6376_v23 = vpop.f32.mrb[153].mxu1  ;;  %v6497_v63 = vmul.f32 %v6374_v27, %v17309_v4  ;;  %v17314_v4 = vld [vmem:[#allocation43_spill] sm:$0xff] }
 0xdb0   :  { %v6377_v13 = vpop.f32.mrb[154].mxu1 }
 0xdb1   :  { %v6498_v37 = vmul.f32 %v6377_v13, %v17310_v29  ;;  %v6379_v19 = vpop.f32.mrb[155].mxu1  ;;  %v17315_v29 = vld [vmem:[#allocation44_spill] sm:$0xff] }
 0xdb3   :  { %v6539_v7 = vpack.c.bf16 %v6498_v37, %v6497_v63 }
 0xdb5   :  { %11867 = vmatprep.mubr.bf16.mxu0 %v6539_v7 }
 0xdb6   :  { %v6382_v34 = vpop.f32.mrb[156].mxu1 }
 0xdb7   :  { %v6384_v14 = vpop.f32.mrb[157].mxu1  ;;  %v6499_v8 = vmul.f32 %v6382_v34, %v17311_v58  ;;  %v17316_v58 = vld [vmem:[#allocation45_spill] sm:$0xff] }
 0xdb8   :  { %v6385_v1 = vpop.f32.mrb[158].mxu1 }
 0xdb9   :  { %v6500_v43 = vmul.f32 %v6385_v1, %v17312_v61  ;;  %v6387_v18 = vpop.f32.mrb[159].mxu1  ;;  %v17317_v61 = vld [vmem:[#allocation46_spill] sm:$0xff] }
 0xdbb   :  { %v6540_v15 = vpack.c.bf16 %v6500_v43, %v6499_v8 }
 0xdbd   :  { %11868 = vmatmul.mubr.bf16.gmra.mrb[108].mxu0 %v6540_v15 }
 0xdbe   :  { %v6390_v59 = vpop.f32.mrb[160].mxu1 }
 0xdbf   :  { %v6392_v55 = vpop.f32.mrb[161].mxu1  ;;  %v6501_v27 = vmul.f32 %v6390_v59, %v17313_v28  ;;  %v17318_v28 = vld [vmem:[#allocation47_spill] sm:$0xff] }
 0xdc0   :  { %v6393_v23 = vpop.f32.mrb[162].mxu1 }
 0xdc1   :  { %v6502_v13 = vmul.f32 %v6393_v23, %v17314_v4  ;;  %v6395_v19 = vpop.f32.mrb[163].mxu1  ;;  %v17319_v4 = vld [vmem:[#allocation48_spill] sm:$0xff] }
 0xdc3   :  { %v6541_v63 = vpack.c.bf16 %v6502_v13, %v6501_v27 }
 0xdc5   :  { %11871 = vmatprep.mubr.bf16.mxu0 %v6541_v63 }
 0xdc6   :  { %v6398_v37 = vpop.f32.mrb[164].mxu1 }
 0xdc7   :  { %v6400_v7 = vpop.f32.mrb[165].mxu1  ;;  %v6503_v34 = vmul.f32 %v6398_v37, %v17315_v29  ;;  %v17320_v29 = vld [vmem:[#allocation49_spill] sm:$0xff] }
 0xdc8   :  { %v6401_v14 = vpop.f32.mrb[166].mxu1 }
 0xdc9   :  { %v6504_v1 = vmul.f32 %v6401_v14, %v17316_v58  ;;  %v6403_v18 = vpop.f32.mrb[167].mxu1  ;;  %v17323_v58 = vld [vmem:[#allocation52_spill] sm:$0xff] }
 0xdcb   :  { %v6542_v8 = vpack.c.bf16 %v6504_v1, %v6503_v34 }
 0xdcd   :  { %11872 = vmatmul.mubr.bf16.gmra.mrb[112].mxu0 %v6542_v8  ;;  %v16058_v8 = vld [vmem:[%s17171_s10 + $0x1] ss:$0 sm:$0xff] }
 0xdce   :  { %v6406_v43 = vpop.f32.mrb[168].mxu1 }
 0xdcf   :  { %v6408_v15 = vpop.f32.mrb[169].mxu1  ;;  %v6505_v59 = vmul.f32 %v6406_v43, %v17317_v61 }
 0xdd0   :  { %v6409_v55 = vpop.f32.mrb[170].mxu1 }
 0xdd1   :  { %v6506_v23 = vmul.f32 %v6409_v55, %v17318_v28  ;;  %v6411_v19 = vpop.f32.mrb[171].mxu1 }
 0xdd2   :  { %v17322_v19 = vld [vmem:[#allocation51_spill] sm:$0xff] }
 0xdd3   :  { %v6543_v27 = vpack.c.bf16 %v6506_v23, %v6505_v59  ;;  %v17321_v59 = vld [vmem:[#allocation50_spill] sm:$0xff] }
 0xdd5   :  { %11875 = vmatprep.mubr.bf16.mxu0 %v6543_v27 }
 0xdd6   :  { %v6414_v13 = vpop.f32.mrb[172].mxu1 }
 0xdd7   :  { %v6416_v63 = vpop.f32.mrb[173].mxu1  ;;  %v6507_v37 = vmul.f32 %v6414_v13, %v17319_v4 }
 0xdd8   :  { %v6417_v7 = vpop.f32.mrb[174].mxu1 }
 0xdd9   :  { %v6508_v14 = vmul.f32 %v6417_v7, %v17320_v29  ;;  %v6419_v18 = vpop.f32.mrb[175].mxu1 }
 0xddb   :  { %v6544_v34 = vpack.c.bf16 %v6508_v14, %v6507_v37 }
 0xddd   :  { %11876 = vmatmul.mubr.bf16.gmra.mrb[116].mxu0 %v6544_v34 }
 0xdde   :  { %v6422_v1 = vpop.f32.mrb[176].mxu1 }
 0xddf   :  { %v6424_v43 = vpop.f32.mrb[177].mxu1  ;;  %v6509_v23 = vmul.f32 %v6422_v1, %v17321_v59 }
 0xde0   :  { %v6425_v15 = vpop.f32.mrb[178].mxu1  ;;  %v11825_v55 = vpop.f32.mrb[64].mxu0 }
 0xde1   :  { %v6510_v27 = vmul.f32 %v6425_v15, %v17322_v19  ;;  %v6427_v63 = vpop.f32.mrb[179].mxu1  ;;  %v6656_v13 = vpop.f32.mrb[65].mxu0  ;;  %v6665_v7 = vadd.f32 %v11825_v55, %v16058_v8 }
 0xde2   :  { %v11826_v18 = vpop.f32.mrb[66].mxu0  ;;  %v6657_v37 = vadd.f32 %v16058_v8, %v6656_v13 }
 0xde3   :  { %v6659_v14 = vpop.f32.mrb[67].mxu0  ;;  %v6545_v34 = vpack.c.bf16 %v6510_v27, %v6509_v23  ;;  %v6668_v29 = vadd.f32 %v11826_v18, %v16058_v8  ;;  %v6913_v28 = vmax.f32 %v6665_v7, 0.0 }
 0xde4   :  { %v6911_v4 = vmax.f32 %v6657_v37, 0.0  ;;  %v6660_v43 = vadd.f32 %v16058_v8, %v6659_v14 }
 0xde5   :  { %11879 = vmatprep.mubr.bf16.mxu0 %v6545_v34  ;;  %v6914_v61 = vmax.f32 %v6668_v29, 0.0  ;;  %v17325_v34 = vld [vmem:[#allocation54_spill] sm:$0xff] }
 0xde6   :  { %7007 = vadd.xlane.f32.xlu1 %v6911_v4  ;;  %v6430_v1 = vpop.f32.mrb[180].mxu1  ;;  %v6912_v15 = vmax.f32 %v6660_v43, 0.0 }
 0xde7   :  { %v6432_v63 = vpop.f32.mrb[181].mxu1  ;;  %v6976_v19 = vpack.c.bf16 %v6914_v61, %v6913_v28  ;;  %v6511_v13 = vmul.f32 %v6430_v1, %v17323_v58 }
 0xde8   :  { %7009 = vadd.xlane.f32.xlu0 %v6912_v15  ;;  %v6433_v55 = vpop.f32.mrb[182].mxu1  ;;  %v6975_v59 = vpack.c.bf16 %v6912_v15, %v6911_v4  ;;  %v17326_v63 = vld [vmem:[#allocation55_spill] sm:$0xff] }
 0xde9   :  { %v6512_v23 = vmul.f32 %v6433_v55, %v17324_v50  ;;  %v6435_v27 = vpop.f32.mrb[183].mxu1  ;;  %v17328_v50 = vld [vmem:[#allocation57_spill] sm:$0xff] }
 0xdea   :  { %7011 = vadd.xlane.f32.xlu1 %v6913_v28 }
 0xdeb   :  { %v6546_v18 = vpack.c.bf16 %v6512_v23, %v6511_v13 }
 0xdec   :  { %7013 = vadd.xlane.f32.xlu0 %v6914_v61 }
 0xded   :  { %11880 = vmatmul.mubr.bf16.gmra.mrb[120].mxu0 %v6546_v18 }
 0xdee   :  { %v6438_v37 = vpop.f32.mrb[184].mxu1 }
 0xdef   :  { %v6440_v7 = vpop.f32.mrb[185].mxu1  ;;  %v6513_v43 = vmul.f32 %v6438_v37, %v17325_v34  ;;  %v17327_v34 = vld [vmem:[#allocation56_spill] sm:$0xff] }
 0xdf0   :  { %v6441_v29 = vpop.f32.mrb[186].mxu1  ;;  %v11829_v14 = vpop.f32.mrb[68].mxu0 }
 0xdf1   :  { %v6514_v49 = vmul.f32 %v6441_v29, %v17326_v63  ;;  %v6443_v36 = vpop.f32.mrb[187].mxu1  ;;  %v6672_v21 = vpop.f32.mrb[69].mxu0  ;;  %v6681_v4 = vadd.f32 %v11829_v14, %v16058_v8 }
 0xdf2   :  { %v11830_v1 = vpop.f32.mrb[70].mxu0  ;;  %v6673_v15 = vadd.f32 %v16058_v8, %v6672_v21 }
 0xdf3   :  { %v6675_v55 = vpop.f32.mrb[71].mxu0  ;;  %v6547_v28 = vpack.c.bf16 %v6514_v49, %v6513_v43  ;;  %v6684_v61 = vadd.f32 %v11830_v1, %v16058_v8  ;;  %v6917_v27 = vmax.f32 %v6681_v4, 0.0 }
 0xdf4   :  { %v6915_v13 = vmax.f32 %v6673_v15, 0.0  ;;  %v6676_v23 = vadd.f32 %v16058_v8, %v6675_v55 }
 0xdf5   :  { %11883 = vmatprep.mubr.bf16.mxu0 %v6547_v28  ;;  %v6918_v18 = vmax.f32 %v6684_v61, 0.0 }
 0xdf6   :  { %7015 = vadd.xlane.f32.xlu1 %v6915_v13  ;;  %v6446_v37 = vpop.f32.mrb[188].mxu1  ;;  %v6916_v7 = vmax.f32 %v6676_v23, 0.0 }
 0xdf7   :  { %v6448_v36 = vpop.f32.mrb[189].mxu1  ;;  %v6978_v29 = vpack.c.bf16 %v6918_v18, %v6917_v27  ;;  %v6515_v21 = vmul.f32 %v6446_v37, %v17327_v34 }
 0xdf8   :  { %7017 = vadd.xlane.f32.xlu0 %v6916_v7  ;;  %v6449_v14 = vpop.f32.mrb[190].mxu1  ;;  %v6977_v63 = vpack.c.bf16 %v6916_v7, %v6915_v13 }
 0xdf9   :  { %v6516_v49 = vmul.f32 %v6449_v14, %v17328_v50  ;;  %v6451_v43 = vpop.f32.mrb[191].mxu1 }
 0xdfa   :  { %7019 = vadd.xlane.f32.xlu1 %v6917_v27 }
 0xdfb   :  { %v6548_v1 = vpack.c.bf16 %v6516_v49, %v6515_v21 }
 0xdfc   :  { %7021 = vadd.xlane.f32.xlu0 %v6918_v18 }
 0xdfd   :  { %11884 = vmatmul.mubr.bf16.gmra.mrb[124].mxu0 %v6548_v1 }
 0xdfe   :  { %11903 = vmatprep.mubr.bf16.mxu0 %v6975_v59 }
 0xe00   :  { %v11833_v4 = vpop.f32.mrb[72].mxu0 }
 0xe01   :  { %v6688_v15 = vpop.f32.mrb[73].mxu0  ;;  %v6697_v55 = vadd.f32 %v11833_v4, %v16058_v8 }
 0xe02   :  { %v11834_v28 = vpop.f32.mrb[74].mxu0  ;;  %v6689_v61 = vadd.f32 %v16058_v8, %v6688_v15 }
 0xe03   :  { %v6691_v23 = vpop.f32.mrb[75].mxu0  ;;  %v6700_v13 = vadd.f32 %v11834_v28, %v16058_v8  ;;  %v6921_v36 = vmax.f32 %v6697_v55, 0.0 }
 0xe04   :  { %v6919_v7 = vmax.f32 %v6689_v61, 0.0  ;;  %v6692_v37 = vadd.f32 %v16058_v8, %v6691_v23 }
 0xe05   :  { %11904 = vmatmul.mubr.bf16.vlgmr.msra.gmra.mrb[128].mxu0 %v6976_v19  ;;  %v6922_v27 = vmax.f32 %v6700_v13, 0.0 }
 0xe06   :  { %7023 = vadd.xlane.f32.xlu1 %v6919_v7  ;;  %11907 = vmatprep.mubr.bf16.mxu0 %v6977_v63  ;;  %v6920_v18 = vmax.f32 %v6692_v37, 0.0 }
 0xe07   :  { %v6980_v59 = vpack.c.bf16 %v6922_v27, %v6921_v36 }
 0xe08   :  { %7025 = vadd.xlane.f32.xlu0 %v6920_v18  ;;  %v6979_v14 = vpack.c.bf16 %v6920_v18, %v6919_v7 }
 0xe0a   :  { %7027 = vadd.xlane.f32.xlu1 %v6921_v36 }
 0xe0c   :  { %7029 = vadd.xlane.f32.xlu0 %v6922_v27 }
 0xe0d   :  { %11908 = vmatmul.mubr.bf16.gmra.mrb[132].mxu0 %v6978_v29 }
 0xe0e   :  { %11911 = vmatprep.mubr.bf16.mxu0 %v6979_v14 }
 0xe10   :  { %v11837_v21 = vpop.f32.mrb[76].mxu0 }
 0xe11   :  { %v6704_v49 = vpop.f32.mrb[77].mxu0  ;;  %v6713_v43 = vadd.f32 %v11837_v21, %v16058_v8 }
 0xe12   :  { %v11838_v1 = vpop.f32.mrb[78].mxu0  ;;  %v6705_v4 = vadd.f32 %v16058_v8, %v6704_v49 }
 0xe13   :  { %v6707_v19 = vpop.f32.mrb[79].mxu0  ;;  %v6716_v15 = vadd.f32 %v11838_v1, %v16058_v8  ;;  %v6925_v28 = vmax.f32 %v6713_v43, 0.0 }
 0xe14   :  { %v6923_v55 = vmax.f32 %v6705_v4, 0.0  ;;  %v6708_v63 = vadd.f32 %v16058_v8, %v6707_v19 }
 0xe15   :  { %11912 = vmatmul.mubr.bf16.gmra.mrb[136].mxu0 %v6980_v59  ;;  %v6926_v61 = vmax.f32 %v6716_v15, 0.0 }
 0xe16   :  { %7031 = vadd.xlane.f32.xlu1 %v6923_v55  ;;  %v6924_v23 = vmax.f32 %v6708_v63, 0.0 }
 0xe17   :  { %v6982_v29 = vpack.c.bf16 %v6926_v61, %v6925_v28 }
 0xe18   :  { %7033 = vadd.xlane.f32.xlu0 %v6924_v23  ;;  %v6981_v13 = vpack.c.bf16 %v6924_v23, %v6923_v55 }
 0xe1a   :  { %7035 = vadd.xlane.f32.xlu1 %v6925_v28  ;;  %11915 = vmatprep.mubr.bf16.mxu0 %v6981_v13 }
 0xe1c   :  { %7037 = vadd.xlane.f32.xlu0 %v6926_v61 }
 0xe1d   :  { %11916 = vmatmul.mubr.bf16.gmra.mrb[140].mxu0 %v6982_v29 }
 0xe20   :  { %v11841_v7 = vpop.f32.mrb[80].mxu0 }
 0xe21   :  { %v6720_v37 = vpop.f32.mrb[81].mxu0  ;;  %v6729_v36 = vadd.f32 %v11841_v7, %v16058_v8 }
 0xe22   :  { %v11842_v27 = vpop.f32.mrb[82].mxu0  ;;  %v6721_v18 = vadd.f32 %v16058_v8, %v6720_v37 }
 0xe23   :  { %v6732_v59 = vadd.f32 %v11842_v27, %v16058_v8  ;;  %v6723_v14 = vpop.f32.mrb[83].mxu0  ;;  %v6929_v1 = vmax.f32 %v6729_v36, 0.0 }
 0xe24   :  { %v6927_v21 = vmax.f32 %v6721_v18, 0.0  ;;  %v6724_v49 = vadd.f32 %v16058_v8, %v6723_v14 }
 0xe25   :  { %v6930_v43 = vmax.f32 %v6732_v59, 0.0 }
 0xe26   :  { %7039 = vadd.xlane.f32.xlu1 %v6927_v21  ;;  %v6928_v4 = vmax.f32 %v6724_v49, 0.0 }
 0xe27   :  { %v6984_v19 = vpack.c.bf16 %v6930_v43, %v6929_v1 }
 0xe28   :  { %7041 = vadd.xlane.f32.xlu0 %v6928_v4  ;;  %v6983_v15 = vpack.c.bf16 %v6928_v4, %v6927_v21 }
 0xe2a   :  { %7043 = vadd.xlane.f32.xlu1 %v6929_v1  ;;  %11919 = vmatprep.mubr.bf16.mxu0 %v6983_v15 }
 0xe2b   :  { %11920 = vmatmul.mubr.bf16.gmra.mrb[144].mxu0 %v6984_v19 }
 0xe2c   :  { %7045 = vadd.xlane.f32.xlu0 %v6930_v43 }
 0xe30   :  { %v11845_v55 = vpop.f32.mrb[84].mxu0 }
 0xe31   :  { %v6736_v63 = vpop.f32.mrb[85].mxu0  ;;  %v6745_v28 = vadd.f32 %v11845_v55, %v16058_v8 }
 0xe32   :  { %v11846_v61 = vpop.f32.mrb[86].mxu0  ;;  %v6737_v23 = vadd.f32 %v16058_v8, %v6736_v63 }
 0xe33   :  { %v6748_v29 = vadd.f32 %v11846_v61, %v16058_v8  ;;  %v6739_v13 = vpop.f32.mrb[87].mxu0  ;;  %v6933_v27 = vmax.f32 %v6745_v28, 0.0 }
 0xe34   :  { %v6931_v7 = vmax.f32 %v6737_v23, 0.0  ;;  %v6740_v37 = vadd.f32 %v16058_v8, %v6739_v13 }
 0xe35   :  { %v6934_v36 = vmax.f32 %v6748_v29, 0.0 }
 0xe36   :  { %7047 = vadd.xlane.f32.xlu1 %v6931_v7  ;;  %v6932_v18 = vmax.f32 %v6740_v37, 0.0 }
 0xe37   :  { %v6986_v59 = vpack.c.bf16 %v6934_v36, %v6933_v27 }
 0xe38   :  { %7049 = vadd.xlane.f32.xlu0 %v6932_v18  ;;  %v6985_v14 = vpack.c.bf16 %v6932_v18, %v6931_v7 }
 0xe3a   :  { %7051 = vadd.xlane.f32.xlu1 %v6933_v27  ;;  %11923 = vmatprep.mubr.bf16.mxu0 %v6985_v14 }
 0xe3b   :  { %11924 = vmatmul.mubr.bf16.gmra.mrb[148].mxu0 %v6986_v59 }
 0xe3c   :  { %7053 = vadd.xlane.f32.xlu0 %v6934_v36 }
 0xe40   :  { %v11849_v21 = vpop.f32.mrb[88].mxu0 }
 0xe41   :  { %v6752_v49 = vpop.f32.mrb[89].mxu0  ;;  %v6761_v43 = vadd.f32 %v11849_v21, %v16058_v8 }
 0xe42   :  { %v11850_v1 = vpop.f32.mrb[90].mxu0  ;;  %v6753_v4 = vadd.f32 %v16058_v8, %v6752_v49 }
 0xe43   :  { %v6764_v19 = vadd.f32 %v11850_v1, %v16058_v8  ;;  %v6755_v15 = vpop.f32.mrb[91].mxu0  ;;  %v6937_v61 = vmax.f32 %v6761_v43, 0.0 }
 0xe44   :  { %v6935_v55 = vmax.f32 %v6753_v4, 0.0  ;;  %v6756_v63 = vadd.f32 %v16058_v8, %v6755_v15 }
 0xe45   :  { %v6938_v28 = vmax.f32 %v6764_v19, 0.0 }
 0xe46   :  { %7055 = vadd.xlane.f32.xlu1 %v6935_v55  ;;  %v6936_v23 = vmax.f32 %v6756_v63, 0.0 }
 0xe47   :  { %v6988_v29 = vpack.c.bf16 %v6938_v28, %v6937_v61 }
 0xe48   :  { %7057 = vadd.xlane.f32.xlu0 %v6936_v23  ;;  %v6987_v13 = vpack.c.bf16 %v6936_v23, %v6935_v55 }
 0xe4a   :  { %7059 = vadd.xlane.f32.xlu1 %v6937_v61  ;;  %11927 = vmatprep.mubr.bf16.mxu0 %v6987_v13 }
 0xe4b   :  { %11928 = vmatmul.mubr.bf16.gmra.mrb[152].mxu0 %v6988_v29 }
 0xe4c   :  { %7061 = vadd.xlane.f32.xlu0 %v6938_v28 }
 0xe50   :  { %v11853_v7 = vpop.f32.mrb[92].mxu0 }
 0xe51   :  { %v6768_v37 = vpop.f32.mrb[93].mxu0  ;;  %v6777_v36 = vadd.f32 %v11853_v7, %v16058_v8 }
 0xe52   :  { %v11854_v27 = vpop.f32.mrb[94].mxu0  ;;  %v6769_v18 = vadd.f32 %v16058_v8, %v6768_v37 }
 0xe53   :  { %v6780_v59 = vadd.f32 %v11854_v27, %v16058_v8  ;;  %v6771_v14 = vpop.f32.mrb[95].mxu0  ;;  %v6941_v1 = vmax.f32 %v6777_v36, 0.0 }
 0xe54   :  { %v6939_v21 = vmax.f32 %v6769_v18, 0.0  ;;  %v6772_v49 = vadd.f32 %v16058_v8, %v6771_v14 }
 0xe55   :  { %v6942_v43 = vmax.f32 %v6780_v59, 0.0 }
 0xe56   :  { %7063 = vadd.xlane.f32.xlu1 %v6939_v21  ;;  %v6940_v4 = vmax.f32 %v6772_v49, 0.0 }
 0xe57   :  { %v6990_v19 = vpack.c.bf16 %v6942_v43, %v6941_v1 }
 0xe58   :  { %7065 = vadd.xlane.f32.xlu0 %v6940_v4  ;;  %v6989_v15 = vpack.c.bf16 %v6940_v4, %v6939_v21 }
 0xe5a   :  { %7067 = vadd.xlane.f32.xlu1 %v6941_v1  ;;  %11931 = vmatprep.mubr.bf16.mxu0 %v6989_v15 }
 0xe5b   :  { %11932 = vmatmul.mubr.bf16.gmra.mrb[156].mxu0 %v6990_v19 }
 0xe5c   :  { %7069 = vadd.xlane.f32.xlu0 %v6942_v43 }
 0xe60   :  { %v11857_v55 = vpop.f32.mrb[96].mxu0 }
 0xe61   :  { %v6784_v63 = vpop.f32.mrb[97].mxu0  ;;  %v6793_v28 = vadd.f32 %v11857_v55, %v16058_v8 }
 0xe62   :  { %v11858_v61 = vpop.f32.mrb[98].mxu0  ;;  %v6785_v23 = vadd.f32 %v16058_v8, %v6784_v63 }
 0xe63   :  { %v6796_v29 = vadd.f32 %v11858_v61, %v16058_v8  ;;  %v6787_v13 = vpop.f32.mrb[99].mxu0  ;;  %v6945_v27 = vmax.f32 %v6793_v28, 0.0 }
 0xe64   :  { %v6943_v7 = vmax.f32 %v6785_v23, 0.0  ;;  %v6788_v37 = vadd.f32 %v16058_v8, %v6787_v13 }
 0xe65   :  { %v6946_v36 = vmax.f32 %v6796_v29, 0.0 }
 0xe66   :  { %7071 = vadd.xlane.f32.xlu1 %v6943_v7  ;;  %v6944_v18 = vmax.f32 %v6788_v37, 0.0 }
 0xe67   :  { %v6992_v59 = vpack.c.bf16 %v6946_v36, %v6945_v27 }
 0xe68   :  { %7073 = vadd.xlane.f32.xlu0 %v6944_v18  ;;  %v6991_v14 = vpack.c.bf16 %v6944_v18, %v6943_v7 }
 0xe6a   :  { %7075 = vadd.xlane.f32.xlu1 %v6945_v27  ;;  %11935 = vmatprep.mubr.bf16.mxu0 %v6991_v14 }
 0xe6b   :  { %11936 = vmatmul.mubr.bf16.gmra.mrb[160].mxu0 %v6992_v59 }
 0xe6c   :  { %7077 = vadd.xlane.f32.xlu0 %v6946_v36 }
 0xe70   :  { %v11861_v21 = vpop.f32.mrb[100].mxu0 }
 0xe71   :  { %v6800_v49 = vpop.f32.mrb[101].mxu0  ;;  %v6809_v43 = vadd.f32 %v11861_v21, %v16058_v8 }
 0xe72   :  { %v11862_v1 = vpop.f32.mrb[102].mxu0  ;;  %v6801_v4 = vadd.f32 %v16058_v8, %v6800_v49 }
 0xe73   :  { %v6812_v19 = vadd.f32 %v11862_v1, %v16058_v8  ;;  %v6803_v15 = vpop.f32.mrb[103].mxu0  ;;  %v6949_v61 = vmax.f32 %v6809_v43, 0.0 }
 0xe74   :  { %v6947_v55 = vmax.f32 %v6801_v4, 0.0  ;;  %v6804_v63 = vadd.f32 %v16058_v8, %v6803_v15 }
 0xe75   :  { %v6950_v28 = vmax.f32 %v6812_v19, 0.0 }
 0xe76   :  { %7079 = vadd.xlane.f32.xlu1 %v6947_v55  ;;  %v6948_v23 = vmax.f32 %v6804_v63, 0.0 }
 0xe77   :  { %v6994_v29 = vpack.c.bf16 %v6950_v28, %v6949_v61 }
 0xe78   :  { %7081 = vadd.xlane.f32.xlu0 %v6948_v23  ;;  %v6993_v13 = vpack.c.bf16 %v6948_v23, %v6947_v55 }
 0xe7a   :  { %7083 = vadd.xlane.f32.xlu1 %v6949_v61  ;;  %11939 = vmatprep.mubr.bf16.mxu0 %v6993_v13 }
 0xe7b   :  { %11940 = vmatmul.mubr.bf16.gmra.mrb[164].mxu0 %v6994_v29 }
 0xe7c   :  { %7085 = vadd.xlane.f32.xlu0 %v6950_v28 }
 0xe80   :  { %v11865_v7 = vpop.f32.mrb[104].mxu0 }
 0xe81   :  { %v6816_v37 = vpop.f32.mrb[105].mxu0  ;;  %v6825_v36 = vadd.f32 %v11865_v7, %v16058_v8 }
 0xe82   :  { %v11866_v27 = vpop.f32.mrb[106].mxu0  ;;  %v6817_v18 = vadd.f32 %v16058_v8, %v6816_v37 }
 0xe83   :  { %v6828_v59 = vadd.f32 %v11866_v27, %v16058_v8  ;;  %v6819_v14 = vpop.f32.mrb[107].mxu0  ;;  %v6953_v1 = vmax.f32 %v6825_v36, 0.0 }
 0xe84   :  { %v6951_v21 = vmax.f32 %v6817_v18, 0.0  ;;  %v6820_v49 = vadd.f32 %v16058_v8, %v6819_v14 }
 0xe85   :  { %v6954_v43 = vmax.f32 %v6828_v59, 0.0 }
 0xe86   :  { %7087 = vadd.xlane.f32.xlu1 %v6951_v21  ;;  %v6952_v4 = vmax.f32 %v6820_v49, 0.0 }
 0xe87   :  { %v6996_v19 = vpack.c.bf16 %v6954_v43, %v6953_v1 }
 0xe88   :  { %7089 = vadd.xlane.f32.xlu0 %v6952_v4  ;;  %v6995_v15 = vpack.c.bf16 %v6952_v4, %v6951_v21 }
 0xe8a   :  { %7091 = vadd.xlane.f32.xlu1 %v6953_v1  ;;  %11943 = vmatprep.mubr.bf16.mxu0 %v6995_v15 }
 0xe8b   :  { %11944 = vmatmul.mubr.bf16.gmra.mrb[168].mxu0 %v6996_v19 }
 0xe8c   :  { %7093 = vadd.xlane.f32.xlu0 %v6954_v43 }
 0xe90   :  { %v11869_v55 = vpop.f32.mrb[108].mxu0 }
 0xe91   :  { %v6832_v63 = vpop.f32.mrb[109].mxu0  ;;  %v6841_v28 = vadd.f32 %v11869_v55, %v16058_v8 }
 0xe92   :  { %v11870_v61 = vpop.f32.mrb[110].mxu0  ;;  %v6833_v23 = vadd.f32 %v16058_v8, %v6832_v63 }
 0xe93   :  { %v6844_v29 = vadd.f32 %v11870_v61, %v16058_v8  ;;  %v6835_v13 = vpop.f32.mrb[111].mxu0  ;;  %v6957_v27 = vmax.f32 %v6841_v28, 0.0 }
 0xe94   :  { %v6955_v7 = vmax.f32 %v6833_v23, 0.0  ;;  %v6836_v37 = vadd.f32 %v16058_v8, %v6835_v13 }
 0xe95   :  { %v6958_v36 = vmax.f32 %v6844_v29, 0.0 }
 0xe96   :  { %7095 = vadd.xlane.f32.xlu1 %v6955_v7  ;;  %v6956_v18 = vmax.f32 %v6836_v37, 0.0 }
 0xe97   :  { %v6998_v59 = vpack.c.bf16 %v6958_v36, %v6957_v27 }
 0xe98   :  { %7097 = vadd.xlane.f32.xlu0 %v6956_v18  ;;  %v6997_v14 = vpack.c.bf16 %v6956_v18, %v6955_v7 }
 0xe9a   :  { %7099 = vadd.xlane.f32.xlu1 %v6957_v27  ;;  %11947 = vmatprep.mubr.bf16.mxu0 %v6997_v14 }
 0xe9b   :  { %11948 = vmatmul.mubr.bf16.gmra.mrb[172].mxu0 %v6998_v59 }
 0xe9c   :  { %7101 = vadd.xlane.f32.xlu0 %v6958_v36 }
 0xea0   :  { %v11873_v21 = vpop.f32.mrb[112].mxu0 }
 0xea1   :  { %v6848_v49 = vpop.f32.mrb[113].mxu0  ;;  %v6857_v43 = vadd.f32 %v11873_v21, %v16058_v8 }
 0xea2   :  { %v11874_v1 = vpop.f32.mrb[114].mxu0  ;;  %v6849_v4 = vadd.f32 %v16058_v8, %v6848_v49 }
 0xea3   :  { %v6860_v19 = vadd.f32 %v11874_v1, %v16058_v8  ;;  %v6851_v15 = vpop.f32.mrb[115].mxu0  ;;  %v6961_v61 = vmax.f32 %v6857_v43, 0.0 }
 0xea4   :  { %v6959_v55 = vmax.f32 %v6849_v4, 0.0  ;;  %v6852_v63 = vadd.f32 %v16058_v8, %v6851_v15 }
 0xea5   :  { %v6962_v28 = vmax.f32 %v6860_v19, 0.0 }
 0xea6   :  { %7103 = vadd.xlane.f32.xlu1 %v6959_v55  ;;  %v6960_v23 = vmax.f32 %v6852_v63, 0.0 }
 0xea7   :  { %v7000_v29 = vpack.c.bf16 %v6962_v28, %v6961_v61 }
 0xea8   :  { %7105 = vadd.xlane.f32.xlu0 %v6960_v23  ;;  %v6999_v13 = vpack.c.bf16 %v6960_v23, %v6959_v55 }
 0xeaa   :  { %7107 = vadd.xlane.f32.xlu1 %v6961_v61  ;;  %11951 = vmatprep.mubr.bf16.mxu0 %v6999_v13 }
 0xeab   :  { %11952 = vmatmul.mubr.bf16.gmra.mrb[176].mxu0 %v7000_v29 }
 0xeac   :  { %7109 = vadd.xlane.f32.xlu0 %v6962_v28 }
 0xeb0   :  { %v11877_v7 = vpop.f32.mrb[116].mxu0 }
 0xeb1   :  { %v6864_v37 = vpop.f32.mrb[117].mxu0  ;;  %v6873_v36 = vadd.f32 %v11877_v7, %v16058_v8 }
 0xeb2   :  { %v11878_v27 = vpop.f32.mrb[118].mxu0  ;;  %v6865_v18 = vadd.f32 %v16058_v8, %v6864_v37 }
 0xeb3   :  { %v6876_v59 = vadd.f32 %v11878_v27, %v16058_v8  ;;  %v6867_v14 = vpop.f32.mrb[119].mxu0  ;;  %v6965_v1 = vmax.f32 %v6873_v36, 0.0 }
 0xeb4   :  { %v6963_v21 = vmax.f32 %v6865_v18, 0.0  ;;  %v6868_v49 = vadd.f32 %v16058_v8, %v6867_v14 }
 0xeb5   :  { %v6966_v43 = vmax.f32 %v6876_v59, 0.0 }
 0xeb6   :  { %7111 = vadd.xlane.f32.xlu1 %v6963_v21  ;;  %v6964_v4 = vmax.f32 %v6868_v49, 0.0 }
 0xeb7   :  { %v7002_v19 = vpack.c.bf16 %v6966_v43, %v6965_v1 }
 0xeb8   :  { %7113 = vadd.xlane.f32.xlu0 %v6964_v4  ;;  %v7001_v15 = vpack.c.bf16 %v6964_v4, %v6963_v21 }
 0xeba   :  { %7115 = vadd.xlane.f32.xlu1 %v6965_v1  ;;  %11955 = vmatprep.mubr.bf16.mxu0 %v7001_v15 }
 0xebb   :  { %11956 = vmatmul.mubr.bf16.gmra.mrb[180].mxu0 %v7002_v19 }
 0xebc   :  { %7117 = vadd.xlane.f32.xlu0 %v6966_v43 }
 0xec0   :  { %v11881_v55 = vpop.f32.mrb[120].mxu0 }
 0xec1   :  { %v6880_v63 = vpop.f32.mrb[121].mxu0  ;;  %v6889_v28 = vadd.f32 %v11881_v55, %v16058_v8 }
 0xec2   :  { %v11882_v61 = vpop.f32.mrb[122].mxu0  ;;  %v6881_v23 = vadd.f32 %v16058_v8, %v6880_v63 }
 0xec3   :  { %v6892_v29 = vadd.f32 %v11882_v61, %v16058_v8  ;;  %v6883_v13 = vpop.f32.mrb[123].mxu0  ;;  %v6969_v27 = vmax.f32 %v6889_v28, 0.0 }
 0xec4   :  { %v6967_v7 = vmax.f32 %v6881_v23, 0.0  ;;  %v6884_v37 = vadd.f32 %v16058_v8, %v6883_v13  ;;  %v16135_v23 = vld [vmem:[%s17173_s12 + $0x1] ss:$0 sm:$0xff] }
 0xec5   :  { %v6970_v36 = vmax.f32 %v6892_v29, 0.0 }
 0xec6   :  { %7119 = vadd.xlane.f32.xlu1 %v6967_v7  ;;  %v6968_v18 = vmax.f32 %v6884_v37, 0.0 }
 0xec7   :  { %v7004_v59 = vpack.c.bf16 %v6970_v36, %v6969_v27 }
 0xec8   :  { %7121 = vadd.xlane.f32.xlu0 %v6968_v18  ;;  %v7003_v14 = vpack.c.bf16 %v6968_v18, %v6967_v7 }
 0xeca   :  { %7123 = vadd.xlane.f32.xlu1 %v6969_v27  ;;  %11959 = vmatprep.mubr.bf16.mxu0 %v7003_v14 }
 0xecb   :  { %11960 = vmatmul.mubr.bf16.gmra.mrb[184].mxu0 %v7004_v59 }
 0xecc   :  { %7125 = vadd.xlane.f32.xlu0 %v6970_v36 }
 0xed0   :  { %v11885_v21 = vpop.f32.mrb[124].mxu0 }
 0xed1   :  { %v6896_v49 = vpop.f32.mrb[125].mxu0  ;;  %v6905_v43 = vadd.f32 %v11885_v21, %v16058_v8 }
 0xed2   :  { %v11886_v1 = vpop.f32.mrb[126].mxu0  ;;  %v6897_v4 = vadd.f32 %v16058_v8, %v6896_v49  ;;  %v13229_v49 = vld [vmem:[#allocation8 + $0x4] ss:$16 sps:$4 sm:$0xff]  }
 0xed3   :  { %v6908_v19 = vadd.f32 %v11886_v1, %v16058_v8  ;;  %v6899_v15 = vpop.f32.mrb[127].mxu0  ;;  %v6973_v61 = vmax.f32 %v6905_v43, 0.0 }
 0xed4   :  { %v6971_v55 = vmax.f32 %v6897_v4, 0.0  ;;  %v6900_v63 = vadd.f32 %v16058_v8, %v6899_v15 }
 0xed5   :  { %v6974_v28 = vmax.f32 %v6908_v19, 0.0 }
 0xed6   :  { %7127 = vadd.xlane.f32.xlu1 %v6971_v55  ;;  %v6972_v29 = vmax.f32 %v6900_v63, 0.0 }
 0xed7   :  { %v7006_v13 = vpack.c.bf16 %v6974_v28, %v6973_v61 }
 0xed8   :  { %v11905_v7 = vpop.f32.mrb[128].mxu0  ;;  %7129 = vadd.xlane.f32.xlu0 %v6972_v29  ;;  %v7005_v37 = vpack.c.bf16 %v6972_v29, %v6971_v55 }
 0xed9   :  { %v7315_v36 = vadd.f32 %v11905_v7, %v16135_v23  ;;  %v7306_v27 = vpop.f32.mrb[129].mxu0 }
 0xeda   :  { %v7307_v18 = vadd.f32 %v16135_v23, %v7306_v27  ;;  %v11906_v59 = vpop.f32.mrb[130].mxu0  ;;  %7131 = vadd.xlane.f32.xlu1 %v6973_v61  ;;  %11963 = vmatprep.mubr.bf16.mxu0 %v7005_v37 }
 0xedb   :  { %v7318_v8 = vadd.f32 %v11906_v59, %v16135_v23  ;;  %v7309_v14 = vpop.f32.mrb[131].mxu0  ;;  %11964 = vmatmul.mubr.bf16.gmra.mrb[188].mxu0 %v7006_v13  ;;  %v7563_v43 = vmax.f32 %v7315_v36, 0.0 }
 0xedc   :  { %v7310_v21 = vadd.f32 %v16135_v23, %v7309_v14  ;;  %7133 = vadd.xlane.f32.xlu0 %v6974_v28  ;;  %7689 = vmatprep.mubr.bf16.mxu0 %v13229_v49  ;;  %v7561_v4 = vmax.f32 %v7307_v18, 0.0 }
 0xedd   :  { %v7564_v1 = vmax.f32 %v7318_v8, 0.0 }
 0xede   :  { %v7562_v19 = vmax.f32 %v7310_v21, 0.0 }
 0xedf   :  { %v7626_v15 = vpack.c.bf16 %v7564_v1, %v7563_v43 }
 0xee0   :  { %v7625_v55 = vpack.c.bf16 %v7562_v19, %v7561_v4  ;;  %v11909_v63 = vpop.f32.mrb[132].mxu0 }
 0xee1   :  { %v7331_v29 = vadd.f32 %v11909_v63, %v16135_v23  ;;  %v7322_v61 = vpop.f32.mrb[133].mxu0 }
 0xee2   :  { %v7323_v7 = vadd.f32 %v16135_v23, %v7322_v61  ;;  %v11910_v37 = vpop.f32.mrb[134].mxu0 }
 0xee3   :  { %v7334_v13 = vadd.f32 %v11910_v37, %v16135_v23  ;;  %v7325_v27 = vpop.f32.mrb[135].mxu0  ;;  %v7567_v59 = vmax.f32 %v7331_v29, 0.0 }
 0xee4   :  { %v7326_v28 = vadd.f32 %v16135_v23, %v7325_v27  ;;  %v7565_v36 = vmax.f32 %v7323_v7, 0.0 }
 0xee5   :  { %v7568_v14 = vmax.f32 %v7334_v13, 0.0 }
 0xee6   :  { %v7566_v8 = vmax.f32 %v7326_v28, 0.0 }
 0xee7   :  { %v16145_v18 = vpack.c.bf16 %v7568_v14, %v7567_v59 }
 0xee8   :  { %v7627_v21 = vpack.c.bf16 %v7566_v8, %v7565_v36  ;;  %v11913_v49 = vpop.f32.mrb[136].mxu0 }
 0xee9   :  { %v7347_v43 = vadd.f32 %v11913_v49, %v16135_v23  ;;  %v7338_v1 = vpop.f32.mrb[137].mxu0 }
 0xeea   :  { %v7339_v4 = vadd.f32 %v16135_v23, %v7338_v1  ;;  %v11914_v19 = vpop.f32.mrb[138].mxu0 }
 0xeeb   :  { %v7350_v63 = vadd.f32 %v11914_v19, %v16135_v23  ;;  %v7341_v61 = vpop.f32.mrb[139].mxu0  ;;  %v7571_v27 = vmax.f32 %v7347_v43, 0.0 }
 0xeec   :  { %v7342_v37 = vadd.f32 %v16135_v23, %v7341_v61  ;;  %v7569_v13 = vmax.f32 %v7339_v4, 0.0 }
 0xeed   :  { %v7572_v29 = vmax.f32 %v7350_v63, 0.0 }
 0xeee   :  { %v7570_v7 = vmax.f32 %v7342_v37, 0.0 }
 0xeef   :  { %v16151_v28 = vpack.c.bf16 %v7572_v29, %v7571_v27 }
 0xef0   :  { %v16153_v59 = vpack.c.bf16 %v7570_v7, %v7569_v13  ;;  %v11917_v14 = vpop.f32.mrb[140].mxu0 }
 0xef1   :  { %v7363_v36 = vadd.f32 %v11917_v14, %v16135_v23  ;;  %v7354_v8 = vpop.f32.mrb[141].mxu0 }
 0xef2   :  { %v7355_v49 = vadd.f32 %v16135_v23, %v7354_v8  ;;  %v11918_v1 = vpop.f32.mrb[142].mxu0 }
 0xef3   :  { %v7366_v19 = vadd.f32 %v11918_v1, %v16135_v23  ;;  %v7357_v50 = vpop.f32.mrb[143].mxu0  ;;  %v7575_v43 = vmax.f32 %v7363_v36, 0.0 }
 0xef4   :  { %v7358_v61 = vadd.f32 %v16135_v23, %v7357_v50  ;;  %v7573_v4 = vmax.f32 %v7355_v49, 0.0 }
 0xef5   :  { %v7576_v63 = vmax.f32 %v7366_v19, 0.0 }
 0xef6   :  { %v7574_v37 = vmax.f32 %v7358_v61, 0.0 }
 0xef7   :  { %v16159_v27 = vpack.c.bf16 %v7576_v63, %v7575_v43 }
 0xef8   :  { %v16161_v29 = vpack.c.bf16 %v7574_v37, %v7573_v4 }
 0xefe   :  { %v11921_v13 = vpop.f32.mrb[144].mxu0 }
 0xeff   :  { %v7379_v7 = vadd.f32 %v11921_v13, %v16135_v23  ;;  %v7370_v14 = vpop.f32.mrb[145].mxu0 }
 0xf00   :  { %v7371_v8 = vadd.f32 %v16135_v23, %v7370_v14  ;;  %v11922_v34 = vpop.f32.mrb[146].mxu0 }
 0xf01   :  { %v7382_v1 = vadd.f32 %v11922_v34, %v16135_v23  ;;  %v7373_v58 = vpop.f32.mrb[147].mxu0  ;;  %v7579_v36 = vmax.f32 %v7379_v7, 0.0 }
 0xf02   :  { %v7374_v50 = vadd.f32 %v16135_v23, %v7373_v58  ;;  %v7577_v49 = vmax.f32 %v7371_v8, 0.0 }
 0xf03   :  { %v7580_v19 = vmax.f32 %v7382_v1, 0.0 }
 0xf04   :  { %v7578_v61 = vmax.f32 %v7374_v50, 0.0 }
 0xf05   :  { %v7634_v43 = vpack.c.bf16 %v7580_v19, %v7579_v36 }
 0xf06   :  { %v7633_v63 = vpack.c.bf16 %v7578_v61, %v7577_v49 }
 0xf08   :  { %11295 = vmatprep.subr.bf16.mxu0 %v7633_v63 }
 0xf09   :  { %11296 = vmatpush3.bf16.msra.mxu0 %v7625_v55 }
 0xf0a   :  { %11297 = vmatprep.subr.bf16.mxu0 %v7634_v43 }
 0xf0d   :  { %11298 = vmatpush3.bf16.msra.mxu0 %v7626_v15 }
 0xf0e   :  { %v11925_v4 = vpop.f32.mrb[148].mxu0 }
 0xf0f   :  { %v7395_v37 = vadd.f32 %v11925_v4, %v16135_v23  ;;  %v7386_v13 = vpop.f32.mrb[149].mxu0 }
 0xf10   :  { %v7387_v14 = vadd.f32 %v16135_v23, %v7386_v13  ;;  %v11926_v34 = vpop.f32.mrb[150].mxu0 }
 0xf11   :  { %v7398_v56 = vadd.f32 %v11926_v34, %v16135_v23  ;;  %v7389_v58 = vpop.f32.mrb[151].mxu0  ;;  %v7583_v8 = vmax.f32 %v7395_v37, 0.0 }
 0xf12   :  { %v7390_v7 = vadd.f32 %v16135_v23, %v7389_v58  ;;  %v7581_v50 = vmax.f32 %v7387_v14, 0.0 }
 0xf13   :  { %v7584_v1 = vmax.f32 %v7398_v56, 0.0 }
 0xf14   :  { %v7582_v36 = vmax.f32 %v7390_v7, 0.0 }
 0xf15   :  { %v7636_v19 = vpack.c.bf16 %v7584_v1, %v7583_v8 }
 0xf16   :  { %v7635_v55 = vpack.c.bf16 %v7582_v36, %v7581_v50 }
 0xf18   :  { %11299 = vmatprep.subr.bf16.mxu0 %v7635_v55 }
 0xf19   :  { %11300 = vmatpush3.bf16.msra.mxu0 %v7627_v21 }
 0xf1a   :  { %11301 = vmatprep.subr.bf16.mxu0 %v7636_v19 }
 0xf1d   :  { %11302 = vmatpush3.bf16.msra.mxu0 %v16145_v18 }
 0xf1e   :  { %v11929_v15 = vpop.f32.mrb[152].mxu0 }
 0xf1f   :  { %v7411_v49 = vadd.f32 %v11929_v15, %v16135_v23  ;;  %v7402_v61 = vpop.f32.mrb[153].mxu0 }
 0xf20   :  { %v7403_v43 = vadd.f32 %v16135_v23, %v7402_v61  ;;  %v11930_v63 = vpop.f32.mrb[154].mxu0 }
 0xf21   :  { %v7414_v4 = vadd.f32 %v11930_v63, %v16135_v23  ;;  %v7405_v37 = vpop.f32.mrb[155].mxu0  ;;  %v7587_v13 = vmax.f32 %v7411_v49, 0.0 }
 0xf22   :  { %v7406_v56 = vadd.f32 %v16135_v23, %v7405_v37  ;;  %v7585_v34 = vmax.f32 %v7403_v43, 0.0 }
 0xf23   :  { %v7588_v14 = vmax.f32 %v7414_v4, 0.0 }
 0xf24   :  { %v7586_v58 = vmax.f32 %v7406_v56, 0.0 }
 0xf25   :  { %v7638_v21 = vpack.c.bf16 %v7588_v14, %v7587_v13 }
 0xf26   :  { %v7637_v7 = vpack.c.bf16 %v7586_v58, %v7585_v34  ;;  %v13230_v34 = vld [vmem:[#allocation8] ss:$16 sps:$4 sm:$0xff]  }
 0xf28   :  { %11303 = vmatprep.subr.bf16.mxu0 %v7637_v7  ;;  %v13231_v7 = vld [vmem:[#allocation8 + $0x24] ss:$16 sps:$4 sm:$0xff]  }
 0xf29   :  { %11304 = vmatpush3.bf16.msra.mxu0 %v16153_v59 }
 0xf2a   :  { %11305 = vmatprep.subr.bf16.mxu0 %v7638_v21 }
 0xf2d   :  { %11306 = vmatpush3.bf16.msra.mxu0 %v16151_v28 }
 0xf2e   :  { %v11933_v18 = vpop.f32.mrb[156].mxu0 }
 0xf2f   :  { %v7427_v8 = vadd.f32 %v11933_v18, %v16135_v23  ;;  %v7418_v1 = vpop.f32.mrb[157].mxu0 }
 0xf30   :  { %v7419_v50 = vadd.f32 %v16135_v23, %v7418_v1  ;;  %v11934_v36 = vpop.f32.mrb[158].mxu0 }
 0xf31   :  { %v7430_v19 = vadd.f32 %v11934_v36, %v16135_v23  ;;  %v7421_v55 = vpop.f32.mrb[159].mxu0  ;;  %v7591_v49 = vmax.f32 %v7427_v8, 0.0 }
 0xf32   :  { %v7422_v15 = vadd.f32 %v16135_v23, %v7421_v55  ;;  %v7589_v43 = vmax.f32 %v7419_v50, 0.0  ;;  %v13233_v55 = vld [vmem:[#allocation8 + $0x44] ss:$16 sps:$4 sm:$0xff]  }
 0xf33   :  { %v7592_v61 = vmax.f32 %v7430_v19, 0.0  ;;  %v13232_v19 = vld [vmem:[#allocation8 + $0x20] ss:$16 sps:$4 sm:$0xff]  }
 0xf34   :  { %v7590_v63 = vmax.f32 %v7422_v15, 0.0 }
 0xf35   :  { %v7640_v59 = vpack.c.bf16 %v7592_v61, %v7591_v49 }
 0xf36   :  { %v7639_v4 = vpack.c.bf16 %v7590_v63, %v7589_v43 }
 0xf38   :  { %11307 = vmatprep.subr.bf16.mxu0 %v7639_v4 }
 0xf39   :  { %11308 = vmatpush3.bf16.msra.mxu0 %v16161_v29 }
 0xf3a   :  { %11309 = vmatprep.subr.bf16.mxu0 %v7640_v59  ;;  %v13234_v59 = vld [vmem:[#allocation8 + $0x40] ss:$16 sps:$4 sm:$0xff]  }
 0xf3d   :  { %11310 = vmatpush3.bf16.msra.mxu0 %v16159_v27 }
 0xf3e   :  { %v11937_v28 = vpop.f32.mrb[160].mxu0 }
 0xf3f   :  { %v7443_v37 = vadd.f32 %v11937_v28, %v16135_v23  ;;  %v7434_v56 = vpop.f32.mrb[161].mxu0 }
 0xf40   :  { %v7435_v13 = vadd.f32 %v16135_v23, %v7434_v56  ;;  %v11938_v14 = vpop.f32.mrb[162].mxu0  ;;  %7690 = vmatmul.mubr.bf16.vlgmr.msra.gmra.mrb[192].mxu0 %v13230_v34 }
 0xf41   :  { %v7446_v58 = vadd.f32 %v11938_v14, %v16135_v23  ;;  %v7437_v21 = vpop.f32.mrb[163].mxu0  ;;  %7697 = vmatprep.mubr.bf16.mxu0 %v13231_v7  ;;  %v7595_v29 = vmax.f32 %v7443_v37, 0.0  ;;  %v13235_v37 = vld [vmem:[#allocation8 + $0x64] ss:$16 sps:$4 sm:$0xff]  }
 0xf42   :  { %v7438_v18 = vadd.f32 %v16135_v23, %v7437_v21  ;;  %v7593_v1 = vmax.f32 %v7435_v13, 0.0 }
 0xf43   :  { %v7596_v8 = vmax.f32 %v7446_v58, 0.0 }
 0xf44   :  { %v7594_v27 = vmax.f32 %v7438_v18, 0.0  ;;  %v13236_v18 = vld [vmem:[#allocation8 + $0x60] ss:$16 sps:$4 sm:$0xff]  }
 0xf45   :  { %v16188_v50 = vpack.c.bf16 %v7596_v8, %v7595_v29  ;;  %v13237_v29 = vld [vmem:[#allocation8 + $0x84] ss:$16 sps:$4 sm:$0xff]  }
 0xf46   :  { %v16190_v36 = vpack.c.bf16 %v7594_v27, %v7593_v1 }
 0xf48   :  { %7698 = vmatmul.mubr.bf16.gmra.mrb[196].mxu0 %v13232_v19 }
 0xf49   :  { %7705 = vmatprep.mubr.bf16.mxu0 %v13233_v55 }
 0xf4e   :  { %v11941_v15 = vpop.f32.mrb[164].mxu0 }
 0xf4f   :  { %v7459_v49 = vadd.f32 %v11941_v15, %v16135_v23  ;;  %v7450_v61 = vpop.f32.mrb[165].mxu0  ;;  %v13238_v15 = vld [vmem:[#allocation8 + $0x80] ss:$16 sps:$4 sm:$0xff]  }
 0xf50   :  { %v7451_v43 = vadd.f32 %v16135_v23, %v7450_v61  ;;  %v11942_v63 = vpop.f32.mrb[166].mxu0  ;;  %7706 = vmatmul.mubr.bf16.gmra.mrb[200].mxu0 %v13234_v59 }
 0xf51   :  { %v7462_v4 = vadd.f32 %v11942_v63, %v16135_v23  ;;  %v7453_v28 = vpop.f32.mrb[167].mxu0  ;;  %7713 = vmatprep.mubr.bf16.mxu0 %v13235_v37  ;;  %v7599_v13 = vmax.f32 %v7459_v49, 0.0 }
 0xf52   :  { %v7454_v56 = vadd.f32 %v16135_v23, %v7453_v28  ;;  %v7597_v34 = vmax.f32 %v7451_v43, 0.0  ;;  %v13239_v43 = vld [vmem:[#allocation8 + $0xa4] ss:$16 sps:$4 sm:$0xff]  }
 0xf53   :  { %v7600_v14 = vmax.f32 %v7462_v4, 0.0 }
 0xf54   :  { %v7598_v58 = vmax.f32 %v7454_v56, 0.0 }
 0xf55   :  { %v16196_v21 = vpack.c.bf16 %v7600_v14, %v7599_v13  ;;  %v13240_v14 = vld [vmem:[#allocation8 + $0xa0] ss:$16 sps:$4 sm:$0xff]  }
 0xf56   :  { %v16198_v7 = vpack.c.bf16 %v7598_v58, %v7597_v34  ;;  %v13241_v34 = vld [vmem:[#allocation8 + $0xc4] ss:$16 sps:$4 sm:$0xff]  }
 0xf58   :  { %7714 = vmatmul.mubr.bf16.gmra.mrb[204].mxu0 %v13236_v18 }
 0xf59   :  { %7721 = vmatprep.mubr.bf16.mxu0 %v13237_v29 }
 0xf5e   :  { %v11945_v8 = vpop.f32.mrb[168].mxu0 }
 0xf5f   :  { %v7475_v1 = vadd.f32 %v11945_v8, %v16135_v23  ;;  %v7466_v27 = vpop.f32.mrb[169].mxu0 }
 0xf60   :  { %v7467_v19 = vadd.f32 %v16135_v23, %v7466_v27  ;;  %v11946_v55 = vpop.f32.mrb[170].mxu0  ;;  %7722 = vmatmul.mubr.bf16.gmra.mrb[208].mxu0 %v13238_v15  ;;  %v13243_v15 = vld [vmem:[#allocation8 + $0xe4] ss:$16 sps:$4 sm:$0xff]  }
 0xf61   :  { %v7478_v49 = vadd.f32 %v11946_v55, %v16135_v23  ;;  %v7469_v61 = vpop.f32.mrb[171].mxu0  ;;  %7729 = vmatprep.mubr.bf16.mxu0 %v13239_v43  ;;  %v7603_v59 = vmax.f32 %v7475_v1, 0.0  ;;  %v13242_v55 = vld [vmem:[#allocation8 + $0xc0] ss:$16 sps:$4 sm:$0xff]  }
 0xf62   :  { %v7470_v63 = vadd.f32 %v16135_v23, %v7469_v61  ;;  %v7601_v28 = vmax.f32 %v7467_v19, 0.0 }
 0xf63   :  { %v7604_v4 = vmax.f32 %v7478_v49, 0.0 }
 0xf64   :  { %v7602_v37 = vmax.f32 %v7470_v63, 0.0 }
 0xf65   :  { %v16204_v56 = vpack.c.bf16 %v7604_v4, %v7603_v59 }
 0xf66   :  { %v16206_v13 = vpack.c.bf16 %v7602_v37, %v7601_v28  ;;  %v13244_v37 = vld [vmem:[#allocation8 + $0xe0] ss:$16 sps:$4 sm:$0xff]  }
 0xf68   :  { %7730 = vmatmul.mubr.bf16.gmra.mrb[212].mxu0 %v13240_v14  ;;  %v12984_v14 = vld [vmem:[#allocation9 + $0x100] ss:$8 sps:$4 sm:$0xff]  }
 0xf69   :  { %7737 = vmatprep.mubr.bf16.mxu0 %v13241_v34  ;;  %v12986_v34 = vld [vmem:[#allocation9 + $0x104] ss:$8 sps:$4 sm:$0xff]  }
 0xf6a   :  { %7956 = vmatprep.subr.bf16.mxu0 %v12986_v34 }
 0xf6b   :  { %7957 = vmatpush1.bf16.msra.mxu0 %v12984_v14  ;;  %v12993_v14 = vld [vmem:[#allocation9 + $0x130] ss:$8 sps:$4 sm:$0xff]  }
 0xf6e   :  { %v11949_v58 = vpop.f32.mrb[172].mxu0 }
 0xf6f   :  { %v7491_v18 = vadd.f32 %v11949_v58, %v16135_v23  ;;  %v7482_v29 = vpop.f32.mrb[173].mxu0  ;;  %v12989_v58 = vld [vmem:[#allocation9 + $0x114] ss:$8 sps:$4 sm:$0xff]  }
 0xf70   :  { %v7483_v8 = vadd.f32 %v16135_v23, %v7482_v29  ;;  %v11950_v27 = vpop.f32.mrb[174].mxu0  ;;  %7738 = vmatmul.mubr.bf16.gmra.mrb[216].mxu0 %v13242_v55  ;;  %v12987_v29 = vld [vmem:[#allocation9 + $0x110] ss:$8 sps:$4 sm:$0xff]   ;;  %7958 = vmatprep.subr.bf16.mxu0 %v12989_v58 }
 0xf71   :  { %v7494_v1 = vadd.f32 %v11950_v27, %v16135_v23  ;;  %v7485_v19 = vpop.f32.mrb[175].mxu0  ;;  %7745 = vmatprep.mubr.bf16.mxu0 %v13243_v15  ;;  %v7607_v61 = vmax.f32 %v7491_v18, 0.0  ;;  %v12992_v27 = vld [vmem:[#allocation9 + $0x124] ss:$8 sps:$4 sm:$0xff]   ;;  %7959 = vmatpush1.bf16.msra.mxu0 %v12987_v29 }
 0xf72   :  { %v7486_v49 = vadd.f32 %v16135_v23, %v7485_v19  ;;  %v7605_v63 = vmax.f32 %v7483_v8, 0.0  ;;  %7960 = vmatprep.subr.bf16.mxu0 %v12992_v27 }
 0xf73   :  { %v7608_v43 = vmax.f32 %v7494_v1, 0.0  ;;  %v12990_v1 = vld [vmem:[#allocation9 + $0x120] ss:$8 sps:$4 sm:$0xff]  }
 0xf74   :  { %v7606_v59 = vmax.f32 %v7486_v49, 0.0  ;;  %v12995_v49 = vld [vmem:[#allocation9 + $0x134] ss:$8 sps:$4 sm:$0xff]  }
 0xf75   :  { %v16212_v4 = vpack.c.bf16 %v7608_v43, %v7607_v61  ;;  %7961 = vmatpush1.bf16.msra.mxu0 %v12990_v1 }
 0xf76   :  { %v16214_v28 = vpack.c.bf16 %v7606_v59, %v7605_v63  ;;  %7962 = vmatprep.subr.bf16.mxu0 %v12995_v49 }
 0xf78   :  { %7746 = vmatmul.mubr.bf16.gmra.mrb[220].mxu0 %v13244_v37 }
 0xf79   :  { %7988 = vmatprep.mubr.bf16.mxu0 %v17291_v0  ;;  %7963 = vmatpush1.bf16.msra.mxu0 %v12993_v14  ;;  %v12999_v14 = vld [vmem:[#allocation9 + $0x150] ss:$8 sps:$4 sm:$0xff]  }
 0xf7e   :  { %v11953_v18 = vpop.f32.mrb[176].mxu0 }
 0xf7f   :  { %v7507_v8 = vadd.f32 %v11953_v18, %v16135_v23  ;;  %v7498_v55 = vpop.f32.mrb[177].mxu0  ;;  %v12998_v18 = vld [vmem:[#allocation9 + $0x144] ss:$8 sps:$4 sm:$0xff]  }
 0xf80   :  { %v7499_v19 = vadd.f32 %v16135_v23, %v7498_v55  ;;  %v11954_v15 = vpop.f32.mrb[178].mxu0  ;;  %v12996_v55 = vld [vmem:[#allocation9 + $0x140] ss:$8 sps:$4 sm:$0xff]   ;;  %7964 = vmatprep.subr.bf16.mxu0 %v12998_v18 }
 0xf81   :  { %v7510_v61 = vadd.f32 %v11954_v15, %v16135_v23  ;;  %v7501_v43 = vpop.f32.mrb[179].mxu0  ;;  %v7611_v59 = vmax.f32 %v7507_v8, 0.0  ;;  %7965 = vmatpush1.bf16.msra.mxu0 %v12996_v55 }
 0xf82   :  { %v7502_v63 = vadd.f32 %v16135_v23, %v7501_v43  ;;  %v7609_v34 = vmax.f32 %v7499_v19, 0.0 }
 0xf83   :  { %v7612_v37 = vmax.f32 %v7510_v61, 0.0 }
 0xf84   :  { %v7610_v58 = vmax.f32 %v7502_v63, 0.0 }
 0xf85   :  { %v7650_v29 = vpack.c.bf16 %v7612_v37, %v7611_v59 }
 0xf86   :  { %v7649_v26 = vpack.c.bf16 %v7610_v58, %v7609_v34  ;;  %v13001_v34 = vld [vmem:[#allocation9 + $0x154] ss:$8 sps:$4 sm:$0xff]  }
 0xf87   :  { %7966 = vmatprep.subr.bf16.mxu0 %v13001_v34 }
 0xf88   :  { %11359 = vmatprep.subr.bf16.mxu1 %v7649_v26  ;;  %7967 = vmatpush1.bf16.msra.mxu0 %v12999_v14 }
 0xf89   :  { %11360 = vmatpush3.bf16.msra.mxu1 %v16190_v36 }
 0xf8a   :  { %11361 = vmatprep.subr.bf16.mxu1 %v7650_v29 }
 0xf8d   :  { %11362 = vmatpush3.bf16.msra.mxu1 %v16188_v50 }
 0xf8e   :  { %v11957_v27 = vpop.f32.mrb[180].mxu0 }
 0xf8f   :  { %v7523_v8 = vadd.f32 %v11957_v27, %v16135_v23  ;;  %v7514_v1 = vpop.f32.mrb[181].mxu0 }
 0xf90   :  { %v7515_v19 = vadd.f32 %v16135_v23, %v7514_v1  ;;  %v11958_v15 = vpop.f32.mrb[182].mxu0 }
 0xf91   :  { %v7526_v49 = vadd.f32 %v11958_v15, %v16135_v23  ;;  %v7517_v61 = vpop.f32.mrb[183].mxu0  ;;  %v7615_v26 = vmax.f32 %v7523_v8, 0.0 }
 0xf92   :  { %v7518_v43 = vadd.f32 %v16135_v23, %v7517_v61  ;;  %v7613_v59 = vmax.f32 %v7515_v19, 0.0 }
 0xf93   :  { %v7616_v63 = vmax.f32 %v7526_v49, 0.0 }
 0xf94   :  { %v7614_v36 = vmax.f32 %v7518_v43, 0.0 }
 0xf95   :  { %v7652_v37 = vpack.c.bf16 %v7616_v63, %v7615_v26 }
 0xf96   :  { %v7651_v50 = vpack.c.bf16 %v7614_v36, %v7613_v59 }
 0xf98   :  { %11363 = vmatprep.subr.bf16.mxu1 %v7651_v50 }
 0xf99   :  { %11364 = vmatpush3.bf16.msra.mxu1 %v16198_v7 }
 0xf9a   :  { %11365 = vmatprep.subr.bf16.mxu1 %v7652_v37 }
 0xf9d   :  { %11366 = vmatpush3.bf16.msra.mxu1 %v16196_v21 }
 0xf9e   :  { %v11961_v58 = vpop.f32.mrb[184].mxu0 }
 0xf9f   :  { %v7539_v18 = vadd.f32 %v11961_v58, %v16135_v23  ;;  %v7530_v29 = vpop.f32.mrb[185].mxu0 }
 0xfa0   :  { %v7531_v55 = vadd.f32 %v16135_v23, %v7530_v29  ;;  %v11962_v27 = vpop.f32.mrb[186].mxu0 }
 0xfa1   :  { %v7542_v8 = vadd.f32 %v11962_v27, %v16135_v23  ;;  %v7533_v1 = vpop.f32.mrb[187].mxu0  ;;  %v7619_v15 = vmax.f32 %v7539_v18, 0.0 }
 0xfa2   :  { %v7534_v19 = vadd.f32 %v16135_v23, %v7533_v1  ;;  %v7617_v61 = vmax.f32 %v7531_v55, 0.0  ;;  %v13247_v1 = vld [vmem:[#allocation8 + $0x28] ss:$16 sps:$4 sm:$0xff]  }
 0xfa3   :  { %v7620_v49 = vmax.f32 %v7542_v8, 0.0  ;;  %v13246_v8 = vld [vmem:[#allocation8 + $0x2c] ss:$16 sps:$4 sm:$0xff]  }
 0xfa4   :  { %v7618_v43 = vmax.f32 %v7534_v19, 0.0  ;;  %v13249_v19 = vld [vmem:[#allocation8 + $0x48] ss:$16 sps:$4 sm:$0xff]  }
 0xfa5   :  { %v7654_v7 = vpack.c.bf16 %v7620_v49, %v7619_v15  ;;  %v13250_v15 = vld [vmem:[#allocation8 + $0x6c] ss:$16 sps:$4 sm:$0xff]   ;;  %v13251_v49 = vld [vmem:[#allocation8 + $0x68] ss:$16 sps:$4 sm:$0xff]  }
 0xfa6   :  { %v7653_v26 = vpack.c.bf16 %v7618_v43, %v7617_v61  ;;  %v13253_v61 = vld [vmem:[#allocation8 + $0x88] ss:$16 sps:$4 sm:$0xff]  }
 0xfa7   :  { %v13255_v43 = vld [vmem:[#allocation8 + $0xa8] ss:$16 sps:$4 sm:$0xff]  }
 0xfa8   :  { %11367 = vmatprep.subr.bf16.mxu1 %v7653_v26  ;;  %v13257_v26 = vld [vmem:[#allocation8 + $0xc8] ss:$16 sps:$4 sm:$0xff]  }
 0xfa9   :  { %11368 = vmatpush3.bf16.msra.mxu1 %v16206_v13 }
 0xfaa   :  { %11369 = vmatprep.subr.bf16.mxu1 %v7654_v7  ;;  %v13256_v7 = vld [vmem:[#allocation8 + $0xcc] ss:$16 sps:$4 sm:$0xff]  }
 0xfad   :  { %11370 = vmatpush3.bf16.msra.mxu1 %v16204_v56  ;;  %v13245_v56 = vld [vmem:[#allocation8 + $0x8] ss:$16 sps:$4 sm:$0xff]  }
 0xfae   :  { %v11965_v21 = vpop.f32.mrb[188].mxu0 }
 0xfaf   :  { %v7555_v63 = vadd.f32 %v11965_v21, %v16135_v23  ;;  %v7546_v59 = vpop.f32.mrb[189].mxu0  ;;  %v13258_v21 = vld [vmem:[#allocation8 + $0xec] ss:$16 sps:$4 sm:$0xff]  }
 0xfb0   :  { %v7547_v36 = vadd.f32 %v16135_v23, %v7546_v59  ;;  %v11966_v37 = vpop.f32.mrb[190].mxu0  ;;  %v13260_v59 = vld [vmem:[#allocation6 + $0x4] ss:$8 sps:$4 sm:$0xff]  }
 0xfb1   :  { %v7558_v14 = vadd.f32 %v11966_v37, %v16135_v23  ;;  %v7549_v34 = vpop.f32.mrb[191].mxu0  ;;  %v7623_v58 = vmax.f32 %v7555_v63, 0.0  ;;  %v13259_v63 = vld [vmem:[#allocation8 + $0xe8] ss:$16 sps:$4 sm:$0xff]   ;;  %v13004_v37 = vld [vmem:[#allocation9 + $0x164] ss:$8 sps:$4 sm:$0xff]  }
 0xfb2   :  { %v7550_v50 = vadd.f32 %v16135_v23, %v7549_v34  ;;  %v7621_v29 = vmax.f32 %v7547_v36, 0.0  ;;  %v13248_v23 = vld [vmem:[#allocation8 + $0x4c] ss:$16 sps:$4 sm:$0xff]   ;;  %v13002_v34 = vld [vmem:[#allocation9 + $0x160] ss:$8 sps:$4 sm:$0xff]   ;;  %7968 = vmatprep.subr.bf16.mxu0 %v13004_v37 }
 0xfb3   :  { %v7624_v18 = vmax.f32 %v7558_v14, 0.0  ;;  %7969 = vmatpush1.bf16.msra.mxu0 %v13002_v34 }
 0xfb4   :  { %v7622_v55 = vmax.f32 %v7550_v50, 0.0 }
 0xfb5   :  { %v7656_v13 = vpack.c.bf16 %v7624_v18, %v7623_v58 }
 0xfb6   :  { %v7655_v27 = vpack.c.bf16 %v7622_v55, %v7621_v29  ;;  %v13007_v55 = vld [vmem:[#allocation9 + $0x174] ss:$8 sps:$4 sm:$0xff]  }
 0xfb7   :  { %7970 = vmatprep.subr.bf16.mxu0 %v13007_v55 }
 0xfb8   :  { %11371 = vmatprep.subr.bf16.mxu1 %v7655_v27 }
 0xfb9   :  { %11372 = vmatpush3.bf16.msra.mxu1 %v16214_v28  ;;  %v13252_v28 = vld [vmem:[#allocation8 + $0x8c] ss:$16 sps:$4 sm:$0xff]  }
 0xfba   :  { %11373 = vmatprep.subr.bf16.mxu1 %v7656_v13  ;;  %v13005_v13 = vld [vmem:[#allocation9 + $0x170] ss:$8 sps:$4 sm:$0xff]  }
 0xfbb   :  { %7971 = vmatpush1.bf16.msra.mxu0 %v13005_v13 }
 0xfbc   :  { %8646 = vmatprep.subr.bf16.mxu0 %v17291_v0 }
 0xfbd   :  { %11374 = vmatpush3.bf16.msra.mxu1 %v16212_v4  ;;  %v13254_v4 = vld [vmem:[#allocation8 + $0xac] ss:$16 sps:$4 sm:$0xff]  }
 0xfbe   :  { %8189 = vmatprep.subr.bf16.mxu1 %v17291_v0 }
 0xfc0   :  { %7787 = vmatmul.mubr.bf16.vlgmr.msra.gmra.mrb[192].mxu1 %v13245_v56 }
 0xfc1   :  { %7794 = vmatprep.mubr.bf16.mxu1 %v13246_v8 }
 0xfc8   :  { %7795 = vmatmul.mubr.bf16.gmra.mrb[196].mxu1 %v13247_v1 }
 0xfc9   :  { %7802 = vmatprep.mubr.bf16.mxu1 %v13248_v23 }
 0xfd0   :  { %7803 = vmatmul.mubr.bf16.gmra.mrb[200].mxu1 %v13249_v19 }
 0xfd1   :  { %7810 = vmatprep.mubr.bf16.mxu1 %v13250_v15 }
 0xfd8   :  { %7811 = vmatmul.mubr.bf16.gmra.mrb[204].mxu1 %v13251_v49 }
 0xfd9   :  { %7818 = vmatprep.mubr.bf16.mxu1 %v13252_v28 }
 0xfe0   :  { %7819 = vmatmul.mubr.bf16.gmra.mrb[208].mxu1 %v13253_v61 }
 0xfe1   :  { %7826 = vmatprep.mubr.bf16.mxu1 %v13254_v4 }
 0xfe8   :  { %7827 = vmatmul.mubr.bf16.gmra.mrb[212].mxu1 %v13255_v43 }
 0xfe9   :  { %7834 = vmatprep.mubr.bf16.mxu1 %v13256_v7 }
 0xff0   :  { %7835 = vmatmul.mubr.bf16.gmra.mrb[216].mxu1 %v13257_v26 }
 0xff1   :  { %7842 = vmatprep.mubr.bf16.mxu1 %v13258_v21 }
 0xff8   :  { %7843 = vmatmul.mubr.bf16.gmra.mrb[220].mxu1 %v13259_v63 }
 0xff9   :  { %8221 = vmatprep.mubr.bf16.mxu1 %v13260_v59 }
0x1013   :  { %v11311_v36 = vpop.f32.mrb[192].mxu0 }
0x1014   :  { %v11312_v14 = vpop.f32.mrb[193].mxu0 }
0x1015   :  { %v11313_v50 = vadd.f32 %v11312_v14, %v11311_v36  ;;  %v11314_v58 = vpop.f32.mrb[194].mxu0 }
0x1016   :  { %v11315_v18 = vpop.f32.mrb[195].mxu0 }
0x1017   :  { %v11316_v29 = vadd.f32 %v11315_v18, %v11314_v58 }
0x101b   :  { %v11317_v27 = vpop.f32.mrb[196].mxu0 }
0x101c   :  { %v11318_v56 = vpop.f32.mrb[197].mxu0 }
0x101d   :  { %v11319_v8 = vadd.f32 %v11318_v56, %v11317_v27  ;;  %v11320_v1 = vpop.f32.mrb[198].mxu0 }
0x101e   :  { %v11321_v23 = vpop.f32.mrb[199].mxu0 }
0x101f   :  { %v11322_v19 = vadd.f32 %v11321_v23, %v11320_v1 }
0x1023   :  { %v11323_v15 = vpop.f32.mrb[200].mxu0 }
0x1024   :  { %v11324_v49 = vpop.f32.mrb[201].mxu0 }
0x1025   :  { %v11325_v28 = vadd.f32 %v11324_v49, %v11323_v15  ;;  %v11326_v61 = vpop.f32.mrb[202].mxu0 }
0x1026   :  { %v11327_v4 = vpop.f32.mrb[203].mxu0 }
0x1027   :  { %v11328_v43 = vadd.f32 %v11327_v4, %v11326_v61 }
0x102b   :  { %v11329_v7 = vpop.f32.mrb[204].mxu0 }
0x102c   :  { %v11330_v26 = vpop.f32.mrb[205].mxu0 }
0x102d   :  { %v16243_v21 = vadd.f32 %v11330_v26, %v11329_v7  ;;  %v11332_v63 = vpop.f32.mrb[206].mxu0 }
0x102e   :  { %v11333_v59 = vpop.f32.mrb[207].mxu0 }
0x102f   :  { %v16245_v36 = vadd.f32 %v11333_v59, %v11332_v63 }
0x1033   :  { %v11335_v37 = vpop.f32.mrb[208].mxu0 }
0x1034   :  { %v11336_v14 = vpop.f32.mrb[209].mxu0 }
0x1035   :  { %v16247_v34 = vadd.f32 %v11336_v14, %v11335_v37  ;;  %v11338_v58 = vpop.f32.mrb[210].mxu0 }
0x1036   :  { %v11339_v18 = vpop.f32.mrb[211].mxu0 }
0x1037   :  { %v16249_v55 = vadd.f32 %v11339_v18, %v11338_v58 }
0x103b   :  { %v11341_v13 = vpop.f32.mrb[212].mxu0 }
0x103c   :  { %v11342_v27 = vpop.f32.mrb[213].mxu0 }
0x103d   :  { %v16251_v56 = vadd.f32 %v11342_v27, %v11341_v13  ;;  %v11344_v1 = vpop.f32.mrb[214].mxu0 }
0x103e   :  { %v11345_v23 = vpop.f32.mrb[215].mxu0 }
0x103f   :  { %v16253_v15 = vadd.f32 %v11345_v23, %v11344_v1 }
0x1043   :  { %v11347_v49 = vpop.f32.mrb[216].mxu0 }
0x1044   :  { %v11348_v61 = vpop.f32.mrb[217].mxu0 }
0x1045   :  { %v16255_v4 = vadd.f32 %v11348_v61, %v11347_v49  ;;  %v11350_v7 = vpop.f32.mrb[218].mxu0 }
0x1046   :  { %v11351_v26 = vpop.f32.mrb[219].mxu0 }
0x1047   :  { %v16257_v63 = vadd.f32 %v11351_v26, %v11350_v7 }
0x104b   :  { %v11353_v59 = vpop.f32.mrb[220].mxu0 }
0x104c   :  { %v11354_v37 = vpop.f32.mrb[221].mxu0 }
0x104d   :  { %v16259_v14 = vadd.f32 %v11354_v37, %v11353_v59  ;;  %v11356_v58 = vpop.f32.mrb[222].mxu0 }
0x104e   :  { %v11357_v18 = vpop.f32.mrb[223].mxu0 }
0x104f   :  { %v16261_v13 = vadd.f32 %v11357_v18, %v11356_v58 }
0x1093   :  { %v11375_v27 = vpop.f32.mrb[192].mxu1 }
0x1094   :  { %v11376_v12 = vpop.f32.mrb[193].mxu1 }
0x1095   :  { %v11377_v1 = vadd.f32 %v11376_v12, %v11375_v27  ;;  %v11378_v23 = vpop.f32.mrb[194].mxu1 }
0x1096   :  { %v11379_v39 = vpop.f32.mrb[195].mxu1 }
0x1097   :  { %v7789_v46 = vadd.f32 %v11377_v1, %v11313_v50  ;;  %v11380_v49 = vadd.f32 %v11379_v39, %v11378_v23 }
0x1099   :  { %v7792_v61 = vadd.f32 %v11380_v49, %v11316_v29 }
0x109b   :  { %v7851_v48 = vpack.c.bf16 %v7792_v61, %v7789_v46  ;;  %v11381_v10 = vpop.f32.mrb[196].mxu1 }
0x109c   :  { %v11382_v7 = vpop.f32.mrb[197].mxu1 }
0x109d   :  { %v11383_v26 = vadd.f32 %v11382_v7, %v11381_v10  ;;  %v11384_v62 = vpop.f32.mrb[198].mxu1  ;;  %7989 = vmatmul.mubr.bf16.vlgmr.msra.gmra.mrb[224].mxu0 %v7851_v48 }
0x109e   :  { %v11385_v59 = vpop.f32.mrb[199].mxu1  ;;  %7998 = vmatprep.mubr.bf16.mxu0 %v17291_v0 }
0x109f   :  { %v7797_v37 = vadd.f32 %v11383_v26, %v11319_v8  ;;  %v11386_v58 = vadd.f32 %v11385_v59, %v11384_v62 }
0x10a1   :  { %v7800_v18 = vadd.f32 %v11386_v58, %v11322_v19 }
0x10a3   :  { %v7852_v33 = vpack.c.bf16 %v7800_v18, %v7797_v37  ;;  %v11387_v35 = vpop.f32.mrb[200].mxu1 }
0x10a4   :  { %v11388_v12 = vpop.f32.mrb[201].mxu1 }
0x10a5   :  { %v11389_v27 = vadd.f32 %v11388_v12, %v11387_v35  ;;  %v11390_v11 = vpop.f32.mrb[202].mxu1  ;;  %7999 = vmatmul.mubr.bf16.gmra.mrb[228].mxu0 %v7852_v33 }
0x10a6   :  { %v11391_v39 = vpop.f32.mrb[203].mxu1  ;;  %8008 = vmatprep.mubr.bf16.mxu0 %v17291_v0 }
0x10a7   :  { %v7805_v46 = vadd.f32 %v11389_v27, %v11325_v28  ;;  %v11392_v50 = vadd.f32 %v11391_v39, %v11390_v11 }
0x10a9   :  { %v7808_v10 = vadd.f32 %v11392_v50, %v11328_v43 }
0x10ab   :  { %v7853_v29 = vpack.c.bf16 %v7808_v10, %v7805_v46  ;;  %v11393_v48 = vpop.f32.mrb[204].mxu1 }
0x10ac   :  { %v11394_v1 = vpop.f32.mrb[205].mxu1 }
0x10ad   :  { %v11395_v23 = vadd.f32 %v11394_v1, %v11393_v48  ;;  %v11396_v49 = vpop.f32.mrb[206].mxu1  ;;  %8009 = vmatmul.mubr.bf16.gmra.mrb[232].mxu0 %v7853_v29 }
0x10ae   :  { %v11397_v62 = vpop.f32.mrb[207].mxu1  ;;  %8018 = vmatprep.mubr.bf16.mxu0 %v17291_v0 }
0x10af   :  { %v7813_v8 = vadd.f32 %v11395_v23, %v16243_v21  ;;  %v11398_v35 = vadd.f32 %v11397_v62, %v11396_v49 }
0x10b1   :  { %v7816_v33 = vadd.f32 %v11398_v35, %v16245_v36 }
0x10b3   :  { %v7854_v19 = vpack.c.bf16 %v7816_v33, %v7813_v8  ;;  %v11399_v61 = vpop.f32.mrb[208].mxu1 }
0x10b4   :  { %v11400_v7 = vpop.f32.mrb[209].mxu1 }
0x10b5   :  { %v11401_v28 = vadd.f32 %v11400_v7, %v11399_v61  ;;  %v11402_v11 = vpop.f32.mrb[210].mxu1  ;;  %8019 = vmatmul.mubr.bf16.gmra.mrb[236].mxu0 %v7854_v19 }
0x10b6   :  { %v11403_v43 = vpop.f32.mrb[211].mxu1  ;;  %8028 = vmatprep.mubr.bf16.mxu0 %v17291_v0 }
0x10b7   :  { %v7821_v26 = vadd.f32 %v11401_v28, %v16247_v34  ;;  %v11404_v59 = vadd.f32 %v11403_v43, %v11402_v11 }
0x10b9   :  { %v7824_v37 = vadd.f32 %v11404_v59, %v16249_v55 }
0x10bb   :  { %v7855_v58 = vpack.c.bf16 %v7824_v37, %v7821_v26  ;;  %v11405_v18 = vpop.f32.mrb[212].mxu1 }
0x10bc   :  { %v11406_v21 = vpop.f32.mrb[213].mxu1 }
0x10bd   :  { %v11407_v12 = vadd.f32 %v11406_v21, %v11405_v18  ;;  %v11408_v27 = vpop.f32.mrb[214].mxu1  ;;  %8029 = vmatmul.mubr.bf16.gmra.mrb[240].mxu0 %v7855_v58 }
0x10be   :  { %v11409_v36 = vpop.f32.mrb[215].mxu1  ;;  %8038 = vmatprep.mubr.bf16.mxu0 %v17291_v0 }
0x10bf   :  { %v7829_v39 = vadd.f32 %v11407_v12, %v16251_v56  ;;  %v11410_v46 = vadd.f32 %v11409_v36, %v11408_v27 }
0x10c1   :  { %v7832_v50 = vadd.f32 %v11410_v46, %v16253_v15 }
0x10c3   :  { %v7856_v10 = vpack.c.bf16 %v7832_v50, %v7829_v39  ;;  %v11411_v29 = vpop.f32.mrb[216].mxu1 }
0x10c4   :  { %v11412_v34 = vpop.f32.mrb[217].mxu1 }
0x10c5   :  { %v11413_v48 = vadd.f32 %v11412_v34, %v11411_v29  ;;  %v11414_v1 = vpop.f32.mrb[218].mxu1  ;;  %8039 = vmatmul.mubr.bf16.gmra.mrb[244].mxu0 %v7856_v10 }
0x10c6   :  { %v11415_v55 = vpop.f32.mrb[219].mxu1  ;;  %8048 = vmatprep.mubr.bf16.mxu0 %v17291_v0 }
0x10c7   :  { %v7837_v23 = vadd.f32 %v11413_v48, %v16255_v4  ;;  %v11416_v49 = vadd.f32 %v11415_v55, %v11414_v1  ;;  %v13261_v4 = vld [vmem:[%s17164_s3 + $0x4] ss:$16 sps:$4 sm:$0xff]  }
0x10c9   :  { %v7840_v62 = vadd.f32 %v11416_v49, %v16257_v63 }
0x10cb   :  { %v7857_v8 = vpack.c.bf16 %v7840_v62, %v7837_v23  ;;  %v11417_v35 = vpop.f32.mrb[220].mxu1 }
0x10cc   :  { %v11418_v56 = vpop.f32.mrb[221].mxu1 }
0x10cd   :  { %v11419_v33 = vadd.f32 %v11418_v56, %v11417_v35  ;;  %v11420_v19 = vpop.f32.mrb[222].mxu1  ;;  %8049 = vmatmul.mubr.bf16.gmra.mrb[248].mxu0 %v7857_v8 }
0x10ce   :  { %v11421_v15 = vpop.f32.mrb[223].mxu1  ;;  %8058 = vmatprep.mubr.bf16.mxu0 %v17291_v0 }
0x10cf   :  { %v7845_v61 = vadd.f32 %v11419_v33, %v16259_v14  ;;  %v11422_v7 = vadd.f32 %v11421_v15, %v11420_v19 }
0x10d1   :  { %v7848_v28 = vadd.f32 %v11422_v7, %v16261_v13 }
0x10d3   :  { %v7858_v11 = vpack.c.bf16 %v7848_v28, %v7845_v61 }
0x10d5   :  { %8059 = vmatmul.mubr.bf16.gmra.mrb[252].mxu0 %v7858_v11 }
0x10d6   :  { %8678 = vmatprep.mubr.bf16.mxu0 %v13261_v4 }
0x1170   :  { %v7990_v63 = vpop.f32.mrb[224].mxu0 }
0x1171   :  { %v16283_v43 = vpop.f32.mrb[225].mxu0 }
0x1172   :  { %v7994_v26 = vpop.f32.mrb[226].mxu0 }
0x1173   :  { %v8069_v59 = vpack.c.bf16 %v7994_v26, %v7990_v63  ;;  %v7996_v37 = vpop.f32.mrb[227].mxu0 }
0x1174   :  { %v8085_v58 = vpack.c.bf16 %v7996_v37, %v16283_v43 }
0x1175   :  { %8190 = vmatpush1.bf16.msra.mxu1 %v8069_v59 }
0x1176   :  { %8191 = vmatprep.subr.bf16.mxu1 %v17291_v0 }
0x1178   :  { %v8000_v14 = vpop.f32.mrb[228].mxu0 }
0x1179   :  { %v8002_v13 = vpop.f32.mrb[229].mxu0 }
0x117a   :  { %v8004_v18 = vpop.f32.mrb[230].mxu0 }
0x117b   :  { %v8070_v21 = vpack.c.bf16 %v8004_v18, %v8000_v14  ;;  %v8006_v12 = vpop.f32.mrb[231].mxu0 }
0x117c   :  { %v8086_v27 = vpack.c.bf16 %v8006_v12, %v8002_v13 }
0x117d   :  { %8192 = vmatpush1.bf16.msra.mxu1 %v8070_v21 }
0x117e   :  { %8193 = vmatprep.subr.bf16.mxu1 %v17291_v0 }
0x1180   :  { %v8010_v36 = vpop.f32.mrb[232].mxu0 }
0x1181   :  { %v8012_v39 = vpop.f32.mrb[233].mxu0 }
0x1182   :  { %v8014_v46 = vpop.f32.mrb[234].mxu0 }
0x1183   :  { %v8071_v50 = vpack.c.bf16 %v8014_v46, %v8010_v36  ;;  %v8016_v10 = vpop.f32.mrb[235].mxu0  ;;  %v13264_v46 = vld [vmem:[#allocation6 + $0x10] ss:$8 sps:$4 sm:$0xff]  }
0x1184   :  { %v8087_v29 = vpack.c.bf16 %v8016_v10, %v8012_v39  ;;  %v13266_v10 = vld [vmem:[#allocation6 + $0x20] ss:$8 sps:$4 sm:$0xff]  }
0x1185   :  { %8194 = vmatpush1.bf16.msra.mxu1 %v8071_v50  ;;  %v13265_v50 = vld [vmem:[#allocation6 + $0x24] ss:$8 sps:$4 sm:$0xff]  }
0x1186   :  { %8195 = vmatprep.subr.bf16.mxu1 %v17291_v0 }
0x1188   :  { %v8020_v34 = vpop.f32.mrb[236].mxu0 }
0x1189   :  { %v8022_v48 = vpop.f32.mrb[237].mxu0 }
0x118a   :  { %v8024_v1 = vpop.f32.mrb[238].mxu0 }
0x118b   :  { %v8072_v55 = vpack.c.bf16 %v8024_v1, %v8020_v34  ;;  %v8026_v23 = vpop.f32.mrb[239].mxu0  ;;  %v13268_v34 = vld [vmem:[#allocation6 + $0x30] ss:$8 sps:$4 sm:$0xff]   ;;  %v13270_v1 = vld [vmem:[#allocation6 + $0x40] ss:$8 sps:$4 sm:$0xff]  }
0x118c   :  { %v8088_v49 = vpack.c.bf16 %v8026_v23, %v8022_v48  ;;  %v13269_v48 = vld [vmem:[#allocation6 + $0x44] ss:$8 sps:$4 sm:$0xff]   ;;  %v13272_v23 = vld [vmem:[#allocation6 + $0x50] ss:$8 sps:$4 sm:$0xff]  }
0x118d   :  { %8196 = vmatpush1.bf16.msra.mxu1 %v8072_v55  ;;  %v13271_v55 = vld [vmem:[#allocation6 + $0x54] ss:$8 sps:$4 sm:$0xff]  }
0x118e   :  { %8197 = vmatprep.subr.bf16.mxu1 %v17291_v0 }
0x1190   :  { %v8030_v62 = vpop.f32.mrb[240].mxu0 }
0x1191   :  { %v8032_v8 = vpop.f32.mrb[241].mxu0 }
0x1192   :  { %v8034_v35 = vpop.f32.mrb[242].mxu0 }
0x1193   :  { %v8073_v56 = vpack.c.bf16 %v8034_v35, %v8030_v62  ;;  %v8036_v33 = vpop.f32.mrb[243].mxu0  ;;  %v13274_v62 = vld [vmem:[#allocation6 + $0x60] ss:$8 sps:$4 sm:$0xff]   ;;  %v13276_v35 = vld [vmem:[#allocation6 + $0x70] ss:$8 sps:$4 sm:$0xff]  }
0x1194   :  { %v8089_v19 = vpack.c.bf16 %v8036_v33, %v8032_v8  ;;  %v13275_v8 = vld [vmem:[#allocation6 + $0x74] ss:$8 sps:$4 sm:$0xff]   ;;  %v13278_v33 = vld [vmem:[#allocation6 + $0x80] ss:$8 sps:$4 sm:$0xff]  }
0x1195   :  { %8198 = vmatpush1.bf16.msra.mxu1 %v8073_v56  ;;  %v13277_v56 = vld [vmem:[#allocation6 + $0x84] ss:$8 sps:$4 sm:$0xff]  }
0x1196   :  { %8199 = vmatprep.subr.bf16.mxu1 %v17291_v0 }
0x1198   :  { %v8040_v15 = vpop.f32.mrb[244].mxu0 }
0x1199   :  { %v8042_v61 = vpop.f32.mrb[245].mxu0 }
0x119a   :  { %v8044_v7 = vpop.f32.mrb[246].mxu0 }
0x119b   :  { %v8074_v28 = vpack.c.bf16 %v8044_v7, %v8040_v15  ;;  %v8046_v11 = vpop.f32.mrb[247].mxu0  ;;  %v13280_v15 = vld [vmem:[#allocation6 + $0x90] ss:$8 sps:$4 sm:$0xff]   ;;  %v13282_v7 = vld [vmem:[#allocation6 + $0xa0] ss:$8 sps:$4 sm:$0xff]  }
0x119c   :  { %v8090_v4 = vpack.c.bf16 %v8046_v11, %v8042_v61  ;;  %v13281_v61 = vld [vmem:[#allocation6 + $0xa4] ss:$8 sps:$4 sm:$0xff]   ;;  %v13284_v11 = vld [vmem:[#allocation6 + $0xb0] ss:$8 sps:$4 sm:$0xff]  }
0x119d   :  { %8200 = vmatpush1.bf16.msra.mxu1 %v8074_v28  ;;  %v13283_v28 = vld [vmem:[#allocation6 + $0xb4] ss:$8 sps:$4 sm:$0xff]  }
0x119e   :  { %8201 = vmatprep.subr.bf16.mxu1 %v17291_v0 }
0x11a0   :  { %v8050_v63 = vpop.f32.mrb[248].mxu0 }
0x11a1   :  { %v8052_v43 = vpop.f32.mrb[249].mxu0 }
0x11a2   :  { %v8054_v26 = vpop.f32.mrb[250].mxu0 }
0x11a3   :  { %v8075_v59 = vpack.c.bf16 %v8054_v26, %v8050_v63  ;;  %v8056_v37 = vpop.f32.mrb[251].mxu0  ;;  %v13286_v63 = vld [vmem:[#allocation6 + $0xc0] ss:$8 sps:$4 sm:$0xff]   ;;  %v13288_v26 = vld [vmem:[#allocation6 + $0xd0] ss:$8 sps:$4 sm:$0xff]  }
0x11a4   :  { %v8091_v14 = vpack.c.bf16 %v8056_v37, %v8052_v43  ;;  %v13287_v43 = vld [vmem:[#allocation6 + $0xd4] ss:$8 sps:$4 sm:$0xff]   ;;  %v13290_v37 = vld [vmem:[#allocation6 + $0xe0] ss:$8 sps:$4 sm:$0xff]  }
0x11a5   :  { %8202 = vmatpush1.bf16.msra.mxu1 %v8075_v59  ;;  %v13289_v59 = vld [vmem:[#allocation6 + $0xe4] ss:$8 sps:$4 sm:$0xff]  }
0x11a6   :  { %8203 = vmatprep.subr.bf16.mxu1 %v17291_v0 }
0x11a8   :  { %v8060_v13 = vpop.f32.mrb[252].mxu0 }
0x11a9   :  { %v8062_v18 = vpop.f32.mrb[253].mxu0 }
0x11aa   :  { %v8064_v21 = vpop.f32.mrb[254].mxu0 }
0x11ab   :  { %v8076_v12 = vpack.c.bf16 %v8064_v21, %v8060_v13  ;;  %v8066_v36 = vpop.f32.mrb[255].mxu0  ;;  %v13292_v13 = vld [vmem:[#allocation6 + $0xf0] ss:$8 sps:$4 sm:$0xff]   ;;  %v13294_v21 = vld [vmem:[#allocation6 + $0x100] ss:$8 sps:$4 sm:$0xff]  }
0x11ac   :  { %v8092_v39 = vpack.c.bf16 %v8066_v36, %v8062_v18  ;;  %v13293_v18 = vld [vmem:[#allocation6 + $0x104] ss:$8 sps:$4 sm:$0xff]   ;;  %v13296_v36 = vld [vmem:[#allocation6 + $0x110] ss:$8 sps:$4 sm:$0xff]  }
0x11ad   :  { %8204 = vmatpush1.bf16.msra.mxu1 %v8076_v12  ;;  %v13295_v12 = vld [vmem:[#allocation6 + $0x114] ss:$8 sps:$4 sm:$0xff]  }
0x11ae   :  { %8205 = vmatprep.subr.bf16.mxu1 %v17291_v0 }
0x11b1   :  { %8206 = vmatpush1.bf16.msra.mxu1 %v8085_v58  ;;  %v13262_v58 = vld [vmem:[#allocation6] ss:$8 sps:$4 sm:$0xff]  }
0x11b2   :  { %8207 = vmatprep.subr.bf16.mxu1 %v17291_v0 }
0x11b5   :  { %8208 = vmatpush1.bf16.msra.mxu1 %v8086_v27  ;;  %v13263_v27 = vld [vmem:[#allocation6 + $0x14] ss:$8 sps:$4 sm:$0xff]  }
0x11b6   :  { %8209 = vmatprep.subr.bf16.mxu1 %v17291_v0 }
0x11b9   :  { %8210 = vmatpush1.bf16.msra.mxu1 %v8087_v29  ;;  %v13267_v29 = vld [vmem:[#allocation6 + $0x34] ss:$8 sps:$4 sm:$0xff]  }
0x11ba   :  { %8211 = vmatprep.subr.bf16.mxu1 %v17291_v0 }
0x11bd   :  { %8212 = vmatpush1.bf16.msra.mxu1 %v8088_v49  ;;  %v13273_v49 = vld [vmem:[#allocation6 + $0x64] ss:$8 sps:$4 sm:$0xff]  }
0x11be   :  { %8213 = vmatprep.subr.bf16.mxu1 %v17291_v0 }
0x11c1   :  { %8214 = vmatpush1.bf16.msra.mxu1 %v8089_v19  ;;  %v13279_v19 = vld [vmem:[#allocation6 + $0x94] ss:$8 sps:$4 sm:$0xff]  }
0x11c2   :  { %8215 = vmatprep.subr.bf16.mxu1 %v17291_v0 }
0x11c5   :  { %8216 = vmatpush1.bf16.msra.mxu1 %v8090_v4  ;;  %v13285_v4 = vld [vmem:[#allocation6 + $0xc4] ss:$8 sps:$4 sm:$0xff]  }
0x11c6   :  { %8217 = vmatprep.subr.bf16.mxu1 %v17291_v0 }
0x11c9   :  { %8218 = vmatpush1.bf16.msra.mxu1 %v8091_v14  ;;  %v13291_v14 = vld [vmem:[#allocation6 + $0xf4] ss:$8 sps:$4 sm:$0xff]  }
0x11ca   :  { %8219 = vmatprep.subr.bf16.mxu1 %v17291_v0 }
0x11cd   :  { %8220 = vmatpush1.bf16.msra.mxu1 %v8092_v39  ;;  %v13297_v39 = vld [vmem:[#allocation6 + $0x124] ss:$8 sps:$4 sm:$0xff]  }
0x11d0   :  { %8222 = vmatmul.mubr.bf16.vlgmr.msra.gmra.mrb[224].mxu1 %v13262_v58  ;;  %v13298_v58 = vld [vmem:[#allocation6 + $0x120] ss:$8 sps:$4 sm:$0xff]  }
0x11d1   :  { %8229 = vmatprep.mubr.bf16.mxu1 %v13263_v27  ;;  %v13299_v27 = vld [vmem:[#allocation6 + $0x134] ss:$8 sps:$4 sm:$0xff]  }
0x11d8   :  { %8230 = vmatmul.mubr.bf16.gmra.mrb[228].mxu1 %v13264_v46  ;;  %v13300_v46 = vld [vmem:[#allocation6 + $0x130] ss:$8 sps:$4 sm:$0xff]  }
0x11d9   :  { %8237 = vmatprep.mubr.bf16.mxu1 %v13265_v50  ;;  %v13301_v50 = vld [vmem:[#allocation6 + $0x144] ss:$8 sps:$4 sm:$0xff]  }
0x11e0   :  { %8238 = vmatmul.mubr.bf16.gmra.mrb[232].mxu1 %v13266_v10  ;;  %v13302_v10 = vld [vmem:[#allocation6 + $0x140] ss:$8 sps:$4 sm:$0xff]  }
0x11e1   :  { %8245 = vmatprep.mubr.bf16.mxu1 %v13267_v29  ;;  %v13303_v29 = vld [vmem:[#allocation6 + $0x154] ss:$8 sps:$4 sm:$0xff]  }
0x11e8   :  { %8246 = vmatmul.mubr.bf16.gmra.mrb[236].mxu1 %v13268_v34  ;;  %v13304_v34 = vld [vmem:[#allocation6 + $0x150] ss:$8 sps:$4 sm:$0xff]  }
0x11e9   :  { %8253 = vmatprep.mubr.bf16.mxu1 %v13269_v48  ;;  %v13305_v48 = vld [vmem:[#allocation6 + $0x164] ss:$8 sps:$4 sm:$0xff]  }
0x11f0   :  { %8254 = vmatmul.mubr.bf16.gmra.mrb[240].mxu1 %v13270_v1  ;;  %v13306_v1 = vld [vmem:[#allocation6 + $0x160] ss:$8 sps:$4 sm:$0xff]  }
0x11f1   :  { %8261 = vmatprep.mubr.bf16.mxu1 %v13271_v55  ;;  %v13307_v55 = vld [vmem:[#allocation6 + $0x174] ss:$8 sps:$4 sm:$0xff]  }
0x11f8   :  { %8262 = vmatmul.mubr.bf16.gmra.mrb[244].mxu1 %v13272_v23  ;;  %v13308_v23 = vld [vmem:[#allocation6 + $0x170] ss:$8 sps:$4 sm:$0xff]  }
0x11f9   :  { %8269 = vmatprep.mubr.bf16.mxu1 %v13273_v49  ;;  %v13309_v49 = vld [vmem:[#allocation6 + $0x184] ss:$8 sps:$4 sm:$0xff]  }
0x1200   :  { %8270 = vmatmul.mubr.bf16.gmra.mrb[248].mxu1 %v13274_v62  ;;  %v13310_v62 = vld [vmem:[#allocation6 + $0x180] ss:$8 sps:$4 sm:$0xff]  }
0x1201   :  { %8277 = vmatprep.mubr.bf16.mxu1 %v13275_v8  ;;  %v13311_v8 = vld [vmem:[#allocation6 + $0x194] ss:$8 sps:$4 sm:$0xff]  }
0x1208   :  { %8278 = vmatmul.mubr.bf16.gmra.mrb[252].mxu1 %v13276_v35  ;;  %v13312_v35 = vld [vmem:[#allocation6 + $0x190] ss:$8 sps:$4 sm:$0xff]  }
0x1209   :  { %8285 = vmatprep.mubr.bf16.mxu1 %v13277_v56  ;;  %v13313_v56 = vld [vmem:[#allocation6 + $0x1a4] ss:$8 sps:$4 sm:$0xff]  }
0x1210   :  { %8286 = vmatmul.mubr.bf16.gmra.mrb[0].mxu1 %v13278_v33  ;;  %v7008_v33 = vpop.xlane.xlu1 %7007 }
0x1211   :  { %8293 = vmatprep.mubr.bf16.mxu1 %v13279_v19  ;;  %v7010_v19 = vpop.xlane.xlu0 %7009 }
0x1218   :  { %8294 = vmatmul.mubr.bf16.gmra.mrb[4].mxu1 %v13280_v15  ;;  %v7135_v15 = vmul.f32 0.0078125, %v7008_v33 }
0x1219   :  { %8301 = vmatprep.mubr.bf16.mxu1 %v13281_v61  ;;  %v16304_v61 = vld [vmem:[%s17168_s7 + $0x2] ss:$0 sm:$0xff] }
0x1220   :  { %8302 = vmatmul.mubr.bf16.gmra.mrb[8].mxu1 %v13282_v7  ;;  %v7136_v7 = vmul.f32 0.0078125, %v7010_v19 }
0x1221   :  { %8309 = vmatprep.mubr.bf16.mxu1 %v13283_v28  ;;  %v13314_v28 = vld [vmem:[#allocation6 + $0x1a0] ss:$8 sps:$4 sm:$0xff]  }
0x1228   :  { %8310 = vmatmul.mubr.bf16.gmra.mrb[12].mxu1 %v13284_v11  ;;  %v13315_v11 = vld [vmem:[#allocation6 + $0x1b4] ss:$8 sps:$4 sm:$0xff]  }
0x1229   :  { %8317 = vmatprep.mubr.bf16.mxu1 %v13285_v4  ;;  %v8125_v4 = vmul.f32 %v16304_v61, %v7135_v15 }
0x1230   :  { %8318 = vmatmul.mubr.bf16.gmra.mrb[16].mxu1 %v13286_v63  ;;  %v7012_v63 = vpop.xlane.xlu1 %7011 }
0x1231   :  { %8325 = vmatprep.mubr.bf16.mxu1 %v13287_v43 }
0x1238   :  { %8326 = vmatmul.mubr.bf16.gmra.mrb[20].mxu1 %v13288_v26  ;;  %v16310_v26 = vld [vmem:[%s17169_s8 + $0x2] ss:$0 sm:$0xff] }
0x1239   :  { %8333 = vmatprep.mubr.bf16.mxu1 %v13289_v59  ;;  %v8126_v59 = vmul.f32 %v16304_v61, %v7136_v7 }
0x1240   :  { %8334 = vmatmul.mubr.bf16.gmra.mrb[24].mxu1 %v13290_v37 }
0x1241   :  { %8341 = vmatprep.mubr.bf16.mxu1 %v13291_v14 }
0x1248   :  { %8342 = vmatmul.mubr.bf16.gmra.mrb[28].mxu1 %v13292_v13  ;;  %v7014_v13 = vpop.xlane.xlu0 %7013 }
0x1249   :  { %8349 = vmatprep.mubr.bf16.mxu1 %v13293_v18 }
0x1250   :  { %8350 = vmatmul.mubr.bf16.gmra.mrb[32].mxu1 %v13294_v21  ;;  %v7137_v21 = vmul.f32 0.0078125, %v7012_v63 }
0x1251   :  { %8357 = vmatprep.mubr.bf16.mxu1 %v13295_v12 }
0x1258   :  { %8358 = vmatmul.mubr.bf16.gmra.mrb[36].mxu1 %v13296_v36 }
0x1259   :  { %8365 = vmatprep.mubr.bf16.mxu1 %v13297_v39 }
0x1260   :  { %8366 = vmatmul.mubr.bf16.gmra.mrb[40].mxu1 %v13298_v58  ;;  %v7138_v58 = vmul.f32 0.0078125, %v7014_v13 }
0x1261   :  { %8373 = vmatprep.mubr.bf16.mxu1 %v13299_v27 }
0x1268   :  { %8374 = vmatmul.mubr.bf16.gmra.mrb[44].mxu1 %v13300_v46  ;;  %v13316_v46 = vld [vmem:[#allocation6 + $0x1b0] ss:$8 sps:$4 sm:$0xff]  }
0x1269   :  { %8381 = vmatprep.mubr.bf16.mxu1 %v13301_v50  ;;  %v13317_v50 = vld [vmem:[#allocation6 + $0x1c4] ss:$8 sps:$4 sm:$0xff]  }
0x1270   :  { %8382 = vmatmul.mubr.bf16.gmra.mrb[48].mxu1 %v13302_v10  ;;  %v8127_v10 = vmul.f32 %v16304_v61, %v7137_v21 }
0x1271   :  { %8389 = vmatprep.mubr.bf16.mxu1 %v13303_v29 }
0x1278   :  { %8390 = vmatmul.mubr.bf16.gmra.mrb[52].mxu1 %v13304_v34 }
0x1279   :  { %8397 = vmatprep.mubr.bf16.mxu1 %v13305_v48  ;;  %v7016_v48 = vpop.xlane.xlu1 %7015 }
0x1280   :  { %8398 = vmatmul.mubr.bf16.gmra.mrb[56].mxu1 %v13306_v1 }
0x1281   :  { %8405 = vmatprep.mubr.bf16.mxu1 %v13307_v55  ;;  %v8128_v55 = vmul.f32 %v16304_v61, %v7138_v58 }
0x1288   :  { %8406 = vmatmul.mubr.bf16.gmra.mrb[60].mxu1 %v13308_v23 }
0x1289   :  { %8413 = vmatprep.mubr.bf16.mxu1 %v13309_v49 }
0x1290   :  { %8414 = vmatmul.mubr.bf16.gmra.mrb[64].mxu1 %v13310_v62 }
0x1291   :  { %8421 = vmatprep.mubr.bf16.mxu1 %v13311_v8  ;;  %v7018_v8 = vpop.xlane.xlu0 %7017 }
0x1292   :  { %v7140_v7 = vmul.f32 0.0078125, %v7018_v8 }
0x1294   :  { %v8130_v13 = vmul.f32 %v16304_v61, %v7140_v7 }
0x1298   :  { %8422 = vmatmul.mubr.bf16.gmra.mrb[68].mxu1 %v13312_v35 }
0x1299   :  { %8429 = vmatprep.mubr.bf16.mxu1 %v13313_v56  ;;  %v7139_v56 = vmul.f32 0.0078125, %v7016_v48  ;;  %v13321_v48 = vld [vmem:[#allocation6 + $0x1e4] ss:$8 sps:$4 sm:$0xff]  }
0x129b   :  { %v8129_v63 = vmul.f32 %v16304_v61, %v7139_v56 }
0x12a0   :  { %8430 = vmatmul.mubr.bf16.gmra.mrb[72].mxu1 %v13314_v28 }
0x12a1   :  { %8437 = vmatprep.mubr.bf16.mxu1 %v13315_v11  ;;  %v13318_v11 = vld [vmem:[#allocation6 + $0x1c0] ss:$8 sps:$4 sm:$0xff]  }
0x12a3   :  { %v8223_v43 = vpop.f32.mrb[224].mxu1 }
0x12a4   :  { %v8224_v37 = vadd.f32 %v8223_v43, %v8125_v4  ;;  %v8225_v14 = vpop.f32.mrb[225].mxu1  ;;  %v13319_v4 = vld [vmem:[#allocation6 + $0x1d4] ss:$8 sps:$4 sm:$0xff]  }
0x12a5   :  { %v8226_v18 = vpop.f32.mrb[226].mxu1 }
0x12a6   :  { %v8486_v12 = vadd.f32 %v16310_v26, %v8224_v37  ;;  %v8227_v36 = vadd.f32 %v8226_v18, %v8126_v59  ;;  %v8228_v39 = vpop.f32.mrb[227].mxu1  ;;  %v7020_v37 = vpop.xlane.xlu1 %7019 }
0x12a7   :  { %v7141_v58 = vmul.f32 0.0078125, %v7020_v37  ;;  %v13323_v37 = vld [vmem:[#allocation6 + $0x1f4] ss:$8 sps:$4 sm:$0xff]  }
0x12a8   :  { %v8487_v27 = vadd.f32 %v16310_v26, %v8227_v36  ;;  %8438 = vmatmul.mubr.bf16.gmra.mrb[76].mxu1 %v13316_v46  ;;  %v8550_v29 = vmax.f32 %v8486_v12, 0.0  ;;  %v7022_v36 = vpop.xlane.xlu0 %7021 }
0x12a9   :  { %8445 = vmatprep.mubr.bf16.mxu1 %v13317_v50 }
0x12aa   :  { %v8551_v34 = vmax.f32 %v8487_v27, 0.0 }
0x12ab   :  { %v8231_v1 = vpop.f32.mrb[228].mxu1 }
0x12ac   :  { %v8232_v23 = vadd.f32 %v8231_v1, %v8127_v10  ;;  %v8233_v49 = vpop.f32.mrb[229].mxu1  ;;  %v8614_v62 = vpack.c.bf16 %v8551_v34, %v8550_v29  ;;  %v7142_v10 = vmul.f32 0.0078125, %v7022_v36  ;;  %v13320_v34 = vld [vmem:[#allocation6 + $0x1d0] ss:$8 sps:$4 sm:$0xff]   ;;  %v8131_v1 = vmul.f32 %v16304_v61, %v7141_v58 }
0x12ad   :  { %v8234_v35 = vpop.f32.mrb[230].mxu1  ;;  %v7024_v49 = vpop.xlane.xlu1 %7023 }
0x12ae   :  { %v8488_v33 = vadd.f32 %v16310_v26, %v8232_v23  ;;  %v8235_v19 = vadd.f32 %v8234_v35, %v8128_v55  ;;  %v8236_v15 = vpop.f32.mrb[231].mxu1  ;;  %8647 = vmatpush1.bf16.msra.mxu0 %v8614_v62  ;;  %v8132_v8 = vmul.f32 %v16304_v61, %v7142_v10  ;;  %v7143_v7 = vmul.f32 0.0078125, %v7024_v49 }
0x12af   :  { %8648 = vmatprep.subr.bf16.mxu0 %v17291_v0 }
0x12b0   :  { %v8489_v28 = vadd.f32 %v16310_v26, %v8235_v19  ;;  %8446 = vmatmul.mubr.bf16.gmra.mrb[80].mxu1 %v13318_v11  ;;  %v8552_v43 = vmax.f32 %v8488_v33, 0.0  ;;  %v7026_v19 = vpop.xlane.xlu0 %7025 }
0x12b1   :  { %8453 = vmatprep.mubr.bf16.mxu1 %v13319_v4 }
0x12b2   :  { %v8553_v59 = vmax.f32 %v8489_v28, 0.0 }
0x12b3   :  { %v8239_v14 = vpop.f32.mrb[232].mxu1 }
0x12b4   :  { %v8240_v18 = vadd.f32 %v8239_v14, %v8129_v63  ;;  %v8241_v21 = vpop.f32.mrb[233].mxu1  ;;  %v8615_v12 = vpack.c.bf16 %v8553_v59, %v8552_v43  ;;  %v7144_v63 = vmul.f32 0.0078125, %v7026_v19  ;;  %v13322_v59 = vld [vmem:[#allocation6 + $0x1e0] ss:$8 sps:$4 sm:$0xff]   ;;  %v8133_v14 = vmul.f32 %v16304_v61, %v7143_v7 }
0x12b5   :  { %v8242_v39 = vpop.f32.mrb[234].mxu1  ;;  %v7028_v21 = vpop.xlane.xlu1 %7027 }
0x12b6   :  { %v8490_v27 = vadd.f32 %v16310_v26, %v8240_v18  ;;  %v8243_v46 = vadd.f32 %v8242_v39, %v8130_v13  ;;  %v8244_v50 = vpop.f32.mrb[235].mxu1  ;;  %8649 = vmatpush1.bf16.msra.mxu0 %v8615_v12  ;;  %v8134_v36 = vmul.f32 %v16304_v61, %v7144_v63  ;;  %v7145_v10 = vmul.f32 0.0078125, %v7028_v21 }
0x12b7   :  { %8650 = vmatprep.subr.bf16.mxu0 %v17291_v0 }
0x12b8   :  { %v8491_v29 = vadd.f32 %v16310_v26, %v8243_v46  ;;  %8454 = vmatmul.mubr.bf16.gmra.mrb[84].mxu1 %v13320_v34  ;;  %v8554_v55 = vmax.f32 %v8490_v27, 0.0  ;;  %v7030_v46 = vpop.xlane.xlu0 %7029  ;;  %v8135_v49 = vmul.f32 %v16304_v61, %v7145_v10 }
0x12b9   :  { %8461 = vmatprep.mubr.bf16.mxu1 %v13321_v48 }
0x12ba   :  { %v8555_v23 = vmax.f32 %v8491_v29, 0.0 }
0x12bb   :  { %v8247_v62 = vpop.f32.mrb[236].mxu1 }
0x12bc   :  { %v8248_v35 = vadd.f32 %v8247_v62, %v8131_v1  ;;  %v8249_v56 = vpop.f32.mrb[237].mxu1  ;;  %v8616_v33 = vpack.c.bf16 %v8555_v23, %v8554_v55  ;;  %v7146_v1 = vmul.f32 0.0078125, %v7030_v46  ;;  %v13324_v23 = vld [vmem:[#allocation6 + $0x1f0] ss:$8 sps:$4 sm:$0xff]  }
0x12bd   :  { %v8250_v15 = vpop.f32.mrb[238].mxu1 }
0x12be   :  { %v8492_v28 = vadd.f32 %v16310_v26, %v8248_v35  ;;  %v8251_v11 = vadd.f32 %v8250_v15, %v8132_v8  ;;  %v8252_v4 = vpop.f32.mrb[239].mxu1  ;;  %8651 = vmatpush1.bf16.msra.mxu0 %v8616_v33  ;;  %v7032_v35 = vpop.xlane.xlu1 %7031  ;;  %v8136_v33 = vmul.f32 %v16304_v61, %v7146_v1 }
0x12bf   :  { %8652 = vmatprep.subr.bf16.mxu0 %v17291_v0  ;;  %v7147_v4 = vmul.f32 0.0078125, %v7032_v35 }
0x12c0   :  { %v8493_v43 = vadd.f32 %v16310_v26, %v8251_v11  ;;  %8462 = vmatmul.mubr.bf16.gmra.mrb[88].mxu1 %v13322_v59  ;;  %v8556_v13 = vmax.f32 %v8492_v28, 0.0  ;;  %v7034_v28 = vpop.xlane.xlu0 %7033 }
0x12c1   :  { %8469 = vmatprep.mubr.bf16.mxu1 %v13323_v37  ;;  %v7148_v37 = vmul.f32 0.0078125, %v7034_v28 }
0x12c2   :  { %v8557_v18 = vmax.f32 %v8493_v43, 0.0 }
0x12c3   :  { %v8255_v12 = vpop.f32.mrb[240].mxu1 }
0x12c4   :  { %v8256_v39 = vadd.f32 %v8255_v12, %v8133_v14  ;;  %v8257_v58 = vpop.f32.mrb[241].mxu1  ;;  %v8617_v27 = vpack.c.bf16 %v8557_v18, %v8556_v13  ;;  %v8137_v13 = vmul.f32 %v16304_v61, %v7147_v4  ;;  %v7036_v12 = vpop.xlane.xlu1 %7035 }
0x12c5   :  { %v8258_v50 = vpop.f32.mrb[242].mxu1 }
0x12c6   :  { %v8494_v29 = vadd.f32 %v16310_v26, %v8256_v39  ;;  %v8259_v34 = vadd.f32 %v8258_v50, %v8134_v36  ;;  %v8260_v48 = vpop.f32.mrb[243].mxu1  ;;  %8653 = vmatpush1.bf16.msra.mxu0 %v8617_v27  ;;  %v8138_v39 = vmul.f32 %v16304_v61, %v7148_v37  ;;  %v7038_v50 = vpop.xlane.xlu0 %7037 }
0x12c7   :  { %8654 = vmatprep.subr.bf16.mxu0 %v17291_v0 }
0x12c8   :  { %v8495_v55 = vadd.f32 %v16310_v26, %v8259_v34  ;;  %8470 = vmatmul.mubr.bf16.gmra.mrb[92].mxu1 %v13324_v23  ;;  %v8558_v62 = vmax.f32 %v8494_v29, 0.0  ;;  %v7149_v29 = vmul.f32 0.0078125, %v7036_v12  ;;  %v7040_v35 = vpop.xlane.xlu1 %7039 }
0x12c9   :  { %v7151_v4 = vmul.f32 0.0078125, %v7040_v35 }
0x12ca   :  { %v8559_v8 = vmax.f32 %v8495_v55, 0.0  ;;  %v7150_v55 = vmul.f32 0.0078125, %v7038_v50  ;;  %v7042_v28 = vpop.xlane.xlu0 %7041 }
0x12cb   :  { %v8263_v56 = vpop.f32.mrb[244].mxu1  ;;  %v7152_v37 = vmul.f32 0.0078125, %v7042_v28 }
0x12cc   :  { %v8264_v19 = vadd.f32 %v8263_v56, %v8135_v49  ;;  %v8265_v15 = vpop.f32.mrb[245].mxu1  ;;  %v8618_v7 = vpack.c.bf16 %v8559_v8, %v8558_v62  ;;  %v8139_v49 = vmul.f32 %v16304_v61, %v7149_v29  ;;  %v7044_v12 = vpop.xlane.xlu1 %7043 }
0x12cd   :  { %v8266_v11 = vpop.f32.mrb[246].mxu1  ;;  %v7153_v29 = vmul.f32 0.0078125, %v7044_v12 }
0x12ce   :  { %v8496_v63 = vadd.f32 %v16310_v26, %v8264_v19  ;;  %v8267_v43 = vadd.f32 %v8266_v11, %v8136_v33  ;;  %v8268_v59 = vpop.f32.mrb[247].mxu1  ;;  %8655 = vmatpush1.bf16.msra.mxu0 %v8618_v7  ;;  %v8140_v33 = vmul.f32 %v16304_v61, %v7150_v55  ;;  %v7046_v50 = vpop.xlane.xlu0 %7045 }
0x12cf   :  { %8656 = vmatprep.subr.bf16.mxu0 %v17291_v0  ;;  %v7154_v55 = vmul.f32 0.0078125, %v7046_v50 }
0x12d0   :  { %v8497_v14 = vadd.f32 %v16310_v26, %v8267_v43  ;;  %v8560_v18 = vmax.f32 %v8496_v63, 0.0  ;;  %v7048_v35 = vpop.xlane.xlu1 %7047 }
0x12d2   :  { %v8561_v21 = vmax.f32 %v8497_v14, 0.0  ;;  %v7050_v28 = vpop.xlane.xlu0 %7049 }
0x12d3   :  { %v8271_v36 = vpop.f32.mrb[248].mxu1 }
0x12d4   :  { %v8272_v58 = vadd.f32 %v8271_v36, %v8137_v13  ;;  %v8273_v27 = vpop.f32.mrb[249].mxu1  ;;  %v8619_v46 = vpack.c.bf16 %v8561_v21, %v8560_v18  ;;  %v8141_v13 = vmul.f32 %v16304_v61, %v7151_v4  ;;  %v7155_v4 = vmul.f32 0.0078125, %v7048_v35  ;;  %v7052_v12 = vpop.xlane.xlu1 %7051 }
0x12d5   :  { %v8274_v10 = vpop.f32.mrb[250].mxu1 }
0x12d6   :  { %v8498_v34 = vadd.f32 %v16310_v26, %v8272_v58  ;;  %v8275_v48 = vadd.f32 %v8274_v10, %v8138_v39  ;;  %v8276_v1 = vpop.f32.mrb[251].mxu1  ;;  %8657 = vmatpush1.bf16.msra.mxu0 %v8619_v46  ;;  %v8142_v39 = vmul.f32 %v16304_v61, %v7152_v37  ;;  %v7156_v37 = vmul.f32 0.0078125, %v7050_v28  ;;  %v7054_v50 = vpop.xlane.xlu0 %7053 }
0x12d7   :  { %8658 = vmatprep.subr.bf16.mxu0 %v17291_v0 }
0x12d8   :  { %v8499_v23 = vadd.f32 %v16310_v26, %v8275_v48  ;;  %v8562_v62 = vmax.f32 %v8498_v34, 0.0  ;;  %v7056_v35 = vpop.xlane.xlu1 %7055 }
0x12da   :  { %v8563_v8 = vmax.f32 %v8499_v23, 0.0  ;;  %v7058_v28 = vpop.xlane.xlu0 %7057 }
0x12db   :  { %v8279_v56 = vpop.f32.mrb[252].mxu1 }
0x12dc   :  { %v8280_v19 = vadd.f32 %v8279_v56, %v8139_v49  ;;  %v8281_v15 = vpop.f32.mrb[253].mxu1  ;;  %v8620_v7 = vpack.c.bf16 %v8563_v8, %v8562_v62  ;;  %v8143_v49 = vmul.f32 %v16304_v61, %v7153_v29  ;;  %v7157_v29 = vmul.f32 0.0078125, %v7052_v12  ;;  %v7060_v12 = vpop.xlane.xlu1 %7059 }
0x12dd   :  { %v8282_v11 = vpop.f32.mrb[254].mxu1 }
0x12de   :  { %v8500_v63 = vadd.f32 %v16310_v26, %v8280_v19  ;;  %v8283_v43 = vadd.f32 %v8282_v11, %v8140_v33  ;;  %v8284_v59 = vpop.f32.mrb[255].mxu1  ;;  %8659 = vmatpush1.bf16.msra.mxu0 %v8620_v7  ;;  %v8144_v33 = vmul.f32 %v16304_v61, %v7154_v55  ;;  %v7158_v55 = vmul.f32 0.0078125, %v7054_v50  ;;  %v7062_v50 = vpop.xlane.xlu0 %7061 }
0x12df   :  { %8660 = vmatprep.subr.bf16.mxu0 %v17291_v0 }
0x12e0   :  { %v8501_v14 = vadd.f32 %v16310_v26, %v8283_v43  ;;  %v8564_v18 = vmax.f32 %v8500_v63, 0.0 }
0x12e2   :  { %v8565_v21 = vmax.f32 %v8501_v14, 0.0 }
0x12e3   :  { %v8287_v36 = vpop.f32.mrb[0].mxu1 }
0x12e4   :  { %v8288_v58 = vadd.f32 %v8287_v36, %v8141_v13  ;;  %v8289_v27 = vpop.f32.mrb[1].mxu1  ;;  %v8621_v46 = vpack.c.bf16 %v8565_v21, %v8564_v18  ;;  %v8145_v13 = vmul.f32 %v16304_v61, %v7155_v4  ;;  %v7159_v4 = vmul.f32 0.0078125, %v7056_v35  ;;  %v7064_v35 = vpop.xlane.xlu1 %7063 }
0x12e5   :  { %v8290_v10 = vpop.f32.mrb[2].mxu1 }
0x12e6   :  { %v8502_v34 = vadd.f32 %v16310_v26, %v8288_v58  ;;  %v8291_v48 = vadd.f32 %v8290_v10, %v8142_v39  ;;  %v8292_v1 = vpop.f32.mrb[3].mxu1  ;;  %8661 = vmatpush1.bf16.msra.mxu0 %v8621_v46  ;;  %v8146_v39 = vmul.f32 %v16304_v61, %v7156_v37  ;;  %v7160_v37 = vmul.f32 0.0078125, %v7058_v28  ;;  %v7066_v28 = vpop.xlane.xlu0 %7065 }
0x12e7   :  { %8662 = vmatprep.subr.bf16.mxu0 %v17291_v0 }
0x12e8   :  { %v8503_v23 = vadd.f32 %v16310_v26, %v8291_v48  ;;  %v8566_v62 = vmax.f32 %v8502_v34, 0.0 }
0x12ea   :  { %v8567_v8 = vmax.f32 %v8503_v23, 0.0 }
0x12eb   :  { %v8295_v56 = vpop.f32.mrb[4].mxu1 }
0x12ec   :  { %v8296_v19 = vadd.f32 %v8295_v56, %v8143_v49  ;;  %v8297_v15 = vpop.f32.mrb[5].mxu1  ;;  %v8622_v7 = vpack.c.bf16 %v8567_v8, %v8566_v62  ;;  %v8147_v49 = vmul.f32 %v16304_v61, %v7157_v29  ;;  %v7161_v29 = vmul.f32 0.0078125, %v7060_v12  ;;  %v7068_v12 = vpop.xlane.xlu1 %7067 }
0x12ed   :  { %v8298_v11 = vpop.f32.mrb[6].mxu1 }
0x12ee   :  { %v8504_v63 = vadd.f32 %v16310_v26, %v8296_v19  ;;  %v8299_v43 = vadd.f32 %v8298_v11, %v8144_v33  ;;  %v8300_v59 = vpop.f32.mrb[7].mxu1  ;;  %8663 = vmatpush1.bf16.msra.mxu0 %v8622_v7  ;;  %v8148_v33 = vmul.f32 %v16304_v61, %v7158_v55  ;;  %v7162_v55 = vmul.f32 0.0078125, %v7062_v50  ;;  %v7070_v50 = vpop.xlane.xlu0 %7069 }
0x12ef   :  { %8664 = vmatprep.subr.bf16.mxu0 %v17291_v0 }
0x12f0   :  { %v8505_v14 = vadd.f32 %v16310_v26, %v8299_v43  ;;  %v8568_v18 = vmax.f32 %v8504_v63, 0.0 }
0x12f2   :  { %v8569_v21 = vmax.f32 %v8505_v14, 0.0 }
0x12f3   :  { %v8303_v36 = vpop.f32.mrb[8].mxu1 }
0x12f4   :  { %v8304_v58 = vadd.f32 %v8303_v36, %v8145_v13  ;;  %v8305_v27 = vpop.f32.mrb[9].mxu1  ;;  %v8623_v46 = vpack.c.bf16 %v8569_v21, %v8568_v18  ;;  %v8149_v21 = vmul.f32 %v16304_v61, %v7159_v4  ;;  %v7163_v4 = vmul.f32 0.0078125, %v7064_v35  ;;  %v7072_v35 = vpop.xlane.xlu1 %7071 }
0x12f5   :  { %v8306_v10 = vpop.f32.mrb[10].mxu1  ;;  %v8150_v27 = vmul.f32 %v16304_v61, %v7160_v37  ;;  %v7164_v37 = vmul.f32 0.0078125, %v7066_v28  ;;  %v7074_v28 = vpop.xlane.xlu0 %7073 }
0x12f6   :  { %v8506_v34 = vadd.f32 %v16310_v26, %v8304_v58  ;;  %v8307_v48 = vadd.f32 %v8306_v10, %v8146_v39  ;;  %v8308_v1 = vpop.f32.mrb[11].mxu1  ;;  %8665 = vmatpush1.bf16.msra.mxu0 %v8623_v46 }
0x12f7   :  { %8666 = vmatprep.subr.bf16.mxu0 %v17291_v0 }
0x12f8   :  { %v8507_v23 = vadd.f32 %v16310_v26, %v8307_v48  ;;  %v8570_v62 = vmax.f32 %v8506_v34, 0.0 }
0x12fa   :  { %v8571_v8 = vmax.f32 %v8507_v23, 0.0 }
0x12fb   :  { %v8311_v56 = vpop.f32.mrb[12].mxu1 }
0x12fc   :  { %v8312_v19 = vadd.f32 %v8311_v56, %v8147_v49  ;;  %v8313_v15 = vpop.f32.mrb[13].mxu1  ;;  %v8624_v7 = vpack.c.bf16 %v8571_v8, %v8570_v62  ;;  %v8151_v8 = vmul.f32 %v16304_v61, %v7161_v29  ;;  %v7165_v29 = vmul.f32 0.0078125, %v7068_v12  ;;  %v7076_v12 = vpop.xlane.xlu1 %7075 }
0x12fd   :  { %v8314_v11 = vpop.f32.mrb[14].mxu1 }
0x12fe   :  { %v8508_v63 = vadd.f32 %v16310_v26, %v8312_v19  ;;  %v8315_v43 = vadd.f32 %v8314_v11, %v8148_v33  ;;  %v8316_v59 = vpop.f32.mrb[15].mxu1  ;;  %8667 = vmatpush1.bf16.msra.mxu0 %v8624_v7  ;;  %v8152_v7 = vmul.f32 %v16304_v61, %v7162_v55  ;;  %v7166_v55 = vmul.f32 0.0078125, %v7070_v50  ;;  %v7078_v50 = vpop.xlane.xlu0 %7077 }
0x12ff   :  { %8668 = vmatprep.subr.bf16.mxu0 %v17291_v0 }
0x1300   :  { %v8509_v14 = vadd.f32 %v16310_v26, %v8315_v43  ;;  %v8572_v13 = vmax.f32 %v8508_v63, 0.0 }
0x1302   :  { %v8573_v18 = vmax.f32 %v8509_v14, 0.0 }
0x1303   :  { %v8319_v36 = vpop.f32.mrb[16].mxu1 }
0x1304   :  { %v8320_v39 = vadd.f32 %v8319_v36, %v8149_v21  ;;  %v8321_v58 = vpop.f32.mrb[17].mxu1  ;;  %v8625_v46 = vpack.c.bf16 %v8573_v18, %v8572_v13  ;;  %v8153_v21 = vmul.f32 %v16304_v61, %v7163_v4  ;;  %v7167_v4 = vmul.f32 0.0078125, %v7072_v35 }
0x1305   :  { %v8322_v10 = vpop.f32.mrb[18].mxu1 }
0x1306   :  { %v8510_v34 = vadd.f32 %v16310_v26, %v8320_v39  ;;  %v8323_v48 = vadd.f32 %v8322_v10, %v8150_v27  ;;  %v8324_v1 = vpop.f32.mrb[19].mxu1  ;;  %8669 = vmatpush1.bf16.msra.mxu0 %v8625_v46  ;;  %v8154_v46 = vmul.f32 %v16304_v61, %v7164_v37  ;;  %v7168_v37 = vmul.f32 0.0078125, %v7074_v28 }
0x1307   :  { %8670 = vmatprep.subr.bf16.mxu0 %v17291_v0 }
0x1308   :  { %v8511_v23 = vadd.f32 %v16310_v26, %v8323_v48  ;;  %v8574_v49 = vmax.f32 %v8510_v34, 0.0 }
0x130a   :  { %v8575_v62 = vmax.f32 %v8511_v23, 0.0 }
0x130b   :  { %v8327_v56 = vpop.f32.mrb[20].mxu1 }
0x130c   :  { %v8626_v33 = vpack.c.bf16 %v8575_v62, %v8574_v49  ;;  %v8328_v19 = vadd.f32 %v8327_v56, %v8151_v8  ;;  %v8329_v15 = vpop.f32.mrb[21].mxu1  ;;  %v8155_v8 = vmul.f32 %v16304_v61, %v7165_v29  ;;  %v7169_v29 = vmul.f32 0.0078125, %v7076_v12 }
0x130d   :  { %v8330_v11 = vpop.f32.mrb[22].mxu1 }
0x130e   :  { %v8512_v63 = vadd.f32 %v16310_v26, %v8328_v19  ;;  %v8331_v43 = vadd.f32 %v8330_v11, %v8152_v7  ;;  %v8332_v59 = vpop.f32.mrb[23].mxu1  ;;  %8671 = vmatpush1.bf16.msra.mxu0 %v8626_v33  ;;  %v8156_v7 = vmul.f32 %v16304_v61, %v7166_v55  ;;  %v7170_v55 = vmul.f32 0.0078125, %v7078_v50 }
0x130f   :  { %8672 = vmatprep.subr.bf16.mxu0 %v17291_v0  ;;  %v8159_v35 = vmul.f32 %v16304_v61, %v7169_v29 }
0x1310   :  { %v8513_v14 = vadd.f32 %v16310_v26, %v8331_v43  ;;  %v8576_v13 = vmax.f32 %v8512_v63, 0.0 }
0x1312   :  { %v8577_v18 = vmax.f32 %v8513_v14, 0.0 }
0x1313   :  { %v8335_v36 = vpop.f32.mrb[24].mxu1 }
0x1314   :  { %v8627_v39 = vpack.c.bf16 %v8577_v18, %v8576_v13  ;;  %v8336_v58 = vadd.f32 %v8335_v36, %v8153_v21  ;;  %v8337_v27 = vpop.f32.mrb[25].mxu1  ;;  %v8157_v21 = vmul.f32 %v16304_v61, %v7167_v4  ;;  %v7082_v4 = vpop.xlane.xlu0 %7081 }
0x1315   :  { %v8338_v10 = vpop.f32.mrb[26].mxu1 }
0x1316   :  { %v8514_v34 = vadd.f32 %v16310_v26, %v8336_v58  ;;  %v8339_v48 = vadd.f32 %v8338_v10, %v8154_v46  ;;  %v8340_v1 = vpop.f32.mrb[27].mxu1  ;;  %8673 = vmatpush1.bf16.msra.mxu0 %v8627_v39  ;;  %v8158_v46 = vmul.f32 %v16304_v61, %v7168_v37 }
0x1317   :  { %8674 = vmatprep.subr.bf16.mxu0 %v17291_v0 }
0x1318   :  { %v8515_v23 = vadd.f32 %v16310_v26, %v8339_v48  ;;  %v8578_v49 = vmax.f32 %v8514_v34, 0.0 }
0x131a   :  { %v8579_v62 = vmax.f32 %v8515_v23, 0.0 }
0x131b   :  { %v8343_v56 = vpop.f32.mrb[28].mxu1 }
0x131c   :  { %v8628_v33 = vpack.c.bf16 %v8579_v62, %v8578_v49  ;;  %v8344_v19 = vadd.f32 %v8343_v56, %v8155_v8  ;;  %v8345_v15 = vpop.f32.mrb[29].mxu1  ;;  %v13325_v49 = vld [vmem:[%s17164_s3] ss:$16 sps:$4 sm:$0xff]   ;;  %v13326_v56 = vld [vmem:[%s17164_s3 + $0x24] ss:$16 sps:$4 sm:$0xff]  }
0x131d   :  { %v8346_v11 = vpop.f32.mrb[30].mxu1 }
0x131e   :  { %v8516_v63 = vadd.f32 %v16310_v26, %v8344_v19  ;;  %v8347_v43 = vadd.f32 %v8346_v11, %v8156_v7  ;;  %v8348_v59 = vpop.f32.mrb[31].mxu1  ;;  %8675 = vmatpush1.bf16.msra.mxu0 %v8628_v33  ;;  %v7080_v33 = vpop.xlane.xlu1 %7079  ;;  %v8160_v11 = vmul.f32 %v16304_v61, %v7170_v55 }
0x131f   :  { %8676 = vmatprep.subr.bf16.mxu0 %v17291_v0 }
0x1320   :  { %v8517_v14 = vadd.f32 %v16310_v26, %v8347_v43  ;;  %v8580_v13 = vmax.f32 %v8516_v63, 0.0  ;;  %v7171_v43 = vmul.f32 0.0078125, %v7080_v33 }
0x1322   :  { %v8581_v18 = vmax.f32 %v8517_v14, 0.0 }
0x1323   :  { %v8351_v36 = vpop.f32.mrb[32].mxu1 }
0x1324   :  { %v8629_v39 = vpack.c.bf16 %v8581_v18, %v8580_v13  ;;  %v8352_v58 = vadd.f32 %v8351_v36, %v8157_v21  ;;  %v8353_v27 = vpop.f32.mrb[33].mxu1  ;;  %v7172_v13 = vmul.f32 0.0078125, %v7082_v4  ;;  %v13327_v21 = vld [vmem:[%s17164_s3 + $0x20] ss:$16 sps:$4 sm:$0xff]  }
0x1325   :  { %v8354_v10 = vpop.f32.mrb[34].mxu1  ;;  %v7084_v27 = vpop.xlane.xlu1 %7083 }
0x1326   :  { %v8518_v34 = vadd.f32 %v16310_v26, %v8352_v58  ;;  %v8355_v48 = vadd.f32 %v8354_v10, %v8158_v46  ;;  %8677 = vmatpush1.bf16.msra.mxu0 %v8629_v39  ;;  %v8356_v1 = vpop.f32.mrb[35].mxu1  ;;  %v8161_v39 = vmul.f32 %v16304_v61, %v7171_v43  ;;  %v13328_v58 = vld [vmem:[%s17164_s3 + $0x44] ss:$16 sps:$4 sm:$0xff]   ;;  %v7173_v55 = vmul.f32 0.0078125, %v7084_v27 }
0x1327   :  { %8935 = vmatprep.subr.bf16.mxu0 %v17291_v0 }
0x1328   :  { %v8519_v23 = vadd.f32 %v16310_v26, %v8355_v48  ;;  %v8582_v62 = vmax.f32 %v8518_v34, 0.0  ;;  %v8162_v34 = vmul.f32 %v16304_v61, %v7172_v13  ;;  %v7086_v48 = vpop.xlane.xlu0 %7085 }
0x1329   :  { %8679 = vmatmul.mubr.bf16.vlgmr.msra.gmra.mrb[0].mxu0 %v13325_v49 }
0x132a   :  { %v8583_v8 = vmax.f32 %v8519_v23, 0.0  ;;  %8686 = vmatprep.mubr.bf16.mxu0 %v13326_v56  ;;  %v13329_v56 = vld [vmem:[%s17164_s3 + $0x40] ss:$16 sps:$4 sm:$0xff]  }
0x132b   :  { %v8359_v19 = vpop.f32.mrb[36].mxu1 }
0x132c   :  { %v8630_v15 = vpack.c.bf16 %v8583_v8, %v8582_v62  ;;  %v8360_v7 = vadd.f32 %v8359_v19, %v8159_v35  ;;  %v8361_v28 = vpop.f32.mrb[37].mxu1  ;;  %v7174_v8 = vmul.f32 0.0078125, %v7086_v48 }
0x132d   :  { %v8362_v63 = vpop.f32.mrb[38].mxu1  ;;  %v7088_v28 = vpop.xlane.xlu1 %7087 }
0x132e   :  { %v8520_v59 = vadd.f32 %v16310_v26, %v8360_v7  ;;  %v8363_v37 = vadd.f32 %v8362_v63, %v8160_v11  ;;  %8936 = vmatpush1.bf16.msra.mxu0 %v8630_v15  ;;  %v8364_v14 = vpop.f32.mrb[39].mxu1  ;;  %v8163_v15 = vmul.f32 %v16304_v61, %v7173_v55  ;;  %v13330_v7 = vld [vmem:[%s17164_s3 + $0x64] ss:$16 sps:$4 sm:$0xff]   ;;  %v7175_v13 = vmul.f32 0.0078125, %v7088_v28 }
0x132f   :  { %8937 = vmatprep.subr.bf16.mxu0 %v17291_v0 }
0x1330   :  { %v8521_v18 = vadd.f32 %v16310_v26, %v8363_v37  ;;  %v8584_v12 = vmax.f32 %v8520_v59, 0.0  ;;  %v8164_v59 = vmul.f32 %v16304_v61, %v7174_v8  ;;  %v7090_v37 = vpop.xlane.xlu0 %7089 }
0x1331   :  { %8687 = vmatmul.mubr.bf16.gmra.mrb[4].mxu0 %v13327_v21 }
0x1332   :  { %v8585_v36 = vmax.f32 %v8521_v18, 0.0  ;;  %8694 = vmatprep.mubr.bf16.mxu0 %v13328_v58  ;;  %v13331_v58 = vld [vmem:[%s17164_s3 + $0x60] ss:$16 sps:$4 sm:$0xff]  }
0x1333   :  { %v8367_v46 = vpop.f32.mrb[40].mxu1 }
0x1334   :  { %v8631_v50 = vpack.c.bf16 %v8585_v36, %v8584_v12  ;;  %v8368_v10 = vadd.f32 %v8367_v46, %v8161_v39  ;;  %v8369_v29 = vpop.f32.mrb[41].mxu1  ;;  %v7176_v36 = vmul.f32 0.0078125, %v7090_v37 }
0x1335   :  { %v8370_v1 = vpop.f32.mrb[42].mxu1  ;;  %v7092_v29 = vpop.xlane.xlu1 %7091 }
0x1336   :  { %v8522_v23 = vadd.f32 %v16310_v26, %v8368_v10  ;;  %v8371_v49 = vadd.f32 %v8370_v1, %v8162_v34  ;;  %8938 = vmatpush1.bf16.msra.mxu0 %v8631_v50  ;;  %v8372_v62 = vpop.f32.mrb[43].mxu1  ;;  %v8165_v50 = vmul.f32 %v16304_v61, %v7175_v13  ;;  %v13332_v10 = vld [vmem:[%s17164_s3 + $0x84] ss:$16 sps:$4 sm:$0xff]   ;;  %v7177_v8 = vmul.f32 0.0078125, %v7092_v29 }
0x1337   :  { %8939 = vmatprep.subr.bf16.mxu0 %v17291_v0 }
0x1338   :  { %v8523_v35 = vadd.f32 %v16310_v26, %v8371_v49  ;;  %v8586_v33 = vmax.f32 %v8522_v23, 0.0  ;;  %v8166_v23 = vmul.f32 %v16304_v61, %v7176_v36  ;;  %v7094_v49 = vpop.xlane.xlu0 %7093 }
0x1339   :  { %8695 = vmatmul.mubr.bf16.gmra.mrb[8].mxu0 %v13329_v56 }
0x133a   :  { %v8587_v19 = vmax.f32 %v8523_v35, 0.0  ;;  %8702 = vmatprep.mubr.bf16.mxu0 %v13330_v7  ;;  %v13333_v7 = vld [vmem:[%s17164_s3 + $0x80] ss:$16 sps:$4 sm:$0xff]  }
0x133b   :  { %v8375_v11 = vpop.f32.mrb[44].mxu1 }
0x133c   :  { %v8632_v4 = vpack.c.bf16 %v8587_v19, %v8586_v33  ;;  %v8376_v63 = vadd.f32 %v8375_v11, %v8163_v15  ;;  %v8377_v43 = vpop.f32.mrb[45].mxu1  ;;  %v7178_v19 = vmul.f32 0.0078125, %v7094_v49 }
0x133d   :  { %v8378_v14 = vpop.f32.mrb[46].mxu1  ;;  %v7096_v43 = vpop.xlane.xlu1 %7095 }
0x133e   :  { %v8524_v18 = vadd.f32 %v16310_v26, %v8376_v63  ;;  %v8379_v21 = vadd.f32 %v8378_v14, %v8164_v59  ;;  %8940 = vmatpush1.bf16.msra.mxu0 %v8632_v4  ;;  %v8380_v12 = vpop.f32.mrb[47].mxu1  ;;  %v8167_v4 = vmul.f32 %v16304_v61, %v7177_v8  ;;  %v13334_v63 = vld [vmem:[%s17164_s3 + $0xa4] ss:$16 sps:$4 sm:$0xff]   ;;  %v7179_v36 = vmul.f32 0.0078125, %v7096_v43 }
0x133f   :  { %8941 = vmatprep.subr.bf16.mxu0 %v17291_v0 }
0x1340   :  { %v8525_v39 = vadd.f32 %v16310_v26, %v8379_v21  ;;  %v8588_v27 = vmax.f32 %v8524_v18, 0.0  ;;  %v8168_v18 = vmul.f32 %v16304_v61, %v7178_v19  ;;  %v7098_v21 = vpop.xlane.xlu0 %7097 }
0x1341   :  { %8703 = vmatmul.mubr.bf16.gmra.mrb[12].mxu0 %v13331_v58 }
0x1342   :  { %v8589_v46 = vmax.f32 %v8525_v39, 0.0  ;;  %8710 = vmatprep.mubr.bf16.mxu0 %v13332_v10  ;;  %v13335_v10 = vld [vmem:[%s17164_s3 + $0xa0] ss:$16 sps:$4 sm:$0xff]  }
0x1343   :  { %v8383_v34 = vpop.f32.mrb[48].mxu1 }
0x1344   :  { %v8633_v48 = vpack.c.bf16 %v8589_v46, %v8588_v27  ;;  %v8384_v1 = vadd.f32 %v8383_v34, %v8165_v50  ;;  %v8385_v55 = vpop.f32.mrb[49].mxu1  ;;  %v7180_v46 = vmul.f32 0.0078125, %v7098_v21 }
0x1345   :  { %v8386_v62 = vpop.f32.mrb[50].mxu1  ;;  %v7100_v55 = vpop.xlane.xlu1 %7099 }
0x1346   :  { %v8526_v35 = vadd.f32 %v16310_v26, %v8384_v1  ;;  %v8387_v56 = vadd.f32 %v8386_v62, %v8166_v23  ;;  %8942 = vmatpush1.bf16.msra.mxu0 %v8633_v48  ;;  %v8388_v33 = vpop.f32.mrb[51].mxu1  ;;  %v8169_v48 = vmul.f32 %v16304_v61, %v7179_v36  ;;  %v13336_v1 = vld [vmem:[%s17164_s3 + $0xc4] ss:$16 sps:$4 sm:$0xff]   ;;  %v7181_v19 = vmul.f32 0.0078125, %v7100_v55 }
0x1347   :  { %8943 = vmatprep.subr.bf16.mxu0 %v17291_v0 }
0x1348   :  { %v8527_v15 = vadd.f32 %v16310_v26, %v8387_v56  ;;  %v8590_v28 = vmax.f32 %v8526_v35, 0.0  ;;  %v8170_v35 = vmul.f32 %v16304_v61, %v7180_v46  ;;  %v7102_v56 = vpop.xlane.xlu0 %7101 }
0x1349   :  { %8711 = vmatmul.mubr.bf16.gmra.mrb[16].mxu0 %v13333_v7 }
0x134a   :  { %v8591_v11 = vmax.f32 %v8527_v15, 0.0  ;;  %8718 = vmatprep.mubr.bf16.mxu0 %v13334_v63  ;;  %v13337_v63 = vld [vmem:[%s17164_s3 + $0xc0] ss:$16 sps:$4 sm:$0xff]  }
0x134b   :  { %v8391_v59 = vpop.f32.mrb[52].mxu1 }
0x134c   :  { %v8634_v37 = vpack.c.bf16 %v8591_v11, %v8590_v28  ;;  %v8392_v14 = vadd.f32 %v8391_v59, %v8167_v4  ;;  %v8393_v13 = vpop.f32.mrb[53].mxu1  ;;  %v7182_v11 = vmul.f32 0.0078125, %v7102_v56 }
0x134d   :  { %v8394_v12 = vpop.f32.mrb[54].mxu1  ;;  %v7104_v13 = vpop.xlane.xlu1 %7103 }
0x134e   :  { %v8528_v39 = vadd.f32 %v16310_v26, %v8392_v14  ;;  %v8395_v58 = vadd.f32 %v8394_v12, %v8168_v18  ;;  %8944 = vmatpush1.bf16.msra.mxu0 %v8634_v37  ;;  %v8396_v27 = vpop.f32.mrb[55].mxu1  ;;  %v8171_v37 = vmul.f32 %v16304_v61, %v7181_v19  ;;  %v13338_v14 = vld [vmem:[%s17164_s3 + $0xe4] ss:$16 sps:$4 sm:$0xff]   ;;  %v7183_v46 = vmul.f32 0.0078125, %v7104_v13 }
0x134f   :  { %8945 = vmatprep.subr.bf16.mxu0 %v17291_v0 }
0x1350   :  { %v8529_v50 = vadd.f32 %v16310_v26, %v8395_v58  ;;  %v8592_v29 = vmax.f32 %v8528_v39, 0.0  ;;  %v8172_v39 = vmul.f32 %v16304_v61, %v7182_v11  ;;  %v7106_v58 = vpop.xlane.xlu0 %7105 }
0x1351   :  { %8719 = vmatmul.mubr.bf16.gmra.mrb[20].mxu0 %v13335_v10 }
0x1352   :  { %v8593_v34 = vmax.f32 %v8529_v50, 0.0  ;;  %8726 = vmatprep.mubr.bf16.mxu0 %v13336_v1  ;;  %v13339_v1 = vld [vmem:[%s17164_s3 + $0xe0] ss:$16 sps:$4 sm:$0xff]  }
0x1353   :  { %v8399_v23 = vpop.f32.mrb[56].mxu1 }
0x1354   :  { %v8635_v49 = vpack.c.bf16 %v8593_v34, %v8592_v29  ;;  %v8400_v62 = vadd.f32 %v8399_v23, %v8169_v48  ;;  %v8401_v8 = vpop.f32.mrb[57].mxu1  ;;  %v7184_v34 = vmul.f32 0.0078125, %v7106_v58 }
0x1355   :  { %v8402_v33 = vpop.f32.mrb[58].mxu1  ;;  %v7108_v8 = vpop.xlane.xlu1 %7107 }
0x1356   :  { %v8530_v15 = vadd.f32 %v16310_v26, %v8400_v62  ;;  %v8403_v7 = vadd.f32 %v8402_v33, %v8170_v35  ;;  %8946 = vmatpush1.bf16.msra.mxu0 %v8635_v49  ;;  %v8404_v28 = vpop.f32.mrb[59].mxu1  ;;  %v8173_v49 = vmul.f32 %v16304_v61, %v7183_v46  ;;  %v13340_v62 = vld [vmem:[%s17164_s3 + $0x104] ss:$16 sps:$4 sm:$0xff]   ;;  %v7185_v11 = vmul.f32 0.0078125, %v7108_v8 }
0x1357   :  { %8947 = vmatprep.subr.bf16.mxu0 %v17291_v0 }
0x1358   :  { %v8531_v4 = vadd.f32 %v16310_v26, %v8403_v7  ;;  %v8594_v43 = vmax.f32 %v8530_v15, 0.0  ;;  %v8174_v15 = vmul.f32 %v16304_v61, %v7184_v34  ;;  %v7110_v7 = vpop.xlane.xlu0 %7109 }
0x1359   :  { %8727 = vmatmul.mubr.bf16.gmra.mrb[24].mxu0 %v13337_v63 }
0x135a   :  { %v8595_v59 = vmax.f32 %v8531_v4, 0.0  ;;  %8734 = vmatprep.mubr.bf16.mxu0 %v13338_v14  ;;  %v13341_v14 = vld [vmem:[%s17164_s3 + $0x100] ss:$16 sps:$4 sm:$0xff]  }
0x135b   :  { %v8407_v18 = vpop.f32.mrb[60].mxu1 }
0x135c   :  { %v8636_v21 = vpack.c.bf16 %v8595_v59, %v8594_v43  ;;  %v8408_v12 = vadd.f32 %v8407_v18, %v8171_v37  ;;  %v8409_v36 = vpop.f32.mrb[61].mxu1  ;;  %v7186_v59 = vmul.f32 0.0078125, %v7110_v7 }
0x135d   :  { %v8410_v27 = vpop.f32.mrb[62].mxu1  ;;  %v7112_v36 = vpop.xlane.xlu1 %7111 }
0x135e   :  { %v8532_v50 = vadd.f32 %v16310_v26, %v8408_v12  ;;  %v8411_v10 = vadd.f32 %v8410_v27, %v8172_v39  ;;  %8948 = vmatpush1.bf16.msra.mxu0 %v8636_v21  ;;  %v8412_v29 = vpop.f32.mrb[63].mxu1  ;;  %v8175_v21 = vmul.f32 %v16304_v61, %v7185_v11  ;;  %v13342_v12 = vld [vmem:[%s17164_s3 + $0x124] ss:$16 sps:$4 sm:$0xff]   ;;  %v7187_v34 = vmul.f32 0.0078125, %v7112_v36 }
0x135f   :  { %8949 = vmatprep.subr.bf16.mxu0 %v17291_v0 }
0x1360   :  { %v8533_v48 = vadd.f32 %v16310_v26, %v8411_v10  ;;  %v8596_v55 = vmax.f32 %v8532_v50, 0.0  ;;  %v8176_v50 = vmul.f32 %v16304_v61, %v7186_v59  ;;  %v7114_v10 = vpop.xlane.xlu0 %7113  ;;  %v13344_v61 = vld [vmem:[%s17164_s3 + $0x120] ss:$16 sps:$4 sm:$0xff]  }
0x1361   :  { %8735 = vmatmul.mubr.bf16.gmra.mrb[28].mxu0 %v13339_v1 }
0x1362   :  { %v8597_v23 = vmax.f32 %v8533_v48, 0.0  ;;  %8742 = vmatprep.mubr.bf16.mxu0 %v13340_v62 }
0x1363   :  { %v8415_v35 = vpop.f32.mrb[64].mxu1 }
0x1364   :  { %v8637_v56 = vpack.c.bf16 %v8597_v23, %v8596_v55  ;;  %v8416_v33 = vadd.f32 %v8415_v35, %v8173_v49  ;;  %v8417_v19 = vpop.f32.mrb[65].mxu1  ;;  %v7188_v23 = vmul.f32 0.0078125, %v7114_v10  ;;  %v16496_v49 = vld [vmem:[%s17169_s8 + $0x2] ss:$0 sm:$0xff] }
0x1365   :  { %v8418_v28 = vpop.f32.mrb[66].mxu1  ;;  %v16505_v35 = vld [vmem:[%s17168_s7 + $0x2] ss:$0 sm:$0xff]  ;;  %v7116_v19 = vpop.xlane.xlu1 %7115 }
0x1366   :  { %v8534_v4 = vadd.f32 %v16310_v26, %v8416_v33  ;;  %v8419_v63 = vadd.f32 %v8418_v28, %v8174_v15  ;;  %8950 = vmatpush1.bf16.msra.mxu0 %v8637_v56  ;;  %v8420_v43 = vpop.f32.mrb[67].mxu1  ;;  %v8177_v56 = vmul.f32 %v16505_v35, %v7187_v34  ;;  %v13346_v33 = vld [vmem:[%s17164_s3 + $0x144] ss:$16 sps:$4 sm:$0xff]   ;;  %v7189_v59 = vmul.f32 0.0078125, %v7116_v19 }
0x1367   :  { %8951 = vmatprep.subr.bf16.mxu0 %v17291_v0 }
0x1368   :  { %v8535_v37 = vadd.f32 %v16310_v26, %v8419_v63  ;;  %v8598_v13 = vmax.f32 %v8534_v4, 0.0  ;;  %v8178_v4 = vmul.f32 %v16505_v35, %v7188_v23  ;;  %v7118_v63 = vpop.xlane.xlu0 %7117 }
0x1369   :  { %8743 = vmatmul.mubr.bf16.gmra.mrb[32].mxu0 %v13341_v14 }
0x136a   :  { %v8599_v18 = vmax.f32 %v8535_v37, 0.0  ;;  %8750 = vmatprep.mubr.bf16.mxu0 %v13342_v12  ;;  %v13347_v12 = vld [vmem:[%s17164_s3 + $0x140] ss:$16 sps:$4 sm:$0xff]  }
0x136b   :  { %v8423_v39 = vpop.f32.mrb[68].mxu1 }
0x136c   :  { %v8638_v58 = vpack.c.bf16 %v8599_v18, %v8598_v13  ;;  %v8424_v27 = vadd.f32 %v8423_v39, %v8175_v21  ;;  %v8425_v46 = vpop.f32.mrb[69].mxu1  ;;  %v7190_v18 = vmul.f32 0.0078125, %v7118_v63 }
0x136d   :  { %v8426_v29 = vpop.f32.mrb[70].mxu1  ;;  %v7120_v46 = vpop.xlane.xlu1 %7119 }
0x136e   :  { %v8536_v48 = vadd.f32 %v16310_v26, %v8424_v27  ;;  %v8427_v1 = vadd.f32 %v8426_v29, %v8176_v50  ;;  %8952 = vmatpush1.bf16.msra.mxu0 %v8638_v58  ;;  %v8428_v55 = vpop.f32.mrb[71].mxu1  ;;  %v8179_v58 = vmul.f32 %v16505_v35, %v7189_v59  ;;  %v13348_v27 = vld [vmem:[%s17164_s3 + $0x164] ss:$16 sps:$4 sm:$0xff]   ;;  %v7191_v23 = vmul.f32 0.0078125, %v7120_v46 }
0x136f   :  { %8953 = vmatprep.subr.bf16.mxu0 %v17291_v0 }
0x1370   :  { %v8537_v62 = vadd.f32 %v16496_v49, %v8427_v1  ;;  %v8600_v8 = vmax.f32 %v8536_v48, 0.0  ;;  %v8180_v48 = vmul.f32 %v16505_v35, %v7190_v18  ;;  %v7122_v1 = vpop.xlane.xlu0 %7121 }
0x1371   :  { %8751 = vmatmul.mubr.bf16.gmra.mrb[36].mxu0 %v13344_v61 }
0x1372   :  { %v8601_v26 = vmax.f32 %v8537_v62, 0.0  ;;  %8758 = vmatprep.mubr.bf16.mxu0 %v13346_v33  ;;  %v13349_v33 = vld [vmem:[%s17164_s3 + $0x160] ss:$16 sps:$4 sm:$0xff]  }
0x1373   :  { %v8431_v15 = vpop.f32.mrb[72].mxu1 }
0x1374   :  { %v8639_v7 = vpack.c.bf16 %v8601_v26, %v8600_v8  ;;  %v8432_v28 = vadd.f32 %v8431_v15, %v8177_v56  ;;  %v8433_v11 = vpop.f32.mrb[73].mxu1  ;;  %v7192_v26 = vmul.f32 0.0078125, %v7122_v1 }
0x1375   :  { %v8434_v43 = vpop.f32.mrb[74].mxu1  ;;  %v7124_v11 = vpop.xlane.xlu1 %7123 }
0x1376   :  { %v8538_v37 = vadd.f32 %v16496_v49, %v8432_v28  ;;  %v8435_v14 = vadd.f32 %v8434_v43, %v8178_v4  ;;  %8954 = vmatpush1.bf16.msra.mxu0 %v8639_v7  ;;  %v8436_v13 = vpop.f32.mrb[75].mxu1  ;;  %v8181_v7 = vmul.f32 %v16505_v35, %v7191_v23  ;;  %v13350_v28 = vld [vmem:[%s17164_s3 + $0x184] ss:$16 sps:$4 sm:$0xff]   ;;  %v7193_v18 = vmul.f32 0.0078125, %v7124_v11 }
0x1377   :  { %8955 = vmatprep.subr.bf16.mxu0 %v17291_v0 }
0x1378   :  { %v8539_v21 = vadd.f32 %v16496_v49, %v8435_v14  ;;  %v8602_v36 = vmax.f32 %v8538_v37, 0.0  ;;  %v8182_v37 = vmul.f32 %v16505_v35, %v7192_v26  ;;  %v7126_v14 = vpop.xlane.xlu0 %7125 }
0x1379   :  { %8759 = vmatmul.mubr.bf16.gmra.mrb[40].mxu0 %v13347_v12 }
0x137a   :  { %v8603_v39 = vmax.f32 %v8539_v21, 0.0  ;;  %8766 = vmatprep.mubr.bf16.mxu0 %v13348_v27  ;;  %v13351_v27 = vld [vmem:[%s17164_s3 + $0x180] ss:$16 sps:$4 sm:$0xff]  }
0x137b   :  { %v8439_v50 = vpop.f32.mrb[76].mxu1 }
0x137c   :  { %v8640_v10 = vpack.c.bf16 %v8603_v39, %v8602_v36  ;;  %v8440_v29 = vadd.f32 %v8439_v50, %v8179_v58  ;;  %v8441_v34 = vpop.f32.mrb[77].mxu1  ;;  %v7194_v39 = vmul.f32 0.0078125, %v7126_v14 }
0x137d   :  { %v8442_v55 = vpop.f32.mrb[78].mxu1  ;;  %v7128_v34 = vpop.xlane.xlu1 %7127 }
0x137e   :  { %v8540_v62 = vadd.f32 %v16496_v49, %v8440_v29  ;;  %v8443_v61 = vadd.f32 %v8442_v55, %v8180_v48  ;;  %8956 = vmatpush1.bf16.msra.mxu0 %v8640_v10  ;;  %v8444_v8 = vpop.f32.mrb[79].mxu1  ;;  %v8183_v10 = vmul.f32 %v16505_v35, %v7193_v18  ;;  %v13352_v29 = vld [vmem:[%s17164_s3 + $0x1a4] ss:$16 sps:$4 sm:$0xff]   ;;  %v7195_v26 = vmul.f32 0.0078125, %v7128_v34 }
0x137f   :  { %8957 = vmatprep.subr.bf16.mxu0 %v17291_v0 }
0x1380   :  { %v8541_v56 = vadd.f32 %v16496_v49, %v8443_v61  ;;  %v8604_v19 = vmax.f32 %v8540_v62, 0.0  ;;  %v8184_v62 = vmul.f32 %v16505_v35, %v7194_v39  ;;  %v7130_v61 = vpop.xlane.xlu0 %7129 }
0x1381   :  { %8767 = vmatmul.mubr.bf16.gmra.mrb[44].mxu0 %v13349_v33 }
0x1382   :  { %v8605_v15 = vmax.f32 %v8541_v56, 0.0  ;;  %8774 = vmatprep.mubr.bf16.mxu0 %v13350_v28  ;;  %v13353_v28 = vld [vmem:[%s17164_s3 + $0x1a0] ss:$16 sps:$4 sm:$0xff]  }
0x1383   :  { %v8447_v4 = vpop.f32.mrb[80].mxu1 }
0x1384   :  { %v8641_v63 = vpack.c.bf16 %v8605_v15, %v8604_v19  ;;  %v8448_v43 = vadd.f32 %v8447_v4, %v8181_v7  ;;  %v8449_v59 = vpop.f32.mrb[81].mxu1  ;;  %v7196_v15 = vmul.f32 0.0078125, %v7130_v61 }
0x1385   :  { %v8450_v13 = vpop.f32.mrb[82].mxu1  ;;  %v7132_v59 = vpop.xlane.xlu1 %7131 }
0x1386   :  { %v8542_v21 = vadd.f32 %v16496_v49, %v8448_v43  ;;  %v8451_v12 = vadd.f32 %v8450_v13, %v8182_v37  ;;  %8958 = vmatpush1.bf16.msra.mxu0 %v8641_v63  ;;  %v8452_v36 = vpop.f32.mrb[83].mxu1  ;;  %v8185_v63 = vmul.f32 %v16505_v35, %v7195_v26  ;;  %v13354_v43 = vld [vmem:[%s17164_s3 + $0x1c4] ss:$16 sps:$4 sm:$0xff]   ;;  %v7197_v39 = vmul.f32 0.0078125, %v7132_v59  ;;  %v13361_v59 = vld [vmem:[%s17164_s3 + $0x220] ss:$16 sps:$4 sm:$0xff]  }
0x1387   :  { %8959 = vmatprep.subr.bf16.mxu0 %v17291_v0 }
0x1388   :  { %v8543_v58 = vadd.f32 %v16496_v49, %v8451_v12  ;;  %v8606_v46 = vmax.f32 %v8542_v21, 0.0  ;;  %v8186_v21 = vmul.f32 %v16505_v35, %v7196_v15  ;;  %v7134_v12 = vpop.xlane.xlu0 %7133  ;;  %v8187_v34 = vmul.f32 %v16505_v35, %v7197_v39  ;;  %v13369_v39 = vld [vmem:[%s17164_s3 + $0x2a0] ss:$16 sps:$4 sm:$0xff]  }
0x1389   :  { %8775 = vmatmul.mubr.bf16.gmra.mrb[48].mxu0 %v13351_v27 }
0x138a   :  { %v8607_v50 = vmax.f32 %v8543_v58, 0.0  ;;  %8782 = vmatprep.mubr.bf16.mxu0 %v13352_v29  ;;  %v13355_v29 = vld [vmem:[%s17164_s3 + $0x1c0] ss:$16 sps:$4 sm:$0xff]  }
0x138b   :  { %v8455_v48 = vpop.f32.mrb[84].mxu1 }
0x138c   :  { %v8642_v1 = vpack.c.bf16 %v8607_v50, %v8606_v46  ;;  %v8456_v55 = vadd.f32 %v8455_v48, %v8183_v10  ;;  %v8457_v23 = vpop.f32.mrb[85].mxu1  ;;  %v7198_v50 = vmul.f32 0.0078125, %v7134_v12  ;;  %v13367_v12 = vld [vmem:[%s17164_s3 + $0x280] ss:$16 sps:$4 sm:$0xff]  }
0x138d   :  { %v8458_v8 = vpop.f32.mrb[86].mxu1 }
0x138e   :  { %v8544_v56 = vadd.f32 %v16496_v49, %v8456_v55  ;;  %v8459_v33 = vadd.f32 %v8458_v8, %v8184_v62  ;;  %8960 = vmatpush1.bf16.msra.mxu0 %v8642_v1  ;;  %v8460_v19 = vpop.f32.mrb[87].mxu1  ;;  %v13356_v55 = vld [vmem:[%s17164_s3 + $0x1e4] ss:$16 sps:$4 sm:$0xff]   ;;  %v8188_v62 = vmul.f32 %v16505_v35, %v7198_v50  ;;  %v13373_v50 = vld [vmem:[%s17164_s3 + $0x2e0] ss:$16 sps:$4 sm:$0xff]  }
0x138f   :  { %8961 = vmatprep.subr.bf16.mxu0 %v17291_v0 }
0x1390   :  { %v8545_v7 = vadd.f32 %v16496_v49, %v8459_v33  ;;  %v8608_v11 = vmax.f32 %v8544_v56, 0.0 }
0x1391   :  { %8783 = vmatmul.mubr.bf16.gmra.mrb[52].mxu0 %v13353_v28  ;;  %v13357_v28 = vld [vmem:[%s17164_s3 + $0x1e0] ss:$16 sps:$4 sm:$0xff]  }
0x1392   :  { %v8609_v4 = vmax.f32 %v8545_v7, 0.0  ;;  %8790 = vmatprep.mubr.bf16.mxu0 %v13354_v43  ;;  %v13359_v43 = vld [vmem:[%s17164_s3 + $0x200] ss:$16 sps:$4 sm:$0xff]  }
0x1393   :  { %v8463_v37 = vpop.f32.mrb[88].mxu1 }
0x1394   :  { %v8643_v14 = vpack.c.bf16 %v8609_v4, %v8608_v11  ;;  %v8464_v13 = vadd.f32 %v8463_v37, %v8185_v63  ;;  %v8465_v18 = vpop.f32.mrb[89].mxu1  ;;  %v13358_v4 = vld [vmem:[%s17164_s3 + $0x204] ss:$16 sps:$4 sm:$0xff]  }
0x1395   :  { %v8466_v36 = vpop.f32.mrb[90].mxu1  ;;  %v13362_v37 = vld [vmem:[%s17164_s3 + $0x244] ss:$16 sps:$4 sm:$0xff]   ;;  %v13365_v18 = vld [vmem:[%s17164_s3 + $0x260] ss:$16 sps:$4 sm:$0xff]  }
0x1396   :  { %v8546_v58 = vadd.f32 %v16496_v49, %v8464_v13  ;;  %v8467_v27 = vadd.f32 %v8466_v36, %v8186_v21  ;;  %8962 = vmatpush1.bf16.msra.mxu0 %v8643_v14  ;;  %v8468_v46 = vpop.f32.mrb[91].mxu1  ;;  %v13363_v14 = vld [vmem:[%s17164_s3 + $0x240] ss:$16 sps:$4 sm:$0xff]   ;;  %v13364_v13 = vld [vmem:[%s17164_s3 + $0x264] ss:$16 sps:$4 sm:$0xff]  }
0x1397   :  { %8963 = vmatprep.subr.bf16.mxu0 %v17291_v0  ;;  %v13366_v21 = vld [vmem:[%s17164_s3 + $0x284] ss:$16 sps:$4 sm:$0xff]  }
0x1398   :  { %v8547_v10 = vadd.f32 %v16496_v49, %v8467_v27  ;;  %v8610_v48 = vmax.f32 %v8546_v58, 0.0  ;;  %v13368_v36 = vld [vmem:[%s17164_s3 + $0x2a4] ss:$16 sps:$4 sm:$0xff]   ;;  %v13371_v27 = vld [vmem:[%s17164_s3 + $0x2c0] ss:$16 sps:$4 sm:$0xff]  }
0x1399   :  { %8791 = vmatmul.mubr.bf16.gmra.mrb[56].mxu0 %v13355_v29  ;;  %v13370_v58 = vld [vmem:[%s17164_s3 + $0x2c4] ss:$16 sps:$4 sm:$0xff]   ;;  %v13375_v29 = vld [vmem:[%s17164_s3 + $0x300] ss:$16 sps:$4 sm:$0xff]  }
0x139a   :  { %v8611_v1 = vmax.f32 %v8547_v10, 0.0  ;;  %8798 = vmatprep.mubr.bf16.mxu0 %v13356_v55  ;;  %v13372_v46 = vld [vmem:[%s17164_s3 + $0x2e4] ss:$16 sps:$4 sm:$0xff]   ;;  %v13379_v55 = vld [vmem:[%s17164_s3 + $0x340] ss:$16 sps:$4 sm:$0xff]  }
0x139b   :  { %v8471_v23 = vpop.f32.mrb[92].mxu1  ;;  %v13374_v10 = vld [vmem:[%s17164_s3 + $0x304] ss:$16 sps:$4 sm:$0xff]  }
0x139c   :  { %v8644_v61 = vpack.c.bf16 %v8611_v1, %v8610_v48  ;;  %v8472_v8 = vadd.f32 %v8471_v23, %v8187_v34  ;;  %v8473_v26 = vpop.f32.mrb[93].mxu1  ;;  %v13376_v34 = vld [vmem:[%s17164_s3 + $0x324] ss:$16 sps:$4 sm:$0xff]   ;;  %v13377_v48 = vld [vmem:[%s17164_s3 + $0x320] ss:$16 sps:$4 sm:$0xff]  }
0x139d   :  { %v8474_v56 = vpop.f32.mrb[94].mxu1  ;;  %v13378_v1 = vld [vmem:[%s17164_s3 + $0x344] ss:$16 sps:$4 sm:$0xff]  }
0x139e   :  { %v8548_v33 = vadd.f32 %v16496_v49, %v8472_v8  ;;  %v8475_v19 = vadd.f32 %v8474_v56, %v8188_v62  ;;  %8964 = vmatpush1.bf16.msra.mxu0 %v8644_v61  ;;  %v8476_v15 = vpop.f32.mrb[95].mxu1  ;;  %v13380_v23 = vld [vmem:[%s17164_s3 + $0x364] ss:$16 sps:$4 sm:$0xff]   ;;  %v13381_v62 = vld [vmem:[%s17164_s3 + $0x360] ss:$16 sps:$4 sm:$0xff]  }
0x139f   :  { %8965 = vmatprep.subr.bf16.mxu0 %v17291_v0  ;;  %v13382_v61 = vld [vmem:[%s17164_s3 + $0x384] ss:$16 sps:$4 sm:$0xff]   ;;  %v13383_v8 = vld [vmem:[%s17164_s3 + $0x380] ss:$16 sps:$4 sm:$0xff]  }
0x13a0   :  { %v8549_v7 = vadd.f32 %v16496_v49, %v8475_v19  ;;  %v8612_v11 = vmax.f32 %v8548_v33, 0.0  ;;  %v13360_v49 = vld [vmem:[%s17164_s3 + $0x224] ss:$16 sps:$4 sm:$0xff]   ;;  %v13385_v56 = vld [vmem:[%s17164_s3 + $0x3a0] ss:$16 sps:$4 sm:$0xff]  }
0x13a1   :  { %8799 = vmatmul.mubr.bf16.gmra.mrb[60].mxu0 %v13357_v28  ;;  %v13384_v26 = vld [vmem:[%s17164_s3 + $0x3a4] ss:$16 sps:$4 sm:$0xff]   ;;  %v13387_v19 = vld [vmem:[%s17164_s3 + $0x3c0] ss:$16 sps:$4 sm:$0xff]   ;;  %v13390_v28 = vld [vmem:[%s17164_s3 + $0xc] ss:$16 sps:$4 sm:$0xff]  }
0x13a2   :  { %v8613_v35 = vmax.f32 %v8549_v7, 0.0  ;;  %8806 = vmatprep.mubr.bf16.mxu0 %v13358_v4  ;;  %v13386_v33 = vld [vmem:[%s17164_s3 + $0x3c4] ss:$16 sps:$4 sm:$0xff]   ;;  %v13389_v7 = vld [vmem:[%s17164_s3 + $0x3e0] ss:$16 sps:$4 sm:$0xff]  }
0x13a3   :  { %v13388_v15 = vld [vmem:[%s17164_s3 + $0x3e4] ss:$16 sps:$4 sm:$0xff]   ;;  %v13393_v4 = vld [vmem:[%s17164_s3 + $0x28] ss:$16 sps:$4 sm:$0xff]  }
0x13a4   :  { %v8645_v63 = vpack.c.bf16 %v8613_v35, %v8612_v11  ;;  %v13391_v11 = vld [vmem:[%s17164_s3 + $0x8] ss:$16 sps:$4 sm:$0xff]   ;;  %v13392_v35 = vld [vmem:[%s17164_s3 + $0x2c] ss:$16 sps:$4 sm:$0xff]  }
0x13a6   :  { %8966 = vmatpush1.bf16.msra.mxu0 %v8645_v63  ;;  %v13394_v63 = vld [vmem:[%s17164_s3 + $0x4c] ss:$16 sps:$4 sm:$0xff]  }
0x13a9   :  { %8807 = vmatmul.mubr.bf16.gmra.mrb[64].mxu0 %v13359_v43  ;;  %v13395_v43 = vld [vmem:[%s17164_s3 + $0x48] ss:$16 sps:$4 sm:$0xff]  }
0x13aa   :  { %8814 = vmatprep.mubr.bf16.mxu0 %v13360_v49  ;;  %v13396_v49 = vld [vmem:[%s17164_s3 + $0x6c] ss:$16 sps:$4 sm:$0xff]  }
0x13b1   :  { %8815 = vmatmul.mubr.bf16.gmra.mrb[68].mxu0 %v13361_v59  ;;  %v13397_v59 = vld [vmem:[%s17164_s3 + $0x68] ss:$16 sps:$4 sm:$0xff]  }
0x13b2   :  { %8822 = vmatprep.mubr.bf16.mxu0 %v13362_v37  ;;  %v13398_v37 = vld [vmem:[%s17164_s3 + $0x8c] ss:$16 sps:$4 sm:$0xff]  }
0x13b9   :  { %8823 = vmatmul.mubr.bf16.gmra.mrb[72].mxu0 %v13363_v14  ;;  %v13399_v14 = vld [vmem:[%s17164_s3 + $0x88] ss:$16 sps:$4 sm:$0xff]  }
0x13ba   :  { %8830 = vmatprep.mubr.bf16.mxu0 %v13364_v13  ;;  %v13400_v13 = vld [vmem:[%s17164_s3 + $0xac] ss:$16 sps:$4 sm:$0xff]  }
0x13c1   :  { %8831 = vmatmul.mubr.bf16.gmra.mrb[76].mxu0 %v13365_v18  ;;  %v13401_v18 = vld [vmem:[%s17164_s3 + $0xa8] ss:$16 sps:$4 sm:$0xff]  }
0x13c2   :  { %8838 = vmatprep.mubr.bf16.mxu0 %v13366_v21  ;;  %v13402_v21 = vld [vmem:[%s17164_s3 + $0xcc] ss:$16 sps:$4 sm:$0xff]  }
0x13c9   :  { %8839 = vmatmul.mubr.bf16.gmra.mrb[80].mxu0 %v13367_v12  ;;  %v13403_v12 = vld [vmem:[%s17164_s3 + $0xc8] ss:$16 sps:$4 sm:$0xff]  }
0x13ca   :  { %8846 = vmatprep.mubr.bf16.mxu0 %v13368_v36  ;;  %v13404_v36 = vld [vmem:[%s17164_s3 + $0xec] ss:$16 sps:$4 sm:$0xff]  }
0x13d1   :  { %8847 = vmatmul.mubr.bf16.gmra.mrb[84].mxu0 %v13369_v39  ;;  %v13405_v39 = vld [vmem:[%s17164_s3 + $0xe8] ss:$16 sps:$4 sm:$0xff]  }
0x13d2   :  { %8854 = vmatprep.mubr.bf16.mxu0 %v13370_v58  ;;  %v13406_v58 = vld [vmem:[%s17164_s3 + $0x10c] ss:$16 sps:$4 sm:$0xff]  }
0x13d9   :  { %8855 = vmatmul.mubr.bf16.gmra.mrb[88].mxu0 %v13371_v27  ;;  %v13407_v27 = vld [vmem:[%s17164_s3 + $0x108] ss:$16 sps:$4 sm:$0xff]  }
0x13da   :  { %8862 = vmatprep.mubr.bf16.mxu0 %v13372_v46  ;;  %v13008_v46 = vld [vmem:[#allocation11 + $0x80] sm:$0xff]  }
0x13db   :  { %11967 = vmatprep.subr.bf16.mxu1 %v13008_v46 }
0x13dc   :  { %11968 = vmatpush3.bf16.msra.mxu1 %v13008_v46  ;;  %v13436_v46 = vld [vmem:[%s17164_s3 + $0x2ec] ss:$16 sps:$4 sm:$0xff]  }
0x13e1   :  { %8863 = vmatmul.mubr.bf16.gmra.mrb[92].mxu0 %v13373_v50  ;;  %v13009_v50 = vld [vmem:[#allocation11 + $0x88] sm:$0xff]  }
0x13e2   :  { %8870 = vmatprep.mubr.bf16.mxu0 %v13374_v10  ;;  %v13408_v10 = vld [vmem:[%s17164_s3 + $0x12c] ss:$16 sps:$4 sm:$0xff]   ;;  %11969 = vmatprep.subr.bf16.mxu1 %v13009_v50 }
0x13e3   :  { %11970 = vmatpush3.bf16.msra.mxu1 %v13009_v50  ;;  %v13437_v50 = vld [vmem:[%s17164_s3 + $0x2e8] ss:$16 sps:$4 sm:$0xff]  }
0x13e9   :  { %8871 = vmatmul.mubr.bf16.gmra.mrb[96].mxu0 %v13375_v29  ;;  %v13409_v29 = vld [vmem:[%s17164_s3 + $0x128] ss:$16 sps:$4 sm:$0xff]  }
0x13ea   :  { %8878 = vmatprep.mubr.bf16.mxu0 %v13376_v34  ;;  %v13010_v34 = vld [vmem:[#allocation11 + $0x90] sm:$0xff]  }
0x13eb   :  { %11971 = vmatprep.subr.bf16.mxu1 %v13010_v34 }
0x13ec   :  { %11972 = vmatpush3.bf16.msra.mxu1 %v13010_v34  ;;  %v13440_v34 = vld [vmem:[%s17164_s3 + $0x32c] ss:$16 sps:$4 sm:$0xff]  }
0x13f1   :  { %8879 = vmatmul.mubr.bf16.gmra.mrb[100].mxu0 %v13377_v48  ;;  %v13011_v48 = vld [vmem:[#allocation11 + $0x98] sm:$0xff]  }
0x13f2   :  { %8886 = vmatprep.mubr.bf16.mxu0 %v13378_v1  ;;  %v13410_v1 = vld [vmem:[%s17164_s3 + $0x14c] ss:$16 sps:$4 sm:$0xff]   ;;  %11973 = vmatprep.subr.bf16.mxu1 %v13011_v48 }
0x13f3   :  { %11974 = vmatpush3.bf16.msra.mxu1 %v13011_v48  ;;  %v13441_v48 = vld [vmem:[%s17164_s3 + $0x328] ss:$16 sps:$4 sm:$0xff]  }
0x13f9   :  { %8887 = vmatmul.mubr.bf16.gmra.mrb[104].mxu0 %v13379_v55  ;;  %v13411_v55 = vld [vmem:[%s17164_s3 + $0x148] ss:$16 sps:$4 sm:$0xff]  }
0x13fa   :  { %8894 = vmatprep.mubr.bf16.mxu0 %v13380_v23  ;;  %v13012_v23 = vld [vmem:[#allocation11 + $0xa0] sm:$0xff]  }
0x13fb   :  { %11975 = vmatprep.subr.bf16.mxu1 %v13012_v23 }
0x13fc   :  { %11976 = vmatpush3.bf16.msra.mxu1 %v13012_v23  ;;  %v13444_v23 = vld [vmem:[%s17164_s3 + $0x36c] ss:$16 sps:$4 sm:$0xff]  }
0x1401   :  { %8895 = vmatmul.mubr.bf16.gmra.mrb[108].mxu0 %v13381_v62  ;;  %v13412_v62 = vld [vmem:[%s17164_s3 + $0x16c] ss:$16 sps:$4 sm:$0xff]  }
0x1402   :  { %8902 = vmatprep.mubr.bf16.mxu0 %v13382_v61  ;;  %v13013_v61 = vld [vmem:[#allocation11 + $0xa8] sm:$0xff]  }
0x1403   :  { %11977 = vmatprep.subr.bf16.mxu1 %v13013_v61 }
0x1404   :  { %11978 = vmatpush3.bf16.msra.mxu1 %v13013_v61 }
0x1409   :  { %8903 = vmatmul.mubr.bf16.gmra.mrb[112].mxu0 %v13383_v8  ;;  %v13413_v8 = vld [vmem:[%s17164_s3 + $0x168] ss:$16 sps:$4 sm:$0xff]  }
0x140a   :  { %8910 = vmatprep.mubr.bf16.mxu0 %v13384_v26  ;;  %v13014_v26 = vld [vmem:[#allocation11 + $0xb0] sm:$0xff]  }
0x140b   :  { %11979 = vmatprep.subr.bf16.mxu1 %v13014_v26 }
0x140c   :  { %11980 = vmatpush3.bf16.msra.mxu1 %v13014_v26 }
0x1411   :  { %8911 = vmatmul.mubr.bf16.gmra.mrb[116].mxu0 %v13385_v56  ;;  %v13414_v56 = vld [vmem:[%s17164_s3 + $0x18c] ss:$16 sps:$4 sm:$0xff]  }
0x1412   :  { %8918 = vmatprep.mubr.bf16.mxu0 %v13386_v33  ;;  %v13015_v33 = vld [vmem:[#allocation11 + $0xb8] sm:$0xff]  }
0x1413   :  { %11981 = vmatprep.subr.bf16.mxu1 %v13015_v33 }
0x1414   :  { %11982 = vmatpush3.bf16.msra.mxu1 %v13015_v33 }
0x1419   :  { %8919 = vmatmul.mubr.bf16.gmra.mrb[120].mxu0 %v13387_v19  ;;  %v13415_v19 = vld [vmem:[%s17164_s3 + $0x188] ss:$16 sps:$4 sm:$0xff]  }
0x141a   :  { %8926 = vmatprep.mubr.bf16.mxu0 %v13388_v15  ;;  %v13416_v15 = vld [vmem:[%s17164_s3 + $0x1ac] ss:$16 sps:$4 sm:$0xff]  }
0x1421   :  { %8927 = vmatmul.mubr.bf16.gmra.mrb[124].mxu0 %v13389_v7  ;;  %v13417_v7 = vld [vmem:[%s17164_s3 + $0x1a8] ss:$16 sps:$4 sm:$0xff]  }
0x1422   :  { %8967 = vmatprep.mubr.bf16.mxu0 %v13390_v28  ;;  %v13418_v28 = vld [vmem:[%s17164_s3 + $0x1cc] ss:$16 sps:$4 sm:$0xff]  }
0x1429   :  { %8968 = vmatmul.mubr.bf16.vlgmr.msra.gmra.mrb[0].mxu0 %v13391_v11  ;;  %v13419_v11 = vld [vmem:[%s17164_s3 + $0x1c8] ss:$16 sps:$4 sm:$0xff]  }
0x142a   :  { %8975 = vmatprep.mubr.bf16.mxu0 %v13392_v35  ;;  %v13420_v35 = vld [vmem:[%s17164_s3 + $0x1ec] ss:$16 sps:$4 sm:$0xff]  }
0x1431   :  { %8976 = vmatmul.mubr.bf16.gmra.mrb[4].mxu0 %v13393_v4  ;;  %v13421_v4 = vld [vmem:[%s17164_s3 + $0x1e8] ss:$16 sps:$4 sm:$0xff]  }
0x1432   :  { %8983 = vmatprep.mubr.bf16.mxu0 %v13394_v63  ;;  %v13422_v63 = vld [vmem:[%s17164_s3 + $0x20c] ss:$16 sps:$4 sm:$0xff]  }
0x1439   :  { %8984 = vmatmul.mubr.bf16.gmra.mrb[8].mxu0 %v13395_v43  ;;  %v13423_v43 = vld [vmem:[%s17164_s3 + $0x208] ss:$16 sps:$4 sm:$0xff]  }
0x143a   :  { %8991 = vmatprep.mubr.bf16.mxu0 %v13396_v49  ;;  %v13424_v49 = vld [vmem:[%s17164_s3 + $0x22c] ss:$16 sps:$4 sm:$0xff]  }
0x1441   :  { %8992 = vmatmul.mubr.bf16.gmra.mrb[12].mxu0 %v13397_v59  ;;  %v13425_v59 = vld [vmem:[%s17164_s3 + $0x228] ss:$16 sps:$4 sm:$0xff]  }
0x1442   :  { %8999 = vmatprep.mubr.bf16.mxu0 %v13398_v37  ;;  %v13426_v37 = vld [vmem:[%s17164_s3 + $0x24c] ss:$16 sps:$4 sm:$0xff]  }
0x1449   :  { %9000 = vmatmul.mubr.bf16.gmra.mrb[16].mxu0 %v13399_v14  ;;  %v13427_v14 = vld [vmem:[%s17164_s3 + $0x248] ss:$16 sps:$4 sm:$0xff]  }
0x144a   :  { %9007 = vmatprep.mubr.bf16.mxu0 %v13400_v13  ;;  %v13428_v13 = vld [vmem:[%s17164_s3 + $0x26c] ss:$16 sps:$4 sm:$0xff]  }
0x1451   :  { %9008 = vmatmul.mubr.bf16.gmra.mrb[20].mxu0 %v13401_v18  ;;  %v13429_v18 = vld [vmem:[%s17164_s3 + $0x268] ss:$16 sps:$4 sm:$0xff]  }
0x1452   :  { %9015 = vmatprep.mubr.bf16.mxu0 %v13402_v21  ;;  %v13430_v21 = vld [vmem:[%s17164_s3 + $0x28c] ss:$16 sps:$4 sm:$0xff]  }
0x1459   :  { %9016 = vmatmul.mubr.bf16.gmra.mrb[24].mxu0 %v13403_v12  ;;  %v13431_v12 = vld [vmem:[%s17164_s3 + $0x288] ss:$16 sps:$4 sm:$0xff]  }
0x145a   :  { %9023 = vmatprep.mubr.bf16.mxu0 %v13404_v36  ;;  %v13432_v36 = vld [vmem:[%s17164_s3 + $0x2ac] ss:$16 sps:$4 sm:$0xff]  }
0x1461   :  { %9024 = vmatmul.mubr.bf16.gmra.mrb[28].mxu0 %v13405_v39  ;;  %v13433_v39 = vld [vmem:[%s17164_s3 + $0x2a8] ss:$16 sps:$4 sm:$0xff]  }
0x1462   :  { %9031 = vmatprep.mubr.bf16.mxu0 %v13406_v58  ;;  %v13434_v58 = vld [vmem:[%s17164_s3 + $0x2cc] ss:$16 sps:$4 sm:$0xff]  }
0x1469   :  { %9032 = vmatmul.mubr.bf16.gmra.mrb[32].mxu0 %v13407_v27  ;;  %v13435_v27 = vld [vmem:[%s17164_s3 + $0x2c8] ss:$16 sps:$4 sm:$0xff]  }
0x146a   :  { %9039 = vmatprep.mubr.bf16.mxu0 %v13408_v10  ;;  %v13438_v10 = vld [vmem:[%s17164_s3 + $0x30c] ss:$16 sps:$4 sm:$0xff]  }
0x1471   :  { %9040 = vmatmul.mubr.bf16.gmra.mrb[36].mxu0 %v13409_v29  ;;  %v13439_v29 = vld [vmem:[%s17164_s3 + $0x308] ss:$16 sps:$4 sm:$0xff]  }
0x1472   :  { %9047 = vmatprep.mubr.bf16.mxu0 %v13410_v1  ;;  %v13442_v1 = vld [vmem:[%s17164_s3 + $0x34c] ss:$16 sps:$4 sm:$0xff]  }
0x1479   :  { %9048 = vmatmul.mubr.bf16.gmra.mrb[40].mxu0 %v13411_v55  ;;  %v13443_v55 = vld [vmem:[%s17164_s3 + $0x348] ss:$16 sps:$4 sm:$0xff]  }
0x147a   :  { %9055 = vmatprep.mubr.bf16.mxu0 %v13412_v62 }
0x1481   :  { %9056 = vmatmul.mubr.bf16.gmra.mrb[44].mxu0 %v13413_v8 }
0x1482   :  { %9063 = vmatprep.mubr.bf16.mxu0 %v13414_v56 }
0x1489   :  { %9064 = vmatmul.mubr.bf16.gmra.mrb[48].mxu0 %v13415_v19 }
0x148a   :  { %9071 = vmatprep.mubr.bf16.mxu0 %v13416_v15  ;;  %v13445_v15 = vld [vmem:[%s17164_s3 + $0x368] ss:$16 sps:$4 sm:$0xff]  }
0x1491   :  { %9072 = vmatmul.mubr.bf16.gmra.mrb[52].mxu0 %v13417_v7  ;;  %v13446_v7 = vld [vmem:[%s17164_s3 + $0x38c] ss:$16 sps:$4 sm:$0xff]  }
0x1492   :  { %9079 = vmatprep.mubr.bf16.mxu0 %v13418_v28 }
0x1499   :  { %9080 = vmatmul.mubr.bf16.gmra.mrb[56].mxu0 %v13419_v11 }
0x149a   :  { %9087 = vmatprep.mubr.bf16.mxu0 %v13420_v35 }
0x14a1   :  { %9088 = vmatmul.mubr.bf16.gmra.mrb[60].mxu0 %v13421_v4 }
0x14a2   :  { %9095 = vmatprep.mubr.bf16.mxu0 %v13422_v63 }
0x14a9   :  { %9096 = vmatmul.mubr.bf16.gmra.mrb[64].mxu0 %v13423_v43  ;;  %v13447_v43 = vld [vmem:[%s17164_s3 + $0x388] ss:$16 sps:$4 sm:$0xff]  }
0x14aa   :  { %9103 = vmatprep.mubr.bf16.mxu0 %v13424_v49  ;;  %v13448_v49 = vld [vmem:[%s17164_s3 + $0x3ac] ss:$16 sps:$4 sm:$0xff]  }
0x14b1   :  { %9104 = vmatmul.mubr.bf16.gmra.mrb[68].mxu0 %v13425_v59 }
0x14b2   :  { %9111 = vmatprep.mubr.bf16.mxu0 %v13426_v37 }
0x14b9   :  { %9112 = vmatmul.mubr.bf16.gmra.mrb[72].mxu0 %v13427_v14 }
0x14ba   :  { %9119 = vmatprep.mubr.bf16.mxu0 %v13428_v13 }
0x14c1   :  { %9120 = vmatmul.mubr.bf16.gmra.mrb[76].mxu0 %v13429_v18 }
0x14c2   :  { %9127 = vmatprep.mubr.bf16.mxu0 %v13430_v21  ;;  %v13449_v21 = vld [vmem:[%s17164_s3 + $0x3a8] ss:$16 sps:$4 sm:$0xff]  }
0x14c9   :  { %9128 = vmatmul.mubr.bf16.gmra.mrb[80].mxu0 %v13431_v12  ;;  %v13450_v12 = vld [vmem:[%s17164_s3 + $0x3cc] ss:$16 sps:$4 sm:$0xff]  }
0x14ca   :  { %9135 = vmatprep.mubr.bf16.mxu0 %v13432_v36 }
0x14d1   :  { %9136 = vmatmul.mubr.bf16.gmra.mrb[84].mxu0 %v13433_v39 }
0x14d2   :  { %9143 = vmatprep.mubr.bf16.mxu0 %v13434_v58 }
0x14d9   :  { %9144 = vmatmul.mubr.bf16.gmra.mrb[88].mxu0 %v13435_v27 }
0x14da   :  { %9151 = vmatprep.mubr.bf16.mxu0 %v13436_v46 }
0x14e1   :  { %9152 = vmatmul.mubr.bf16.gmra.mrb[92].mxu0 %v13437_v50  ;;  %v13451_v50 = vld [vmem:[%s17164_s3 + $0x3c8] ss:$16 sps:$4 sm:$0xff]  }
0x14e2   :  { %9159 = vmatprep.mubr.bf16.mxu0 %v13438_v10  ;;  %v13452_v10 = vld [vmem:[%s17164_s3 + $0x3ec] ss:$16 sps:$4 sm:$0xff]  }
0x14e9   :  { %9160 = vmatmul.mubr.bf16.gmra.mrb[96].mxu0 %v13439_v29 }
0x14ea   :  { %9167 = vmatprep.mubr.bf16.mxu0 %v13440_v34 }
0x14f1   :  { %9168 = vmatmul.mubr.bf16.gmra.mrb[100].mxu0 %v13441_v48 }
0x14f2   :  { %9175 = vmatprep.mubr.bf16.mxu0 %v13442_v1 }
0x14f9   :  { %9176 = vmatmul.mubr.bf16.gmra.mrb[104].mxu0 %v13443_v55 }
0x14fa   :  { %9183 = vmatprep.mubr.bf16.mxu0 %v13444_v23  ;;  %v13453_v23 = vld [vmem:[%s17164_s3 + $0x3e8] ss:$16 sps:$4 sm:$0xff]  }
0x14fc   :  { %v8969_v62 = vpop.f32.mrb[0].mxu0 }
0x14fd   :  { %v8971_v61 = vpop.f32.mrb[1].mxu0  ;;  %v9224_v26 = vmul.f32 %v8969_v62, %v14982_v42  ;;  %v13454_v62 = vld [vmem:[#allocation8 + $0xc] ss:$16 sps:$4 sm:$0xff]  }
0x14fe   :  { %v8972_v8 = vpop.f32.mrb[2].mxu0 }
0x14ff   :  { %v9225_v56 = vmul.f32 %v8972_v8, %v14987_v20  ;;  %v8974_v33 = vpop.f32.mrb[3].mxu0 }
0x1501   :  { %v9288_v19 = vpack.c.bf16 %v9225_v56, %v9224_v26  ;;  %9184 = vmatmul.mubr.bf16.gmra.mrb[108].mxu0 %v13445_v15 }
0x1502   :  { %9191 = vmatprep.mubr.bf16.mxu0 %v13446_v7 }
0x1503   :  { %11983 = vmatprep.mubr.bf16.mxu1 %v9288_v19 }
0x1504   :  { %v8977_v28 = vpop.f32.mrb[4].mxu0 }
0x1505   :  { %v8979_v11 = vpop.f32.mrb[5].mxu0  ;;  %v9226_v42 = vmul.f32 %v8977_v28, %v14994_v38 }
0x1506   :  { %v8980_v35 = vpop.f32.mrb[6].mxu0 }
0x1507   :  { %v9227_v20 = vmul.f32 %v8980_v35, %v14999_v53  ;;  %v8982_v4 = vpop.f32.mrb[7].mxu0 }
0x1509   :  { %v9289_v63 = vpack.c.bf16 %v9227_v20, %v9226_v42  ;;  %9192 = vmatmul.mubr.bf16.gmra.mrb[112].mxu0 %v13447_v43 }
0x150a   :  { %9199 = vmatprep.mubr.bf16.mxu0 %v13448_v49 }
0x150b   :  { %11984 = vmatmul.mubr.bf16.vlgmr.msra.gmra.mrb[96].mxu1 %v9289_v63 }
0x150c   :  { %v8985_v59 = vpop.f32.mrb[8].mxu0 }
0x150d   :  { %v8987_v37 = vpop.f32.mrb[9].mxu0  ;;  %v9228_v38 = vmul.f32 %v8985_v59, %v15006_v24 }
0x150e   :  { %v8988_v14 = vpop.f32.mrb[10].mxu0 }
0x150f   :  { %v9229_v53 = vmul.f32 %v8988_v14, %v15011_v47  ;;  %v8990_v13 = vpop.f32.mrb[11].mxu0 }
0x1511   :  { %v9290_v18 = vpack.c.bf16 %v9229_v53, %v9228_v38  ;;  %9200 = vmatmul.mubr.bf16.gmra.mrb[116].mxu0 %v13449_v21 }
0x1512   :  { %9207 = vmatprep.mubr.bf16.mxu0 %v13450_v12 }
0x1513   :  { %11987 = vmatprep.mubr.bf16.mxu1 %v9290_v18 }
0x1514   :  { %v8993_v36 = vpop.f32.mrb[12].mxu0 }
0x1515   :  { %v8995_v39 = vpop.f32.mrb[13].mxu0  ;;  %v9230_v24 = vmul.f32 %v8993_v36, %v15018_v44 }
0x1516   :  { %v8996_v58 = vpop.f32.mrb[14].mxu0 }
0x1517   :  { %v9231_v47 = vmul.f32 %v8996_v58, %v15023_v45  ;;  %v8998_v27 = vpop.f32.mrb[15].mxu0 }
0x1519   :  { %v9291_v46 = vpack.c.bf16 %v9231_v47, %v9230_v24  ;;  %9208 = vmatmul.mubr.bf16.gmra.mrb[120].mxu0 %v13451_v50 }
0x151a   :  { %9215 = vmatprep.mubr.bf16.mxu0 %v13452_v10 }
0x151b   :  { %11988 = vmatmul.mubr.bf16.gmra.mrb[100].mxu1 %v9291_v46 }
0x151c   :  { %v9001_v29 = vpop.f32.mrb[16].mxu0 }
0x151d   :  { %v9003_v34 = vpop.f32.mrb[17].mxu0  ;;  %v9232_v44 = vmul.f32 %v9001_v29, %v15030_v51 }
0x151e   :  { %v9004_v48 = vpop.f32.mrb[18].mxu0 }
0x151f   :  { %v9233_v45 = vmul.f32 %v9004_v48, %v15035_v54  ;;  %v9006_v1 = vpop.f32.mrb[19].mxu0 }
0x1521   :  { %v9292_v55 = vpack.c.bf16 %v9233_v45, %v9232_v44  ;;  %9216 = vmatmul.mubr.bf16.gmra.mrb[124].mxu0 %v13453_v23  ;;  %v13016_v23 = vld [vmem:[#allocation12 + $0x80] sm:$0xff]  }
0x1522   :  { %10365 = vmatprep.mubr.bf16.mxu0 %v13454_v62  ;;  %12047 = vmatprep.subr.bf16.mxu1 %v13016_v23 }
0x1523   :  { %11991 = vmatprep.mubr.bf16.mxu1 %v9292_v55  ;;  %12048 = vmatpush3.bf16.msra.mxu1 %v13016_v23 }
0x1524   :  { %v9009_v61 = vpop.f32.mrb[20].mxu0 }
0x1525   :  { %v9011_v8 = vpop.f32.mrb[21].mxu0  ;;  %v9234_v56 = vmul.f32 %v9009_v61, %v15039_v2  ;;  %v13017_v61 = vld [vmem:[#allocation12 + $0x88] sm:$0xff]  }
0x1526   :  { %v9012_v26 = vpop.f32.mrb[22].mxu0  ;;  %12049 = vmatprep.subr.bf16.mxu1 %v13017_v61 }
0x1527   :  { %v9235_v33 = vmul.f32 %v9012_v26, %v15041_v6  ;;  %v9014_v51 = vpop.f32.mrb[23].mxu0  ;;  %v17329_v26 = vld [vmem:[#allocation21_spill] sm:$0xff]  ;;  %12050 = vmatpush3.bf16.msra.mxu1 %v13017_v61 }
0x1528   :  { %v13018_v51 = vld [vmem:[#allocation12 + $0x90] sm:$0xff]   ;;  %v17341_v61 = vld [vmem:[#allocation33_spill] sm:$0xff] }
0x1529   :  { %v9293_v19 = vpack.c.bf16 %v9235_v33, %v9234_v56  ;;  %12051 = vmatprep.subr.bf16.mxu1 %v13018_v51 }
0x152b   :  { %11992 = vmatmul.mubr.bf16.gmra.mrb[104].mxu1 %v9293_v19 }
0x152c   :  { %v9017_v54 = vpop.f32.mrb[24].mxu0  ;;  %12052 = vmatpush3.bf16.msra.mxu1 %v13018_v51  ;;  %v17342_v51 = vld [vmem:[#allocation34_spill] sm:$0xff] }
0x152d   :  { %v9019_v15 = vpop.f32.mrb[25].mxu0  ;;  %v9236_v28 = vmul.f32 %v9017_v54, %v15045_v16  ;;  %v13019_v54 = vld [vmem:[#allocation12 + $0x98] sm:$0xff]  }
0x152e   :  { %v9020_v7 = vpop.f32.mrb[26].mxu0  ;;  %12053 = vmatprep.subr.bf16.mxu1 %v13019_v54 }
0x152f   :  { %v9237_v11 = vmul.f32 %v9020_v7, %v15047_v22  ;;  %v9022_v35 = vpop.f32.mrb[27].mxu0  ;;  %v17330_v7 = vld [vmem:[#allocation22_spill] sm:$0xff] }
0x1530   :  { %12054 = vmatpush3.bf16.msra.mxu1 %v13019_v54 }
0x1531   :  { %v9294_v42 = vpack.c.bf16 %v9237_v11, %v9236_v28  ;;  %v17331_v11 = vld [vmem:[#allocation23_spill] sm:$0xff] }
0x1533   :  { %11995 = vmatprep.mubr.bf16.mxu1 %v9294_v42 }
0x1534   :  { %v9025_v20 = vpop.f32.mrb[28].mxu0 }
0x1535   :  { %v9027_v4 = vpop.f32.mrb[29].mxu0  ;;  %v9238_v2 = vmul.f32 %v9025_v20, %v15051_v52  ;;  %v13020_v20 = vld [vmem:[#allocation12 + $0xa0] sm:$0xff]  }
0x1536   :  { %v9028_v63 = vpop.f32.mrb[30].mxu0  ;;  %12055 = vmatprep.subr.bf16.mxu1 %v13020_v20 }
0x1537   :  { %v9239_v6 = vmul.f32 %v9028_v63, %v15053_v57  ;;  %v9030_v43 = vpop.f32.mrb[31].mxu0  ;;  %12056 = vmatpush3.bf16.msra.mxu1 %v13020_v20  ;;  %v17345_v20 = vld [vmem:[#allocation37_spill] sm:$0xff] }
0x1538   :  { %v17332_v43 = vld [vmem:[#allocation24_spill] sm:$0xff] }
0x1539   :  { %v9295_v49 = vpack.c.bf16 %v9239_v6, %v9238_v2  ;;  %v13021_v2 = vld [vmem:[#allocation12 + $0xa8] sm:$0xff]  }
0x153a   :  { %12057 = vmatprep.subr.bf16.mxu1 %v13021_v2 }
0x153b   :  { %11996 = vmatmul.mubr.bf16.gmra.mrb[108].mxu1 %v9295_v49 }
0x153c   :  { %v9033_v59 = vpop.f32.mrb[32].mxu0  ;;  %12058 = vmatpush3.bf16.msra.mxu1 %v13021_v2 }
0x153d   :  { %v9035_v37 = vpop.f32.mrb[33].mxu0  ;;  %v9240_v16 = vmul.f32 %v9033_v59, %v15057_v30  ;;  %v17333_v59 = vld [vmem:[#allocation25_spill] sm:$0xff] }
0x153e   :  { %v9036_v14 = vpop.f32.mrb[34].mxu0 }
0x153f   :  { %v9241_v22 = vmul.f32 %v9036_v14, %v15059_v31  ;;  %v9038_v38 = vpop.f32.mrb[35].mxu0 }
0x1541   :  { %v9296_v53 = vpack.c.bf16 %v9241_v22, %v9240_v16  ;;  %v13022_v22 = vld [vmem:[#allocation12 + $0xb0] sm:$0xff]  }
0x1542   :  { %12059 = vmatprep.subr.bf16.mxu1 %v13022_v22 }
0x1543   :  { %11999 = vmatprep.mubr.bf16.mxu1 %v9296_v53  ;;  %12060 = vmatpush3.bf16.msra.mxu1 %v13022_v22 }
0x1544   :  { %v9041_v13 = vpop.f32.mrb[36].mxu0 }
0x1545   :  { %v9043_v18 = vpop.f32.mrb[37].mxu0  ;;  %v9242_v52 = vmul.f32 %v9041_v13, %v15063_v25  ;;  %v13023_v13 = vld [vmem:[#allocation12 + $0xb8] sm:$0xff]  }
0x1546   :  { %v9044_v21 = vpop.f32.mrb[38].mxu0  ;;  %12061 = vmatprep.subr.bf16.mxu1 %v13023_v13 }
0x1547   :  { %v9243_v57 = vmul.f32 %v9044_v21, %v15065_v60  ;;  %v9046_v12 = vpop.f32.mrb[39].mxu0  ;;  %v17334_v21 = vld [vmem:[#allocation26_spill] sm:$0xff]  ;;  %12062 = vmatpush3.bf16.msra.mxu1 %v13023_v13 }
0x1549   :  { %v9297_v36 = vpack.c.bf16 %v9243_v57, %v9242_v52  ;;  %v17335_v57 = vld [vmem:[#allocation27_spill] sm:$0xff] }
0x154b   :  { %12000 = vmatmul.mubr.bf16.gmra.mrb[112].mxu1 %v9297_v36 }
0x154c   :  { %v9049_v39 = vpop.f32.mrb[40].mxu0 }
0x154d   :  { %v9051_v58 = vpop.f32.mrb[41].mxu0  ;;  %v9244_v30 = vmul.f32 %v9049_v39, %v15069_v5 }
0x154e   :  { %v9052_v24 = vpop.f32.mrb[42].mxu0 }
0x154f   :  { %v9245_v31 = vmul.f32 %v9052_v24, %v15071_v3  ;;  %v9054_v47 = vpop.f32.mrb[43].mxu0 }
0x1551   :  { %v9298_v27 = vpack.c.bf16 %v9245_v31, %v9244_v30  ;;  %v17336_v31 = vld [vmem:[#allocation28_spill] sm:$0xff] }
0x1553   :  { %12003 = vmatprep.mubr.bf16.mxu1 %v9298_v27  ;;  %v17337_v27 = vld [vmem:[#allocation29_spill] sm:$0xff] }
0x1554   :  { %v9057_v46 = vpop.f32.mrb[44].mxu0 }
0x1555   :  { %v9059_v50 = vpop.f32.mrb[45].mxu0  ;;  %v9246_v25 = vmul.f32 %v9057_v46, %v15075_v17 }
0x1556   :  { %v9060_v10 = vpop.f32.mrb[46].mxu0 }
0x1557   :  { %v9247_v60 = vmul.f32 %v9060_v10, %v15077_v9  ;;  %v9062_v29 = vpop.f32.mrb[47].mxu0 }
0x1559   :  { %v9299_v34 = vpack.c.bf16 %v9247_v60, %v9246_v25 }
0x155b   :  { %12004 = vmatmul.mubr.bf16.gmra.mrb[116].mxu1 %v9299_v34  ;;  %v17338_v34 = vld [vmem:[#allocation30_spill] sm:$0xff] }
0x155c   :  { %v9065_v48 = vpop.f32.mrb[48].mxu0 }
0x155d   :  { %v9067_v44 = vpop.f32.mrb[49].mxu0  ;;  %v9248_v5 = vmul.f32 %v9065_v48, %v15081_v32 }
0x155e   :  { %v9068_v45 = vpop.f32.mrb[50].mxu0  ;;  %v17339_v44 = vld [vmem:[#allocation31_spill] sm:$0xff] }
0x155f   :  { %v9249_v3 = vmul.f32 %v9068_v45, %v15083_v41  ;;  %v9070_v1 = vpop.f32.mrb[51].mxu0 }
0x1561   :  { %v9300_v55 = vpack.c.bf16 %v9249_v3, %v9248_v5 }
0x1563   :  { %12007 = vmatprep.mubr.bf16.mxu1 %v9300_v55 }
0x1564   :  { %v9073_v62 = vpop.f32.mrb[52].mxu0 }
0x1565   :  { %v9075_v17 = vpop.f32.mrb[53].mxu0  ;;  %v9250_v8 = vmul.f32 %v9073_v62, %v15087_v40  ;;  %v17340_v62 = vld [vmem:[#allocation32_spill] sm:$0xff] }
0x1566   :  { %v9076_v9 = vpop.f32.mrb[54].mxu0 }
0x1567   :  { %v9251_v56 = vmul.f32 %v9076_v9, %v17329_v26  ;;  %v9078_v33 = vpop.f32.mrb[55].mxu0 }
0x1569   :  { %v9301_v32 = vpack.c.bf16 %v9251_v56, %v9250_v8 }
0x156b   :  { %12008 = vmatmul.mubr.bf16.gmra.mrb[120].mxu1 %v9301_v32 }
0x156c   :  { %v9081_v41 = vpop.f32.mrb[56].mxu0 }
0x156d   :  { %v9083_v19 = vpop.f32.mrb[57].mxu0  ;;  %v9252_v28 = vmul.f32 %v9081_v41, %v17330_v7 }
0x156e   :  { %v9084_v15 = vpop.f32.mrb[58].mxu0  ;;  %v17343_v19 = vld [vmem:[#allocation35_spill] sm:$0xff] }
0x156f   :  { %v9253_v35 = vmul.f32 %v9084_v15, %v17331_v11  ;;  %v9086_v42 = vpop.f32.mrb[59].mxu0 }
0x1570   :  { %v17344_v42 = vld [vmem:[#allocation36_spill] sm:$0xff] }
0x1571   :  { %v9302_v40 = vpack.c.bf16 %v9253_v35, %v9252_v28 }
0x1573   :  { %12011 = vmatprep.mubr.bf16.mxu1 %v9302_v40 }
0x1574   :  { %v9089_v4 = vpop.f32.mrb[60].mxu0 }
0x1575   :  { %v9091_v63 = vpop.f32.mrb[61].mxu0  ;;  %v9254_v49 = vmul.f32 %v9089_v4, %v17332_v43 }
0x1576   :  { %v9092_v6 = vpop.f32.mrb[62].mxu0 }
0x1577   :  { %v9255_v37 = vmul.f32 %v9092_v6, %v17333_v59  ;;  %v9094_v14 = vpop.f32.mrb[63].mxu0  ;;  %v17346_v59 = vld [vmem:[#allocation38_spill] sm:$0xff] }
0x1578   :  { %v17347_v14 = vld [vmem:[#allocation39_spill] sm:$0xff] }
0x1579   :  { %v9303_v16 = vpack.c.bf16 %v9255_v37, %v9254_v49 }
0x157b   :  { %12012 = vmatmul.mubr.bf16.gmra.mrb[124].mxu1 %v9303_v16 }
0x157c   :  { %v9097_v38 = vpop.f32.mrb[64].mxu0 }
0x157d   :  { %v9099_v53 = vpop.f32.mrb[65].mxu0  ;;  %v9256_v52 = vmul.f32 %v9097_v38, %v17334_v21  ;;  %v17348_v21 = vld [vmem:[#allocation40_spill] sm:$0xff] }
0x157e   :  { %v9100_v18 = vpop.f32.mrb[66].mxu0 }
0x157f   :  { %v9257_v12 = vmul.f32 %v9100_v18, %v17335_v57  ;;  %v9102_v36 = vpop.f32.mrb[67].mxu0  ;;  %v17349_v57 = vld [vmem:[#allocation41_spill] sm:$0xff] }
0x1581   :  { %v9304_v39 = vpack.c.bf16 %v9257_v12, %v9256_v52 }
0x1583   :  { %12015 = vmatprep.mubr.bf16.mxu1 %v9304_v39 }
0x1584   :  { %v9105_v58 = vpop.f32.mrb[68].mxu0 }
0x1585   :  { %v9107_v24 = vpop.f32.mrb[69].mxu0  ;;  %v9258_v47 = vmul.f32 %v9105_v58, %v17336_v31  ;;  %v17350_v31 = vld [vmem:[#allocation42_spill] sm:$0xff] }
0x1586   :  { %v9108_v30 = vpop.f32.mrb[70].mxu0 }
0x1587   :  { %v9259_v46 = vmul.f32 %v9108_v30, %v17337_v27  ;;  %v9110_v50 = vpop.f32.mrb[71].mxu0  ;;  %v17351_v27 = vld [vmem:[#allocation43_spill] sm:$0xff] }
0x1589   :  { %v9305_v10 = vpack.c.bf16 %v9259_v46, %v9258_v47 }
0x158b   :  { %12016 = vmatmul.mubr.bf16.gmra.mrb[128].mxu1 %v9305_v10 }
0x158c   :  { %v9113_v25 = vpop.f32.mrb[72].mxu0 }
0x158d   :  { %v9115_v60 = vpop.f32.mrb[73].mxu0  ;;  %v9260_v48 = vmul.f32 %v9113_v25, %v17338_v34  ;;  %v17352_v34 = vld [vmem:[#allocation44_spill] sm:$0xff] }
0x158e   :  { %v9116_v29 = vpop.f32.mrb[74].mxu0 }
0x158f   :  { %v9261_v45 = vmul.f32 %v9116_v29, %v17339_v44  ;;  %v9118_v5 = vpop.f32.mrb[75].mxu0  ;;  %v17353_v44 = vld [vmem:[#allocation45_spill] sm:$0xff] }
0x1591   :  { %v9306_v3 = vpack.c.bf16 %v9261_v45, %v9260_v48 }
0x1593   :  { %12019 = vmatprep.mubr.bf16.mxu1 %v9306_v3 }
0x1594   :  { %v9121_v1 = vpop.f32.mrb[76].mxu0 }
0x1595   :  { %v9123_v55 = vpop.f32.mrb[77].mxu0  ;;  %v9262_v17 = vmul.f32 %v9121_v1, %v17340_v62  ;;  %v17354_v62 = vld [vmem:[#allocation46_spill] sm:$0xff] }
0x1596   :  { %v9124_v23 = vpop.f32.mrb[78].mxu0 }
0x1597   :  { %v9263_v9 = vmul.f32 %v9124_v23, %v17341_v61  ;;  %v9126_v8 = vpop.f32.mrb[79].mxu0  ;;  %v17355_v61 = vld [vmem:[#allocation47_spill] sm:$0xff] }
0x1599   :  { %v9307_v26 = vpack.c.bf16 %v9263_v9, %v9262_v17 }
0x159b   :  { %12020 = vmatmul.mubr.bf16.gmra.mrb[132].mxu1 %v9307_v26 }
0x159c   :  { %v9129_v56 = vpop.f32.mrb[80].mxu0 }
0x159d   :  { %v9131_v33 = vpop.f32.mrb[81].mxu0  ;;  %v9264_v41 = vmul.f32 %v9129_v56, %v17342_v51  ;;  %v17356_v51 = vld [vmem:[#allocation48_spill] sm:$0xff] }
0x159e   :  { %v9132_v32 = vpop.f32.mrb[82].mxu0 }
0x159f   :  { %v9265_v54 = vmul.f32 %v9132_v32, %v17343_v19  ;;  %v9134_v15 = vpop.f32.mrb[83].mxu0  ;;  %v17357_v19 = vld [vmem:[#allocation49_spill] sm:$0xff] }
0x15a1   :  { %v9308_v7 = vpack.c.bf16 %v9265_v54, %v9264_v41 }
0x15a3   :  { %12023 = vmatprep.mubr.bf16.mxu1 %v9308_v7 }
0x15a4   :  { %v9137_v28 = vpop.f32.mrb[84].mxu0 }
0x15a5   :  { %v9139_v11 = vpop.f32.mrb[85].mxu0  ;;  %v9266_v40 = vmul.f32 %v9137_v28, %v17344_v42 }
0x15a6   :  { %v9140_v35 = vpop.f32.mrb[86].mxu0  ;;  %v16920_v11 = vld [vmem:[%s17171_s10 + $0x2] ss:$0 sm:$0xff] }
0x15a7   :  { %v9267_v4 = vmul.f32 %v9140_v35, %v17345_v20  ;;  %v9142_v63 = vpop.f32.mrb[87].mxu0  ;;  %v17358_v20 = vld [vmem:[#allocation50_spill] sm:$0xff] }
0x15a8   :  { %v17359_v63 = vld [vmem:[#allocation51_spill] sm:$0xff] }
0x15a9   :  { %v9309_v2 = vpack.c.bf16 %v9267_v4, %v9266_v40 }
0x15ab   :  { %12024 = vmatmul.mubr.bf16.gmra.mrb[136].mxu1 %v9309_v2 }
0x15ac   :  { %v9145_v6 = vpop.f32.mrb[88].mxu0 }
0x15ad   :  { %v9147_v43 = vpop.f32.mrb[89].mxu0  ;;  %v9268_v37 = vmul.f32 %v9145_v6, %v17346_v59 }
0x15ae   :  { %v9148_v49 = vpop.f32.mrb[90].mxu0 }
0x15af   :  { %v9269_v16 = vmul.f32 %v9148_v49, %v17347_v14  ;;  %v9150_v22 = vpop.f32.mrb[91].mxu0 }
0x15b1   :  { %v9310_v38 = vpack.c.bf16 %v9269_v16, %v9268_v37 }
0x15b3   :  { %12027 = vmatprep.mubr.bf16.mxu1 %v9310_v38 }
0x15b4   :  { %v9153_v53 = vpop.f32.mrb[92].mxu0 }
0x15b5   :  { %v9155_v13 = vpop.f32.mrb[93].mxu0  ;;  %v9270_v52 = vmul.f32 %v9153_v53, %v17348_v21 }
0x15b6   :  { %v9156_v18 = vpop.f32.mrb[94].mxu0 }
0x15b7   :  { %v9271_v12 = vmul.f32 %v9156_v18, %v17349_v57  ;;  %v9158_v36 = vpop.f32.mrb[95].mxu0 }
0x15b9   :  { %v9311_v39 = vpack.c.bf16 %v9271_v12, %v9270_v52 }
0x15bb   :  { %12028 = vmatmul.mubr.bf16.gmra.mrb[140].mxu1 %v9311_v39 }
0x15bc   :  { %v9161_v58 = vpop.f32.mrb[96].mxu0 }
0x15bd   :  { %v9163_v24 = vpop.f32.mrb[97].mxu0  ;;  %v9272_v47 = vmul.f32 %v9161_v58, %v17350_v31  ;;  %v17360_v58 = vld [vmem:[#allocation52_spill] sm:$0xff] }
0x15be   :  { %v9164_v30 = vpop.f32.mrb[98].mxu0 }
0x15bf   :  { %v9273_v46 = vmul.f32 %v9164_v30, %v17351_v27  ;;  %v9166_v50 = vpop.f32.mrb[99].mxu0  ;;  %v17361_v30 = vld [vmem:[#allocation53_spill] sm:$0xff] }
0x15c1   :  { %v9312_v10 = vpack.c.bf16 %v9273_v46, %v9272_v47 }
0x15c3   :  { %12031 = vmatprep.mubr.bf16.mxu1 %v9312_v10 }
0x15c4   :  { %v9169_v25 = vpop.f32.mrb[100].mxu0 }
0x15c5   :  { %v9171_v60 = vpop.f32.mrb[101].mxu0  ;;  %v9274_v48 = vmul.f32 %v9169_v25, %v17352_v34  ;;  %v17363_v34 = vld [vmem:[#allocation55_spill] sm:$0xff] }
0x15c6   :  { %v9172_v29 = vpop.f32.mrb[102].mxu0  ;;  %v17362_v60 = vld [vmem:[#allocation54_spill] sm:$0xff] }
0x15c7   :  { %v9275_v45 = vmul.f32 %v9172_v29, %v17353_v44  ;;  %v9174_v5 = vpop.f32.mrb[103].mxu0 }
0x15c9   :  { %v9313_v3 = vpack.c.bf16 %v9275_v45, %v9274_v48 }
0x15cb   :  { %12032 = vmatmul.mubr.bf16.gmra.mrb[144].mxu1 %v9313_v3 }
0x15cc   :  { %v9177_v1 = vpop.f32.mrb[104].mxu0 }
0x15cd   :  { %v9179_v55 = vpop.f32.mrb[105].mxu0  ;;  %v9276_v17 = vmul.f32 %v9177_v1, %v17354_v62 }
0x15ce   :  { %v9180_v23 = vpop.f32.mrb[106].mxu0 }
0x15cf   :  { %v9277_v9 = vmul.f32 %v9180_v23, %v17355_v61  ;;  %v9182_v8 = vpop.f32.mrb[107].mxu0 }
0x15d1   :  { %v9314_v26 = vpack.c.bf16 %v9277_v9, %v9276_v17 }
0x15d3   :  { %12035 = vmatprep.mubr.bf16.mxu1 %v9314_v26 }
0x15d4   :  { %v9185_v56 = vpop.f32.mrb[108].mxu0 }
0x15d5   :  { %v9187_v33 = vpop.f32.mrb[109].mxu0  ;;  %v9278_v41 = vmul.f32 %v9185_v56, %v17356_v51 }
0x15d6   :  { %v9188_v32 = vpop.f32.mrb[110].mxu0 }
0x15d7   :  { %v9279_v54 = vmul.f32 %v9188_v32, %v17357_v19  ;;  %v9190_v15 = vpop.f32.mrb[111].mxu0  ;;  %v17364_v19 = vld [vmem:[#allocation56_spill] sm:$0xff] }
0x15d8   :  { %v17365_v15 = vld [vmem:[#allocation57_spill] sm:$0xff] }
0x15d9   :  { %v9315_v7 = vpack.c.bf16 %v9279_v54, %v9278_v41 }
0x15db   :  { %12036 = vmatmul.mubr.bf16.gmra.mrb[148].mxu1 %v9315_v7 }
0x15dc   :  { %v9193_v28 = vpop.f32.mrb[112].mxu0 }
0x15dd   :  { %v9195_v35 = vpop.f32.mrb[113].mxu0  ;;  %v9280_v4 = vmul.f32 %v9193_v28, %v17358_v20 }
0x15de   :  { %v9196_v42 = vpop.f32.mrb[114].mxu0  ;;  %v11985_v40 = vpop.f32.mrb[96].mxu1 }
0x15df   :  { %v9281_v2 = vmul.f32 %v9196_v42, %v17359_v63  ;;  %v9436_v6 = vadd.f32 %v11985_v40, %v16920_v11  ;;  %v9198_v43 = vpop.f32.mrb[115].mxu0  ;;  %v9427_v49 = vpop.f32.mrb[97].mxu1 }
0x15e0   :  { %v9428_v59 = vadd.f32 %v16920_v11, %v9427_v49  ;;  %v11986_v37 = vpop.f32.mrb[98].mxu1 }
0x15e1   :  { %v9316_v14 = vpack.c.bf16 %v9281_v2, %v9280_v4  ;;  %v9439_v16 = vadd.f32 %v11986_v37, %v16920_v11  ;;  %v9430_v22 = vpop.f32.mrb[99].mxu1  ;;  %v9684_v53 = vmax.f32 %v9436_v6, 0.0 }
0x15e2   :  { %v9431_v38 = vadd.f32 %v16920_v11, %v9430_v22  ;;  %v9682_v18 = vmax.f32 %v9428_v59, 0.0 }
0x15e3   :  { %v9685_v13 = vmax.f32 %v9439_v16, 0.0  ;;  %12039 = vmatprep.mubr.bf16.mxu1 %v9316_v14 }
0x15e4   :  { %v9683_v21 = vmax.f32 %v9431_v38, 0.0  ;;  %v9201_v52 = vpop.f32.mrb[116].mxu0 }
0x15e5   :  { %v9747_v57 = vpack.c.bf16 %v9685_v13, %v9684_v53  ;;  %v9203_v12 = vpop.f32.mrb[117].mxu0  ;;  %v9282_v24 = vmul.f32 %v9201_v52, %v17360_v58 }
0x15e6   :  { %v9746_v36 = vpack.c.bf16 %v9683_v21, %v9682_v18  ;;  %v9204_v39 = vpop.f32.mrb[118].mxu0 }
0x15e7   :  { %v9283_v31 = vmul.f32 %v9204_v39, %v17361_v30  ;;  %v9206_v47 = vpop.f32.mrb[119].mxu0 }
0x15e9   :  { %v9317_v27 = vpack.c.bf16 %v9283_v31, %v9282_v24 }
0x15eb   :  { %12040 = vmatmul.mubr.bf16.gmra.mrb[152].mxu1 %v9317_v27 }
0x15ec   :  { %v9209_v46 = vpop.f32.mrb[120].mxu0 }
0x15ed   :  { %v9211_v50 = vpop.f32.mrb[121].mxu0  ;;  %v9284_v29 = vmul.f32 %v9209_v46, %v17362_v60 }
0x15ee   :  { %v9212_v10 = vpop.f32.mrb[122].mxu0  ;;  %v11989_v25 = vpop.f32.mrb[100].mxu1 }
0x15ef   :  { %v9285_v48 = vmul.f32 %v9212_v10, %v17363_v34  ;;  %v9452_v44 = vadd.f32 %v11989_v25, %v16920_v11  ;;  %v9214_v45 = vpop.f32.mrb[123].mxu0  ;;  %v9443_v5 = vpop.f32.mrb[101].mxu1 }
0x15f0   :  { %v9444_v3 = vadd.f32 %v16920_v11, %v9443_v5  ;;  %v11990_v1 = vpop.f32.mrb[102].mxu1 }
0x15f1   :  { %v9318_v55 = vpack.c.bf16 %v9285_v48, %v9284_v29  ;;  %v9455_v23 = vadd.f32 %v11990_v1, %v16920_v11  ;;  %v9446_v62 = vpop.f32.mrb[103].mxu1  ;;  %v9688_v61 = vmax.f32 %v9452_v44, 0.0 }
0x15f2   :  { %v9447_v17 = vadd.f32 %v16920_v11, %v9446_v62  ;;  %v9686_v8 = vmax.f32 %v9444_v3, 0.0 }
0x15f3   :  { %v9689_v9 = vmax.f32 %v9455_v23, 0.0  ;;  %12043 = vmatprep.mubr.bf16.mxu1 %v9318_v55 }
0x15f4   :  { %v9687_v26 = vmax.f32 %v9447_v17, 0.0  ;;  %v9217_v56 = vpop.f32.mrb[124].mxu0 }
0x15f5   :  { %v9749_v33 = vpack.c.bf16 %v9689_v9, %v9688_v61  ;;  %v9219_v32 = vpop.f32.mrb[125].mxu0  ;;  %v9286_v54 = vmul.f32 %v9217_v56, %v17364_v19 }
0x15f6   :  { %v9748_v51 = vpack.c.bf16 %v9687_v26, %v9686_v8  ;;  %v9220_v41 = vpop.f32.mrb[126].mxu0 }
0x15f7   :  { %v9287_v7 = vmul.f32 %v9220_v41, %v17365_v15  ;;  %v9222_v28 = vpop.f32.mrb[127].mxu0 }
0x15f9   :  { %v9319_v35 = vpack.c.bf16 %v9287_v7, %v9286_v54 }
0x15fb   :  { %12044 = vmatmul.mubr.bf16.gmra.mrb[156].mxu1 %v9319_v35 }
0x15fc   :  { %12063 = vmatprep.mubr.bf16.mxu1 %v9746_v36 }
0x15fe   :  { %v11993_v42 = vpop.f32.mrb[104].mxu1 }
0x15ff   :  { %v9468_v40 = vadd.f32 %v11993_v42, %v16920_v11  ;;  %v9459_v20 = vpop.f32.mrb[105].mxu1 }
0x1600   :  { %v9460_v4 = vadd.f32 %v16920_v11, %v9459_v20  ;;  %v11994_v63 = vpop.f32.mrb[106].mxu1 }
0x1601   :  { %v9471_v2 = vadd.f32 %v11994_v63, %v16920_v11  ;;  %v9462_v6 = vpop.f32.mrb[107].mxu1  ;;  %v9692_v49 = vmax.f32 %v9468_v40, 0.0 }
0x1602   :  { %v9463_v43 = vadd.f32 %v16920_v11, %v9462_v6  ;;  %v9690_v37 = vmax.f32 %v9460_v4, 0.0 }
0x1603   :  { %v9693_v59 = vmax.f32 %v9471_v2, 0.0  ;;  %12064 = vmatmul.mubr.bf16.vlgmr.msra.gmra.mrb[160].mxu1 %v9747_v57 }
0x1604   :  { %v9691_v14 = vmax.f32 %v9463_v43, 0.0  ;;  %12067 = vmatprep.mubr.bf16.mxu1 %v9748_v51 }
0x1605   :  { %v9751_v16 = vpack.c.bf16 %v9693_v59, %v9692_v49 }
0x1606   :  { %v9750_v22 = vpack.c.bf16 %v9691_v14, %v9690_v37 }
0x160b   :  { %12068 = vmatmul.mubr.bf16.gmra.mrb[164].mxu1 %v9749_v33 }
0x160c   :  { %12071 = vmatprep.mubr.bf16.mxu1 %v9750_v22 }
0x160e   :  { %v11997_v38 = vpop.f32.mrb[108].mxu1 }
0x160f   :  { %v9484_v53 = vadd.f32 %v11997_v38, %v16920_v11  ;;  %v9475_v13 = vpop.f32.mrb[109].mxu1 }
0x1610   :  { %v9476_v18 = vadd.f32 %v16920_v11, %v9475_v13  ;;  %v11998_v21 = vpop.f32.mrb[110].mxu1 }
0x1611   :  { %v9487_v52 = vadd.f32 %v11998_v21, %v16920_v11  ;;  %v9478_v12 = vpop.f32.mrb[111].mxu1  ;;  %v9696_v57 = vmax.f32 %v9484_v53, 0.0 }
0x1612   :  { %v9479_v36 = vadd.f32 %v16920_v11, %v9478_v12  ;;  %v9694_v58 = vmax.f32 %v9476_v18, 0.0 }
0x1613   :  { %v9697_v39 = vmax.f32 %v9487_v52, 0.0  ;;  %12072 = vmatmul.mubr.bf16.gmra.mrb[168].mxu1 %v9751_v16 }
0x1614   :  { %v9695_v24 = vmax.f32 %v9479_v36, 0.0 }
0x1615   :  { %v9753_v30 = vpack.c.bf16 %v9697_v39, %v9696_v57 }
0x1616   :  { %v9752_v31 = vpack.c.bf16 %v9695_v24, %v9694_v58 }
0x1618   :  { %12075 = vmatprep.mubr.bf16.mxu1 %v9752_v31 }
0x161b   :  { %12076 = vmatmul.mubr.bf16.gmra.mrb[172].mxu1 %v9753_v30 }
0x161e   :  { %v12001_v47 = vpop.f32.mrb[112].mxu1 }
0x161f   :  { %v9500_v27 = vadd.f32 %v12001_v47, %v16920_v11  ;;  %v9491_v46 = vpop.f32.mrb[113].mxu1 }
0x1620   :  { %v9492_v50 = vadd.f32 %v16920_v11, %v9491_v46  ;;  %v12002_v10 = vpop.f32.mrb[114].mxu1 }
0x1621   :  { %v9503_v25 = vadd.f32 %v12002_v10, %v16920_v11  ;;  %v9494_v60 = vpop.f32.mrb[115].mxu1  ;;  %v9700_v34 = vmax.f32 %v9500_v27, 0.0 }
0x1622   :  { %v9495_v29 = vadd.f32 %v16920_v11, %v9494_v60  ;;  %v9698_v44 = vmax.f32 %v9492_v50, 0.0 }
0x1623   :  { %v9701_v48 = vmax.f32 %v9503_v25, 0.0 }
0x1624   :  { %v9699_v45 = vmax.f32 %v9495_v29, 0.0 }
0x1625   :  { %v9755_v5 = vpack.c.bf16 %v9701_v48, %v9700_v34 }
0x1626   :  { %v9754_v3 = vpack.c.bf16 %v9699_v45, %v9698_v44 }
0x1628   :  { %12079 = vmatprep.mubr.bf16.mxu1 %v9754_v3 }
0x1629   :  { %12080 = vmatmul.mubr.bf16.gmra.mrb[176].mxu1 %v9755_v5 }
0x162e   :  { %v12005_v1 = vpop.f32.mrb[116].mxu1 }
0x162f   :  { %v9516_v55 = vadd.f32 %v12005_v1, %v16920_v11  ;;  %v9507_v23 = vpop.f32.mrb[117].mxu1 }
0x1630   :  { %v9508_v62 = vadd.f32 %v16920_v11, %v9507_v23  ;;  %v12006_v17 = vpop.f32.mrb[118].mxu1 }
0x1631   :  { %v9519_v61 = vadd.f32 %v12006_v17, %v16920_v11  ;;  %v9510_v9 = vpop.f32.mrb[119].mxu1  ;;  %v9704_v26 = vmax.f32 %v9516_v55, 0.0 }
0x1632   :  { %v9511_v8 = vadd.f32 %v16920_v11, %v9510_v9  ;;  %v9702_v33 = vmax.f32 %v9508_v62, 0.0 }
0x1633   :  { %v9705_v56 = vmax.f32 %v9519_v61, 0.0 }
0x1634   :  { %v9703_v32 = vmax.f32 %v9511_v8, 0.0 }
0x1635   :  { %v9757_v51 = vpack.c.bf16 %v9705_v56, %v9704_v26 }
0x1636   :  { %v9756_v41 = vpack.c.bf16 %v9703_v32, %v9702_v33 }
0x1638   :  { %12083 = vmatprep.mubr.bf16.mxu1 %v9756_v41 }
0x1639   :  { %12084 = vmatmul.mubr.bf16.gmra.mrb[180].mxu1 %v9757_v51 }
0x163e   :  { %v12009_v19 = vpop.f32.mrb[120].mxu1 }
0x163f   :  { %v9532_v54 = vadd.f32 %v12009_v19, %v16920_v11  ;;  %v9523_v15 = vpop.f32.mrb[121].mxu1 }
0x1640   :  { %v9524_v7 = vadd.f32 %v16920_v11, %v9523_v15  ;;  %v12010_v28 = vpop.f32.mrb[122].mxu1 }
0x1641   :  { %v9535_v35 = vadd.f32 %v12010_v28, %v16920_v11  ;;  %v9526_v42 = vpop.f32.mrb[123].mxu1  ;;  %v9708_v20 = vmax.f32 %v9532_v54, 0.0 }
0x1642   :  { %v9527_v40 = vadd.f32 %v16920_v11, %v9526_v42  ;;  %v9706_v63 = vmax.f32 %v9524_v7, 0.0 }
0x1643   :  { %v9709_v4 = vmax.f32 %v9535_v35, 0.0 }
0x1644   :  { %v9707_v2 = vmax.f32 %v9527_v40, 0.0 }
0x1645   :  { %v9759_v6 = vpack.c.bf16 %v9709_v4, %v9708_v20 }
0x1646   :  { %v9758_v43 = vpack.c.bf16 %v9707_v2, %v9706_v63 }
0x1648   :  { %12087 = vmatprep.mubr.bf16.mxu1 %v9758_v43 }
0x1649   :  { %12088 = vmatmul.mubr.bf16.gmra.mrb[184].mxu1 %v9759_v6 }
0x164e   :  { %v12013_v49 = vpop.f32.mrb[124].mxu1 }
0x164f   :  { %v9548_v59 = vadd.f32 %v12013_v49, %v16920_v11  ;;  %v9539_v37 = vpop.f32.mrb[125].mxu1 }
0x1650   :  { %v9540_v14 = vadd.f32 %v16920_v11, %v9539_v37  ;;  %v12014_v16 = vpop.f32.mrb[126].mxu1 }
0x1651   :  { %v9551_v22 = vadd.f32 %v12014_v16, %v16920_v11  ;;  %v9542_v38 = vpop.f32.mrb[127].mxu1  ;;  %v9712_v13 = vmax.f32 %v9548_v59, 0.0 }
0x1652   :  { %v9543_v53 = vadd.f32 %v16920_v11, %v9542_v38  ;;  %v9710_v21 = vmax.f32 %v9540_v14, 0.0 }
0x1653   :  { %v9713_v18 = vmax.f32 %v9551_v22, 0.0 }
0x1654   :  { %v9711_v52 = vmax.f32 %v9543_v53, 0.0 }
0x1655   :  { %v9761_v12 = vpack.c.bf16 %v9713_v18, %v9712_v13 }
0x1656   :  { %v9760_v36 = vpack.c.bf16 %v9711_v52, %v9710_v21 }
0x1658   :  { %12091 = vmatprep.mubr.bf16.mxu1 %v9760_v36 }
0x1659   :  { %12092 = vmatmul.mubr.bf16.gmra.mrb[188].mxu1 %v9761_v12 }
0x165e   :  { %v12017_v57 = vpop.f32.mrb[128].mxu1 }
0x165f   :  { %v9564_v39 = vadd.f32 %v12017_v57, %v16920_v11  ;;  %v9555_v58 = vpop.f32.mrb[129].mxu1 }
0x1660   :  { %v9556_v24 = vadd.f32 %v16920_v11, %v9555_v58  ;;  %v12018_v30 = vpop.f32.mrb[130].mxu1 }
0x1661   :  { %v9567_v31 = vadd.f32 %v12018_v30, %v16920_v11  ;;  %v9558_v47 = vpop.f32.mrb[131].mxu1  ;;  %v9716_v46 = vmax.f32 %v9564_v39, 0.0 }
0x1662   :  { %v9559_v27 = vadd.f32 %v16920_v11, %v9558_v47  ;;  %v9714_v10 = vmax.f32 %v9556_v24, 0.0 }
0x1663   :  { %v9717_v50 = vmax.f32 %v9567_v31, 0.0 }
0x1664   :  { %v9715_v25 = vmax.f32 %v9559_v27, 0.0 }
0x1665   :  { %v9763_v60 = vpack.c.bf16 %v9717_v50, %v9716_v46 }
0x1666   :  { %v9762_v29 = vpack.c.bf16 %v9715_v25, %v9714_v10 }
0x1668   :  { %12095 = vmatprep.mubr.bf16.mxu1 %v9762_v29 }
0x1669   :  { %12096 = vmatmul.mubr.bf16.gmra.mrb[192].mxu1 %v9763_v60 }
0x166e   :  { %v12021_v34 = vpop.f32.mrb[132].mxu1 }
0x166f   :  { %v9580_v48 = vadd.f32 %v12021_v34, %v16920_v11  ;;  %v9571_v44 = vpop.f32.mrb[133].mxu1 }
0x1670   :  { %v9572_v45 = vadd.f32 %v16920_v11, %v9571_v44  ;;  %v12022_v5 = vpop.f32.mrb[134].mxu1 }
0x1671   :  { %v9583_v3 = vadd.f32 %v12022_v5, %v16920_v11  ;;  %v9574_v1 = vpop.f32.mrb[135].mxu1  ;;  %v9720_v23 = vmax.f32 %v9580_v48, 0.0 }
0x1672   :  { %v9575_v55 = vadd.f32 %v16920_v11, %v9574_v1  ;;  %v9718_v17 = vmax.f32 %v9572_v45, 0.0 }
0x1673   :  { %v9721_v62 = vmax.f32 %v9583_v3, 0.0 }
0x1674   :  { %v9719_v61 = vmax.f32 %v9575_v55, 0.0 }
0x1675   :  { %v9765_v9 = vpack.c.bf16 %v9721_v62, %v9720_v23 }
0x1676   :  { %v9764_v8 = vpack.c.bf16 %v9719_v61, %v9718_v17 }
0x1678   :  { %12099 = vmatprep.mubr.bf16.mxu1 %v9764_v8 }
0x1679   :  { %12100 = vmatmul.mubr.bf16.gmra.mrb[196].mxu1 %v9765_v9 }
0x167e   :  { %v12025_v26 = vpop.f32.mrb[136].mxu1 }
0x167f   :  { %v9596_v56 = vadd.f32 %v12025_v26, %v16920_v11  ;;  %v9587_v33 = vpop.f32.mrb[137].mxu1 }
0x1680   :  { %v9588_v32 = vadd.f32 %v16920_v11, %v9587_v33  ;;  %v12026_v51 = vpop.f32.mrb[138].mxu1 }
0x1681   :  { %v9599_v41 = vadd.f32 %v12026_v51, %v16920_v11  ;;  %v9590_v19 = vpop.f32.mrb[139].mxu1  ;;  %v9724_v15 = vmax.f32 %v9596_v56, 0.0 }
0x1682   :  { %v9591_v54 = vadd.f32 %v16920_v11, %v9590_v19  ;;  %v9722_v28 = vmax.f32 %v9588_v32, 0.0 }
0x1683   :  { %v9725_v7 = vmax.f32 %v9599_v41, 0.0 }
0x1684   :  { %v9723_v35 = vmax.f32 %v9591_v54, 0.0 }
0x1685   :  { %v9767_v42 = vpack.c.bf16 %v9725_v7, %v9724_v15 }
0x1686   :  { %v9766_v40 = vpack.c.bf16 %v9723_v35, %v9722_v28 }
0x1688   :  { %12103 = vmatprep.mubr.bf16.mxu1 %v9766_v40 }
0x1689   :  { %12104 = vmatmul.mubr.bf16.gmra.mrb[200].mxu1 %v9767_v42 }
0x168e   :  { %v12029_v20 = vpop.f32.mrb[140].mxu1 }
0x168f   :  { %v9612_v4 = vadd.f32 %v12029_v20, %v16920_v11  ;;  %v9603_v63 = vpop.f32.mrb[141].mxu1 }
0x1690   :  { %v9604_v2 = vadd.f32 %v16920_v11, %v9603_v63  ;;  %v12030_v6 = vpop.f32.mrb[142].mxu1 }
0x1691   :  { %v9615_v43 = vadd.f32 %v12030_v6, %v16920_v11  ;;  %v9606_v49 = vpop.f32.mrb[143].mxu1  ;;  %v9728_v37 = vmax.f32 %v9612_v4, 0.0 }
0x1692   :  { %v9607_v59 = vadd.f32 %v16920_v11, %v9606_v49  ;;  %v9726_v16 = vmax.f32 %v9604_v2, 0.0  ;;  %v16997_v49 = vld [vmem:[%s17173_s12 + $0x2] ss:$0 sm:$0xff] }
0x1693   :  { %v9729_v14 = vmax.f32 %v9615_v43, 0.0 }
0x1694   :  { %v9727_v22 = vmax.f32 %v9607_v59, 0.0 }
0x1695   :  { %v9769_v38 = vpack.c.bf16 %v9729_v14, %v9728_v37 }
0x1696   :  { %v9768_v53 = vpack.c.bf16 %v9727_v22, %v9726_v16 }
0x1698   :  { %12107 = vmatprep.mubr.bf16.mxu1 %v9768_v53 }
0x1699   :  { %12108 = vmatmul.mubr.bf16.gmra.mrb[204].mxu1 %v9769_v38 }
0x169e   :  { %v12033_v13 = vpop.f32.mrb[144].mxu1 }
0x169f   :  { %v9628_v18 = vadd.f32 %v12033_v13, %v16920_v11  ;;  %v9619_v21 = vpop.f32.mrb[145].mxu1 }
0x16a0   :  { %v9620_v52 = vadd.f32 %v16920_v11, %v9619_v21  ;;  %v12034_v12 = vpop.f32.mrb[146].mxu1  ;;  %v13455_v21 = vld [vmem:[#allocation8 + $0x4] ss:$16 sps:$4 sm:$0xff]  }
0x16a1   :  { %v9631_v36 = vadd.f32 %v12034_v12, %v16920_v11  ;;  %v9622_v57 = vpop.f32.mrb[147].mxu1  ;;  %v9732_v58 = vmax.f32 %v9628_v18, 0.0 }
0x16a2   :  { %v9623_v39 = vadd.f32 %v16920_v11, %v9622_v57  ;;  %v9730_v30 = vmax.f32 %v9620_v52, 0.0 }
0x16a3   :  { %v9733_v24 = vmax.f32 %v9631_v36, 0.0 }
0x16a4   :  { %v9731_v31 = vmax.f32 %v9623_v39, 0.0 }
0x16a5   :  { %v9771_v47 = vpack.c.bf16 %v9733_v24, %v9732_v58 }
0x16a6   :  { %v9770_v27 = vpack.c.bf16 %v9731_v31, %v9730_v30 }
0x16a8   :  { %12111 = vmatprep.mubr.bf16.mxu1 %v9770_v27 }
0x16a9   :  { %12112 = vmatmul.mubr.bf16.gmra.mrb[208].mxu1 %v9771_v47 }
0x16ae   :  { %v12037_v46 = vpop.f32.mrb[148].mxu1 }
0x16af   :  { %v9644_v50 = vadd.f32 %v12037_v46, %v16920_v11  ;;  %v9635_v10 = vpop.f32.mrb[149].mxu1 }
0x16b0   :  { %v9636_v25 = vadd.f32 %v16920_v11, %v9635_v10  ;;  %v12038_v60 = vpop.f32.mrb[150].mxu1 }
0x16b1   :  { %v9647_v29 = vadd.f32 %v12038_v60, %v16920_v11  ;;  %v9638_v34 = vpop.f32.mrb[151].mxu1  ;;  %v9736_v44 = vmax.f32 %v9644_v50, 0.0 }
0x16b2   :  { %v9639_v48 = vadd.f32 %v16920_v11, %v9638_v34  ;;  %v9734_v5 = vmax.f32 %v9636_v25, 0.0 }
0x16b3   :  { %v9737_v45 = vmax.f32 %v9647_v29, 0.0 }
0x16b4   :  { %v9735_v3 = vmax.f32 %v9639_v48, 0.0 }
0x16b5   :  { %v9773_v1 = vpack.c.bf16 %v9737_v45, %v9736_v44 }
0x16b6   :  { %v9772_v55 = vpack.c.bf16 %v9735_v3, %v9734_v5 }
0x16b8   :  { %12115 = vmatprep.mubr.bf16.mxu1 %v9772_v55 }
0x16b9   :  { %12116 = vmatmul.mubr.bf16.gmra.mrb[212].mxu1 %v9773_v1 }
0x16be   :  { %v12041_v23 = vpop.f32.mrb[152].mxu1 }
0x16bf   :  { %v9660_v62 = vadd.f32 %v12041_v23, %v16920_v11  ;;  %v9651_v17 = vpop.f32.mrb[153].mxu1 }
0x16c0   :  { %v9652_v61 = vadd.f32 %v16920_v11, %v9651_v17  ;;  %v12042_v9 = vpop.f32.mrb[154].mxu1 }
0x16c1   :  { %v9663_v8 = vadd.f32 %v12042_v9, %v16920_v11  ;;  %v9654_v26 = vpop.f32.mrb[155].mxu1  ;;  %v9740_v33 = vmax.f32 %v9660_v62, 0.0 }
0x16c2   :  { %v9655_v56 = vadd.f32 %v16920_v11, %v9654_v26  ;;  %v9738_v51 = vmax.f32 %v9652_v61, 0.0 }
0x16c3   :  { %v9741_v32 = vmax.f32 %v9663_v8, 0.0 }
0x16c4   :  { %v9739_v41 = vmax.f32 %v9655_v56, 0.0 }
0x16c5   :  { %v9775_v19 = vpack.c.bf16 %v9741_v32, %v9740_v33 }
0x16c6   :  { %v9774_v54 = vpack.c.bf16 %v9739_v41, %v9738_v51 }
0x16c8   :  { %12119 = vmatprep.mubr.bf16.mxu1 %v9774_v54 }
0x16c9   :  { %12120 = vmatmul.mubr.bf16.gmra.mrb[216].mxu1 %v9775_v19 }
0x16ce   :  { %v12045_v15 = vpop.f32.mrb[156].mxu1 }
0x16cf   :  { %v9676_v7 = vadd.f32 %v12045_v15, %v16920_v11  ;;  %v9667_v28 = vpop.f32.mrb[157].mxu1 }
0x16d0   :  { %v9668_v35 = vadd.f32 %v16920_v11, %v9667_v28  ;;  %v12046_v42 = vpop.f32.mrb[158].mxu1 }
0x16d1   :  { %v9679_v40 = vadd.f32 %v12046_v42, %v16920_v11  ;;  %v9670_v20 = vpop.f32.mrb[159].mxu1  ;;  %v9744_v63 = vmax.f32 %v9676_v7, 0.0 }
0x16d2   :  { %v9671_v4 = vadd.f32 %v16920_v11, %v9670_v20  ;;  %v9742_v6 = vmax.f32 %v9668_v35, 0.0 }
0x16d3   :  { %v9745_v2 = vmax.f32 %v9679_v40, 0.0 }
0x16d4   :  { %v9743_v43 = vmax.f32 %v9671_v4, 0.0 }
0x16d5   :  { %v9777_v59 = vpack.c.bf16 %v9745_v2, %v9744_v63 }
0x16d6   :  { %v9776_v37 = vpack.c.bf16 %v9743_v43, %v9742_v6  ;;  %v12065_v14 = vpop.f32.mrb[160].mxu1 }
0x16d7   :  { %v9894_v16 = vadd.f32 %v12065_v14, %v16997_v49  ;;  %v9885_v22 = vpop.f32.mrb[161].mxu1 }
0x16d8   :  { %v9886_v38 = vadd.f32 %v16997_v49, %v9885_v22  ;;  %v12066_v53 = vpop.f32.mrb[162].mxu1  ;;  %12123 = vmatprep.mubr.bf16.mxu1 %v9776_v37 }
0x16d9   :  { %v9897_v11 = vadd.f32 %v12066_v53, %v16997_v49  ;;  %v9888_v13 = vpop.f32.mrb[163].mxu1  ;;  %12124 = vmatmul.mubr.bf16.gmra.mrb[220].mxu1 %v9777_v59  ;;  %v10142_v52 = vmax.f32 %v9894_v16, 0.0 }
0x16da   :  { %v9889_v18 = vadd.f32 %v16997_v49, %v9888_v13  ;;  %10268 = vmatprep.mubr.bf16.mxu1 %v13455_v21  ;;  %v10140_v36 = vmax.f32 %v9886_v38, 0.0 }
0x16db   :  { %v10143_v12 = vmax.f32 %v9897_v11, 0.0 }
0x16dc   :  { %v10141_v57 = vmax.f32 %v9889_v18, 0.0 }
0x16dd   :  { %v10205_v39 = vpack.c.bf16 %v10143_v12, %v10142_v52 }
0x16de   :  { %v10204_v58 = vpack.c.bf16 %v10141_v57, %v10140_v36  ;;  %v12069_v24 = vpop.f32.mrb[164].mxu1 }
0x16df   :  { %v9910_v30 = vadd.f32 %v12069_v24, %v16997_v49  ;;  %v9901_v31 = vpop.f32.mrb[165].mxu1 }
0x16e0   :  { %v9902_v47 = vadd.f32 %v16997_v49, %v9901_v31  ;;  %v12070_v27 = vpop.f32.mrb[166].mxu1 }
0x16e1   :  { %v9913_v46 = vadd.f32 %v12070_v27, %v16997_v49  ;;  %v9904_v50 = vpop.f32.mrb[167].mxu1  ;;  %v10146_v25 = vmax.f32 %v9910_v30, 0.0 }
0x16e2   :  { %v9905_v10 = vadd.f32 %v16997_v49, %v9904_v50  ;;  %v10144_v29 = vmax.f32 %v9902_v47, 0.0 }
0x16e3   :  { %v10147_v60 = vmax.f32 %v9913_v46, 0.0 }
0x16e4   :  { %v10145_v34 = vmax.f32 %v9905_v10, 0.0 }
0x16e5   :  { %v17007_v48 = vpack.c.bf16 %v10147_v60, %v10146_v25 }
0x16e6   :  { %v10206_v44 = vpack.c.bf16 %v10145_v34, %v10144_v29  ;;  %v12073_v45 = vpop.f32.mrb[168].mxu1 }
0x16e7   :  { %v9926_v5 = vadd.f32 %v12073_v45, %v16997_v49  ;;  %v9917_v3 = vpop.f32.mrb[169].mxu1 }
0x16e8   :  { %v9918_v1 = vadd.f32 %v16997_v49, %v9917_v3  ;;  %v12074_v55 = vpop.f32.mrb[170].mxu1 }
0x16e9   :  { %v9929_v23 = vadd.f32 %v12074_v55, %v16997_v49  ;;  %v9920_v62 = vpop.f32.mrb[171].mxu1  ;;  %v10150_v61 = vmax.f32 %v9926_v5, 0.0 }
0x16ea   :  { %v9921_v17 = vadd.f32 %v16997_v49, %v9920_v62  ;;  %v10148_v8 = vmax.f32 %v9918_v1, 0.0 }
0x16eb   :  { %v10151_v9 = vmax.f32 %v9929_v23, 0.0 }
0x16ec   :  { %v10149_v26 = vmax.f32 %v9921_v17, 0.0 }
0x16ed   :  { %v17013_v56 = vpack.c.bf16 %v10151_v9, %v10150_v61 }
0x16ee   :  { %v17015_v33 = vpack.c.bf16 %v10149_v26, %v10148_v8  ;;  %v12077_v32 = vpop.f32.mrb[172].mxu1 }
0x16ef   :  { %v9942_v51 = vadd.f32 %v12077_v32, %v16997_v49  ;;  %v9933_v41 = vpop.f32.mrb[173].mxu1 }
0x16f0   :  { %v9934_v19 = vadd.f32 %v16997_v49, %v9933_v41  ;;  %v12078_v54 = vpop.f32.mrb[174].mxu1 }
0x16f1   :  { %v9945_v15 = vadd.f32 %v12078_v54, %v16997_v49  ;;  %v9936_v7 = vpop.f32.mrb[175].mxu1  ;;  %v10154_v35 = vmax.f32 %v9942_v51, 0.0 }
0x16f2   :  { %v9937_v28 = vadd.f32 %v16997_v49, %v9936_v7  ;;  %v10152_v40 = vmax.f32 %v9934_v19, 0.0 }
0x16f3   :  { %v10155_v42 = vmax.f32 %v9945_v15, 0.0 }
0x16f4   :  { %v10153_v20 = vmax.f32 %v9937_v28, 0.0 }
0x16f5   :  { %v17021_v4 = vpack.c.bf16 %v10155_v42, %v10154_v35 }
0x16f6   :  { %v17023_v63 = vpack.c.bf16 %v10153_v20, %v10152_v40 }
0x16fc   :  { %v12081_v2 = vpop.f32.mrb[176].mxu1 }
0x16fd   :  { %v9958_v6 = vadd.f32 %v12081_v2, %v16997_v49  ;;  %v9949_v43 = vpop.f32.mrb[177].mxu1 }
0x16fe   :  { %v9950_v59 = vadd.f32 %v16997_v49, %v9949_v43  ;;  %v12082_v37 = vpop.f32.mrb[178].mxu1 }
0x16ff   :  { %v9961_v14 = vadd.f32 %v12082_v37, %v16997_v49  ;;  %v9952_v16 = vpop.f32.mrb[179].mxu1  ;;  %v10158_v38 = vmax.f32 %v9958_v6, 0.0  ;;  %v13456_v6 = vld [vmem:[#allocation8] ss:$16 sps:$4 sm:$0xff]   ;;  %v13457_v37 = vld [vmem:[#allocation8 + $0x24] ss:$16 sps:$4 sm:$0xff]  }
0x1700   :  { %v9953_v22 = vadd.f32 %v16997_v49, %v9952_v16  ;;  %v10156_v11 = vmax.f32 %v9950_v59, 0.0 }
0x1701   :  { %v10159_v53 = vmax.f32 %v9961_v14, 0.0 }
0x1702   :  { %v10157_v13 = vmax.f32 %v9953_v22, 0.0 }
0x1703   :  { %v10213_v18 = vpack.c.bf16 %v10159_v53, %v10158_v38 }
0x1704   :  { %v10212_v21 = vpack.c.bf16 %v10157_v13, %v10156_v11  ;;  %v13458_v11 = vld [vmem:[#allocation8 + $0x20] ss:$16 sps:$4 sm:$0xff]   ;;  %v13459_v13 = vld [vmem:[#allocation8 + $0x44] ss:$16 sps:$4 sm:$0xff]  }
0x1706   :  { %11503 = vmatprep.subr.bf16.mxu1 %v10212_v21 }
0x1707   :  { %11504 = vmatpush3.bf16.msra.mxu1 %v10204_v58 }
0x1708   :  { %11505 = vmatprep.subr.bf16.mxu1 %v10213_v18 }
0x170b   :  { %11506 = vmatpush3.bf16.msra.mxu1 %v10205_v39 }
0x170c   :  { %v12085_v52 = vpop.f32.mrb[180].mxu1 }
0x170d   :  { %v9974_v12 = vadd.f32 %v12085_v52, %v16997_v49  ;;  %v9965_v36 = vpop.f32.mrb[181].mxu1 }
0x170e   :  { %v9966_v57 = vadd.f32 %v16997_v49, %v9965_v36  ;;  %v12086_v24 = vpop.f32.mrb[182].mxu1 }
0x170f   :  { %v9977_v30 = vadd.f32 %v12086_v24, %v16997_v49  ;;  %v9968_v31 = vpop.f32.mrb[183].mxu1  ;;  %v10162_v27 = vmax.f32 %v9974_v12, 0.0 }
0x1710   :  { %v9969_v47 = vadd.f32 %v16997_v49, %v9968_v31  ;;  %v10160_v50 = vmax.f32 %v9966_v57, 0.0  ;;  %v13460_v57 = vld [vmem:[#allocation8 + $0x40] ss:$16 sps:$4 sm:$0xff]   ;;  %v13461_v31 = vld [vmem:[#allocation8 + $0x64] ss:$16 sps:$4 sm:$0xff]  }
0x1711   :  { %v10163_v46 = vmax.f32 %v9977_v30, 0.0 }
0x1712   :  { %v10161_v10 = vmax.f32 %v9969_v47, 0.0 }
0x1713   :  { %v10215_v25 = vpack.c.bf16 %v10163_v46, %v10162_v27 }
0x1714   :  { %v10214_v58 = vpack.c.bf16 %v10161_v10, %v10160_v50 }
0x1716   :  { %11507 = vmatprep.subr.bf16.mxu1 %v10214_v58 }
0x1717   :  { %11508 = vmatpush3.bf16.msra.mxu1 %v10206_v44 }
0x1718   :  { %11509 = vmatprep.subr.bf16.mxu1 %v10215_v25 }
0x171b   :  { %11510 = vmatpush3.bf16.msra.mxu1 %v17007_v48 }
0x171c   :  { %v12089_v39 = vpop.f32.mrb[184].mxu1 }
0x171d   :  { %v9990_v60 = vadd.f32 %v12089_v39, %v16997_v49  ;;  %v9981_v29 = vpop.f32.mrb[185].mxu1  ;;  %v13462_v39 = vld [vmem:[#allocation8 + $0x60] ss:$16 sps:$4 sm:$0xff]  }
0x171e   :  { %v9982_v34 = vadd.f32 %v16997_v49, %v9981_v29  ;;  %v12090_v45 = vpop.f32.mrb[186].mxu1 }
0x171f   :  { %v9993_v5 = vadd.f32 %v12090_v45, %v16997_v49  ;;  %v9984_v3 = vpop.f32.mrb[187].mxu1  ;;  %v10166_v55 = vmax.f32 %v9990_v60, 0.0  ;;  %v13463_v60 = vld [vmem:[#allocation8 + $0x84] ss:$16 sps:$4 sm:$0xff]  }
0x1720   :  { %v9985_v1 = vadd.f32 %v16997_v49, %v9984_v3  ;;  %v10164_v62 = vmax.f32 %v9982_v34, 0.0 }
0x1721   :  { %v10167_v23 = vmax.f32 %v9993_v5, 0.0 }
0x1722   :  { %v10165_v17 = vmax.f32 %v9985_v1, 0.0  ;;  %v13464_v1 = vld [vmem:[#allocation8 + $0x80] ss:$16 sps:$4 sm:$0xff]  }
0x1723   :  { %v10217_v44 = vpack.c.bf16 %v10167_v23, %v10166_v55 }
0x1724   :  { %v10216_v61 = vpack.c.bf16 %v10165_v17, %v10164_v62  ;;  %v13465_v62 = vld [vmem:[#allocation8 + $0xa4] ss:$16 sps:$4 sm:$0xff]  }
0x1726   :  { %11511 = vmatprep.subr.bf16.mxu1 %v10216_v61 }
0x1727   :  { %11512 = vmatpush3.bf16.msra.mxu1 %v17015_v33 }
0x1728   :  { %11513 = vmatprep.subr.bf16.mxu1 %v10217_v44 }
0x172b   :  { %11514 = vmatpush3.bf16.msra.mxu1 %v17013_v56 }
0x172c   :  { %v12093_v48 = vpop.f32.mrb[188].mxu1 }
0x172d   :  { %v10006_v9 = vadd.f32 %v12093_v48, %v16997_v49  ;;  %v9997_v8 = vpop.f32.mrb[189].mxu1 }
0x172e   :  { %v9998_v26 = vadd.f32 %v16997_v49, %v9997_v8  ;;  %v12094_v32 = vpop.f32.mrb[190].mxu1 }
0x172f   :  { %v10009_v51 = vadd.f32 %v12094_v32, %v16997_v49  ;;  %v10000_v41 = vpop.f32.mrb[191].mxu1  ;;  %v10170_v54 = vmax.f32 %v10006_v9, 0.0  ;;  %v13466_v32 = vld [vmem:[#allocation8 + $0xa0] ss:$16 sps:$4 sm:$0xff]  }
0x1730   :  { %v10001_v19 = vadd.f32 %v16997_v49, %v10000_v41  ;;  %v10168_v7 = vmax.f32 %v9998_v26, 0.0 }
0x1731   :  { %v10171_v15 = vmax.f32 %v10009_v51, 0.0  ;;  %v13467_v51 = vld [vmem:[#allocation8 + $0xc4] ss:$16 sps:$4 sm:$0xff]  }
0x1732   :  { %v10169_v28 = vmax.f32 %v10001_v19, 0.0 }
0x1733   :  { %v10219_v33 = vpack.c.bf16 %v10171_v15, %v10170_v54 }
0x1734   :  { %v10218_v35 = vpack.c.bf16 %v10169_v28, %v10168_v7  ;;  %v13468_v28 = vld [vmem:[#allocation8 + $0xc0] ss:$16 sps:$4 sm:$0xff]  }
0x1736   :  { %11515 = vmatprep.subr.bf16.mxu1 %v10218_v35 }
0x1737   :  { %11516 = vmatpush3.bf16.msra.mxu1 %v17023_v63 }
0x1738   :  { %11517 = vmatprep.subr.bf16.mxu1 %v10219_v33 }
0x173b   :  { %11518 = vmatpush3.bf16.msra.mxu1 %v17021_v4 }
0x173c   :  { %v12097_v56 = vpop.f32.mrb[192].mxu1 }
0x173d   :  { %v10022_v42 = vadd.f32 %v12097_v56, %v16997_v49  ;;  %v10013_v40 = vpop.f32.mrb[193].mxu1  ;;  %v13469_v56 = vld [vmem:[#allocation8 + $0xe4] ss:$16 sps:$4 sm:$0xff]  }
0x173e   :  { %v10014_v20 = vadd.f32 %v16997_v49, %v10013_v40  ;;  %v12098_v2 = vpop.f32.mrb[194].mxu1  ;;  %10269 = vmatmul.mubr.bf16.vlgmr.msra.gmra.mrb[224].mxu1 %v13456_v6 }
0x173f   :  { %v10025_v43 = vadd.f32 %v12098_v2, %v16997_v49  ;;  %v10016_v59 = vpop.f32.mrb[195].mxu1  ;;  %10276 = vmatprep.mubr.bf16.mxu1 %v13457_v37  ;;  %v10174_v63 = vmax.f32 %v10022_v42, 0.0  ;;  %v13470_v37 = vld [vmem:[#allocation8 + $0xe0] ss:$16 sps:$4 sm:$0xff]  }
0x1740   :  { %v10017_v14 = vadd.f32 %v16997_v49, %v10016_v59  ;;  %v10172_v22 = vmax.f32 %v10014_v20, 0.0 }
0x1741   :  { %v10175_v16 = vmax.f32 %v10025_v43, 0.0 }
0x1742   :  { %v10173_v4 = vmax.f32 %v10017_v14, 0.0  ;;  %v13024_v14 = vld [vmem:[#allocation14] sm:$0xff]  }
0x1743   :  { %v17050_v38 = vpack.c.bf16 %v10175_v16, %v10174_v63  ;;  %v13025_v63 = vld [vmem:[#allocation14 + $0x8] sm:$0xff]   ;;  %12127 = vmatprep.subr.bf16.mxu1 %v13024_v14  ;;  %v13026_v16 = vld [vmem:[#allocation14 + $0x10] sm:$0xff]  }
0x1744   :  { %v17052_v53 = vpack.c.bf16 %v10173_v4, %v10172_v22  ;;  %12128 = vmatpush3.bf16.msra.mxu1 %v13024_v14 }
0x1745   :  { %12129 = vmatprep.subr.bf16.mxu1 %v13025_v63 }
0x1746   :  { %10277 = vmatmul.mubr.bf16.gmra.mrb[228].mxu1 %v13458_v11 }
0x1747   :  { %10284 = vmatprep.mubr.bf16.mxu1 %v13459_v13 }
0x1748   :  { %12130 = vmatpush3.bf16.msra.mxu1 %v13025_v63  ;;  %v13472_v63 = vld [vmem:[#allocation8 + $0x2c] ss:$16 sps:$4 sm:$0xff]  }
0x1749   :  { %12131 = vmatprep.subr.bf16.mxu1 %v13026_v16 }
0x174c   :  { %v12101_v18 = vpop.f32.mrb[196].mxu1  ;;  %12132 = vmatpush3.bf16.msra.mxu1 %v13026_v16  ;;  %v13473_v16 = vld [vmem:[#allocation8 + $0x28] ss:$16 sps:$4 sm:$0xff]  }
0x174d   :  { %v10038_v21 = vadd.f32 %v12101_v18, %v16997_v49  ;;  %v10029_v52 = vpop.f32.mrb[197].mxu1 }
0x174e   :  { %v10030_v12 = vadd.f32 %v16997_v49, %v10029_v52  ;;  %v12102_v36 = vpop.f32.mrb[198].mxu1  ;;  %10285 = vmatmul.mubr.bf16.gmra.mrb[232].mxu1 %v13460_v57 }
0x174f   :  { %v10041_v24 = vadd.f32 %v12102_v36, %v16997_v49  ;;  %v10032_v30 = vpop.f32.mrb[199].mxu1  ;;  %10292 = vmatprep.mubr.bf16.mxu1 %v13461_v31  ;;  %v10178_v27 = vmax.f32 %v10038_v21, 0.0  ;;  %v13027_v21 = vld [vmem:[#allocation14 + $0x18] sm:$0xff]  }
0x1750   :  { %v10033_v47 = vadd.f32 %v16997_v49, %v10032_v30  ;;  %v10176_v50 = vmax.f32 %v10030_v12, 0.0  ;;  %12133 = vmatprep.subr.bf16.mxu1 %v13027_v21 }
0x1751   :  { %v10179_v46 = vmax.f32 %v10041_v24, 0.0  ;;  %12134 = vmatpush3.bf16.msra.mxu1 %v13027_v21  ;;  %v13482_v21 = vld [vmem:[#allocation8 + $0xcc] ss:$16 sps:$4 sm:$0xff]  }
0x1752   :  { %v10177_v10 = vmax.f32 %v10033_v47, 0.0 }
0x1753   :  { %v17058_v25 = vpack.c.bf16 %v10179_v46, %v10178_v27 }
0x1754   :  { %v17060_v58 = vpack.c.bf16 %v10177_v10, %v10176_v50 }
0x1756   :  { %10293 = vmatmul.mubr.bf16.gmra.mrb[236].mxu1 %v13462_v39 }
0x1757   :  { %10300 = vmatprep.mubr.bf16.mxu1 %v13463_v60 }
0x175c   :  { %v12105_v29 = vpop.f32.mrb[200].mxu1 }
0x175d   :  { %v10054_v34 = vadd.f32 %v12105_v29, %v16997_v49  ;;  %v10045_v45 = vpop.f32.mrb[201].mxu1 }
0x175e   :  { %v10046_v5 = vadd.f32 %v16997_v49, %v10045_v45  ;;  %v12106_v3 = vpop.f32.mrb[202].mxu1  ;;  %10301 = vmatmul.mubr.bf16.gmra.mrb[240].mxu1 %v13464_v1 }
0x175f   :  { %v10057_v55 = vadd.f32 %v12106_v3, %v16997_v49  ;;  %v10048_v23 = vpop.f32.mrb[203].mxu1  ;;  %10308 = vmatprep.mubr.bf16.mxu1 %v13465_v62  ;;  %v10182_v44 = vmax.f32 %v10054_v34, 0.0 }
0x1760   :  { %v10049_v17 = vadd.f32 %v16997_v49, %v10048_v23  ;;  %v10180_v48 = vmax.f32 %v10046_v5, 0.0 }
0x1761   :  { %v10183_v61 = vmax.f32 %v10057_v55, 0.0 }
0x1762   :  { %v10181_v9 = vmax.f32 %v10049_v17, 0.0 }
0x1763   :  { %v17066_v8 = vpack.c.bf16 %v10183_v61, %v10182_v44 }
0x1764   :  { %v17068_v26 = vpack.c.bf16 %v10181_v9, %v10180_v48 }
0x1766   :  { %10309 = vmatmul.mubr.bf16.gmra.mrb[244].mxu1 %v13466_v32 }
0x1767   :  { %10316 = vmatprep.mubr.bf16.mxu1 %v13467_v51 }
0x176c   :  { %v12109_v41 = vpop.f32.mrb[204].mxu1 }
0x176d   :  { %v10070_v19 = vadd.f32 %v12109_v41, %v16997_v49  ;;  %v10061_v54 = vpop.f32.mrb[205].mxu1 }
0x176e   :  { %v10062_v15 = vadd.f32 %v16997_v49, %v10061_v54  ;;  %v12110_v7 = vpop.f32.mrb[206].mxu1  ;;  %10317 = vmatmul.mubr.bf16.gmra.mrb[248].mxu1 %v13468_v28 }
0x176f   :  { %v10073_v33 = vadd.f32 %v12110_v7, %v16997_v49  ;;  %v10064_v35 = vpop.f32.mrb[207].mxu1  ;;  %10324 = vmatprep.mubr.bf16.mxu1 %v13469_v56  ;;  %v10186_v40 = vmax.f32 %v10070_v19, 0.0 }
0x1770   :  { %v10065_v42 = vadd.f32 %v16997_v49, %v10064_v35  ;;  %v10184_v2 = vmax.f32 %v10062_v15, 0.0 }
0x1771   :  { %v10187_v20 = vmax.f32 %v10073_v33, 0.0 }
0x1772   :  { %v10185_v6 = vmax.f32 %v10065_v42, 0.0 }
0x1773   :  { %v17074_v43 = vpack.c.bf16 %v10187_v20, %v10186_v40 }
0x1774   :  { %v17076_v59 = vpack.c.bf16 %v10185_v6, %v10184_v2 }
0x1776   :  { %10325 = vmatmul.mubr.bf16.gmra.mrb[252].mxu1 %v13470_v37 }
0x177c   :  { %v12113_v22 = vpop.f32.mrb[208].mxu1 }
0x177d   :  { %v10086_v4 = vadd.f32 %v12113_v22, %v16997_v49  ;;  %v10077_v11 = vpop.f32.mrb[209].mxu1  ;;  %v13474_v22 = vld [vmem:[#allocation8 + $0x4c] ss:$16 sps:$4 sm:$0xff]  }
0x177e   :  { %v10078_v13 = vadd.f32 %v16997_v49, %v10077_v11  ;;  %v12114_v18 = vpop.f32.mrb[210].mxu1  ;;  %v13477_v11 = vld [vmem:[#allocation8 + $0x68] ss:$16 sps:$4 sm:$0xff]  }
0x177f   :  { %v10089_v52 = vadd.f32 %v12114_v18, %v16997_v49  ;;  %v10080_v12 = vpop.f32.mrb[211].mxu1  ;;  %v10190_v57 = vmax.f32 %v10086_v4, 0.0  ;;  %v13476_v4 = vld [vmem:[#allocation8 + $0x6c] ss:$16 sps:$4 sm:$0xff]  }
0x1780   :  { %v10081_v36 = vadd.f32 %v16997_v49, %v10080_v12  ;;  %v10188_v30 = vmax.f32 %v10078_v13, 0.0  ;;  %v13478_v13 = vld [vmem:[#allocation8 + $0x8c] ss:$16 sps:$4 sm:$0xff]  }
0x1781   :  { %v10191_v24 = vmax.f32 %v10089_v52, 0.0  ;;  %v13480_v18 = vld [vmem:[#allocation8 + $0xac] ss:$16 sps:$4 sm:$0xff]   ;;  %v13483_v52 = vld [vmem:[#allocation8 + $0xc8] ss:$16 sps:$4 sm:$0xff]  }
0x1782   :  { %v10189_v31 = vmax.f32 %v10081_v36, 0.0  ;;  %v13484_v12 = vld [vmem:[#allocation8 + $0xec] ss:$16 sps:$4 sm:$0xff]   ;;  %v13485_v36 = vld [vmem:[#allocation8 + $0xe8] ss:$16 sps:$4 sm:$0xff]  }
0x1783   :  { %v10229_v47 = vpack.c.bf16 %v10191_v24, %v10190_v57 }
0x1784   :  { %v10228_v27 = vpack.c.bf16 %v10189_v31, %v10188_v30  ;;  %v13028_v31 = vld [vmem:[#allocation14 + $0x20] sm:$0xff]  }
0x1785   :  { %12135 = vmatprep.subr.bf16.mxu1 %v13028_v31 }
0x1786   :  { %11567 = vmatprep.subr.bf16.mxu0 %v10228_v27  ;;  %12136 = vmatpush3.bf16.msra.mxu1 %v13028_v31 }
0x1787   :  { %11568 = vmatpush3.bf16.msra.mxu0 %v17052_v53 }
0x1788   :  { %11569 = vmatprep.subr.bf16.mxu0 %v10229_v47 }
0x178b   :  { %11570 = vmatpush3.bf16.msra.mxu0 %v17050_v38 }
0x178c   :  { %v12117_v46 = vpop.f32.mrb[212].mxu1 }
0x178d   :  { %v10102_v50 = vadd.f32 %v12117_v46, %v16997_v49  ;;  %v10093_v10 = vpop.f32.mrb[213].mxu1 }
0x178e   :  { %v10094_v39 = vadd.f32 %v16997_v49, %v10093_v10  ;;  %v12118_v60 = vpop.f32.mrb[214].mxu1 }
0x178f   :  { %v10105_v29 = vadd.f32 %v12118_v60, %v16997_v49  ;;  %v10096_v34 = vpop.f32.mrb[215].mxu1  ;;  %v10194_v5 = vmax.f32 %v10102_v50, 0.0  ;;  %v13029_v50 = vld [vmem:[#allocation14 + $0x28] sm:$0xff]  }
0x1790   :  { %v10097_v45 = vadd.f32 %v16997_v49, %v10096_v34  ;;  %v10192_v1 = vmax.f32 %v10094_v39, 0.0  ;;  %12137 = vmatprep.subr.bf16.mxu1 %v13029_v50  ;;  %v13030_v34 = vld [vmem:[#allocation14 + $0x30] sm:$0xff]  }
0x1791   :  { %v10195_v3 = vmax.f32 %v10105_v29, 0.0  ;;  %12138 = vmatpush3.bf16.msra.mxu1 %v13029_v50 }
0x1792   :  { %v10193_v55 = vmax.f32 %v10097_v45, 0.0  ;;  %12139 = vmatprep.subr.bf16.mxu1 %v13030_v34 }
0x1793   :  { %v10231_v53 = vpack.c.bf16 %v10195_v3, %v10194_v5  ;;  %v13031_v3 = vld [vmem:[#allocation14 + $0x38] sm:$0xff]  }
0x1794   :  { %v10230_v23 = vpack.c.bf16 %v10193_v55, %v10192_v1 }
0x1795   :  { %12140 = vmatpush3.bf16.msra.mxu1 %v13030_v34 }
0x1796   :  { %11571 = vmatprep.subr.bf16.mxu0 %v10230_v23  ;;  %12141 = vmatprep.subr.bf16.mxu1 %v13031_v3 }
0x1797   :  { %11572 = vmatpush3.bf16.msra.mxu0 %v17060_v58 }
0x1798   :  { %11573 = vmatprep.subr.bf16.mxu0 %v10231_v53 }
0x1799   :  { %12142 = vmatpush3.bf16.msra.mxu1 %v13031_v3 }
0x179b   :  { %11574 = vmatpush3.bf16.msra.mxu0 %v17058_v25 }
0x179c   :  { %v12121_v38 = vpop.f32.mrb[216].mxu1 }
0x179d   :  { %v10118_v62 = vadd.f32 %v12121_v38, %v16997_v49  ;;  %v10109_v17 = vpop.f32.mrb[217].mxu1 }
0x179e   :  { %v10110_v44 = vadd.f32 %v16997_v49, %v10109_v17  ;;  %v12122_v61 = vpop.f32.mrb[218].mxu1 }
0x179f   :  { %v10121_v48 = vadd.f32 %v12122_v61, %v16997_v49  ;;  %v10112_v9 = vpop.f32.mrb[219].mxu1  ;;  %v10198_v51 = vmax.f32 %v10118_v62, 0.0 }
0x17a0   :  { %v10113_v32 = vadd.f32 %v16997_v49, %v10112_v9  ;;  %v10196_v19 = vmax.f32 %v10110_v44, 0.0 }
0x17a1   :  { %v10199_v41 = vmax.f32 %v10121_v48, 0.0 }
0x17a2   :  { %v10197_v54 = vmax.f32 %v10113_v32, 0.0 }
0x17a3   :  { %v10233_v58 = vpack.c.bf16 %v10199_v41, %v10198_v51 }
0x17a4   :  { %v10232_v15 = vpack.c.bf16 %v10197_v54, %v10196_v19 }
0x17a6   :  { %11575 = vmatprep.subr.bf16.mxu0 %v10232_v15 }
0x17a7   :  { %11576 = vmatpush3.bf16.msra.mxu0 %v17068_v26 }
0x17a8   :  { %11577 = vmatprep.subr.bf16.mxu0 %v10233_v58 }
0x17ab   :  { %11578 = vmatpush3.bf16.msra.mxu0 %v17066_v8  ;;  %v13471_v8 = vld [vmem:[#allocation8 + $0x8] ss:$16 sps:$4 sm:$0xff]  }
0x17ac   :  { %v12125_v25 = vpop.f32.mrb[220].mxu1 }
0x17ad   :  { %v10134_v7 = vadd.f32 %v12125_v25, %v16997_v49  ;;  %v10125_v28 = vpop.f32.mrb[221].mxu1 }
0x17ae   :  { %v10126_v33 = vadd.f32 %v16997_v49, %v10125_v28  ;;  %v12126_v35 = vpop.f32.mrb[222].mxu1 }
0x17af   :  { %v10137_v56 = vadd.f32 %v12126_v35, %v16997_v49  ;;  %v10128_v42 = vpop.f32.mrb[223].mxu1  ;;  %v10202_v20 = vmax.f32 %v10134_v7, 0.0 }
0x17b0   :  { %v10129_v40 = vadd.f32 %v16997_v49, %v10128_v42  ;;  %v10200_v6 = vmax.f32 %v10126_v33, 0.0  ;;  %v13475_v49 = vld [vmem:[#allocation8 + $0x48] ss:$16 sps:$4 sm:$0xff]  }
0x17b1   :  { %v10203_v2 = vmax.f32 %v10137_v56, 0.0 }
0x17b2   :  { %v10201_v37 = vmax.f32 %v10129_v40, 0.0 }
0x17b3   :  { %v10235_v26 = vpack.c.bf16 %v10203_v2, %v10202_v20 }
0x17b4   :  { %v10234_v14 = vpack.c.bf16 %v10201_v37, %v10200_v6 }
0x17b6   :  { %11579 = vmatprep.subr.bf16.mxu0 %v10234_v14 }
0x17b7   :  { %11580 = vmatpush3.bf16.msra.mxu0 %v17076_v59  ;;  %v13479_v59 = vld [vmem:[#allocation8 + $0x88] ss:$16 sps:$4 sm:$0xff]  }
0x17b8   :  { %11581 = vmatprep.subr.bf16.mxu0 %v10235_v26 }
0x17bb   :  { %11582 = vmatpush3.bf16.msra.mxu0 %v17074_v43  ;;  %v13481_v43 = vld [vmem:[#allocation8 + $0xa8] ss:$16 sps:$4 sm:$0xff]  }
0x17be   :  { %10366 = vmatmul.mubr.bf16.vlgmr.msra.gmra.mrb[128].mxu0 %v13471_v8 }
0x17bf   :  { %10373 = vmatprep.mubr.bf16.mxu0 %v13472_v63 }
0x17c6   :  { %10374 = vmatmul.mubr.bf16.gmra.mrb[132].mxu0 %v13473_v16 }
0x17c7   :  { %10381 = vmatprep.mubr.bf16.mxu0 %v13474_v22 }
0x17ce   :  { %10382 = vmatmul.mubr.bf16.gmra.mrb[136].mxu0 %v13475_v49 }
0x17cf   :  { %10389 = vmatprep.mubr.bf16.mxu0 %v13476_v4 }
0x17d6   :  { %10390 = vmatmul.mubr.bf16.gmra.mrb[140].mxu0 %v13477_v11 }
0x17d7   :  { %10397 = vmatprep.mubr.bf16.mxu0 %v13478_v13 }
0x17de   :  { %10398 = vmatmul.mubr.bf16.gmra.mrb[144].mxu0 %v13479_v59 }
0x17df   :  { %10405 = vmatprep.mubr.bf16.mxu0 %v13480_v18 }
0x17e6   :  { %10406 = vmatmul.mubr.bf16.gmra.mrb[148].mxu0 %v13481_v43 }
0x17e7   :  { %10413 = vmatprep.mubr.bf16.mxu0 %v13482_v21 }
0x17ee   :  { %10414 = vmatmul.mubr.bf16.gmra.mrb[152].mxu0 %v13483_v52 }
0x17ef   :  { %10421 = vmatprep.mubr.bf16.mxu0 %v13484_v12 }
0x17f6   :  { %10422 = vmatmul.mubr.bf16.gmra.mrb[156].mxu0 %v13485_v36 }
0x1811   :  { %v11519_v57 = vpop.f32.mrb[224].mxu1 }
0x1812   :  { %v11520_v24 = vpop.f32.mrb[225].mxu1 }
0x1813   :  { %v17102_v30 = vadd.f32 %v11520_v24, %v11519_v57  ;;  %v11522_v47 = vpop.f32.mrb[226].mxu1 }
0x1814   :  { %v11523_v27 = vpop.f32.mrb[227].mxu1 }
0x1815   :  { %v11524_v46 = vadd.f32 %v11523_v27, %v11522_v47 }
0x1819   :  { %v11525_v10 = vpop.f32.mrb[228].mxu1 }
0x181a   :  { %v11526_v39 = vpop.f32.mrb[229].mxu1 }
0x181b   :  { %v11527_v60 = vadd.f32 %v11526_v39, %v11525_v10  ;;  %v11528_v29 = vpop.f32.mrb[230].mxu1 }
0x181c   :  { %v11529_v45 = vpop.f32.mrb[231].mxu1 }
0x181d   :  { %v11530_v5 = vadd.f32 %v11529_v45, %v11528_v29 }
0x1821   :  { %v11531_v1 = vpop.f32.mrb[232].mxu1 }
0x1822   :  { %v11532_v55 = vpop.f32.mrb[233].mxu1 }
0x1823   :  { %v11533_v53 = vadd.f32 %v11532_v55, %v11531_v1  ;;  %v11534_v23 = vpop.f32.mrb[234].mxu1 }
0x1824   :  { %v11535_v38 = vpop.f32.mrb[235].mxu1 }
0x1825   :  { %v11536_v62 = vadd.f32 %v11535_v38, %v11534_v23 }
0x1829   :  { %v11537_v17 = vpop.f32.mrb[236].mxu1 }
0x182a   :  { %v11538_v44 = vpop.f32.mrb[237].mxu1 }
0x182b   :  { %v17104_v61 = vadd.f32 %v11538_v44, %v11537_v17  ;;  %v11540_v48 = vpop.f32.mrb[238].mxu1 }
0x182c   :  { %v11541_v9 = vpop.f32.mrb[239].mxu1 }
0x182d   :  { %v17106_v32 = vadd.f32 %v11541_v9, %v11540_v48 }
0x1831   :  { %v11543_v51 = vpop.f32.mrb[240].mxu1 }
0x1832   :  { %v11544_v41 = vpop.f32.mrb[241].mxu1 }
0x1833   :  { %v17108_v19 = vadd.f32 %v11544_v41, %v11543_v51  ;;  %v11546_v54 = vpop.f32.mrb[242].mxu1 }
0x1834   :  { %v11547_v58 = vpop.f32.mrb[243].mxu1 }
0x1835   :  { %v17110_v15 = vadd.f32 %v11547_v58, %v11546_v54 }
0x1839   :  { %v11549_v25 = vpop.f32.mrb[244].mxu1 }
0x183a   :  { %v11550_v7 = vpop.f32.mrb[245].mxu1 }
0x183b   :  { %v17112_v28 = vadd.f32 %v11550_v7, %v11549_v25  ;;  %v11552_v33 = vpop.f32.mrb[246].mxu1 }
0x183c   :  { %v11553_v35 = vpop.f32.mrb[247].mxu1 }
0x183d   :  { %v17114_v56 = vadd.f32 %v11553_v35, %v11552_v33 }
0x1841   :  { %v11555_v42 = vpop.f32.mrb[248].mxu1 }
0x1842   :  { %v11556_v40 = vpop.f32.mrb[249].mxu1 }
0x1843   :  { %v17116_v20 = vadd.f32 %v11556_v40, %v11555_v42  ;;  %v11558_v2 = vpop.f32.mrb[250].mxu1 }
0x1844   :  { %v11559_v6 = vpop.f32.mrb[251].mxu1 }
0x1845   :  { %v17118_v37 = vadd.f32 %v11559_v6, %v11558_v2 }
0x1849   :  { %v11561_v26 = vpop.f32.mrb[252].mxu1 }
0x184a   :  { %v11562_v14 = vpop.f32.mrb[253].mxu1 }
0x184b   :  { %v17120_v8 = vadd.f32 %v11562_v14, %v11561_v26  ;;  %v11564_v63 = vpop.f32.mrb[254].mxu1 }
0x184c   :  { %v11565_v16 = vpop.f32.mrb[255].mxu1 }
0x184d   :  { %v17122_v22 = vadd.f32 %v11565_v16, %v11564_v63 }
0x1891   :  { %v11583_v49 = vpop.f32.mrb[128].mxu0 }
0x1892   :  { %v11584_v4 = vpop.f32.mrb[129].mxu0 }
0x1893   :  { %v11585_v11 = vadd.f32 %v11584_v4, %v11583_v49  ;;  %v11586_v13 = vpop.f32.mrb[130].mxu0 }
0x1894   :  { %v11587_v59 = vpop.f32.mrb[131].mxu0 }
0x1895   :  { %v10368_v18 = vadd.f32 %v11585_v11, %v17102_v30  ;;  %v11588_v43 = vadd.f32 %v11587_v59, %v11586_v13 }
0x1897   :  { %v10371_v21 = vadd.f32 %v11588_v43, %v11524_v46 }
0x1899   :  { %v10430_v52 = vpack.c.bf16 %v10371_v21, %v10368_v18  ;;  %v11589_v12 = vpop.f32.mrb[132].mxu0 }
0x189a   :  { %v11590_v36 = vpop.f32.mrb[133].mxu0 }
0x189b   :  { %v11591_v57 = vadd.f32 %v11590_v36, %v11589_v12  ;;  %v11592_v24 = vpop.f32.mrb[134].mxu0  ;;  %v10438_v31 = vmax.bf16 %v17291_v0, %v10430_v52 }
0x189c   :  { %v11593_v47 = vpop.f32.mrb[135].mxu0 }
0x189d   :  { %v10376_v27 = vadd.f32 %v11591_v57, %v11527_v60  ;;  %v11594_v50 = vadd.f32 %v11593_v47, %v11592_v24  ;;  %12143 = vmatprep.mubr.bf16.mxu1 %v10438_v31 }
0x189f   :  { %v10379_v10 = vadd.f32 %v11594_v50, %v11530_v5 }
0x18a1   :  { %v10431_v39 = vpack.c.bf16 %v10379_v10, %v10376_v27  ;;  %v11595_v29 = vpop.f32.mrb[136].mxu0 }
0x18a2   :  { %v11596_v34 = vpop.f32.mrb[137].mxu0 }
0x18a3   :  { %v10439_v45 = vmax.bf16 %v17291_v0, %v10431_v39  ;;  %v11597_v30 = vadd.f32 %v11596_v34, %v11595_v29  ;;  %v11598_v3 = vpop.f32.mrb[138].mxu0 }
0x18a4   :  { %v11599_v46 = vpop.f32.mrb[139].mxu0 }
0x18a5   :  { %v10384_v1 = vadd.f32 %v11597_v30, %v11533_v53  ;;  %12144 = vmatmul.mubr.bf16.vlgmr.msra.gmra.mrb[0].mxu1 %v10439_v45  ;;  %v11600_v55 = vadd.f32 %v11599_v46, %v11598_v3 }
0x18a7   :  { %v10387_v23 = vadd.f32 %v11600_v55, %v11536_v62 }
0x18a9   :  { %v10432_v38 = vpack.c.bf16 %v10387_v23, %v10384_v1  ;;  %v11601_v17 = vpop.f32.mrb[140].mxu0 }
0x18aa   :  { %v11602_v44 = vpop.f32.mrb[141].mxu0 }
0x18ab   :  { %v11603_v48 = vadd.f32 %v11602_v44, %v11601_v17  ;;  %v11604_v60 = vpop.f32.mrb[142].mxu0  ;;  %v10440_v9 = vmax.bf16 %v17291_v0, %v10432_v38 }
0x18ac   :  { %v11605_v5 = vpop.f32.mrb[143].mxu0 }
0x18ad   :  { %v10392_v51 = vadd.f32 %v11603_v48, %v17104_v61  ;;  %v11606_v41 = vadd.f32 %v11605_v5, %v11604_v60  ;;  %12147 = vmatprep.mubr.bf16.mxu1 %v10440_v9 }
0x18af   :  { %v10395_v54 = vadd.f32 %v11606_v41, %v17106_v32 }
0x18b1   :  { %v10433_v58 = vpack.c.bf16 %v10395_v54, %v10392_v51  ;;  %v11607_v25 = vpop.f32.mrb[144].mxu0 }
0x18b2   :  { %v11608_v53 = vpop.f32.mrb[145].mxu0 }
0x18b3   :  { %v10441_v7 = vmax.bf16 %v17291_v0, %v10433_v58  ;;  %v11609_v62 = vadd.f32 %v11608_v53, %v11607_v25  ;;  %v11610_v33 = vpop.f32.mrb[146].mxu0 }
0x18b4   :  { %v11611_v35 = vpop.f32.mrb[147].mxu0 }
0x18b5   :  { %v10400_v42 = vadd.f32 %v11609_v62, %v17108_v19  ;;  %12148 = vmatmul.mubr.bf16.gmra.mrb[4].mxu1 %v10441_v7  ;;  %v11612_v40 = vadd.f32 %v11611_v35, %v11610_v33 }
0x18b7   :  { %v10403_v2 = vadd.f32 %v11612_v40, %v17110_v15 }
0x18b9   :  { %v10434_v6 = vpack.c.bf16 %v10403_v2, %v10400_v42  ;;  %v11613_v61 = vpop.f32.mrb[148].mxu0 }
0x18ba   :  { %v11614_v26 = vpop.f32.mrb[149].mxu0 }
0x18bb   :  { %v11615_v14 = vadd.f32 %v11614_v26, %v11613_v61  ;;  %v11616_v63 = vpop.f32.mrb[150].mxu0  ;;  %v10442_v32 = vmax.bf16 %v17291_v0, %v10434_v6 }
0x18bc   :  { %v11617_v16 = vpop.f32.mrb[151].mxu0 }
0x18bd   :  { %v10408_v49 = vadd.f32 %v11615_v14, %v17112_v28  ;;  %v11618_v4 = vadd.f32 %v11617_v16, %v11616_v63  ;;  %12151 = vmatprep.mubr.bf16.mxu1 %v10442_v32 }
0x18bf   :  { %v10411_v11 = vadd.f32 %v11618_v4, %v17114_v56 }
0x18c1   :  { %v10435_v13 = vpack.c.bf16 %v10411_v11, %v10408_v49  ;;  %v11619_v19 = vpop.f32.mrb[152].mxu0 }
0x18c2   :  { %v11620_v59 = vpop.f32.mrb[153].mxu0 }
0x18c3   :  { %v10443_v18 = vmax.bf16 %v17291_v0, %v10435_v13  ;;  %v11621_v15 = vadd.f32 %v11620_v59, %v11619_v19  ;;  %v11622_v43 = vpop.f32.mrb[154].mxu0 }
0x18c4   :  { %v11623_v21 = vpop.f32.mrb[155].mxu0 }
0x18c5   :  { %v10416_v52 = vadd.f32 %v11621_v15, %v17116_v20  ;;  %12152 = vmatmul.mubr.bf16.gmra.mrb[8].mxu1 %v10443_v18  ;;  %v11624_v12 = vadd.f32 %v11623_v21, %v11622_v43 }
0x18c7   :  { %v10419_v36 = vadd.f32 %v11624_v12, %v17118_v37  ;;  %v10998_v37 = vld [vmem:[%s17175_s14] ss:$0 sm:$0xff]  ;;  %s13686_s14 = smov [#allocation15]  }
0x18c8   :  { %s10635_s13 = sshll.u32 %s13686_s14, 4  ;;  %s10636_s13 = int_to_ptr.vmem [resolvable:$true] %s10635_s13 }
0x18c9   :  { %v10436_v57 = vpack.c.bf16 %v10419_v36, %v10416_v52  ;;  %v11625_v28 = vpop.f32.mrb[156].mxu0  ;;  %s13640_s18 = scalar_lea.vmem %s10636_s13, 2048  ;;  %p13645_p1 = scmp.lt.s32.totalorder %s10636_s13, %s10636_s13 }
0x18ca   :  { %v11626_v24 = vpop.f32.mrb[157].mxu0  ;;  %p13641_p0 = scmp.ne.s32.totalorder %s10636_s13, %s13640_s18  ;;  %p13646_p2 = scmp.lt.s32.totalorder %s13640_s18, %s13640_s18 }
0x18cb   :  { %v11627_v31 = vadd.f32 %v11626_v24, %v11625_v28  ;;  %v11628_v47 = vpop.f32.mrb[158].mxu0  ;;  %v10444_v56 = vmax.bf16 %v17291_v0, %v10436_v57 }
0x18cc   :  { %v11629_v27 = vpop.f32.mrb[159].mxu0  ;;  %p13647_p3 = por %p13646_p2, %p13645_p1 }
0x18cd   :  { %v10424_v50 = vadd.f32 %v11627_v31, %v17120_v8  ;;  %v11630_v10 = vadd.f32 %v11629_v27, %v11628_v47  ;;  %12155 = vmatprep.mubr.bf16.mxu1 %v10444_v56 }
0x18ce   :  { %p13648_p4 = pnand %p13647_p3, %p13641_p0 }
0x18cf   :  { %v10427_v39 = vadd.f32 %v11630_v10, %v17122_v22 }
0x18d1   :  { %v10437_v29 = vpack.c.bf16 %v10427_v39, %v10424_v50 }
0x18d3   :  { %v10445_v20 = vmax.bf16 %v17291_v0, %v10437_v29 }
0x18d5   :  { %12156 = vmatmul.mubr.bf16.gmra.mrb[12].mxu1 %v10445_v20 }
0x1978   :  { %v12145_v34 = vpop.f32.mrb[0].mxu1 }
0x1979   :  { %v10560_v45 = vadd.f32 %v12145_v34, %v10998_v37  ;;  %v10551_v30 = vpop.f32.mrb[1].mxu1 }
0x197a   :  { %v10552_v3 = vadd.f32 %v10998_v37, %v10551_v30  ;;  %v12146_v46 = vpop.f32.mrb[2].mxu1 }
0x197b   :  { %10616 = vst [vmem:[#allocation15 + $0x10] sm:$0xff] %v10560_v45  ;;  %v10563_v1 = vadd.f32 %v12146_v46, %v10998_v37  ;;  %v10554_v8 = vpop.f32.mrb[3].mxu1 }
0x197c   :  { %10614 = vst [vmem:[#allocation15] sm:$0xff] %v10552_v3  ;;  %v10555_v55 = vadd.f32 %v10998_v37, %v10554_v8 }
0x197d   :  { %10617 = vst [vmem:[#allocation15 + $0x18] sm:$0xff] %v10563_v1 }
0x197e   :  { %10615 = vst [vmem:[#allocation15 + $0x8] sm:$0xff] %v10555_v55 }
0x1988   :  { %v12149_v22 = vpop.f32.mrb[4].mxu1 }
0x1989   :  { %v10576_v23 = vadd.f32 %v12149_v22, %v10998_v37  ;;  %v10567_v0 = vpop.f32.mrb[5].mxu1 }
0x198a   :  { %v10568_v38 = vadd.f32 %v10998_v37, %v10567_v0  ;;  %v12150_v17 = vpop.f32.mrb[6].mxu1 }
0x198b   :  { %10620 = vst [vmem:[#allocation15 + $0x30] sm:$0xff] %v10576_v23  ;;  %v10579_v44 = vadd.f32 %v12150_v17, %v10998_v37  ;;  %v10570_v48 = vpop.f32.mrb[7].mxu1 }
0x198c   :  { %10618 = vst [vmem:[#allocation15 + $0x20] sm:$0xff] %v10568_v38  ;;  %v10571_v60 = vadd.f32 %v10998_v37, %v10570_v48 }
0x198d   :  { %10621 = vst [vmem:[#allocation15 + $0x38] sm:$0xff] %v10579_v44 }
0x198e   :  { %10619 = vst [vmem:[#allocation15 + $0x28] sm:$0xff] %v10571_v60 }
0x1998   :  { %v12153_v9 = vpop.f32.mrb[8].mxu1 }
0x1999   :  { %v10592_v5 = vadd.f32 %v12153_v9, %v10998_v37  ;;  %v10583_v51 = vpop.f32.mrb[9].mxu1 }
0x199a   :  { %v10584_v41 = vadd.f32 %v10998_v37, %v10583_v51  ;;  %v12154_v54 = vpop.f32.mrb[10].mxu1 }
0x199b   :  { %10624 = vst [vmem:[#allocation15 + $0x50] sm:$0xff] %v10592_v5  ;;  %v10595_v58 = vadd.f32 %v12154_v54, %v10998_v37  ;;  %v10586_v25 = vpop.f32.mrb[11].mxu1 }
0x199c   :  { %10622 = vst [vmem:[#allocation15 + $0x40] sm:$0xff] %v10584_v41  ;;  %v10587_v53 = vadd.f32 %v10998_v37, %v10586_v25 }
0x199d   :  { %10625 = vst [vmem:[#allocation15 + $0x58] sm:$0xff] %v10595_v58 }
0x199e   :  { %10623 = vst [vmem:[#allocation15 + $0x48] sm:$0xff] %v10587_v53 }
0x19a8   :  { %v12157_v7 = vpop.f32.mrb[12].mxu1 }
0x19a9   :  { %v10608_v62 = vadd.f32 %v12157_v7, %v10998_v37  ;;  %v10599_v33 = vpop.f32.mrb[13].mxu1 }
0x19aa   :  { %v10600_v35 = vadd.f32 %v10998_v37, %v10599_v33  ;;  %v12158_v42 = vpop.f32.mrb[14].mxu1 }
0x19ab   :  { %10628 = vst [vmem:[#allocation15 + $0x70] sm:$0xff] %v10608_v62  ;;  %v10611_v40 = vadd.f32 %v12158_v42, %v10998_v37  ;;  %v10602_v2 = vpop.f32.mrb[15].mxu1 }
0x19ac   :  { %10626 = vst [vmem:[#allocation15 + $0x60] sm:$0xff] %v10600_v35  ;;  %v10603_v6 = vadd.f32 %v10998_v37, %v10602_v2 }
0x19ad   :  { %10629 = vst [vmem:[#allocation15 + $0x78] sm:$0xff] %v10611_v40 }
0x19ae   :  { %10627 = vst [vmem:[#allocation15 + $0x68] sm:$0xff] %v10603_v6 }
0x19af   :  { %13651 = shalt.err (!%p13648_p4)
}
0x19b0   :  { %s13652_s23 = scalar_lea.hbm %s17176_s15, 2048 }
0x19b1   :  { %p13653_p5 = scmp.ne.s32.totalorder %s17176_s15, %s13652_s23  ;;  %p13656_p6 = scmp.lt.u32.totalorder %s13652_s23, %s17176_s15 }
0x19b3   :  { %p13658_p7 = pnand %p13656_p6, %p13653_p5 }
0x19b5   :  { %13661 = shalt.err (!%p13658_p7)
}
0x19b6   :  { %s17366_s8 = smov 128  }
0x19b7   :  { %10641 = dma.vmem_to_hbm [thread:$0]  %s10636_s13, 2048, %s17176_s15, [#allocation5], %s17366_s8, %s17366_s8, %s13674_s29  }
0x19b8   :  { %13670 = dma.done.wait [#allocation5], 2048  }
0x19b9   :  { %13671 = vsyncadd [#allocation5], 4294965248 }
0x19ba   :  { %10645 = vsyncpa [#allocation4], 1 }
0x19bb   :  { %10646 = vsyncpa [#allocation7], 1 }
0x19bc   :  { %10647 = vsyncpa [#allocation10], 1 }
0x19bd   :  { %10648 = vsyncpa [#allocation13], 1 }
0x19be   :  { %10649 = vsyncpa [#allocation5], 1 }

</bundles_post_ra>
